<compile_context>
chip_gen: v6e
topology: v6e:2x2x1
jax: 0.10.0
libtpu: 0.0.40
codegen_flags: <defaults>
</compile_context>

<pallas_src>
import functools

import jax
import jax.numpy as jnp
from jax.experimental import pallas as pl
from jax.experimental.pallas import tpu as pltpu

NEG_SLOPE = 0.01   # nn.LeakyReLU default negative_slope
GCN_ALPHA = 0.05   # mixprop retain ratio
GCN_DEPTH = 1      # gc_depth default in the module


def _leaky(y):
    return jnp.where(y >= 0, y, NEG_SLOPE * y)


# -----------------------------------------------------------------------------
# Fused per-level kernel.  One grid step processes a block of B_blk batch elements.
#   low_ref/high_ref : (B_blk, T, 1, N)  wavelet low/high band
#   at_ref           : (N, N) bf16       transpose of (1-alpha)*row-normalized adjacency
#   w1_ref (2, C, 1), b1_ref (C, 1)      1x1 input conv
#   wmix_ref (C, C) bf16, bmix_ref (1, C)  GCN channel mix
#   w3_ref (C, 9*n_out) bf16, b3_ref (n_out, 1)  packed 3x3 generate conv(s)
#                                        column k = g*n_out + o, g = 3*node_tap + time_tap
#   out_ref          : (B_blk, T, n_out, N)
#   ppad_ref         : VMEM scratch (B_blk, T+2, 9*n_out, N+2) f32 (zero-halo tap maps)
# NOTE: N and C are assumed multiples of 8 (toy N=8) so in-kernel reshapes are clean
#       sublane merges/splits.
# -----------------------------------------------------------------------------
def _level_kernel(low_ref, high_ref, at_ref, w1_ref, b1_ref, wmix_ref, bmix_ref,
                  w3_ref, b3_ref, out_ref, ppad_ref, *, depth, alpha, n_out):
    b_blk, t_l, _, n = low_ref.shape
    c = wmix_ref.shape[0]
    k_taps = w3_ref.shape[1]              # 9 * n_out

    # ---- 1x1 input conv + LeakyReLU in node-major layout (B, T, C, N): pure VPU FMAs.
    low = low_ref[...]                    # (B, T, 1, N)
    high = high_ref[...]
    feat = _leaky(low * w1_ref[0] + high * w1_ref[1] + b1_ref[...])   # (B, T, C, N) f32

    # ---- mixprop GCN hop(s): single bf16 MXU matmul per hop, (B*T*C, N) x (N, N).
    # TODO(synk): canonical mixprop concatenates all hop outputs before the 1x1 mix;
    #             identical for gc_depth=1 (the module default).
    a_t = at_ref[...]                     # (N, N) bf16, already transposed & (1-alpha)-scaled
    af = alpha * feat
    h = feat
    for _ in range(depth):
        hb = h.astype(jnp.bfloat16).reshape(b_blk * t_l * c, n)
        hop = jnp.dot(hb, a_t, preferred_element_type=jnp.float32)
        h = af + hop.reshape(b_blk, t_l, c, n)

    # ---- single relayout node-major -> channel-major, then channel mix + LeakyReLU
    #      as one big (M, C) x (C, C) bf16 MXU matmul, M = B_blk*T*N.
    h_t = jnp.swapaxes(h, 2, 3)                               # (B, T, N, C)
    h2 = h_t.reshape(b_blk * t_l * n, c)
    latent = _leaky(jnp.dot(h2.astype(jnp.bfloat16), wmix_ref[...],
                            preferred_element_type=jnp.float32) + bmix_ref[...])

    # ---- 3x3 generate conv(s): ONE (M, C) x (C, 9*n_out) MXU matmul, then combine the 9
    #      tap maps with shifted adds on a small zero-halo scratch (lane dim = N).
    p = jnp.dot(latent.astype(jnp.bfloat16), w3_ref[...],
                preferred_element_type=jnp.float32)           # (M, 9*n_out)
    p_t = jnp.swapaxes(p.reshape(b_blk, t_l, n, k_taps), 2, 3)  # (B, T, 9*n_out, N)

    # zero only the 1-wide halo strips (time rows / node columns), then write the interior
    zrow = jnp.zeros((b_blk, 1, k_taps, n + 2), jnp.float32)
    zcol = jnp.zeros((b_blk, t_l + 2, k_taps, 1), jnp.float32)
    ppad_ref[:, 0:1, :, :] = zrow
    ppad_ref[:, t_l + 1:t_l + 2, :, :] = zrow
    ppad_ref[:, :, :, 0:1] = zcol
    ppad_ref[:, :, :, n + 1:n + 2] = zcol
    ppad_ref[:, 1:t_l + 1, :, 1:n + 1] = p_t

    full = ppad_ref[...]                                      # (B, T+2, 9*n_out, N+2)
    # hoist the node-axis shift: 3 node windows reused across the 3 time taps
    wins = [full[:, :, :, a:a + n] for a in range(3)]         # each (B, T+2, 9*n_out, N)

    acc = jnp.zeros((b_blk, t_l, n_out, n), jnp.float32)
    for a in range(3):            # node tap (conv H axis)
        wa = wins[a]
        for d in range(3):        # time tap (conv W axis)
            g = a * 3 + d
            acc = acc + wa[:, d:d + t_l, g * n_out:(g + 1) * n_out, :]
    out_ref[...] = _leaky(acc + b3_ref[...])                  # lane-dense (N on lanes) store


def process_level(low, high, a_t, p, *, n_out):
    """low/high: (B, T_l, N).  Returns (B, T_l, n_out, N) generated signals."""
    bsz, t_l, n = low.shape
    c = p["w1"].shape[1]
    k_taps = 9 * n_out

    if n_out == 2:
        w3_list = [p["w3h"], p["w3l"]]                        # o=0: high, o=1: low
        b3p = jnp.concatenate([p["b3h"], p["b3l"]]).reshape(n_out, 1)
    else:
        w3_list = [p["w3h"]]
        b3p = p["b3h"].reshape(n_out, 1)
    # pack generate-conv weights: column k = g*n_out + o, g = 3*node_tap + time_tap
    w3p = jnp.transpose(jnp.stack(w3_list, axis=-1), (1, 0, 2)).reshape(c, k_taps)
    w3p = w3p.astype(jnp.bfloat16)
    wmix = p["wmix"].astype(jnp.bfloat16)
    w1p = p["w1"][:, :, None]                                 # (2, C, 1)
    b1p = p["b1"].reshape(c, 1)                               # (C, 1)

    # Fold the batch into the matmul M dimension.  Keep 2 parallel grid steps when the
    # batch allows (v7x: one per TensorCore); otherwise a single fused step (v5e/v6e).
    nb = 2 if (bsz % 2 == 0 and bsz >= 4) else 1
    b_blk = bsz // nb

    kernel = functools.partial(_level_kernel, depth=GCN_DEPTH, alpha=GCN_ALPHA,
                               n_out=n_out)
    out = pl.pallas_call(
        kernel,
        out_shape=jax.ShapeDtypeStruct((bsz, t_l, n_out, n), jnp.float32),
        grid=(nb,),
        in_specs=[
            pl.BlockSpec((b_blk, t_l, 1, n), lambda b: (b, 0, 0, 0)),    # low
            pl.BlockSpec((b_blk, t_l, 1, n), lambda b: (b, 0, 0, 0)),    # high
            pl.BlockSpec((n, n), lambda b: (0, 0)),                      # A^T scaled (bf16)
            pl.BlockSpec((2, c, 1), lambda b: (0, 0, 0)),                # w1
            pl.BlockSpec((c, 1), lambda b: (0, 0)),                      # b1
            pl.BlockSpec((c, c), lambda b: (0, 0)),                      # wmix (bf16)
            pl.BlockSpec((1, c), lambda b: (0, 0)),                      # bmix
            pl.BlockSpec((c, k_taps), lambda b: (0, 0)),                 # packed 3x3 (bf16)
            pl.BlockSpec((n_out, 1), lambda b: (0, 0)),                  # 3x3 biases
        ],
        out_specs=pl.BlockSpec((b_blk, t_l, n_out, n), lambda b: (b, 0, 0, 0)),
        scratch_shapes=[pltpu.VMEM((b_blk, t_l + 2, k_taps, n + 2), jnp.float32)],
        compiler_params=pltpu.CompilerParams(
            dimension_semantics=("parallel",),
            vmem_limit_bytes=64 * 1024 * 1024),
    )(low[:, :, None, :], high[:, :, None, :], a_t,
      w1p, b1p, wmix, p["bmix"], w3p, b3p)
    return out                                                 # (B, T_l, n_out, N)


# -----------------------------------------------------------------------------
# Cheap wavelet glue (Haar DWT / IDWT along time), kept in plain JAX.
# -----------------------------------------------------------------------------
_INV_SQRT2 = 2.0 ** -0.5


def haar_dwt_step(x):                     # x: (B, T, N) -> low, high: (B, T//2, N)
    even, odd = x[:, 0::2, :], x[:, 1::2, :]
    return (even + odd) * _INV_SQRT2, (even - odd) * _INV_SQRT2


def wave_decompose(x, levels=3):
    out, low = [], x
    for _ in range(levels):
        low, high = haar_dwt_step(low)
        out.append((low, high))
    return out


def haar_idwt(low, high):                 # (B, T_l, N) each -> (B, 2*T_l, N)
    even = (low + high) * _INV_SQRT2
    odd = (low - high) * _INV_SQRT2
    stacked = jnp.stack([even, odd], axis=2)          # (B, T_l, 2, N)
    return stacked.reshape(low.shape[0], -1, low.shape[2])


# -----------------------------------------------------------------------------
# Full forward pass.
# -----------------------------------------------------------------------------
def multi_wave_gcunet_forward(x, idx, params):
    """x: (B, T, N).  Returns the 5 (target, prediction) pairs of the module."""
    # TODO(synk): nn.Embedding(idx) selects adjacency rows only; assumes idx == arange(N)
    #             as in the reference usage.
    adj = params["adjacency"][idx]                     # (N, N)
    n = adj.shape[-1]
    a_hat = adj + jnp.eye(n, dtype=adj.dtype)          # self-loops + row normalization
    adj_norm = a_hat / jnp.sum(a_hat, axis=1, keepdims=True)
    # fold (1 - alpha) into the adjacency and pre-transpose for the (B*T*C, N) hop matmul
    a_t = ((1.0 - GCN_ALPHA) * adj_norm).T.astype(jnp.bfloat16)

    (low1, high1), (low2, high2), (low3, high3) = wave_decompose(x, 3)

    o1 = process_level(low1, high1, a_t, params["lvl1"], n_out=1)    # (B, T/2, 1, N)
    o2 = process_level(low2, high2, a_t, params["lvl2"], n_out=1)    # (B, T/4, 1, N)
    o3 = process_level(low3, high3, a_t, params["lvl3"], n_out=2)    # (B, T/8, 2, N)
    gh1 = o1[:, :, 0, :]
    gh2 = o2[:, :, 0, :]
    gh3 = o3[:, :, 0, :]
    gl3 = o3[:, :, 1, :]

    gl2 = haar_idwt(gl3, gh3)
    gl1 = haar_idwt(gl2, gh2)
    recons = haar_idwt(gl1, gh1)

    return [
        (low3, gl3),
        (high3, gh3),
        (high2, gh2),
        (high1, gh1),
        (x, recons),
    ]


# -----------------------------------------------------------------------------
# Deterministic synthetic parameters (no checkpoint load).
# -----------------------------------------------------------------------------
def init_params(key, num_nodes, filters=(32, 64, 128)):
    ks = jax.random.split(key, 26)
    adj = (jax.random.uniform(ks[0], (num_nodes, num_nodes)) < 0.4).astype(jnp.float32)
    adj = jnp.maximum(adj, adj.T)
    params = {"adjacency": adj}
    ki = 1
    for lvl, c in enumerate(filters, start=1):
        params[f"lvl{lvl}"] = {
            "w1": 0.3 * jax.random.normal(ks[ki + 0], (2, c), jnp.float32),
            "b1": 0.1 * jax.random.normal(ks[ki + 1], (1, c), jnp.float32),
            "wmix": (1.0 / jnp.sqrt(c)) * jax.random.normal(ks[ki + 2], (c, c), jnp.float32),
            "bmix": 0.1 * jax.random.normal(ks[ki + 3], (1, c), jnp.float32),
            # 3x3 generate-conv weights, row g = 3*node_tap + time_tap = torch_w[0, :, a, d]
            "w3h": (0.2 / jnp.sqrt(c)) * jax.random.normal(ks[ki + 4], (9, c), jnp.float32),
            "b3h": 0.1 * jax.random.normal(ks[ki + 5], (1,), jnp.float32),
        }
        ki += 6
    c3 = filters[2]
    params["lvl3"]["w3l"] = (0.2 / jnp.sqrt(c3)) * jax.random.normal(ks[ki], (9, c3), jnp.float32)
    params["lvl3"]["b3l"] = 0.1 * jax.random.normal(ks[ki + 1], (1,), jnp.float32)
    return params


if __name__ == "__main__":
    B, T, N = 2, 16, 8          # batch, sequence length (3 DWT levels -> T % 8 == 0), nodes
    key = jax.random.PRNGKey(0)
    kx, _ = jax.random.split(key)
    x = jax.random.normal(kx, (B, T, N), jnp.float32)
    idx = jnp.arange(N, dtype=jnp.int32)
    params = init_params(jax.random.PRNGKey(42), N, filters=(32, 64, 128))

    fwd = jax.jit(multi_wave_gcunet_forward)
    outs = fwd(x, idx, params)
    jax.block_until_ready(outs)

    # sanity: shapes of the 5 loss pairs
    assert outs[0][0].shape == (B, T // 8, N) and outs[0][1].shape == (B, T // 8, N)
    assert outs[1][1].shape == (B, T // 8, N)
    assert outs[2][1].shape == (B, T // 4, N)
    assert outs[3][1].shape == (B, T // 2, N)
    assert outs[4][0].shape == (B, T, N) and outs[4][1].shape == (B, T, N)
    print("KERNEL_OK")
</pallas_src>

<mosaic_0001>
module attributes {stable_mosaic.version = 11 : i64} {
  func.func @_level_kernel(%arg0: i32, %arg1: memref<2x2x1x8xf32, #tpu.memory_space<vmem>>, %arg2: memref<2x2x1x8xf32, #tpu.memory_space<vmem>>, %arg3: memref<8x8xbf16, #tpu.memory_space<vmem>>, %arg4: memref<2x128x1xf32, #tpu.memory_space<vmem>>, %arg5: memref<128x1xf32, #tpu.memory_space<vmem>>, %arg6: memref<128x128xbf16, #tpu.memory_space<vmem>>, %arg7: memref<1x128xf32, #tpu.memory_space<vmem>>, %arg8: memref<128x18xbf16, #tpu.memory_space<vmem>>, %arg9: memref<2x1xf32, #tpu.memory_space<vmem>>, %arg10: memref<2x2x2x8xf32, #tpu.memory_space<vmem>>, %arg11: memref<2x4x18x10xf32, #tpu.memory_space<vmem>>) attributes {dimension_semantics = [#tpu.dimension_semantics<parallel>], iteration_bounds = array<i64: 1>, scalar_prefetch = 0 : i64, scratch_operands = 1 : i64, tpu.core_type = #tpu.core_type<tc>, window_params = [{transform_indices = @transform_0, window_bounds = array<i64: 2, 2, 1, 8>}, {transform_indices = @transform_1, window_bounds = array<i64: 2, 2, 1, 8>}, {pipeline_mode = #tpu.pipeline_mode<synchronous>, transform_indices = @transform_2, window_bounds = array<i64: 8, 8>}, {pipeline_mode = #tpu.pipeline_mode<synchronous>, transform_indices = @transform_3, window_bounds = array<i64: 2, 128, 1>}, {pipeline_mode = #tpu.pipeline_mode<synchronous>, transform_indices = @transform_4, window_bounds = array<i64: 128, 1>}, {pipeline_mode = #tpu.pipeline_mode<synchronous>, transform_indices = @transform_5, window_bounds = array<i64: 128, 128>}, {pipeline_mode = #tpu.pipeline_mode<synchronous>, transform_indices = @transform_6, window_bounds = array<i64: 1, 128>}, {pipeline_mode = #tpu.pipeline_mode<synchronous>, transform_indices = @transform_7, window_bounds = array<i64: 128, 18>}, {pipeline_mode = #tpu.pipeline_mode<synchronous>, transform_indices = @transform_8, window_bounds = array<i64: 2, 1>}, {transform_indices = @transform_9, window_bounds = array<i64: 2, 2, 2, 8>}]} {
    %c0 = arith.constant 0 : index
    %c0_0 = arith.constant 0 : index
    %c0_1 = arith.constant 0 : index
    %c0_2 = arith.constant 0 : index
    %0 = vector.load %arg1[%c0, %c0_0, %c0_1, %c0_2] : memref<2x2x1x8xf32, #tpu.memory_space<vmem>>, vector<2x2x1x8xf32>
    %c0_3 = arith.constant 0 : index
    %c0_4 = arith.constant 0 : index
    %c0_5 = arith.constant 0 : index
    %c0_6 = arith.constant 0 : index
    %1 = vector.load %arg2[%c0_3, %c0_4, %c0_5, %c0_6] : memref<2x2x1x8xf32, #tpu.memory_space<vmem>>, vector<2x2x1x8xf32>
    %c0_7 = arith.constant 0 : index
    %c0_8 = arith.constant 0 : index
    %c0_9 = arith.constant 0 : index
    %2 = vector.load %arg4[%c0_7, %c0_8, %c0_9] : memref<2x128x1xf32, #tpu.memory_space<vmem>>, vector<1x128x1xf32>
    %3 = vector.shape_cast %2 : vector<1x128x1xf32> to vector<128x1xf32>
    %4 = vector.shape_cast %3 : vector<128x1xf32> to vector<1x1x128x1xf32>
    %5 = vector.broadcast %0 : vector<2x2x1x8xf32> to vector<2x2x128x8xf32>
    %6 = vector.broadcast %4 : vector<1x1x128x1xf32> to vector<2x2x128x8xf32>
    %7 = arith.mulf %5, %6 : vector<2x2x128x8xf32>
    %c1 = arith.constant 1 : index
    %c0_10 = arith.constant 0 : index
    %c0_11 = arith.constant 0 : index
    %8 = vector.load %arg4[%c1, %c0_10, %c0_11] : memref<2x128x1xf32, #tpu.memory_space<vmem>>, vector<1x128x1xf32>
    %9 = vector.shape_cast %8 : vector<1x128x1xf32> to vector<128x1xf32>
    %10 = vector.shape_cast %9 : vector<128x1xf32> to vector<1x1x128x1xf32>
    %11 = vector.broadcast %1 : vector<2x2x1x8xf32> to vector<2x2x128x8xf32>
    %12 = vector.broadcast %10 : vector<1x1x128x1xf32> to vector<2x2x128x8xf32>
    %13 = arith.mulf %11, %12 : vector<2x2x128x8xf32>
    %14 = arith.addf %7, %13 : vector<2x2x128x8xf32>
    %c0_12 = arith.constant 0 : index
    %c0_13 = arith.constant 0 : index
    %15 = vector.load %arg5[%c0_12, %c0_13] : memref<128x1xf32, #tpu.memory_space<vmem>>, vector<128x1xf32>
    %16 = vector.shape_cast %15 : vector<128x1xf32> to vector<1x1x128x1xf32>
    %17 = vector.broadcast %16 : vector<1x1x128x1xf32> to vector<2x2x128x8xf32>
    %18 = arith.addf %14, %17 : vector<2x2x128x8xf32>
    %cst = arith.constant 0.000000e+00 : f32
    %19 = vector.broadcast %cst : f32 to vector<2x2x128x8xf32>
    %20 = arith.cmpf oge, %18, %19 : vector<2x2x128x8xf32>
    %cst_14 = arith.constant 0.00999999977 : f32
    %21 = vector.broadcast %cst_14 : f32 to vector<2x2x128x8xf32>
    %22 = arith.mulf %21, %18 : vector<2x2x128x8xf32>
    %23 = arith.select %20, %18, %22 : vector<2x2x128x8xi1>, vector<2x2x128x8xf32>
    %c0_15 = arith.constant 0 : index
    %c0_16 = arith.constant 0 : index
    %24 = vector.load %arg3[%c0_15, %c0_16] : memref<8x8xbf16, #tpu.memory_space<vmem>>, vector<8x8xbf16>
    %cst_17 = arith.constant 5.000000e-02 : f32
    %25 = vector.broadcast %cst_17 : f32 to vector<2x2x128x8xf32>
    %26 = arith.mulf %25, %23 : vector<2x2x128x8xf32>
    %27 = arith.truncf %23 : vector<2x2x128x8xf32> to vector<2x2x128x8xbf16>
    %28 = vector.shape_cast %27 : vector<2x2x128x8xbf16> to vector<512x8xbf16>
    %cst_18 = arith.constant dense<0.000000e+00> : vector<512x8xf32>
    %29 = tpu.matmul %28, %24, %cst_18 {dimension_numbers = #tpu.dot_dimension_numbers<[1], [0], [0], [1], [0, 0, 1, 1], [], []>} : vector<512x8xbf16>, vector<8x8xbf16>, vector<512x8xf32> -> vector<512x8xf32>
    %30 = vector.shape_cast %29 : vector<512x8xf32> to vector<2x2x128x8xf32>
    %31 = arith.addf %26, %30 : vector<2x2x128x8xf32>
    %32 = tpu.transpose %31, [0, 1, 3, 2] : vector<2x2x128x8xf32> -> vector<2x2x8x128xf32>
    %33 = vector.shape_cast %32 : vector<2x2x8x128xf32> to vector<32x128xf32>
    %34 = arith.truncf %33 : vector<32x128xf32> to vector<32x128xbf16>
    %c0_19 = arith.constant 0 : index
    %c0_20 = arith.constant 0 : index
    %35 = vector.load %arg6[%c0_19, %c0_20] : memref<128x128xbf16, #tpu.memory_space<vmem>>, vector<128x128xbf16>
    %cst_21 = arith.constant dense<0.000000e+00> : vector<32x128xf32>
    %36 = tpu.matmul %34, %35, %cst_21 {dimension_numbers = #tpu.dot_dimension_numbers<[1], [0], [0], [1], [0, 0, 1, 1], [], []>} : vector<32x128xbf16>, vector<128x128xbf16>, vector<32x128xf32> -> vector<32x128xf32>
    %c0_22 = arith.constant 0 : index
    %c0_23 = arith.constant 0 : index
    %37 = vector.load %arg7[%c0_22, %c0_23] : memref<1x128xf32, #tpu.memory_space<vmem>>, vector<1x128xf32>
    %38 = vector.broadcast %37 : vector<1x128xf32> to vector<32x128xf32>
    %39 = arith.addf %36, %38 : vector<32x128xf32>
    %cst_24 = arith.constant 0.000000e+00 : f32
    %40 = vector.broadcast %cst_24 : f32 to vector<32x128xf32>
    %41 = arith.cmpf oge, %39, %40 : vector<32x128xf32>
    %cst_25 = arith.constant 0.00999999977 : f32
    %42 = vector.broadcast %cst_25 : f32 to vector<32x128xf32>
    %43 = arith.mulf %42, %39 : vector<32x128xf32>
    %44 = arith.select %41, %39, %43 : vector<32x128xi1>, vector<32x128xf32>
    %45 = arith.truncf %44 : vector<32x128xf32> to vector<32x128xbf16>
    %c0_26 = arith.constant 0 : index
    %c0_27 = arith.constant 0 : index
    %46 = vector.load %arg8[%c0_26, %c0_27] : memref<128x18xbf16, #tpu.memory_space<vmem>>, vector<128x18xbf16>
    %cst_28 = arith.constant dense<0.000000e+00> : vector<32x18xf32>
    %47 = tpu.matmul %45, %46, %cst_28 {dimension_numbers = #tpu.dot_dimension_numbers<[1], [0], [0], [1], [0, 0, 1, 1], [], []>} : vector<32x128xbf16>, vector<128x18xbf16>, vector<32x18xf32> -> vector<32x18xf32>
    %48 = vector.shape_cast %47 : vector<32x18xf32> to vector<2x2x8x18xf32>
    %49 = tpu.transpose %48, [0, 1, 3, 2] : vector<2x2x8x18xf32> -> vector<2x2x18x8xf32>
    %cst_29 = arith.constant 0.000000e+00 : f32
    %50 = vector.broadcast %cst_29 : f32 to vector<2x1x18x10xf32>
    %cst_30 = arith.constant 0.000000e+00 : f32
    %51 = vector.broadcast %cst_30 : f32 to vector<2x4x18x1xf32>
    %c0_31 = arith.constant 0 : index
    %c0_32 = arith.constant 0 : index
    %c0_33 = arith.constant 0 : index
    %c0_34 = arith.constant 0 : index
    %52 = vector.load %arg11[%c0_31, %c0_32, %c0_33, %c0_34] : memref<2x4x18x10xf32, #tpu.memory_space<vmem>>, vector<2x1x18x10xf32>
    tpu.vector_store %arg11[%c0_31, %c0_32, %c0_33, %c0_34], %50 {strides = array<i32>} : memref<2x4x18x10xf32, #tpu.memory_space<vmem>>, vector<2x1x18x10xf32>,
    %c0_35 = arith.constant 0 : index
    %c3 = arith.constant 3 : index
    %c0_36 = arith.constant 0 : index
    %c0_37 = arith.constant 0 : index
    %53 = vector.load %arg11[%c0_35, %c3, %c0_36, %c0_37] : memref<2x4x18x10xf32, #tpu.memory_space<vmem>>, vector<2x1x18x10xf32>
    tpu.vector_store %arg11[%c0_35, %c3, %c0_36, %c0_37], %50 {strides = array<i32>} : memref<2x4x18x10xf32, #tpu.memory_space<vmem>>, vector<2x1x18x10xf32>,
    %c0_38 = arith.constant 0 : index
    %c0_39 = arith.constant 0 : index
    %c0_40 = arith.constant 0 : index
    %c0_41 = arith.constant 0 : index
    %54 = vector.load %arg11[%c0_38, %c0_39, %c0_40, %c0_41] : memref<2x4x18x10xf32, #tpu.memory_space<vmem>>, vector<2x4x18x1xf32>
    tpu.vector_store %arg11[%c0_38, %c0_39, %c0_40, %c0_41], %51 {strides = array<i32>} : memref<2x4x18x10xf32, #tpu.memory_space<vmem>>, vector<2x4x18x1xf32>,
    %c0_42 = arith.constant 0 : index
    %c0_43 = arith.constant 0 : index
    %c0_44 = arith.constant 0 : index
    %c9 = arith.constant 9 : index
    %55 = vector.load %arg11[%c0_42, %c0_43, %c0_44, %c9] : memref<2x4x18x10xf32, #tpu.memory_space<vmem>>, vector<2x4x18x1xf32>
    tpu.vector_store %arg11[%c0_42, %c0_43, %c0_44, %c9], %51 {strides = array<i32>} : memref<2x4x18x10xf32, #tpu.memory_space<vmem>>, vector<2x4x18x1xf32>,
    %c0_45 = arith.constant 0 : index
    %c1_46 = arith.constant 1 : index
    %c0_47 = arith.constant 0 : index
    %c1_48 = arith.constant 1 : index
    %56 = vector.load %arg11[%c0_45, %c1_46, %c0_47, %c1_48] : memref<2x4x18x10xf32, #tpu.memory_space<vmem>>, vector<2x2x18x8xf32>
    tpu.vector_store %arg11[%c0_45, %c1_46, %c0_47, %c1_48], %49 {strides = array<i32>} : memref<2x4x18x10xf32, #tpu.memory_space<vmem>>, vector<2x2x18x8xf32>,
    %c0_49 = arith.constant 0 : index
    %c0_50 = arith.constant 0 : index
    %c0_51 = arith.constant 0 : index
    %c0_52 = arith.constant 0 : index
    %57 = vector.load %arg11[%c0_49, %c0_50, %c0_51, %c0_52] : memref<2x4x18x10xf32, #tpu.memory_space<vmem>>, vector<2x4x18x10xf32>
    %58 = vector.extract_strided_slice %57 {offsets = [0, 0, 0, 0], sizes = [2, 4, 18, 8], strides = [1, 1, 1, 1]} : vector<2x4x18x10xf32> to vector<2x4x18x8xf32>
    %59 = vector.extract_strided_slice %57 {offsets = [0, 0, 0, 1], sizes = [2, 4, 18, 8], strides = [1, 1, 1, 1]} : vector<2x4x18x10xf32> to vector<2x4x18x8xf32>
    %60 = vector.extract_strided_slice %57 {offsets = [0, 0, 0, 2], sizes = [2, 4, 18, 8], strides = [1, 1, 1, 1]} : vector<2x4x18x10xf32> to vector<2x4x18x8xf32>
    %cst_53 = arith.constant 0.000000e+00 : f32
    %61 = vector.broadcast %cst_53 : f32 to vector<2x2x2x8xf32>
    %62 = vector.extract_strided_slice %58 {offsets = [0, 0, 0, 0], sizes = [2, 2, 2, 8], strides = [1, 1, 1, 1]} : vector<2x4x18x8xf32> to vector<2x2x2x8xf32>
    %63 = arith.addf %61, %62 : vector<2x2x2x8xf32>
    %64 = vector.extract_strided_slice %58 {offsets = [0, 1, 2, 0], sizes = [2, 2, 2, 8], strides = [1, 1, 1, 1]} : vector<2x4x18x8xf32> to vector<2x2x2x8xf32>
    %65 = arith.addf %63, %64 : vector<2x2x2x8xf32>
    %66 = vector.extract_strided_slice %58 {offsets = [0, 2, 4, 0], sizes = [2, 2, 2, 8], strides = [1, 1, 1, 1]} : vector<2x4x18x8xf32> to vector<2x2x2x8xf32>
    %67 = arith.addf %65, %66 : vector<2x2x2x8xf32>
    %68 = vector.extract_strided_slice %59 {offsets = [0, 0, 6, 0], sizes = [2, 2, 2, 8], strides = [1, 1, 1, 1]} : vector<2x4x18x8xf32> to vector<2x2x2x8xf32>
    %69 = arith.addf %67, %68 : vector<2x2x2x8xf32>
    %70 = vector.extract_strided_slice %59 {offsets = [0, 1, 8, 0], sizes = [2, 2, 2, 8], strides = [1, 1, 1, 1]} : vector<2x4x18x8xf32> to vector<2x2x2x8xf32>
    %71 = arith.addf %69, %70 : vector<2x2x2x8xf32>
    %72 = vector.extract_strided_slice %59 {offsets = [0, 2, 10, 0], sizes = [2, 2, 2, 8], strides = [1, 1, 1, 1]} : vector<2x4x18x8xf32> to vector<2x2x2x8xf32>
    %73 = arith.addf %71, %72 : vector<2x2x2x8xf32>
    %74 = vector.extract_strided_slice %60 {offsets = [0, 0, 12, 0], sizes = [2, 2, 2, 8], strides = [1, 1, 1, 1]} : vector<2x4x18x8xf32> to vector<2x2x2x8xf32>
    %75 = arith.addf %73, %74 : vector<2x2x2x8xf32>
    %76 = vector.extract_strided_slice %60 {offsets = [0, 1, 14, 0], sizes = [2, 2, 2, 8], strides = [1, 1, 1, 1]} : vector<2x4x18x8xf32> to vector<2x2x2x8xf32>
    %77 = arith.addf %75, %76 : vector<2x2x2x8xf32>
    %78 = vector.extract_strided_slice %60 {offsets = [0, 2, 16, 0], sizes = [2, 2, 2, 8], strides = [1, 1, 1, 1]} : vector<2x4x18x8xf32> to vector<2x2x2x8xf32>
    %79 = arith.addf %77, %78 : vector<2x2x2x8xf32>
    %c0_54 = arith.constant 0 : index
    %c0_55 = arith.constant 0 : index
    %80 = vector.load %arg9[%c0_54, %c0_55] : memref<2x1xf32, #tpu.memory_space<vmem>>, vector<2x1xf32>
    %81 = vector.shape_cast %80 : vector<2x1xf32> to vector<1x1x2x1xf32>
    %82 = vector.broadcast %81 : vector<1x1x2x1xf32> to vector<2x2x2x8xf32>
    %83 = arith.addf %79, %82 : vector<2x2x2x8xf32>
    %cst_56 = arith.constant 0.000000e+00 : f32
    %84 = vector.broadcast %cst_56 : f32 to vector<2x2x2x8xf32>
    %85 = arith.cmpf oge, %83, %84 : vector<2x2x2x8xf32>
    %cst_57 = arith.constant 0.00999999977 : f32
    %86 = vector.broadcast %cst_57 : f32 to vector<2x2x2x8xf32>
    %87 = arith.mulf %86, %83 : vector<2x2x2x8xf32>
    %88 = arith.select %85, %83, %87 : vector<2x2x2x8xi1>, vector<2x2x2x8xf32>
    %c0_58 = arith.constant 0 : index
    %c0_59 = arith.constant 0 : index
    %c0_60 = arith.constant 0 : index
    %c0_61 = arith.constant 0 : index
    %89 = vector.load %arg10[%c0_58, %c0_59, %c0_60, %c0_61] : memref<2x2x2x8xf32, #tpu.memory_space<vmem>>, vector<2x2x2x8xf32>
    tpu.vector_store %arg10[%c0_58, %c0_59, %c0_60, %c0_61], %88 {strides = array<i32>} : memref<2x2x2x8xf32, #tpu.memory_space<vmem>>, vector<2x2x2x8xf32>,
    return
  }
  func.func @transform_0(%arg0: i32) -> (i32, i32, i32, i32) {
    %c0_i32 = arith.constant 0 : i32
    %c0_i32_0 = arith.constant 0 : i32
    %c0_i32_1 = arith.constant 0 : i32
    %c0_i32_2 = arith.constant 0 : i32
    return %arg0, %c0_i32, %c0_i32_0, %c0_i32_1 : i32, i32, i32, i32
  }
  func.func @transform_1(%arg0: i32) -> (i32, i32, i32, i32) {
    %c0_i32 = arith.constant 0 : i32
    %c0_i32_0 = arith.constant 0 : i32
    %c0_i32_1 = arith.constant 0 : i32
    %c0_i32_2 = arith.constant 0 : i32
    return %arg0, %c0_i32, %c0_i32_0, %c0_i32_1 : i32, i32, i32, i32
  }
  func.func @transform_2(%arg0: i32) -> (i32, i32) {
    %c0_i32 = arith.constant 0 : i32
    %c0_i32_0 = arith.constant 0 : i32
    %c0_i32_1 = arith.constant 0 : i32
    return %c0_i32, %c0_i32_0 : i32, i32
  }
  func.func @transform_3(%arg0: i32) -> (i32, i32, i32) {
    %c0_i32 = arith.constant 0 : i32
    %c0_i32_0 = arith.constant 0 : i32
    %c0_i32_1 = arith.constant 0 : i32
    %c0_i32_2 = arith.constant 0 : i32
    return %c0_i32, %c0_i32_0, %c0_i32_1 : i32, i32, i32
  }
  func.func @transform_4(%arg0: i32) -> (i32, i32) {
    %c0_i32 = arith.constant 0 : i32
    %c0_i32_0 = arith.constant 0 : i32
    %c0_i32_1 = arith.constant 0 : i32
    return %c0_i32, %c0_i32_0 : i32, i32
  }
  func.func @transform_5(%arg0: i32) -> (i32, i32) {
    %c0_i32 = arith.constant 0 : i32
    %c0_i32_0 = arith.constant 0 : i32
    %c0_i32_1 = arith.constant 0 : i32
    return %c0_i32, %c0_i32_0 : i32, i32
  }
  func.func @transform_6(%arg0: i32) -> (i32, i32) {
    %c0_i32 = arith.constant 0 : i32
    %c0_i32_0 = arith.constant 0 : i32
    %c0_i32_1 = arith.constant 0 : i32
    return %c0_i32, %c0_i32_0 : i32, i32
  }
  func.func @transform_7(%arg0: i32) -> (i32, i32) {
    %c0_i32 = arith.constant 0 : i32
    %c0_i32_0 = arith.constant 0 : i32
    %c0_i32_1 = arith.constant 0 : i32
    return %c0_i32, %c0_i32_0 : i32, i32
  }
  func.func @transform_8(%arg0: i32) -> (i32, i32) {
    %c0_i32 = arith.constant 0 : i32
    %c0_i32_0 = arith.constant 0 : i32
    %c0_i32_1 = arith.constant 0 : i32
    return %c0_i32, %c0_i32_0 : i32, i32
  }
  func.func @transform_9(%arg0: i32) -> (i32, i32, i32, i32) {
    %c0_i32 = arith.constant 0 : i32
    %c0_i32_0 = arith.constant 0 : i32
    %c0_i32_1 = arith.constant 0 : i32
    %c0_i32_2 = arith.constant 0 : i32
    return %arg0, %c0_i32, %c0_i32_0, %c0_i32_1 : i32, i32, i32, i32
  }
}

module attributes {stable_mosaic.version = 11 : i64} {
  func.func @_level_kernel(%arg0: i32, %arg1: memref<2x4x1x8xf32, #tpu.memory_space<vmem>>, %arg2: memref<2x4x1x8xf32, #tpu.memory_space<vmem>>, %arg3: memref<8x8xbf16, #tpu.memory_space<vmem>>, %arg4: memref<2x64x1xf32, #tpu.memory_space<vmem>>, %arg5: memref<64x1xf32, #tpu.memory_space<vmem>>, %arg6: memref<64x64xbf16, #tpu.memory_space<vmem>>, %arg7: memref<1x64xf32, #tpu.memory_space<vmem>>, %arg8: memref<64x9xbf16, #tpu.memory_space<vmem>>, %arg9: memref<1x1xf32, #tpu.memory_space<vmem>>, %arg10: memref<2x4x1x8xf32, #tpu.memory_space<vmem>>, %arg11: memref<2x6x9x10xf32, #tpu.memory_space<vmem>>) attributes {dimension_semantics = [#tpu.dimension_semantics<parallel>], iteration_bounds = array<i64: 1>, scalar_prefetch = 0 : i64, scratch_operands = 1 : i64, tpu.core_type = #tpu.core_type<tc>, window_params = [{transform_indices = @transform_0, window_bounds = array<i64: 2, 4, 1, 8>}, {transform_indices = @transform_1, window_bounds = array<i64: 2, 4, 1, 8>}, {pipeline_mode = #tpu.pipeline_mode<synchronous>, transform_indices = @transform_2, window_bounds = array<i64: 8, 8>}, {pipeline_mode = #tpu.pipeline_mode<synchronous>, transform_indices = @transform_3, window_bounds = array<i64: 2, 64, 1>}, {pipeline_mode = #tpu.pipeline_mode<synchronous>, transform_indices = @transform_4, window_bounds = array<i64: 64, 1>}, {pipeline_mode = #tpu.pipeline_mode<synchronous>, transform_indices = @transform_5, window_bounds = array<i64: 64, 64>}, {pipeline_mode = #tpu.pipeline_mode<synchronous>, transform_indices = @transform_6, window_bounds = array<i64: 1, 64>}, {pipeline_mode = #tpu.pipeline_mode<synchronous>, transform_indices = @transform_7, window_bounds = array<i64: 64, 9>}, {pipeline_mode = #tpu.pipeline_mode<synchronous>, transform_indices = @transform_8, window_bounds = array<i64: 1, 1>}, {transform_indices = @transform_9, window_bounds = array<i64: 2, 4, 1, 8>}]} {
    %c0 = arith.constant 0 : index
    %c0_0 = arith.constant 0 : index
    %c0_1 = arith.constant 0 : index
    %c0_2 = arith.constant 0 : index
    %0 = vector.load %arg1[%c0, %c0_0, %c0_1, %c0_2] : memref<2x4x1x8xf32, #tpu.memory_space<vmem>>, vector<2x4x1x8xf32>
    %c0_3 = arith.constant 0 : index
    %c0_4 = arith.constant 0 : index
    %c0_5 = arith.constant 0 : index
    %c0_6 = arith.constant 0 : index
    %1 = vector.load %arg2[%c0_3, %c0_4, %c0_5, %c0_6] : memref<2x4x1x8xf32, #tpu.memory_space<vmem>>, vector<2x4x1x8xf32>
    %c0_7 = arith.constant 0 : index
    %c0_8 = arith.constant 0 : index
    %c0_9 = arith.constant 0 : index
    %2 = vector.load %arg4[%c0_7, %c0_8, %c0_9] : memref<2x64x1xf32, #tpu.memory_space<vmem>>, vector<1x64x1xf32>
    %3 = vector.shape_cast %2 : vector<1x64x1xf32> to vector<64x1xf32>
    %4 = vector.shape_cast %3 : vector<64x1xf32> to vector<1x1x64x1xf32>
    %5 = vector.broadcast %0 : vector<2x4x1x8xf32> to vector<2x4x64x8xf32>
    %6 = vector.broadcast %4 : vector<1x1x64x1xf32> to vector<2x4x64x8xf32>
    %7 = arith.mulf %5, %6 : vector<2x4x64x8xf32>
    %c1 = arith.constant 1 : index
    %c0_10 = arith.constant 0 : index
    %c0_11 = arith.constant 0 : index
    %8 = vector.load %arg4[%c1, %c0_10, %c0_11] : memref<2x64x1xf32, #tpu.memory_space<vmem>>, vector<1x64x1xf32>
    %9 = vector.shape_cast %8 : vector<1x64x1xf32> to vector<64x1xf32>
    %10 = vector.shape_cast %9 : vector<64x1xf32> to vector<1x1x64x1xf32>
    %11 = vector.broadcast %1 : vector<2x4x1x8xf32> to vector<2x4x64x8xf32>
    %12 = vector.broadcast %10 : vector<1x1x64x1xf32> to vector<2x4x64x8xf32>
    %13 = arith.mulf %11, %12 : vector<2x4x64x8xf32>
    %14 = arith.addf %7, %13 : vector<2x4x64x8xf32>
    %c0_12 = arith.constant 0 : index
    %c0_13 = arith.constant 0 : index
    %15 = vector.load %arg5[%c0_12, %c0_13] : memref<64x1xf32, #tpu.memory_space<vmem>>, vector<64x1xf32>
    %16 = vector.shape_cast %15 : vector<64x1xf32> to vector<1x1x64x1xf32>
    %17 = vector.broadcast %16 : vector<1x1x64x1xf32> to vector<2x4x64x8xf32>
    %18 = arith.addf %14, %17 : vector<2x4x64x8xf32>
    %cst = arith.constant 0.000000e+00 : f32
    %19 = vector.broadcast %cst : f32 to vector<2x4x64x8xf32>
    %20 = arith.cmpf oge, %18, %19 : vector<2x4x64x8xf32>
    %cst_14 = arith.constant 0.00999999977 : f32
    %21 = vector.broadcast %cst_14 : f32 to vector<2x4x64x8xf32>
    %22 = arith.mulf %21, %18 : vector<2x4x64x8xf32>
    %23 = arith.select %20, %18, %22 : vector<2x4x64x8xi1>, vector<2x4x64x8xf32>
    %c0_15 = arith.constant 0 : index
    %c0_16 = arith.constant 0 : index
    %24 = vector.load %arg3[%c0_15, %c0_16] : memref<8x8xbf16, #tpu.memory_space<vmem>>, vector<8x8xbf16>
    %cst_17 = arith.constant 5.000000e-02 : f32
    %25 = vector.broadcast %cst_17 : f32 to vector<2x4x64x8xf32>
    %26 = arith.mulf %25, %23 : vector<2x4x64x8xf32>
    %27 = arith.truncf %23 : vector<2x4x64x8xf32> to vector<2x4x64x8xbf16>
    %28 = vector.shape_cast %27 : vector<2x4x64x8xbf16> to vector<512x8xbf16>
    %cst_18 = arith.constant dense<0.000000e+00> : vector<512x8xf32>
    %29 = tpu.matmul %28, %24, %cst_18 {dimension_numbers = #tpu.dot_dimension_numbers<[1], [0], [0], [1], [0, 0, 1, 1], [], []>} : vector<512x8xbf16>, vector<8x8xbf16>, vector<512x8xf32> -> vector<512x8xf32>
    %30 = vector.shape_cast %29 : vector<512x8xf32> to vector<2x4x64x8xf32>
    %31 = arith.addf %26, %30 : vector<2x4x64x8xf32>
    %32 = tpu.transpose %31, [0, 1, 3, 2] : vector<2x4x64x8xf32> -> vector<2x4x8x64xf32>
    %33 = vector.shape_cast %32 : vector<2x4x8x64xf32> to vector<64x64xf32>
    %34 = arith.truncf %33 : vector<64x64xf32> to vector<64x64xbf16>
    %c0_19 = arith.constant 0 : index
    %c0_20 = arith.constant 0 : index
    %35 = vector.load %arg6[%c0_19, %c0_20] : memref<64x64xbf16, #tpu.memory_space<vmem>>, vector<64x64xbf16>
    %cst_21 = arith.constant dense<0.000000e+00> : vector<64x64xf32>
    %36 = tpu.matmul %34, %35, %cst_21 {dimension_numbers = #tpu.dot_dimension_numbers<[1], [0], [0], [1], [0, 0, 1, 1], [], []>} : vector<64x64xbf16>, vector<64x64xbf16>, vector<64x64xf32> -> vector<64x64xf32>
    %c0_22 = arith.constant 0 : index
    %c0_23 = arith.constant 0 : index
    %37 = vector.load %arg7[%c0_22, %c0_23] : memref<1x64xf32, #tpu.memory_space<vmem>>, vector<1x64xf32>
    %38 = vector.broadcast %37 : vector<1x64xf32> to vector<64x64xf32>
    %39 = arith.addf %36, %38 : vector<64x64xf32>
    %cst_24 = arith.constant 0.000000e+00 : f32
    %40 = vector.broadcast %cst_24 : f32 to vector<64x64xf32>
    %41 = arith.cmpf oge, %39, %40 : vector<64x64xf32>
    %cst_25 = arith.constant 0.00999999977 : f32
    %42 = vector.broadcast %cst_25 : f32 to vector<64x64xf32>
    %43 = arith.mulf %42, %39 : vector<64x64xf32>
    %44 = arith.select %41, %39, %43 : vector<64x64xi1>, vector<64x64xf32>
    %45 = arith.truncf %44 : vector<64x64xf32> to vector<64x64xbf16>
    %c0_26 = arith.constant 0 : index
    %c0_27 = arith.constant 0 : index
    %46 = vector.load %arg8[%c0_26, %c0_27] : memref<64x9xbf16, #tpu.memory_space<vmem>>, vector<64x9xbf16>
    %cst_28 = arith.constant dense<0.000000e+00> : vector<64x9xf32>
    %47 = tpu.matmul %45, %46, %cst_28 {dimension_numbers = #tpu.dot_dimension_numbers<[1], [0], [0], [1], [0, 0, 1, 1], [], []>} : vector<64x64xbf16>, vector<64x9xbf16>, vector<64x9xf32> -> vector<64x9xf32>
    %48 = vector.shape_cast %47 : vector<64x9xf32> to vector<2x4x8x9xf32>
    %49 = tpu.transpose %48, [0, 1, 3, 2] : vector<2x4x8x9xf32> -> vector<2x4x9x8xf32>
    %cst_29 = arith.constant 0.000000e+00 : f32
    %50 = vector.broadcast %cst_29 : f32 to vector<2x1x9x10xf32>
    %cst_30 = arith.constant 0.000000e+00 : f32
    %51 = vector.broadcast %cst_30 : f32 to vector<2x6x9x1xf32>
    %c0_31 = arith.constant 0 : index
    %c0_32 = arith.constant 0 : index
    %c0_33 = arith.constant 0 : index
    %c0_34 = arith.constant 0 : index
    %52 = vector.load %arg11[%c0_31, %c0_32, %c0_33, %c0_34] : memref<2x6x9x10xf32, #tpu.memory_space<vmem>>, vector<2x1x9x10xf32>
    tpu.vector_store %arg11[%c0_31, %c0_32, %c0_33, %c0_34], %50 {strides = array<i32>} : memref<2x6x9x10xf32, #tpu.memory_space<vmem>>, vector<2x1x9x10xf32>,
    %c0_35 = arith.constant 0 : index
    %c5 = arith.constant 5 : index
    %c0_36 = arith.constant 0 : index
    %c0_37 = arith.constant 0 : index
    %53 = vector.load %arg11[%c0_35, %c5, %c0_36, %c0_37] : memref<2x6x9x10xf32, #tpu.memory_space<vmem>>, vector<2x1x9x10xf32>
    tpu.vector_store %arg11[%c0_35, %c5, %c0_36, %c0_37], %50 {strides = array<i32>} : memref<2x6x9x10xf32, #tpu.memory_space<vmem>>, vector<2x1x9x10xf32>,
    %c0_38 = arith.constant 0 : index
    %c0_39 = arith.constant 0 : index
    %c0_40 = arith.constant 0 : index
    %c0_41 = arith.constant 0 : index
    %54 = vector.load %arg11[%c0_38, %c0_39, %c0_40, %c0_41] : memref<2x6x9x10xf32, #tpu.memory_space<vmem>>, vector<2x6x9x1xf32>
    tpu.vector_store %arg11[%c0_38, %c0_39, %c0_40, %c0_41], %51 {strides = array<i32>} : memref<2x6x9x10xf32, #tpu.memory_space<vmem>>, vector<2x6x9x1xf32>,
    %c0_42 = arith.constant 0 : index
    %c0_43 = arith.constant 0 : index
    %c0_44 = arith.constant 0 : index
    %c9 = arith.constant 9 : index
    %55 = vector.load %arg11[%c0_42, %c0_43, %c0_44, %c9] : memref<2x6x9x10xf32, #tpu.memory_space<vmem>>, vector<2x6x9x1xf32>
    tpu.vector_store %arg11[%c0_42, %c0_43, %c0_44, %c9], %51 {strides = array<i32>} : memref<2x6x9x10xf32, #tpu.memory_space<vmem>>, vector<2x6x9x1xf32>,
    %c0_45 = arith.constant 0 : index
    %c1_46 = arith.constant 1 : index
    %c0_47 = arith.constant 0 : index
    %c1_48 = arith.constant 1 : index
    %56 = vector.load %arg11[%c0_45, %c1_46, %c0_47, %c1_48] : memref<2x6x9x10xf32, #tpu.memory_space<vmem>>, vector<2x4x9x8xf32>
    tpu.vector_store %arg11[%c0_45, %c1_46, %c0_47, %c1_48], %49 {strides = array<i32>} : memref<2x6x9x10xf32, #tpu.memory_space<vmem>>, vector<2x4x9x8xf32>,
    %c0_49 = arith.constant 0 : index
    %c0_50 = arith.constant 0 : index
    %c0_51 = arith.constant 0 : index
    %c0_52 = arith.constant 0 : index
    %57 = vector.load %arg11[%c0_49, %c0_50, %c0_51, %c0_52] : memref<2x6x9x10xf32, #tpu.memory_space<vmem>>, vector<2x6x9x10xf32>
    %58 = vector.extract_strided_slice %57 {offsets = [0, 0, 0, 0], sizes = [2, 6, 9, 8], strides = [1, 1, 1, 1]} : vector<2x6x9x10xf32> to vector<2x6x9x8xf32>
    %59 = vector.extract_strided_slice %57 {offsets = [0, 0, 0, 1], sizes = [2, 6, 9, 8], strides = [1, 1, 1, 1]} : vector<2x6x9x10xf32> to vector<2x6x9x8xf32>
    %60 = vector.extract_strided_slice %57 {offsets = [0, 0, 0, 2], sizes = [2, 6, 9, 8], strides = [1, 1, 1, 1]} : vector<2x6x9x10xf32> to vector<2x6x9x8xf32>
    %cst_53 = arith.constant 0.000000e+00 : f32
    %61 = vector.broadcast %cst_53 : f32 to vector<2x4x1x8xf32>
    %62 = vector.extract_strided_slice %58 {offsets = [0, 0, 0, 0], sizes = [2, 4, 1, 8], strides = [1, 1, 1, 1]} : vector<2x6x9x8xf32> to vector<2x4x1x8xf32>
    %63 = arith.addf %61, %62 : vector<2x4x1x8xf32>
    %64 = vector.extract_strided_slice %58 {offsets = [0, 1, 1, 0], sizes = [2, 4, 1, 8], strides = [1, 1, 1, 1]} : vector<2x6x9x8xf32> to vector<2x4x1x8xf32>
    %65 = arith.addf %63, %64 : vector<2x4x1x8xf32>
    %66 = vector.extract_strided_slice %58 {offsets = [0, 2, 2, 0], sizes = [2, 4, 1, 8], strides = [1, 1, 1, 1]} : vector<2x6x9x8xf32> to vector<2x4x1x8xf32>
    %67 = arith.addf %65, %66 : vector<2x4x1x8xf32>
    %68 = vector.extract_strided_slice %59 {offsets = [0, 0, 3, 0], sizes = [2, 4, 1, 8], strides = [1, 1, 1, 1]} : vector<2x6x9x8xf32> to vector<2x4x1x8xf32>
    %69 = arith.addf %67, %68 : vector<2x4x1x8xf32>
    %70 = vector.extract_strided_slice %59 {offsets = [0, 1, 4, 0], sizes = [2, 4, 1, 8], strides = [1, 1, 1, 1]} : vector<2x6x9x8xf32> to vector<2x4x1x8xf32>
    %71 = arith.addf %69, %70 : vector<2x4x1x8xf32>
    %72 = vector.extract_strided_slice %59 {offsets = [0, 2, 5, 0], sizes = [2, 4, 1, 8], strides = [1, 1, 1, 1]} : vector<2x6x9x8xf32> to vector<2x4x1x8xf32>
    %73 = arith.addf %71, %72 : vector<2x4x1x8xf32>
    %74 = vector.extract_strided_slice %60 {offsets = [0, 0, 6, 0], sizes = [2, 4, 1, 8], strides = [1, 1, 1, 1]} : vector<2x6x9x8xf32> to vector<2x4x1x8xf32>
    %75 = arith.addf %73, %74 : vector<2x4x1x8xf32>
    %76 = vector.extract_strided_slice %60 {offsets = [0, 1, 7, 0], sizes = [2, 4, 1, 8], strides = [1, 1, 1, 1]} : vector<2x6x9x8xf32> to vector<2x4x1x8xf32>
    %77 = arith.addf %75, %76 : vector<2x4x1x8xf32>
    %78 = vector.extract_strided_slice %60 {offsets = [0, 2, 8, 0], sizes = [2, 4, 1, 8], strides = [1, 1, 1, 1]} : vector<2x6x9x8xf32> to vector<2x4x1x8xf32>
    %79 = arith.addf %77, %78 : vector<2x4x1x8xf32>
    %c0_54 = arith.constant 0 : index
    %c0_55 = arith.constant 0 : index
    %80 = vector.load %arg9[%c0_54, %c0_55] : memref<1x1xf32, #tpu.memory_space<vmem>>, vector<1x1xf32>
    %81 = vector.shape_cast %80 : vector<1x1xf32> to vector<1x1x1x1xf32>
    %82 = vector.broadcast %81 : vector<1x1x1x1xf32> to vector<2x4x1x8xf32>
    %83 = arith.addf %79, %82 : vector<2x4x1x8xf32>
    %cst_56 = arith.constant 0.000000e+00 : f32
    %84 = vector.broadcast %cst_56 : f32 to vector<2x4x1x8xf32>
    %85 = arith.cmpf oge, %83, %84 : vector<2x4x1x8xf32>
    %cst_57 = arith.constant 0.00999999977 : f32
    %86 = vector.broadcast %cst_57 : f32 to vector<2x4x1x8xf32>
    %87 = arith.mulf %86, %83 : vector<2x4x1x8xf32>
    %88 = arith.select %85, %83, %87 : vector<2x4x1x8xi1>, vector<2x4x1x8xf32>
    %c0_58 = arith.constant 0 : index
    %c0_59 = arith.constant 0 : index
    %c0_60 = arith.constant 0 : index
    %c0_61 = arith.constant 0 : index
    %89 = vector.load %arg10[%c0_58, %c0_59, %c0_60, %c0_61] : memref<2x4x1x8xf32, #tpu.memory_space<vmem>>, vector<2x4x1x8xf32>
    tpu.vector_store %arg10[%c0_58, %c0_59, %c0_60, %c0_61], %88 {strides = array<i32>} : memref<2x4x1x8xf32, #tpu.memory_space<vmem>>, vector<2x4x1x8xf32>,
    return
  }
  func.func @transform_0(%arg0: i32) -> (i32, i32, i32, i32) {
    %c0_i32 = arith.constant 0 : i32
    %c0_i32_0 = arith.constant 0 : i32
    %c0_i32_1 = arith.constant 0 : i32
    %c0_i32_2 = arith.constant 0 : i32
    return %arg0, %c0_i32, %c0_i32_0, %c0_i32_1 : i32, i32, i32, i32
  }
  func.func @transform_1(%arg0: i32) -> (i32, i32, i32, i32) {
    %c0_i32 = arith.constant 0 : i32
    %c0_i32_0 = arith.constant 0 : i32
    %c0_i32_1 = arith.constant 0 : i32
    %c0_i32_2 = arith.constant 0 : i32
    return %arg0, %c0_i32, %c0_i32_0, %c0_i32_1 : i32, i32, i32, i32
  }
  func.func @transform_2(%arg0: i32) -> (i32, i32) {
    %c0_i32 = arith.constant 0 : i32
    %c0_i32_0 = arith.constant 0 : i32
    %c0_i32_1 = arith.constant 0 : i32
    return %c0_i32, %c0_i32_0 : i32, i32
  }
  func.func @transform_3(%arg0: i32) -> (i32, i32, i32) {
    %c0_i32 = arith.constant 0 : i32
    %c0_i32_0 = arith.constant 0 : i32
    %c0_i32_1 = arith.constant 0 : i32
    %c0_i32_2 = arith.constant 0 : i32
    return %c0_i32, %c0_i32_0, %c0_i32_1 : i32, i32, i32
  }
  func.func @transform_4(%arg0: i32) -> (i32, i32) {
    %c0_i32 = arith.constant 0 : i32
    %c0_i32_0 = arith.constant 0 : i32
    %c0_i32_1 = arith.constant 0 : i32
    return %c0_i32, %c0_i32_0 : i32, i32
  }
  func.func @transform_5(%arg0: i32) -> (i32, i32) {
    %c0_i32 = arith.constant 0 : i32
    %c0_i32_0 = arith.constant 0 : i32
    %c0_i32_1 = arith.constant 0 : i32
    return %c0_i32, %c0_i32_0 : i32, i32
  }
  func.func @transform_6(%arg0: i32) -> (i32, i32) {
    %c0_i32 = arith.constant 0 : i32
    %c0_i32_0 = arith.constant 0 : i32
    %c0_i32_1 = arith.constant 0 : i32
    return %c0_i32, %c0_i32_0 : i32, i32
  }
  func.func @transform_7(%arg0: i32) -> (i32, i32) {
    %c0_i32 = arith.constant 0 : i32
    %c0_i32_0 = arith.constant 0 : i32
    %c0_i32_1 = arith.constant 0 : i32
    return %c0_i32, %c0_i32_0 : i32, i32
  }
  func.func @transform_8(%arg0: i32) -> (i32, i32) {
    %c0_i32 = arith.constant 0 : i32
    %c0_i32_0 = arith.constant 0 : i32
    %c0_i32_1 = arith.constant 0 : i32
    return %c0_i32, %c0_i32_0 : i32, i32
  }
  func.func @transform_9(%arg0: i32) -> (i32, i32, i32, i32) {
    %c0_i32 = arith.constant 0 : i32
    %c0_i32_0 = arith.constant 0 : i32
    %c0_i32_1 = arith.constant 0 : i32
    %c0_i32_2 = arith.constant 0 : i32
    return %arg0, %c0_i32, %c0_i32_0, %c0_i32_1 : i32, i32, i32, i32
  }
}

module attributes {stable_mosaic.version = 11 : i64} {
  func.func @_level_kernel(%arg0: i32, %arg1: memref<2x8x1x8xf32, #tpu.memory_space<vmem>>, %arg2: memref<2x8x1x8xf32, #tpu.memory_space<vmem>>, %arg3: memref<8x8xbf16, #tpu.memory_space<vmem>>, %arg4: memref<2x32x1xf32, #tpu.memory_space<vmem>>, %arg5: memref<32x1xf32, #tpu.memory_space<vmem>>, %arg6: memref<32x32xbf16, #tpu.memory_space<vmem>>, %arg7: memref<1x32xf32, #tpu.memory_space<vmem>>, %arg8: memref<32x9xbf16, #tpu.memory_space<vmem>>, %arg9: memref<1x1xf32, #tpu.memory_space<vmem>>, %arg10: memref<2x8x1x8xf32, #tpu.memory_space<vmem>>, %arg11: memref<2x10x9x10xf32, #tpu.memory_space<vmem>>) attributes {dimension_semantics = [#tpu.dimension_semantics<parallel>], iteration_bounds = array<i64: 1>, scalar_prefetch = 0 : i64, scratch_operands = 1 : i64, tpu.core_type = #tpu.core_type<tc>, window_params = [{transform_indices = @transform_0, window_bounds = array<i64: 2, 8, 1, 8>}, {transform_indices = @transform_1, window_bounds = array<i64: 2, 8, 1, 8>}, {pipeline_mode = #tpu.pipeline_mode<synchronous>, transform_indices = @transform_2, window_bounds = array<i64: 8, 8>}, {pipeline_mode = #tpu.pipeline_mode<synchronous>, transform_indices = @transform_3, window_bounds = array<i64: 2, 32, 1>}, {pipeline_mode = #tpu.pipeline_mode<synchronous>, transform_indices = @transform_4, window_bounds = array<i64: 32, 1>}, {pipeline_mode = #tpu.pipeline_mode<synchronous>, transform_indices = @transform_5, window_bounds = array<i64: 32, 32>}, {pipeline_mode = #tpu.pipeline_mode<synchronous>, transform_indices = @transform_6, window_bounds = array<i64: 1, 32>}, {pipeline_mode = #tpu.pipeline_mode<synchronous>, transform_indices = @transform_7, window_bounds = array<i64: 32, 9>}, {pipeline_mode = #tpu.pipeline_mode<synchronous>, transform_indices = @transform_8, window_bounds = array<i64: 1, 1>}, {transform_indices = @transform_9, window_bounds = array<i64: 2, 8, 1, 8>}]} {
    %c0 = arith.constant 0 : index
    %c0_0 = arith.constant 0 : index
    %c0_1 = arith.constant 0 : index
    %c0_2 = arith.constant 0 : index
    %0 = vector.load %arg1[%c0, %c0_0, %c0_1, %c0_2] : memref<2x8x1x8xf32, #tpu.memory_space<vmem>>, vector<2x8x1x8xf32>
    %c0_3 = arith.constant 0 : index
    %c0_4 = arith.constant 0 : index
    %c0_5 = arith.constant 0 : index
    %c0_6 = arith.constant 0 : index
    %1 = vector.load %arg2[%c0_3, %c0_4, %c0_5, %c0_6] : memref<2x8x1x8xf32, #tpu.memory_space<vmem>>, vector<2x8x1x8xf32>
    %c0_7 = arith.constant 0 : index
    %c0_8 = arith.constant 0 : index
    %c0_9 = arith.constant 0 : index
    %2 = vector.load %arg4[%c0_7, %c0_8, %c0_9] : memref<2x32x1xf32, #tpu.memory_space<vmem>>, vector<1x32x1xf32>
    %3 = vector.shape_cast %2 : vector<1x32x1xf32> to vector<32x1xf32>
    %4 = vector.shape_cast %3 : vector<32x1xf32> to vector<1x1x32x1xf32>
    %5 = vector.broadcast %0 : vector<2x8x1x8xf32> to vector<2x8x32x8xf32>
    %6 = vector.broadcast %4 : vector<1x1x32x1xf32> to vector<2x8x32x8xf32>
    %7 = arith.mulf %5, %6 : vector<2x8x32x8xf32>
    %c1 = arith.constant 1 : index
    %c0_10 = arith.constant 0 : index
    %c0_11 = arith.constant 0 : index
    %8 = vector.load %arg4[%c1, %c0_10, %c0_11] : memref<2x32x1xf32, #tpu.memory_space<vmem>>, vector<1x32x1xf32>
    %9 = vector.shape_cast %8 : vector<1x32x1xf32> to vector<32x1xf32>
    %10 = vector.shape_cast %9 : vector<32x1xf32> to vector<1x1x32x1xf32>
    %11 = vector.broadcast %1 : vector<2x8x1x8xf32> to vector<2x8x32x8xf32>
    %12 = vector.broadcast %10 : vector<1x1x32x1xf32> to vector<2x8x32x8xf32>
    %13 = arith.mulf %11, %12 : vector<2x8x32x8xf32>
    %14 = arith.addf %7, %13 : vector<2x8x32x8xf32>
    %c0_12 = arith.constant 0 : index
    %c0_13 = arith.constant 0 : index
    %15 = vector.load %arg5[%c0_12, %c0_13] : memref<32x1xf32, #tpu.memory_space<vmem>>, vector<32x1xf32>
    %16 = vector.shape_cast %15 : vector<32x1xf32> to vector<1x1x32x1xf32>
    %17 = vector.broadcast %16 : vector<1x1x32x1xf32> to vector<2x8x32x8xf32>
    %18 = arith.addf %14, %17 : vector<2x8x32x8xf32>
    %cst = arith.constant 0.000000e+00 : f32
    %19 = vector.broadcast %cst : f32 to vector<2x8x32x8xf32>
    %20 = arith.cmpf oge, %18, %19 : vector<2x8x32x8xf32>
    %cst_14 = arith.constant 0.00999999977 : f32
    %21 = vector.broadcast %cst_14 : f32 to vector<2x8x32x8xf32>
    %22 = arith.mulf %21, %18 : vector<2x8x32x8xf32>
    %23 = arith.select %20, %18, %22 : vector<2x8x32x8xi1>, vector<2x8x32x8xf32>
    %c0_15 = arith.constant 0 : index
    %c0_16 = arith.constant 0 : index
    %24 = vector.load %arg3[%c0_15, %c0_16] : memref<8x8xbf16, #tpu.memory_space<vmem>>, vector<8x8xbf16>
    %cst_17 = arith.constant 5.000000e-02 : f32
    %25 = vector.broadcast %cst_17 : f32 to vector<2x8x32x8xf32>
    %26 = arith.mulf %25, %23 : vector<2x8x32x8xf32>
    %27 = arith.truncf %23 : vector<2x8x32x8xf32> to vector<2x8x32x8xbf16>
    %28 = vector.shape_cast %27 : vector<2x8x32x8xbf16> to vector<512x8xbf16>
    %cst_18 = arith.constant dense<0.000000e+00> : vector<512x8xf32>
    %29 = tpu.matmul %28, %24, %cst_18 {dimension_numbers = #tpu.dot_dimension_numbers<[1], [0], [0], [1], [0, 0, 1, 1], [], []>} : vector<512x8xbf16>, vector<8x8xbf16>, vector<512x8xf32> -> vector<512x8xf32>
    %30 = vector.shape_cast %29 : vector<512x8xf32> to vector<2x8x32x8xf32>
    %31 = arith.addf %26, %30 : vector<2x8x32x8xf32>
    %32 = tpu.transpose %31, [0, 1, 3, 2] : vector<2x8x32x8xf32> -> vector<2x8x8x32xf32>
    %33 = vector.shape_cast %32 : vector<2x8x8x32xf32> to vector<128x32xf32>
    %34 = arith.truncf %33 : vector<128x32xf32> to vector<128x32xbf16>
    %c0_19 = arith.constant 0 : index
    %c0_20 = arith.constant 0 : index
    %35 = vector.load %arg6[%c0_19, %c0_20] : memref<32x32xbf16, #tpu.memory_space<vmem>>, vector<32x32xbf16>
    %cst_21 = arith.constant dense<0.000000e+00> : vector<128x32xf32>
    %36 = tpu.matmul %34, %35, %cst_21 {dimension_numbers = #tpu.dot_dimension_numbers<[1], [0], [0], [1], [0, 0, 1, 1], [], []>} : vector<128x32xbf16>, vector<32x32xbf16>, vector<128x32xf32> -> vector<128x32xf32>
    %c0_22 = arith.constant 0 : index
    %c0_23 = arith.constant 0 : index
    %37 = vector.load %arg7[%c0_22, %c0_23] : memref<1x32xf32, #tpu.memory_space<vmem>>, vector<1x32xf32>
    %38 = vector.broadcast %37 : vector<1x32xf32> to vector<128x32xf32>
    %39 = arith.addf %36, %38 : vector<128x32xf32>
    %cst_24 = arith.constant 0.000000e+00 : f32
    %40 = vector.broadcast %cst_24 : f32 to vector<128x32xf32>
    %41 = arith.cmpf oge, %39, %40 : vector<128x32xf32>
    %cst_25 = arith.constant 0.00999999977 : f32
    %42 = vector.broadcast %cst_25 : f32 to vector<128x32xf32>
    %43 = arith.mulf %42, %39 : vector<128x32xf32>
    %44 = arith.select %41, %39, %43 : vector<128x32xi1>, vector<128x32xf32>
    %45 = arith.truncf %44 : vector<128x32xf32> to vector<128x32xbf16>
    %c0_26 = arith.constant 0 : index
    %c0_27 = arith.constant 0 : index
    %46 = vector.load %arg8[%c0_26, %c0_27] : memref<32x9xbf16, #tpu.memory_space<vmem>>, vector<32x9xbf16>
    %cst_28 = arith.constant dense<0.000000e+00> : vector<128x9xf32>
    %47 = tpu.matmul %45, %46, %cst_28 {dimension_numbers = #tpu.dot_dimension_numbers<[1], [0], [0], [1], [0, 0, 1, 1], [], []>} : vector<128x32xbf16>, vector<32x9xbf16>, vector<128x9xf32> -> vector<128x9xf32>
    %48 = vector.shape_cast %47 : vector<128x9xf32> to vector<2x8x8x9xf32>
    %49 = tpu.transpose %48, [0, 1, 3, 2] : vector<2x8x8x9xf32> -> vector<2x8x9x8xf32>
    %cst_29 = arith.constant 0.000000e+00 : f32
    %50 = vector.broadcast %cst_29 : f32 to vector<2x1x9x10xf32>
    %cst_30 = arith.constant 0.000000e+00 : f32
    %51 = vector.broadcast %cst_30 : f32 to vector<2x10x9x1xf32>
    %c0_31 = arith.constant 0 : index
    %c0_32 = arith.constant 0 : index
    %c0_33 = arith.constant 0 : index
    %c0_34 = arith.constant 0 : index
    %52 = vector.load %arg11[%c0_31, %c0_32, %c0_33, %c0_34] : memref<2x10x9x10xf32, #tpu.memory_space<vmem>>, vector<2x1x9x10xf32>
    tpu.vector_store %arg11[%c0_31, %c0_32, %c0_33, %c0_34], %50 {strides = array<i32>} : memref<2x10x9x10xf32, #tpu.memory_space<vmem>>, vector<2x1x9x10xf32>,
    %c0_35 = arith.constant 0 : index
    %c9 = arith.constant 9 : index
    %c0_36 = arith.constant 0 : index
    %c0_37 = arith.constant 0 : index
    %53 = vector.load %arg11[%c0_35, %c9, %c0_36, %c0_37] : memref<2x10x9x10xf32, #tpu.memory_space<vmem>>, vector<2x1x9x10xf32>
    tpu.vector_store %arg11[%c0_35, %c9, %c0_36, %c0_37], %50 {strides = array<i32>} : memref<2x10x9x10xf32, #tpu.memory_space<vmem>>, vector<2x1x9x10xf32>,
    %c0_38 = arith.constant 0 : index
    %c0_39 = arith.constant 0 : index
    %c0_40 = arith.constant 0 : index
    %c0_41 = arith.constant 0 : index
    %54 = vector.load %arg11[%c0_38, %c0_39, %c0_40, %c0_41] : memref<2x10x9x10xf32, #tpu.memory_space<vmem>>, vector<2x10x9x1xf32>
    tpu.vector_store %arg11[%c0_38, %c0_39, %c0_40, %c0_41], %51 {strides = array<i32>} : memref<2x10x9x10xf32, #tpu.memory_space<vmem>>, vector<2x10x9x1xf32>,
    %c0_42 = arith.constant 0 : index
    %c0_43 = arith.constant 0 : index
    %c0_44 = arith.constant 0 : index
    %c9_45 = arith.constant 9 : index
    %55 = vector.load %arg11[%c0_42, %c0_43, %c0_44, %c9_45] : memref<2x10x9x10xf32, #tpu.memory_space<vmem>>, vector<2x10x9x1xf32>
    tpu.vector_store %arg11[%c0_42, %c0_43, %c0_44, %c9_45], %51 {strides = array<i32>} : memref<2x10x9x10xf32, #tpu.memory_space<vmem>>, vector<2x10x9x1xf32>,
    %c0_46 = arith.constant 0 : index
    %c1_47 = arith.constant 1 : index
    %c0_48 = arith.constant 0 : index
    %c1_49 = arith.constant 1 : index
    %56 = vector.load %arg11[%c0_46, %c1_47, %c0_48, %c1_49] : memref<2x10x9x10xf32, #tpu.memory_space<vmem>>, vector<2x8x9x8xf32>
    tpu.vector_store %arg11[%c0_46, %c1_47, %c0_48, %c1_49], %49 {strides = array<i32>} : memref<2x10x9x10xf32, #tpu.memory_space<vmem>>, vector<2x8x9x8xf32>,
    %c0_50 = arith.constant 0 : index
    %c0_51 = arith.constant 0 : index
    %c0_52 = arith.constant 0 : index
    %c0_53 = arith.constant 0 : index
    %57 = vector.load %arg11[%c0_50, %c0_51, %c0_52, %c0_53] : memref<2x10x9x10xf32, #tpu.memory_space<vmem>>, vector<2x10x9x10xf32>
    %58 = vector.extract_strided_slice %57 {offsets = [0, 0, 0, 0], sizes = [2, 10, 9, 8], strides = [1, 1, 1, 1]} : vector<2x10x9x10xf32> to vector<2x10x9x8xf32>
    %59 = vector.extract_strided_slice %57 {offsets = [0, 0, 0, 1], sizes = [2, 10, 9, 8], strides = [1, 1, 1, 1]} : vector<2x10x9x10xf32> to vector<2x10x9x8xf32>
    %60 = vector.extract_strided_slice %57 {offsets = [0, 0, 0, 2], sizes = [2, 10, 9, 8], strides = [1, 1, 1, 1]} : vector<2x10x9x10xf32> to vector<2x10x9x8xf32>
    %cst_54 = arith.constant 0.000000e+00 : f32
    %61 = vector.broadcast %cst_54 : f32 to vector<2x8x1x8xf32>
    %62 = vector.extract_strided_slice %58 {offsets = [0, 0, 0, 0], sizes = [2, 8, 1, 8], strides = [1, 1, 1, 1]} : vector<2x10x9x8xf32> to vector<2x8x1x8xf32>
    %63 = arith.addf %61, %62 : vector<2x8x1x8xf32>
    %64 = vector.extract_strided_slice %58 {offsets = [0, 1, 1, 0], sizes = [2, 8, 1, 8], strides = [1, 1, 1, 1]} : vector<2x10x9x8xf32> to vector<2x8x1x8xf32>
    %65 = arith.addf %63, %64 : vector<2x8x1x8xf32>
    %66 = vector.extract_strided_slice %58 {offsets = [0, 2, 2, 0], sizes = [2, 8, 1, 8], strides = [1, 1, 1, 1]} : vector<2x10x9x8xf32> to vector<2x8x1x8xf32>
    %67 = arith.addf %65, %66 : vector<2x8x1x8xf32>
    %68 = vector.extract_strided_slice %59 {offsets = [0, 0, 3, 0], sizes = [2, 8, 1, 8], strides = [1, 1, 1, 1]} : vector<2x10x9x8xf32> to vector<2x8x1x8xf32>
    %69 = arith.addf %67, %68 : vector<2x8x1x8xf32>
    %70 = vector.extract_strided_slice %59 {offsets = [0, 1, 4, 0], sizes = [2, 8, 1, 8], strides = [1, 1, 1, 1]} : vector<2x10x9x8xf32> to vector<2x8x1x8xf32>
    %71 = arith.addf %69, %70 : vector<2x8x1x8xf32>
    %72 = vector.extract_strided_slice %59 {offsets = [0, 2, 5, 0], sizes = [2, 8, 1, 8], strides = [1, 1, 1, 1]} : vector<2x10x9x8xf32> to vector<2x8x1x8xf32>
    %73 = arith.addf %71, %72 : vector<2x8x1x8xf32>
    %74 = vector.extract_strided_slice %60 {offsets = [0, 0, 6, 0], sizes = [2, 8, 1, 8], strides = [1, 1, 1, 1]} : vector<2x10x9x8xf32> to vector<2x8x1x8xf32>
    %75 = arith.addf %73, %74 : vector<2x8x1x8xf32>
    %76 = vector.extract_strided_slice %60 {offsets = [0, 1, 7, 0], sizes = [2, 8, 1, 8], strides = [1, 1, 1, 1]} : vector<2x10x9x8xf32> to vector<2x8x1x8xf32>
    %77 = arith.addf %75, %76 : vector<2x8x1x8xf32>
    %78 = vector.extract_strided_slice %60 {offsets = [0, 2, 8, 0], sizes = [2, 8, 1, 8], strides = [1, 1, 1, 1]} : vector<2x10x9x8xf32> to vector<2x8x1x8xf32>
    %79 = arith.addf %77, %78 : vector<2x8x1x8xf32>
    %c0_55 = arith.constant 0 : index
    %c0_56 = arith.constant 0 : index
    %80 = vector.load %arg9[%c0_55, %c0_56] : memref<1x1xf32, #tpu.memory_space<vmem>>, vector<1x1xf32>
    %81 = vector.shape_cast %80 : vector<1x1xf32> to vector<1x1x1x1xf32>
    %82 = vector.broadcast %81 : vector<1x1x1x1xf32> to vector<2x8x1x8xf32>
    %83 = arith.addf %79, %82 : vector<2x8x1x8xf32>
    %cst_57 = arith.constant 0.000000e+00 : f32
    %84 = vector.broadcast %cst_57 : f32 to vector<2x8x1x8xf32>
    %85 = arith.cmpf oge, %83, %84 : vector<2x8x1x8xf32>
    %cst_58 = arith.constant 0.00999999977 : f32
    %86 = vector.broadcast %cst_58 : f32 to vector<2x8x1x8xf32>
    %87 = arith.mulf %86, %83 : vector<2x8x1x8xf32>
    %88 = arith.select %85, %83, %87 : vector<2x8x1x8xi1>, vector<2x8x1x8xf32>
    %c0_59 = arith.constant 0 : index
    %c0_60 = arith.constant 0 : index
    %c0_61 = arith.constant 0 : index
    %c0_62 = arith.constant 0 : index
    %89 = vector.load %arg10[%c0_59, %c0_60, %c0_61, %c0_62] : memref<2x8x1x8xf32, #tpu.memory_space<vmem>>, vector<2x8x1x8xf32>
    tpu.vector_store %arg10[%c0_59, %c0_60, %c0_61, %c0_62], %88 {strides = array<i32>} : memref<2x8x1x8xf32, #tpu.memory_space<vmem>>, vector<2x8x1x8xf32>,
    return
  }
  func.func @transform_0(%arg0: i32) -> (i32, i32, i32, i32) {
    %c0_i32 = arith.constant 0 : i32
    %c0_i32_0 = arith.constant 0 : i32
    %c0_i32_1 = arith.constant 0 : i32
    %c0_i32_2 = arith.constant 0 : i32
    return %arg0, %c0_i32, %c0_i32_0, %c0_i32_1 : i32, i32, i32, i32
  }
  func.func @transform_1(%arg0: i32) -> (i32, i32, i32, i32) {
    %c0_i32 = arith.constant 0 : i32
    %c0_i32_0 = arith.constant 0 : i32
    %c0_i32_1 = arith.constant 0 : i32
    %c0_i32_2 = arith.constant 0 : i32
    return %arg0, %c0_i32, %c0_i32_0, %c0_i32_1 : i32, i32, i32, i32
  }
  func.func @transform_2(%arg0: i32) -> (i32, i32) {
    %c0_i32 = arith.constant 0 : i32
    %c0_i32_0 = arith.constant 0 : i32
    %c0_i32_1 = arith.constant 0 : i32
    return %c0_i32, %c0_i32_0 : i32, i32
  }
  func.func @transform_3(%arg0: i32) -> (i32, i32, i32) {
    %c0_i32 = arith.constant 0 : i32
    %c0_i32_0 = arith.constant 0 : i32
    %c0_i32_1 = arith.constant 0 : i32
    %c0_i32_2 = arith.constant 0 : i32
    return %c0_i32, %c0_i32_0, %c0_i32_1 : i32, i32, i32
  }
  func.func @transform_4(%arg0: i32) -> (i32, i32) {
    %c0_i32 = arith.constant 0 : i32
    %c0_i32_0 = arith.constant 0 : i32
    %c0_i32_1 = arith.constant 0 : i32
    return %c0_i32, %c0_i32_0 : i32, i32
  }
  func.func @transform_5(%arg0: i32) -> (i32, i32) {
    %c0_i32 = arith.constant 0 : i32
    %c0_i32_0 = arith.constant 0 : i32
    %c0_i32_1 = arith.constant 0 : i32
    return %c0_i32, %c0_i32_0 : i32, i32
  }
  func.func @transform_6(%arg0: i32) -> (i32, i32) {
    %c0_i32 = arith.constant 0 : i32
    %c0_i32_0 = arith.constant 0 : i32
    %c0_i32_1 = arith.constant 0 : i32
    return %c0_i32, %c0_i32_0 : i32, i32
  }
  func.func @transform_7(%arg0: i32) -> (i32, i32) {
    %c0_i32 = arith.constant 0 : i32
    %c0_i32_0 = arith.constant 0 : i32
    %c0_i32_1 = arith.constant 0 : i32
    return %c0_i32, %c0_i32_0 : i32, i32
  }
  func.func @transform_8(%arg0: i32) -> (i32, i32) {
    %c0_i32 = arith.constant 0 : i32
    %c0_i32_0 = arith.constant 0 : i32
    %c0_i32_1 = arith.constant 0 : i32
    return %c0_i32, %c0_i32_0 : i32, i32
  }
  func.func @transform_9(%arg0: i32) -> (i32, i32, i32, i32) {
    %c0_i32 = arith.constant 0 : i32
    %c0_i32_0 = arith.constant 0 : i32
    %c0_i32_1 = arith.constant 0 : i32
    %c0_i32_2 = arith.constant 0 : i32
    return %arg0, %c0_i32, %c0_i32_0, %c0_i32_1 : i32, i32, i32, i32
  }
}

</mosaic_0001>

<bundles_post_ra>
// kernel: multi_wave_gcunet_forward.5
= control target key start
LH: loop header
LB: loop body
LE: loop exit
PB: predicated region body
PF: predicated region fallthrough
CT: control target
= control target key end

     0   :  { %v2556_v0 = vmov 0   ;;  %vm1020_vm0 = vcmask 1043456   ;;  %vm923_vm5 = vcmask 64512   ;;  %s2560_s17 = smov 126   ;;  %s4096_s3 = inlined_call_operand.vmem [shape: f32[2,128,1], index: 3, kind: input, shape index: {}]   ;;  %s4097_s4 = inlined_call_operand.vmem [shape: f32[128,1], index: 4, kind: input, shape index: {}]   ;;  %s4098_s2 = inlined_call_operand.vmem [shape: bf16[8,8], index: 2, kind: input, shape index: {}]   ;;  %s4099_s1 = inlined_call_operand.vmem [shape: f32[2,2,1,8], index: 1, kind: input, shape index: {}]   ;;  %s4100_s0 = inlined_call_operand.vmem [shape: f32[2,2,1,8], index: 0, kind: input, shape index: {}]   ;;  %s4101_s5 = inlined_call_operand.vmem [shape: bf16[128,128], index: 5, kind: input, shape index: {}]   ;;  %s4102_s7 = inlined_call_operand.vmem [shape: bf16[128,18], index: 7, kind: input, shape index: {}]   ;;  %s4103_s6 = inlined_call_operand.vmem [shape: f32[1,128], index: 6, kind: input, shape index: {}]   ;;  %s4104_s8 = inlined_call_operand.vmem [shape: f32[2,1], index: 8, kind: input, shape index: {}]   ;;  %s4105_s9 = inlined_call_operand.vmem [shape: f32[2,2,2,8], index: 9, kind: output, shape index: {}]  }
   0x1   :  { %2465 = vset.pattern.permute.xlu1 %v2556_v0  ;;  %2464 = vset.pattern.permute.xlu0 %v2556_v0  ;;  %v2227_v1 = vld [vmem:[%s4096_s3 + $0x80] sm:$0xff]  ;;  %v2228_v3 = vld [vmem:[%s4096_s3 + $0x88] sm:$0xff]  ;;  %v44_v5 = vld [vmem:[%s4096_s3 + $0x18] sm:$0xff] }
   0x2   :  { %v41_v2 = vld [vmem:[%s4096_s3] sm:$0xff]  ;;  %268 = vperm.xlu1 %2465, %v2227_v1   ;;  %v42_v4 = vld [vmem:[%s4096_s3 + $0x8] sm:$0xff]  ;;  %v43_v6 = vld [vmem:[%s4096_s3 + $0x10] sm:$0xff] }
   0x3   :  { %83 = vperm.xlu0 %2464, %v41_v2   ;;  %v2230_v7 = vld [vmem:[%s4096_s3 + $0x98] sm:$0xff]  ;;  %v2229_v8 = vld [vmem:[%s4096_s3 + $0x90] sm:$0xff]  ;;  %v475_v9 = vld [vmem:[%s4097_s4 + $0x8] sm:$0xff] }
   0x4   :  { %v474_v10 = vld [vmem:[%s4097_s4] sm:$0xff]  ;;  %v477_v11 = vld [vmem:[%s4097_s4 + $0x18] sm:$0xff]  ;;  %v476_v12 = vld [vmem:[%s4097_s4 + $0x10] sm:$0xff] }
   0x5   :  { %v46_v13 = vld [vmem:[%s4096_s3 + $0x28] sm:$0xff]  ;;  %v45_v14 = vld [vmem:[%s4096_s3 + $0x20] sm:$0xff]  ;;  %v48_v18 = vld [vmem:[%s4096_s3 + $0x38] sm:$0xff] }
   0x6   :  { %273 = vperm.xlu1 %2465, %v2228_v3   ;;  %v826_v15 = vld [vmem:[%s4098_s2] sm:$0xf]  ;;  %v2232_v16 = vld [vmem:[%s4096_s3 + $0xa8] sm:$0xff]  ;;  %v47_v19 = vld [vmem:[%s4096_s3 + $0x30] sm:$0xff] }
   0x7   :  { %88 = vperm.xlu0 %2464, %v42_v4   ;;  %2457 = vmatprep.subr.msk.bf16.mxu0 %vm1020_vm0, %v826_v15  ;;  %v2231_v17 = vld [vmem:[%s4096_s3 + $0xa0] sm:$0xff]  ;;  %v1022_v20 = vsel %vm1020_vm0, %v826_v15, 0  ;;  %v2234_v21 = vld [vmem:[%s4096_s3 + $0xb8] sm:$0xff]  ;;  %v2233_v22 = vld [vmem:[%s4096_s3 + $0xb0] sm:$0xff] }
   0x8   :  { %2458 = vmatprep.subr.msk.bf16.mxu1 %vm1020_vm0, %v826_v15  ;;  %2350 = vmatpush3.bf16.msra.mxu0 %v1022_v20  ;;  %v479_v23 = vld [vmem:[%s4097_s4 + $0x28] sm:$0xff]  ;;  %v478_v24 = vld [vmem:[%s4097_s4 + $0x20] sm:$0xff]  ;;  %v481_v25 = vld [vmem:[%s4097_s4 + $0x38] sm:$0xff] }
   0x9   :  { %2456 = vmatpush3.bf16.msra.mxu1 %v1022_v20  ;;  %v480_v26 = vld [vmem:[%s4097_s4 + $0x30] sm:$0xff]  ;;  %v50_v27 = vld [vmem:[%s4096_s3 + $0x48] sm:$0xff]  ;;  %v49_v28 = vld [vmem:[%s4096_s3 + $0x40] sm:$0xff] }
   0xa   :  { %98 = vperm.xlu1 %2465, %v44_v5   ;;  %v2236_v29 = vld [vmem:[%s4096_s3 + $0xc8] sm:$0xff]  ;;  %v2235_v30 = vld [vmem:[%s4096_s3 + $0xc0] sm:$0xff]  ;;  %v52_v31 = vld [vmem:[%s4096_s3 + $0x58] sm:$0xff] }
   0xb   :  { %93 = vperm.xlu0 %2464, %v43_v6   ;;  %v51_v32 = vld [vmem:[%s4096_s3 + $0x50] sm:$0xff]  ;;  %v2238_v33 = vld [vmem:[%s4096_s3 + $0xd8] sm:$0xff]  ;;  %v483_v35 = vld [vmem:[%s4097_s4 + $0x48] sm:$0xff] }
   0xc   :  { %v2237_v34 = vld [vmem:[%s4096_s3 + $0xd0] sm:$0xff]  ;;  %v482_v36 = vld [vmem:[%s4097_s4 + $0x40] sm:$0xff]  ;;  %v485_v37 = vld [vmem:[%s4097_s4 + $0x58] sm:$0xff] }
   0xd   :  { %v484_v38 = vld [vmem:[%s4097_s4 + $0x50] sm:$0xff]  ;;  %v54_v39 = vld [vmem:[%s4096_s3 + $0x68] sm:$0xff]  ;;  %v53_v40 = vld [vmem:[%s4096_s3 + $0x60] sm:$0xff] }
   0xe   :  { %283 = vperm.xlu1 %2465, %v2230_v7   ;;  %v2240_v41 = vld [vmem:[%s4096_s3 + $0xe8] sm:$0xff]  ;;  %v2239_v42 = vld [vmem:[%s4096_s3 + $0xe0] sm:$0xff]  ;;  %v56_v43 = vld [vmem:[%s4096_s3 + $0x78] sm:$0xff] }
   0xf   :  { %278 = vperm.xlu0 %2464, %v2229_v8   ;;  %v55_v44 = vld [vmem:[%s4096_s3 + $0x70] sm:$0xff]  ;;  %v2242_v45 = vld [vmem:[%s4096_s3 + $0xf8] sm:$0xff]  ;;  %v487_v47 = vld [vmem:[%s4097_s4 + $0x68] sm:$0xff] }
  0x10   :  { %v2241_v46 = vld [vmem:[%s4096_s3 + $0xf0] sm:$0xff]  ;;  %v486_v48 = vld [vmem:[%s4097_s4 + $0x60] sm:$0xff]  ;;  %v489_v49 = vld [vmem:[%s4097_s4 + $0x78] sm:$0xff] }
  0x11   :  { %v488_v50 = vld [vmem:[%s4097_s4 + $0x70] sm:$0xff]  ;;  %v2761_v51 = vld [vmem:[%s4099_s1 + $0x1] ss:$0 sm:$0xff]  ;;  %v2766_v52 = vld [vmem:[%s4099_s1 + $0x2] ss:$0 sm:$0xff] }
  0x12   :  { %497 = vperm.xlu1 %2465, %v475_v9   ;;  %v2771_v53 = vld [vmem:[%s4099_s1 + $0x3] ss:$0 sm:$0xff]  ;;  %v2776_v54 = vld [vmem:[%s4100_s0 + $0x1] ss:$0 sm:$0xff]  ;;  %v2781_v55 = vld [vmem:[%s4100_s0 + $0x2] ss:$0 sm:$0xff] }
  0x13   :  { %492 = vperm.xlu0 %2464, %v474_v10   ;;  %v2786_v56 = vld [vmem:[%s4100_s0 + $0x3] ss:$0 sm:$0xff] }
  0x14   :  { %4183 = vst [vmem:[#allocation3_spill] sm:$0xff] %v2786_v56 }
  0x16   :  { %507 = vperm.xlu1 %2465, %v477_v11  }
  0x17   :  { %502 = vperm.xlu0 %2464, %v476_v12  }
  0x1a   :  { %108 = vperm.xlu1 %2465, %v46_v13  }
  0x1b   :  { %103 = vperm.xlu0 %2464, %v45_v14  }
  0x1e   :  { %293 = vperm.xlu1 %2465, %v2232_v16  }
  0x1f   :  { %288 = vperm.xlu0 %2464, %v2231_v17  }
  0x22   :  { %118 = vperm.xlu1 %2465, %v48_v18  }
  0x23   :  { %113 = vperm.xlu0 %2464, %v47_v19  }
  0x26   :  { %303 = vperm.xlu1 %2465, %v2234_v21  }
  0x27   :  { %298 = vperm.xlu0 %2464, %v2233_v22  }
  0x2a   :  { %517 = vperm.xlu1 %2465, %v479_v23  }
  0x2b   :  { %512 = vperm.xlu0 %2464, %v478_v24  }
  0x2e   :  { %527 = vperm.xlu1 %2465, %v481_v25  }
  0x2f   :  { %522 = vperm.xlu0 %2464, %v480_v26  }
  0x32   :  { %128 = vperm.xlu1 %2465, %v50_v27  }
  0x33   :  { %123 = vperm.xlu0 %2464, %v49_v28  }
  0x36   :  { %313 = vperm.xlu1 %2465, %v2236_v29  }
  0x37   :  { %308 = vperm.xlu0 %2464, %v2235_v30  }
  0x3a   :  { %138 = vperm.xlu1 %2465, %v52_v31  }
  0x3b   :  { %133 = vperm.xlu0 %2464, %v51_v32  }
  0x3e   :  { %323 = vperm.xlu1 %2465, %v2238_v33  }
  0x3f   :  { %318 = vperm.xlu0 %2464, %v2237_v34   ;;  %v2815_v34 = vld [vmem:[%s4099_s1] ss:$0 sm:$0xff] }
  0x42   :  { %537 = vperm.xlu1 %2465, %v483_v35  }
  0x43   :  { %532 = vperm.xlu0 %2464, %v482_v36  }
  0x46   :  { %547 = vperm.xlu1 %2465, %v485_v37  }
  0x47   :  { %542 = vperm.xlu0 %2464, %v484_v38  }
  0x4a   :  { %148 = vperm.xlu1 %2465, %v54_v39  }
  0x4b   :  { %143 = vperm.xlu0 %2464, %v53_v40   ;;  %v2820_v40 = vld [vmem:[%s4100_s0] ss:$0 sm:$0xff] }
  0x4e   :  { %333 = vperm.xlu1 %2465, %v2240_v41  }
  0x4f   :  { %328 = vperm.xlu0 %2464, %v2239_v42  }
  0x52   :  { %158 = vperm.xlu1 %2465, %v56_v43  }
  0x53   :  { %153 = vperm.xlu0 %2464, %v55_v44  }
  0x56   :  { %343 = vperm.xlu1 %2465, %v2242_v45  }
  0x57   :  { %338 = vperm.xlu0 %2464, %v2241_v46  }
  0x5a   :  { %557 = vperm.xlu1 %2465, %v487_v47  }
  0x5b   :  { %552 = vperm.xlu0 %2464, %v486_v48  }
  0x5e   :  { %567 = vperm.xlu1 %2465, %v489_v49  }
  0x5f   :  { %562 = vperm.xlu0 %2464, %v488_v50  }
  0x7d   :  { %v269_v57 = vpop.permute.xlu1 %268 }
  0x7e   :  { %v84_v58 = vpop.permute.xlu0 %83  ;;  %v362_v59 = vmul.f32 %v2761_v51, %v269_v57  ;;  %v378_v60 = vmul.f32 %v2766_v52, %v269_v57  ;;  %v394_v61 = vmul.f32 %v2771_v53, %v269_v57  ;;  %v346_v49 = vmul.f32 %v2815_v34, %v269_v57 }
  0x7f   :  { %v177_v62 = vmul.f32 %v2776_v54, %v84_v58  ;;  %v193_v63 = vmul.f32 %v2781_v55, %v84_v58  ;;  %v209_v0 = vmul.f32 %v2786_v56, %v84_v58 }
  0x81   :  { %v274_v1 = vpop.permute.xlu1 %273  ;;  %v426_v3 = vadd.f32 %v362_v59, %v177_v62  ;;  %v442_v4 = vadd.f32 %v378_v60, %v193_v63  ;;  %v458_v5 = vadd.f32 %v394_v61, %v209_v0  ;;  %v161_v59 = vmul.f32 %v2820_v40, %v84_v58 }
  0x82   :  { %v89_v2 = vpop.permute.xlu0 %88  ;;  %v363_v6 = vmul.f32 %v2761_v51, %v274_v1  ;;  %v379_v7 = vmul.f32 %v2766_v52, %v274_v1  ;;  %v395_v8 = vmul.f32 %v2771_v53, %v274_v1  ;;  %v347_v60 = vmul.f32 %v2815_v34, %v274_v1 }
  0x83   :  { %v178_v9 = vmul.f32 %v2776_v54, %v89_v2  ;;  %v194_v10 = vmul.f32 %v2781_v55, %v89_v2  ;;  %v210_v11 = vmul.f32 %v2786_v56, %v89_v2  ;;  %v162_v61 = vmul.f32 %v2820_v40, %v89_v2 }
  0x85   :  { %v99_v12 = vpop.permute.xlu1 %98  ;;  %v427_v14 = vadd.f32 %v363_v6, %v178_v9  ;;  %v443_v15 = vadd.f32 %v379_v7, %v194_v10  ;;  %v459_v16 = vadd.f32 %v395_v8, %v210_v11  ;;  %v411_v58 = vadd.f32 %v347_v60, %v162_v61 }
  0x86   :  { %v94_v13 = vpop.permute.xlu0 %93  ;;  %v180_v17 = vmul.f32 %v2776_v54, %v99_v12  ;;  %v196_v18 = vmul.f32 %v2781_v55, %v99_v12  ;;  %v212_v19 = vmul.f32 %v2786_v56, %v99_v12  ;;  %v164_v50 = vmul.f32 %v2820_v40, %v99_v12 }
  0x87   :  { %v179_v20 = vmul.f32 %v2776_v54, %v94_v13  ;;  %v195_v21 = vmul.f32 %v2781_v55, %v94_v13  ;;  %v211_v22 = vmul.f32 %v2786_v56, %v94_v13  ;;  %v163_v62 = vmul.f32 %v2820_v40, %v94_v13 }
  0x88   :  { %v410_v9 = vadd.f32 %v346_v49, %v161_v59 }
  0x89   :  { %v284_v23 = vpop.permute.xlu1 %283 }
  0x8a   :  { %v279_v24 = vpop.permute.xlu0 %278  ;;  %v365_v25 = vmul.f32 %v2761_v51, %v284_v23  ;;  %v381_v26 = vmul.f32 %v2766_v52, %v284_v23  ;;  %v397_v27 = vmul.f32 %v2771_v53, %v284_v23  ;;  %v349_v41 = vmul.f32 %v2815_v34, %v284_v23 }
  0x8b   :  { %v364_v28 = vmul.f32 %v2761_v51, %v279_v24  ;;  %v380_v29 = vmul.f32 %v2766_v52, %v279_v24  ;;  %v396_v30 = vmul.f32 %v2771_v53, %v279_v24  ;;  %v348_v45 = vmul.f32 %v2815_v34, %v279_v24 }
  0x8c   :  { %v429_v31 = vadd.f32 %v365_v25, %v180_v17  ;;  %v445_v32 = vadd.f32 %v381_v26, %v196_v18  ;;  %v461_v33 = vadd.f32 %v397_v27, %v212_v19 }
  0x8d   :  { %v498_v35 = vpop.permute.xlu1 %497  ;;  %v428_v37 = vadd.f32 %v364_v28, %v179_v20  ;;  %v444_v38 = vadd.f32 %v380_v29, %v195_v21  ;;  %v460_v39 = vadd.f32 %v396_v30, %v211_v22  ;;  %v412_v57 = vadd.f32 %v348_v45, %v163_v62 }
  0x8e   :  { %v493_v36 = vpop.permute.xlu0 %492  ;;  %v2823_v42 = vadd.f32 %v498_v35, %v427_v14  ;;  %v2825_v43 = vadd.f32 %v498_v35, %v443_v15  ;;  %v2827_v44 = vadd.f32 %v498_v35, %v459_v16  ;;  %v571_v13 = vadd.f32 %v498_v35, %v411_v58 }
  0x8f   :  { %v2830_v46 = vadd.f32 %v493_v36, %v426_v3  ;;  %v2832_v47 = vadd.f32 %v493_v36, %v442_v4  ;;  %v2834_v48 = vadd.f32 %v493_v36, %v458_v5  ;;  %v413_v3 = vadd.f32 %v349_v41, %v164_v50 }
  0x90   :  { %4184 = vst [vmem:[#allocation4_spill] sm:$0xff] %v2825_v43  ;;  %v570_v14 = vadd.f32 %v493_v36, %v410_v9  ;;  %vm635_vm3 = vcmp.ge.f32.partialorder %v571_v13, 0.0  ;;  %v699_v26 = vmul.f32 0.01, %v571_v13  ;;  %vm651_vm0 = vcmp.ge.f32.partialorder %v2823_v42, 0.0 }
  0x91   :  { %4185 = vst [vmem:[#allocation5_spill] sm:$0xff] %v2832_v47  ;;  %v508_v63 = vpop.permute.xlu1 %507  ;;  %vm650_vm15 = vcmp.ge.f32.partialorder %v2830_v46, 0.0 }
  0x92   :  { %v503_v0 = vpop.permute.xlu0 %502  ;;  %v2842_v6 = vadd.f32 %v508_v63, %v429_v31  ;;  %v2844_v4 = vadd.f32 %v508_v63, %v445_v32  ;;  %v2846_v5 = vadd.f32 %v508_v63, %v461_v33  ;;  %v573_v7 = vadd.f32 %v508_v63, %v413_v3 }
  0x93   :  { %v2848_v8 = vadd.f32 %v503_v0, %v428_v37  ;;  %v572_v1 = vadd.f32 %v503_v0, %v412_v57  ;;  %v2854_v11 = vadd.f32 %v503_v0, %v444_v38  ;;  %v2856_v12 = vadd.f32 %v503_v0, %v460_v39 }
  0x94   :  { %4186 = vst [vmem:[#allocation6_spill] sm:$0xff] %v2844_v4  ;;  %v701_v15 = vmul.f32 0.01, %v573_v7  ;;  %vm634_vm2 = vcmp.ge.f32.partialorder %v570_v14, 0.0  ;;  %v698_v25 = vmul.f32 0.01, %v570_v14  ;;  %v2875_v31 = vsel %vm635_vm3, %v571_v13, %v699_v26 }
  0x95   :  { %v2850_v10 = vpop.permute.xlu1 %108  ;;  %4187 = vst [vmem:[#allocation7_spill] sm:$0xff] %v2854_v11  ;;  %vm636_vm1 = vcmp.ge.f32.partialorder %v572_v1, 0.0  ;;  %v700_v21 = vmul.f32 0.01, %v572_v1  ;;  %vm637_vm4 = vcmp.ge.f32.partialorder %v573_v7, 0.0  ;;  %4189 = vst [vmem:[#allocation9_spill] sm:$0xff] %v2875_v31 }
  0x96   :  { %v2852_v2 = vpop.permute.xlu0 %103  ;;  %v182_v16 = vmul.f32 %v2776_v54, %v2850_v10  ;;  %v198_v17 = vmul.f32 %v2781_v55, %v2850_v10  ;;  %v214_v18 = vmul.f32 %v2786_v56, %v2850_v10  ;;  %v2873_v30 = vsel %vm634_vm2, %v570_v14, %v698_v25 }
  0x97   :  { %v181_v22 = vmul.f32 %v2776_v54, %v2852_v2  ;;  %v197_v23 = vmul.f32 %v2781_v55, %v2852_v2  ;;  %v213_v24 = vmul.f32 %v2786_v56, %v2852_v2  ;;  %4188 = vst [vmem:[#allocation8_spill] sm:$0xff] %v2873_v30  ;;  %v891_v36 = vpack.c.bf16 %v2875_v31, %v2873_v30 }
  0x98   :  { %v2883_v39 = vsel %vm636_vm1, %v572_v1, %v700_v21  ;;  %v2885_v41 = vsel %vm637_vm4, %v573_v7, %v701_v15  ;;  %vm682_vm1 = vcmp.ge.f32.partialorder %v2834_v48, 0.0 }
  0x99   :  { %v294_v19 = vpop.permute.xlu1 %293  ;;  %4190 = vst [vmem:[#allocation10_spill] sm:$0xff] %v2883_v39  ;;  %4191 = vst [vmem:[#allocation11_spill] sm:$0xff] %v2885_v41  ;;  %2351 = vmatprep.mubr.msk.bf16.mxu0 %vm923_vm5, %v891_v36  ;;  %v892_v50 = vpack.c.bf16 %v2885_v41, %v2883_v39 }
  0x9a   :  { %v289_v20 = vpop.permute.xlu0 %288  ;;  %v367_v27 = vmul.f32 %v2761_v51, %v294_v19  ;;  %v383_v28 = vmul.f32 %v2766_v52, %v294_v19  ;;  %v399_v29 = vmul.f32 %v2771_v53, %v294_v19 }
  0x9b   :  { %v366_v32 = vmul.f32 %v2761_v51, %v289_v20  ;;  %v382_v37 = vmul.f32 %v2766_v52, %v289_v20  ;;  %v398_v38 = vmul.f32 %v2771_v53, %v289_v20  ;;  %2352 = vmatmul.mubr.msk.bf16.vlgmr.msra.gmra.mxu0 %vm923_vm5, %v892_v50  ;;  %v351_v50 = vmul.f32 %v2815_v34, %v294_v19 }
  0x9c   :  { %v2896_v3 = vadd.f32 %v367_v27, %v182_v16  ;;  %v447_v14 = vadd.f32 %v383_v28, %v198_v17  ;;  %v463_v15 = vadd.f32 %v399_v29, %v214_v18  ;;  %v350_v31 = vmul.f32 %v2815_v34, %v289_v20 }
  0x9d   :  { %v119_v33 = vpop.permute.xlu1 %118  ;;  %v430_v21 = vadd.f32 %v366_v32, %v181_v22  ;;  %v446_v26 = vadd.f32 %v382_v37, %v197_v23  ;;  %v462_v27 = vadd.f32 %v398_v38, %v213_v24  ;;  %v166_v17 = vmul.f32 %v2820_v40, %v2850_v10 }
  0x9e   :  { %v114_v35 = vpop.permute.xlu0 %113  ;;  %v184_v45 = vmul.f32 %v2776_v54, %v119_v33  ;;  %v200_v49 = vmul.f32 %v2781_v55, %v119_v33  ;;  %v216_v59 = vmul.f32 %v2786_v56, %v119_v33  ;;  %v165_v22 = vmul.f32 %v2820_v40, %v2852_v2 }
  0x9f   :  { %v183_v60 = vmul.f32 %v2776_v54, %v114_v35  ;;  %v199_v61 = vmul.f32 %v2781_v55, %v114_v35  ;;  %v215_v62 = vmul.f32 %v2786_v56, %v114_v35  ;;  %v168_v28 = vmul.f32 %v2820_v40, %v119_v33 }
  0xa0   :  { %v415_v20 = vadd.f32 %v351_v50, %v166_v17  ;;  %v414_v32 = vadd.f32 %v350_v31, %v165_v22  ;;  %v167_v38 = vmul.f32 %v2820_v40, %v114_v35  ;;  %v2937_v31 = vmul.f32 0.01, %v2825_v43 }
  0xa1   :  { %v304_v63 = vpop.permute.xlu1 %303  ;;  %v2940_v35 = vmul.f32 0.01, %v2827_v44  ;;  %v2954_v17 = vmul.f32 0.01, %v2842_v6 }
  0xa2   :  { %v299_v0 = vpop.permute.xlu0 %298  ;;  %v369_v57 = vmul.f32 %v2761_v51, %v304_v63  ;;  %v385_v7 = vmul.f32 %v2766_v52, %v304_v63  ;;  %v401_v58 = vmul.f32 %v2771_v53, %v304_v63  ;;  %v353_v18 = vmul.f32 %v2815_v34, %v304_v63  ;;  %4199 = vst [vmem:[#allocation19_spill] sm:$0xff] %v2937_v31 }
  0xa3   :  { %v368_v9 = vmul.f32 %v2761_v51, %v299_v0  ;;  %v384_v1 = vmul.f32 %v2766_v52, %v299_v0  ;;  %v400_v13 = vmul.f32 %v2771_v53, %v299_v0  ;;  %v352_v29 = vmul.f32 %v2815_v34, %v299_v0  ;;  %4200 = vst [vmem:[#allocation20_spill] sm:$0xff] %v2940_v35 }
  0xa4   :  { %v433_v36 = vadd.f32 %v369_v57, %v184_v45  ;;  %v449_v19 = vadd.f32 %v385_v7, %v200_v49  ;;  %v465_v37 = vadd.f32 %v401_v58, %v216_v59  ;;  %v417_v57 = vadd.f32 %v353_v18, %v168_v28  ;;  %4205 = vst [vmem:[#allocation25_spill] sm:$0xff] %v2954_v17 }
  0xa5   :  { %v518_v25 = vpop.permute.xlu1 %517  ;;  %v432_v49 = vadd.f32 %v368_v9, %v183_v60  ;;  %v2934_v0 = vmul.f32 0.01, %v2823_v42  ;;  %v416_v59 = vadd.f32 %v352_v29, %v167_v38  ;;  %v2943_v58 = vmul.f32 0.01, %v2830_v46 }
  0xa6   :  { %v513_v16 = vpop.permute.xlu0 %512  ;;  %v2906_v41 = vadd.f32 %v518_v25, %v447_v14  ;;  %v2908_v39 = vadd.f32 %v518_v25, %v463_v15  ;;  %v575_v45 = vadd.f32 %v518_v25, %v415_v20  ;;  %v2946_v15 = vmul.f32 0.01, %v2832_v47 }
  0xa7   :  { %v2911_v30 = vadd.f32 %v513_v16, %v446_v26  ;;  %v2913_v56 = vadd.f32 %v513_v16, %v462_v27  ;;  %v574_v63 = vadd.f32 %v513_v16, %v414_v32  ;;  %4198 = vst [vmem:[#allocation18_spill] sm:$0xff] %v2934_v0  ;;  %4201 = vst [vmem:[#allocation21_spill] sm:$0xff] %v2943_v58  ;;  %v2949_v60 = vmul.f32 0.01, %v2834_v48 }
  0xa8   :  { %4192 = vst [vmem:[#allocation12_spill] sm:$0xff] %v2906_v41  ;;  %4202 = vst [vmem:[#allocation22_spill] sm:$0xff] %v2946_v15  ;;  %v448_v26 = vadd.f32 %v384_v1, %v199_v61  ;;  %v464_v27 = vadd.f32 %v400_v13, %v215_v62  ;;  %v703_v18 = vmul.f32 0.01, %v575_v45  ;;  %vm639_vm6 = vcmp.ge.f32.partialorder %v575_v45, 0.0 }
  0xa9   :  { %4193 = vst [vmem:[#allocation13_spill] sm:$0xff] %v2911_v30  ;;  %4194 = vst [vmem:[#allocation14_spill] sm:$0xff] %v2913_v56  ;;  %v528_v23 = vpop.permute.xlu1 %527  ;;  %v702_v22 = vmul.f32 0.01, %v574_v63  ;;  %vm638_vm7 = vcmp.ge.f32.partialorder %v574_v63, 0.0  ;;  %v2976_v32 = vadd.f32 %v513_v16, %v430_v21 }
  0xaa   :  { %v523_v24 = vpop.permute.xlu0 %522  ;;  %v2923_v10 = vadd.f32 %v528_v23, %v433_v36  ;;  %v2925_v14 = vadd.f32 %v528_v23, %v449_v19  ;;  %v2927_v2 = vadd.f32 %v528_v23, %v465_v37  ;;  %4203 = vst [vmem:[#allocation23_spill] sm:$0xff] %v2949_v60  ;;  %v577_v9 = vadd.f32 %v528_v23, %v417_v57 }
  0xab   :  { %v576_v36 = vadd.f32 %v523_v24, %v416_v59  ;;  %v2951_v50 = vadd.f32 %v523_v24, %v432_v49  ;;  %v2960_v20 = vadd.f32 %v523_v24, %v448_v26  ;;  %v2962_v61 = vadd.f32 %v523_v24, %v464_v27 }
  0xac   :  { %4195 = vst [vmem:[#allocation15_spill] sm:$0xff] %v2923_v10  ;;  %4196 = vst [vmem:[#allocation16_spill] sm:$0xff] %v2925_v14  ;;  %v2965_v62 = vmul.f32 0.01, %v2844_v4  ;;  %v2968_v1 = vmul.f32 0.01, %v2846_v5  ;;  %v2974_v23 = vadd.f32 %v518_v25, %v2896_v3  ;;  %v2980_v57 = vsel %vm638_vm7, %v574_v63, %v702_v22 }
  0xad   :  { %4197 = vst [vmem:[#allocation17_spill] sm:$0xff] %v2927_v2  ;;  %v2929_v7 = vpop.permute.xlu1 %128  ;;  %4204 = vst [vmem:[#allocation24_spill] sm:$0xff] %v2951_v50  ;;  %v2971_v13 = vmul.f32 0.01, %v2848_v8  ;;  %vm641_vm8 = vcmp.ge.f32.partialorder %v577_v9, 0.0  ;;  %vm640_vm9 = vcmp.ge.f32.partialorder %v576_v36, 0.0  ;;  %v2982_v49 = vsel %vm639_vm6, %v575_v45, %v703_v18 }
  0xae   :  { %v2931_v33 = vpop.permute.xlu0 %123  ;;  %v202_v19 = vmul.f32 %v2781_v55, %v2929_v7  ;;  %4206 = vst [vmem:[#allocation26_spill] sm:$0xff] %v2960_v20  ;;  %4207 = vst [vmem:[#allocation27_spill] sm:$0xff] %v2962_v61  ;;  %v705_v37 = vmul.f32 0.01, %v577_v9  ;;  %v704_v38 = vmul.f32 0.01, %v576_v36  ;;  %v893_v21 = vpack.c.bf16 %v2982_v49, %v2980_v57 }
  0xaf   :  { %4208 = vst [vmem:[#allocation28_spill] sm:$0xff] %v2965_v62  ;;  %4209 = vst [vmem:[#allocation29_spill] sm:$0xff] %v2968_v1  ;;  %v201_v24 = vmul.f32 %v2781_v55, %v2931_v33  ;;  %v2987_v27 = vmul.f32 0.01, %v2854_v11  ;;  %v2990_v3 = vmul.f32 0.01, %v2856_v12  ;;  %v170_v43 = vmul.f32 %v2820_v40, %v2929_v7 }
  0xb0   :  { %4210 = vst [vmem:[#allocation30_spill] sm:$0xff] %v2971_v13  ;;  %4211 = vst [vmem:[#allocation31_spill] sm:$0xff] %v2980_v57  ;;  %v2996_v16 = vmul.f32 0.01, %v2974_v23  ;;  %v2999_v45 = vmul.f32 0.01, %v2906_v41  ;;  %2355 = vmatprep.mubr.msk.bf16.mxu0 %vm923_vm5, %v893_v21  ;;  %v3017_v57 = vsel %vm641_vm8, %v577_v9, %v705_v37  ;;  %v186_v21 = vmul.f32 %v2776_v54, %v2929_v7 }
  0xb1   :  { %v314_v28 = vpop.permute.xlu1 %313  ;;  %4212 = vst [vmem:[#allocation32_spill] sm:$0xff] %v2982_v49  ;;  %4213 = vst [vmem:[#allocation33_spill] sm:$0xff] %v2987_v27  ;;  %v3002_v63 = vmul.f32 0.01, %v2908_v39  ;;  %v3007_v22 = vmul.f32 0.01, %v2976_v32  ;;  %v3014_v49 = vsel %vm640_vm9, %v576_v36, %v704_v38  ;;  %v169_v60 = vmul.f32 %v2820_v40, %v2931_v33 }
  0xb2   :  { %v2958_v29 = vpop.permute.xlu0 %308  ;;  %4214 = vst [vmem:[#allocation34_spill] sm:$0xff] %v2990_v3  ;;  %v387_v25 = vmul.f32 %v2766_v52, %v314_v28  ;;  %4215 = vst [vmem:[#allocation35_spill] sm:$0xff] %v2996_v16  ;;  %v3010_v62 = vmul.f32 0.01, %v2911_v30  ;;  %v403_v27 = vmul.f32 %v2771_v53, %v314_v28  ;;  %v894_v31 = vpack.c.bf16 %v3017_v57, %v3014_v49 }
  0xb3   :  { %4216 = vst [vmem:[#allocation36_spill] sm:$0xff] %v2999_v45  ;;  %4217 = vst [vmem:[#allocation37_spill] sm:$0xff] %v3002_v63  ;;  %v386_v18 = vmul.f32 %v2766_v52, %v2958_v29  ;;  %v371_v45 = vmul.f32 %v2761_v51, %v314_v28  ;;  %v370_v36 = vmul.f32 %v2761_v51, %v2958_v29  ;;  %v3034_v38 = vmul.f32 0.01, %v2923_v10 }
  0xb4   :  { %4218 = vst [vmem:[#allocation38_spill] sm:$0xff] %v3007_v22  ;;  %4219 = vst [vmem:[#allocation39_spill] sm:$0xff] %v3010_v62  ;;  %v3025_v62 = vmul.f32 0.01, %v2913_v56  ;;  %v402_v9 = vmul.f32 %v2771_v53, %v2958_v29  ;;  %2356 = vmatmul.mubr.msk.bf16.gmra.mxu0 %vm923_vm5, %v894_v31  ;;  %v3043_v22 = vmul.f32 0.01, %v2925_v14  ;;  %v185_v30 = vmul.f32 %v2776_v54, %v2931_v33 }
  0xb5   :  { %v139_v59 = vpop.permute.xlu1 %138  ;;  %4220 = vst [vmem:[#allocation40_spill] sm:$0xff] %v3014_v49  ;;  %4221 = vst [vmem:[#allocation41_spill] sm:$0xff] %v3017_v57  ;;  %v4224_v57 = vld [vmem:[#allocation3_spill] sm:$0xff]  ;;  %v3051_v1 = vmul.f32 0.01, %v2927_v2  ;;  %v435_v17 = vadd.f32 %v371_v45, %v186_v21  ;;  %v451_v11 = vadd.f32 %v387_v25, %v202_v19  ;;  %v355_v13 = vmul.f32 %v2815_v34, %v314_v28 }
  0xb6   :  { %v2984_v26 = vpop.permute.xlu0 %133  ;;  %v204_v15 = vmul.f32 %v2781_v55, %v139_v59  ;;  %4222 = vst [vmem:[#allocation42_spill] sm:$0xff] %v3025_v62  ;;  %4223 = vst [vmem:[#allocation43_spill] sm:$0xff] %v3034_v38  ;;  %v218_v49 = vmul.f32 %v4224_v57, %v2929_v7  ;;  %v217_v41 = vmul.f32 %v4224_v57, %v2931_v33  ;;  %v3055_v47 = vmul.f32 0.01, %v2951_v50 }
  0xb7   :  { %v203_v37 = vmul.f32 %v2781_v55, %v2984_v26  ;;  %4225 = vst [vmem:[#allocation3_spill] sm:$0xff] %v3043_v22  ;;  %4226 = vst [vmem:[#allocation44_spill] sm:$0xff] %v3051_v1  ;;  %v434_v14 = vadd.f32 %v370_v36, %v185_v30  ;;  %v450_v22 = vadd.f32 %v386_v18, %v201_v24  ;;  %v3064_v19 = vmul.f32 0.01, %v2960_v20 }
  0xb8   :  { %v467_v31 = vadd.f32 %v403_v27, %v218_v49  ;;  %v466_v35 = vadd.f32 %v402_v9, %v217_v41  ;;  %4227 = vst [vmem:[#allocation45_spill] sm:$0xff] %v3055_v47  ;;  %v354_v28 = vmul.f32 %v2815_v34, %v2958_v29  ;;  %v3072_v24 = vmul.f32 0.01, %v2962_v61 }
  0xb9   :  { %v324_v63 = vpop.permute.xlu1 %323  ;;  %4229 = vst [vmem:[#allocation47_spill] sm:$0xff] %v3064_v19  ;;  %v172_v7 = vmul.f32 %v2820_v40, %v139_v59  ;;  %v188_v49 = vmul.f32 %v2776_v54, %v139_v59  ;;  %v220_v25 = vmul.f32 %v4224_v57, %v139_v59  ;;  %v419_v18 = vadd.f32 %v355_v13, %v170_v43 }
  0xba   :  { %v319_v16 = vpop.permute.xlu0 %318  ;;  %v389_v62 = vmul.f32 %v2766_v52, %v324_v63  ;;  %v373_v30 = vmul.f32 %v2761_v51, %v324_v63  ;;  %4231 = vst [vmem:[#allocation49_spill] sm:$0xff] %v3072_v24  ;;  %v357_v45 = vmul.f32 %v2815_v34, %v324_v63  ;;  %v187_v36 = vmul.f32 %v2776_v54, %v2984_v26 }
  0xbb   :  { %v388_v38 = vmul.f32 %v2766_v52, %v319_v16  ;;  %v372_v29 = vmul.f32 %v2761_v51, %v319_v16  ;;  %v219_v9 = vmul.f32 %v4224_v57, %v2984_v26  ;;  %v404_v21 = vmul.f32 %v2771_v53, %v319_v16 }
  0xbc   :  { %v356_v19 = vmul.f32 %v2815_v34, %v319_v16  ;;  %v418_v59 = vadd.f32 %v354_v28, %v169_v60  ;;  %v437_v47 = vadd.f32 %v373_v30, %v188_v49  ;;  %v453_v43 = vadd.f32 %v389_v62, %v204_v15 }
  0xbd   :  { %v538_v3 = vpop.permute.xlu1 %537  ;;  %v421_v10 = vadd.f32 %v357_v45, %v172_v7  ;;  %v452_v16 = vadd.f32 %v388_v38, %v203_v37  ;;  %v468_v60 = vadd.f32 %v404_v21, %v219_v9 }
  0xbe   :  { %v533_v4 = vpop.permute.xlu0 %532  ;;  %v3061_v1 = vadd.f32 %v538_v3, %v451_v11  ;;  %v405_v11 = vmul.f32 %v2771_v53, %v324_v63  ;;  %v579_v24 = vadd.f32 %v538_v3, %v419_v18  ;;  %v3088_v63 = vadd.f32 %v538_v3, %v435_v17 }
  0xbf   :  { %v3069_v41 = vadd.f32 %v533_v4, %v450_v22  ;;  %v171_v22 = vmul.f32 %v2820_v40, %v2984_v26  ;;  %v3090_v20 = vadd.f32 %v538_v3, %v467_v31  ;;  %v578_v2 = vadd.f32 %v533_v4, %v418_v59 }
  0xc0   :  { %4228 = vst [vmem:[#allocation46_spill] sm:$0xff] %v3061_v1  ;;  %v469_v13 = vadd.f32 %v405_v11, %v220_v25  ;;  %v3092_v61 = vadd.f32 %v533_v4, %v434_v14  ;;  %v436_v26 = vadd.f32 %v372_v29, %v187_v36  ;;  %v3094_v50 = vadd.f32 %v533_v4, %v466_v35 }
  0xc1   :  { %4230 = vst [vmem:[#allocation48_spill] sm:$0xff] %v3069_v41  ;;  %v548_v33 = vpop.permute.xlu1 %547  ;;  %vm643_vm10 = vcmp.ge.f32.partialorder %v579_v24, 0.0  ;;  %v707_v17 = vmul.f32 0.01, %v579_v24  ;;  %v420_v3 = vadd.f32 %v356_v19, %v171_v22  ;;  %v3099_v15 = vmul.f32 0.01, %v3088_v63 }
  0xc2   :  { %v543_v27 = vpop.permute.xlu0 %542  ;;  %v3096_v56 = vadd.f32 %v548_v33, %v453_v43  ;;  %v581_v28 = vadd.f32 %v548_v33, %v421_v10  ;;  %v3102_v62 = vmul.f32 0.01, %v3061_v1  ;;  %v3105_v14 = vmul.f32 0.01, %v3090_v20 }
  0xc3   :  { %4233 = vst [vmem:[#allocation51_spill] sm:$0xff] %v3099_v15  ;;  %v3107_v31 = vadd.f32 %v548_v33, %v437_v47  ;;  %vm642_vm11 = vcmp.ge.f32.partialorder %v578_v2, 0.0  ;;  %v3109_v37 = vadd.f32 %v548_v33, %v469_v13  ;;  %v580_v38 = vadd.f32 %v543_v27, %v420_v3 }
  0xc4   :  { %4232 = vst [vmem:[#allocation50_spill] sm:$0xff] %v3096_v56  ;;  %4234 = vst [vmem:[#allocation52_spill] sm:$0xff] %v3102_v62  ;;  %v3111_v30 = vadd.f32 %v543_v27, %v452_v16  ;;  %v706_v10 = vmul.f32 0.01, %v578_v2  ;;  %v3114_v19 = vmul.f32 0.01, %v3092_v61  ;;  %v3122_v11 = vadd.f32 %v543_v27, %v436_v26 }
  0xc5   :  { %v149_v0 = vpop.permute.xlu1 %148  ;;  %4235 = vst [vmem:[#allocation53_spill] sm:$0xff] %v3105_v14  ;;  %4236 = vst [vmem:[#allocation54_spill] sm:$0xff] %v3109_v37  ;;  %v3117_v7 = vmul.f32 0.01, %v3069_v41  ;;  %v3120_v49 = vmul.f32 0.01, %v3094_v50  ;;  %v3130_v45 = vadd.f32 %v543_v27, %v468_v60  ;;  %v3143_v27 = vsel %vm643_vm10, %v579_v24, %v707_v17 }
  0xc6   :  { %v144_v58 = vpop.permute.xlu0 %143  ;;  %4237 = vst [vmem:[#allocation55_spill] sm:$0xff] %v3111_v30  ;;  %4238 = vst [vmem:[#allocation56_spill] sm:$0xff] %v3114_v19  ;;  %vm645_vm12 = vcmp.ge.f32.partialorder %v581_v28, 0.0  ;;  %v709_v47 = vmul.f32 0.01, %v581_v28  ;;  %vm644_vm13 = vcmp.ge.f32.partialorder %v580_v38, 0.0  ;;  %v174_v9 = vmul.f32 %v2820_v40, %v149_v0 }
  0xc7   :  { %4239 = vst [vmem:[#allocation57_spill] sm:$0xff] %v3117_v7  ;;  %4240 = vst [vmem:[#allocation58_spill] sm:$0xff] %v3120_v49  ;;  %v3125_v33 = vmul.f32 0.01, %v3107_v31  ;;  %v3128_v25 = vmul.f32 0.01, %v3096_v56  ;;  %v190_v21 = vmul.f32 %v2776_v54, %v149_v0  ;;  %v206_v59 = vmul.f32 %v2781_v55, %v149_v0 }
  0xc8   :  { %4243 = vst [vmem:[#allocation61_spill] sm:$0xff] %v3130_v45  ;;  %v708_v29 = vmul.f32 0.01, %v580_v38  ;;  %v3133_v36 = vmul.f32 0.01, %v3109_v37  ;;  %v222_v43 = vmul.f32 %v4224_v57, %v149_v0  ;;  %v3140_v13 = vsel %vm642_vm11, %v578_v2, %v706_v10  ;;  %4246 = vst [vmem:[#allocation64_spill] sm:$0xff] %v3143_v27 }
  0xc9   :  { %v334_v4 = vpop.permute.xlu1 %333  ;;  %4241 = vst [vmem:[#allocation59_spill] sm:$0xff] %v3125_v33  ;;  %4242 = vst [vmem:[#allocation60_spill] sm:$0xff] %v3128_v25  ;;  %v3146_v26 = vmul.f32 0.01, %v3122_v11  ;;  %v3149_v16 = vmul.f32 0.01, %v3111_v30  ;;  %v173_v60 = vmul.f32 %v2820_v40, %v144_v58  ;;  %v895_v3 = vpack.c.bf16 %v3143_v27, %v3140_v13 }
  0xca   :  { %v329_v35 = vpop.permute.xlu0 %328  ;;  %4244 = vst [vmem:[#allocation62_spill] sm:$0xff] %v3133_v36  ;;  %4245 = vst [vmem:[#allocation63_spill] sm:$0xff] %v3140_v13  ;;  %v3155_v25 = vmul.f32 0.01, %v3130_v45  ;;  %v189_v2 = vmul.f32 %v2776_v54, %v144_v58  ;;  %v205_v0 = vmul.f32 %v2781_v55, %v144_v58  ;;  %v3159_v24 = vsel %vm644_vm13, %v580_v38, %v708_v29 }
  0xcb   :  { %4247 = vst [vmem:[#allocation65_spill] sm:$0xff] %v3146_v26  ;;  %4248 = vst [vmem:[#allocation66_spill] sm:$0xff] %v3149_v16  ;;  %v221_v62 = vmul.f32 %v4224_v57, %v144_v58  ;;  %2359 = vmatprep.mubr.msk.bf16.mxu0 %vm923_vm5, %v895_v3  ;;  %v359_v16 = vmul.f32 %v2815_v34, %v334_v4  ;;  %v375_v7 = vmul.f32 %v2761_v51, %v334_v4 }
  0xcc   :  { %4249 = vst [vmem:[#allocation67_spill] sm:$0xff] %v3155_v25  ;;  %4250 = vst [vmem:[#allocation68_spill] sm:$0xff] %v3159_v24  ;;  %v3166_v27 = vsel %vm645_vm12, %v581_v28, %v709_v47  ;;  %v391_v13 = vmul.f32 %v2766_v52, %v334_v4  ;;  %v407_v36 = vmul.f32 %v2771_v53, %v334_v4 }
  0xcd   :  { %v159_v18 = vpop.permute.xlu1 %158  ;;  %4251 = vst [vmem:[#allocation69_spill] sm:$0xff] %v3166_v27  ;;  %v374_v38 = vmul.f32 %v2761_v51, %v329_v35  ;;  %v896_v29 = vpack.c.bf16 %v3166_v27, %v3159_v24  ;;  %v358_v58 = vmul.f32 %v2815_v34, %v329_v35  ;;  %v390_v3 = vmul.f32 %v2766_v52, %v329_v35 }
  0xce   :  { %v154_v22 = vpop.permute.xlu0 %153  ;;  %v406_v25 = vmul.f32 %v2771_v53, %v329_v35  ;;  %v176_v33 = vmul.f32 %v2820_v40, %v159_v18  ;;  %v192_v28 = vmul.f32 %v2776_v54, %v159_v18  ;;  %v208_v47 = vmul.f32 %v2781_v55, %v159_v18 }
  0xcf   :  { %2360 = vmatmul.mubr.msk.bf16.gmra.mxu0 %vm923_vm5, %v896_v29  ;;  %v224_v4 = vmul.f32 %v4224_v57, %v159_v18  ;;  %v175_v26 = vmul.f32 %v2820_v40, %v154_v22  ;;  %v191_v27 = vmul.f32 %v2776_v54, %v154_v22  ;;  %v207_v24 = vmul.f32 %v2781_v55, %v154_v22 }
  0xd0   :  { %v423_v49 = vadd.f32 %v359_v16, %v174_v9  ;;  %v439_v15 = vadd.f32 %v375_v7, %v190_v21  ;;  %v223_v35 = vmul.f32 %v4224_v57, %v154_v22  ;;  %v455_v19 = vadd.f32 %v391_v13, %v206_v59 }
  0xd1   :  { %v344_v17 = vpop.permute.xlu1 %343  ;;  %v471_v30 = vadd.f32 %v407_v36, %v222_v43  ;;  %v438_v56 = vadd.f32 %v374_v38, %v189_v2  ;;  %v454_v18 = vadd.f32 %v390_v3, %v205_v0  ;;  %v470_v37 = vadd.f32 %v406_v25, %v221_v62  ;;  %v4252_v38 = vld [vmem:[#allocation14_spill] sm:$0xff] }
  0xd2   :  { %v339_v10 = vpop.permute.xlu0 %338  ;;  %v361_v40 = vmul.f32 %v2815_v34, %v344_v17  ;;  %v377_v54 = vmul.f32 %v2761_v51, %v344_v17  ;;  %v422_v55 = vadd.f32 %v358_v58, %v173_v60  ;;  %v393_v7 = vmul.f32 %v2766_v52, %v344_v17  ;;  %v4253_v58 = vld [vmem:[#allocation24_spill] sm:$0xff] }
  0xd3   :  { %v409_v57 = vmul.f32 %v2771_v53, %v344_v17  ;;  %v360_v22 = vmul.f32 %v2815_v34, %v339_v10  ;;  %v408_v36 = vmul.f32 %v2771_v53, %v339_v10 }
  0xd4   :  { %v425_v53 = vadd.f32 %v361_v40, %v176_v33  ;;  %v441_v34 = vadd.f32 %v377_v54, %v192_v28 }
  0xd5   :  { %v558_v14 = vpop.permute.xlu1 %557  ;;  %v473_v43 = vadd.f32 %v409_v57, %v224_v4  ;;  %v424_v13 = vadd.f32 %v360_v22, %v175_v26  ;;  %v472_v2 = vadd.f32 %v408_v36, %v223_v35  ;;  %v4254_v4 = vld [vmem:[#allocation15_spill] sm:$0xff]  ;;  %v4258_v36 = vld [vmem:[#allocation61_spill] sm:$0xff] }
  0xd6   :  { %v553_v29 = vpop.permute.xlu0 %552  ;;  %v3185_v41 = vadd.f32 %v558_v14, %v423_v49  ;;  %v3187_v1 = vadd.f32 %v558_v14, %v439_v15  ;;  %v3191_v45 = vadd.f32 %v558_v14, %v471_v30  ;;  %v376_v49 = vmul.f32 %v2761_v51, %v339_v10  ;;  %v4255_v35 = vld [vmem:[#allocation27_spill] sm:$0xff] }
  0xd7   :  { %v392_v15 = vmul.f32 %v2766_v52, %v339_v10  ;;  %v3199_v62 = vadd.f32 %v558_v14, %v455_v19  ;;  %v582_v25 = vadd.f32 %v553_v29, %v422_v55  ;;  %v3206_v21 = vadd.f32 %v553_v29, %v438_v56 }
  0xd8   :  { %vm647_vm14 = vcmp.ge.f32.partialorder %v3185_v41, 0.0  ;;  %v711_v30 = vmul.f32 0.01, %v3185_v41  ;;  %v3204_v9 = vmul.f32 0.01, %v3187_v1  ;;  %v3212_v52 = vadd.f32 %v553_v29, %v470_v37 }
  0xd9   :  { %v568_v59 = vpop.permute.xlu1 %567  ;;  %v3210_v51 = vmul.f32 0.01, %v3191_v45  ;;  %v457_v19 = vadd.f32 %v393_v7, %v208_v47  ;;  %v440_v56 = vadd.f32 %v376_v49, %v191_v27  ;;  %v456_v37 = vadd.f32 %v392_v15, %v207_v24  ;;  %v4256_v7 = vld [vmem:[#allocation17_spill] sm:$0xff] }
  0xda   :  { %v563_v14 = vpop.permute.xlu0 %562  ;;  %v585_v16 = vadd.f32 %v568_v59, %v425_v53  ;;  %v3218_v60 = vadd.f32 %v568_v59, %v441_v34  ;;  %v710_v33 = vmul.f32 0.01, %v582_v25  ;;  %v3223_v17 = vadd.f32 %v568_v59, %v473_v43 }
  0xdb   :  { %v617_v0 = vadd.f32 %v568_v59, %v457_v19  ;;  %v584_v27 = vadd.f32 %v563_v14, %v424_v13  ;;  %vm646_vm9 = vcmp.ge.f32.partialorder %v582_v25, 0.0  ;;  %v3227_v26 = vmul.f32 0.01, %v3206_v21 }
  0xdc   :  { %v3230_v24 = vmul.f32 0.01, %v3212_v52  ;;  %v3232_v10 = vadd.f32 %v563_v14, %v440_v56  ;;  %v614_v3 = vadd.f32 %v553_v29, %v454_v18  ;;  %vm649_vm6 = vcmp.ge.f32.partialorder %v585_v16, 0.0  ;;  %v4260_v56 = vld [vmem:[#allocation21_spill] sm:$0xff] }
  0xdd   :  { %v713_v28 = vmul.f32 0.01, %v585_v16  ;;  %v3239_v47 = vmul.f32 0.01, %v3218_v60  ;;  %vm681_vm4 = vcmp.ge.f32.partialorder %v617_v0, 0.0  ;;  %v616_v55 = vadd.f32 %v563_v14, %v456_v37 }
  0xde   :  { %v745_v40 = vmul.f32 0.01, %v617_v0  ;;  %v3244_v54 = vmul.f32 0.01, %v3223_v17  ;;  %vm648_vm10 = vcmp.ge.f32.partialorder %v584_v27, 0.0  ;;  %v3250_v18 = vsel %vm646_vm9, %v582_v25, %v710_v33  ;;  %v4262_v33 = vld [vmem:[#allocation18_spill] sm:$0xff] }
  0xdf   :  { %v712_v29 = vmul.f32 0.01, %v584_v27  ;;  %v3255_v57 = vsel %vm647_vm14, %v3185_v41, %v711_v30  ;;  %v3259_v22 = vadd.f32 %v563_v14, %v472_v2  ;;  %vm680_vm11 = vcmp.ge.f32.partialorder %v616_v55, 0.0  ;;  %v4259_v30 = vld [vmem:[#allocation54_spill] sm:$0xff] }
  0xe0   :  { %4257 = vst [vmem:[#allocation14_spill] sm:$0xff] %v3255_v57  ;;  %v3262_v49 = vmul.f32 0.01, %v3232_v10  ;;  %v744_v15 = vmul.f32 0.01, %v616_v55  ;;  %vm660_vm9 = vcmp.ge.f32.partialorder %v3122_v11, 0.0  ;;  %v897_v41 = vpack.c.bf16 %v3255_v57, %v3250_v18 }
  0xe1   :  { %vm678_vm14 = vcmp.ge.f32.partialorder %v614_v3, 0.0  ;;  %vm679_vm7 = vcmp.ge.f32.partialorder %v3199_v62, 0.0  ;;  %v742_v25 = vmul.f32 0.01, %v614_v3  ;;  %vm693_vm8 = vcmp.ge.f32.partialorder %v4259_v30, 0.0  ;;  %v4308_v57 = vld [vmem:[#allocation44_spill] sm:$0xff] }
  0xe2   :  { %vm663_vm3 = vcmp.ge.f32.partialorder %v3187_v1, 0.0  ;;  %vm662_vm2 = vcmp.ge.f32.partialorder %v3206_v21, 0.0  ;;  %v743_v59 = vmul.f32 0.01, %v3199_v62  ;;  %v3275_v53 = vsel %vm648_vm10, %v584_v27, %v712_v29  ;;  %2363 = vmatprep.mubr.msk.bf16.mxu0 %vm923_vm5, %v897_v41  ;;  %v4273_v41 = vld [vmem:[#allocation7_spill] sm:$0xff] }
  0xe3   :  { %v3278_v34 = vsel %vm649_vm6, %v585_v16, %v713_v28  ;;  %v3281_v14 = vsel %vm680_vm11, %v616_v55, %v744_v15  ;;  %vm695_vm12 = vcmp.ge.f32.partialorder %v3191_v45, 0.0  ;;  %vm694_vm13 = vcmp.ge.f32.partialorder %v3212_v52, 0.0  ;;  %v4266_v28 = vld [vmem:[#allocation5_spill] sm:$0xff]  ;;  %v4270_v55 = vld [vmem:[#allocation30_spill] sm:$0xff] }
  0xe4   :  { %v3286_v19 = vsel %vm678_vm14, %v614_v3, %v742_v25  ;;  %v898_v43 = vpack.c.bf16 %v3278_v34, %v3275_v53  ;;  %v3291_v13 = vsel %vm681_vm4, %v617_v0, %v745_v40  ;;  %v3297_v16 = vsel %vm650_vm15, %v2830_v46, %v4260_v56  ;;  %v4263_v0 = vld [vmem:[#allocation23_spill] sm:$0xff]  ;;  %v4265_v3 = vld [vmem:[#allocation4_spill] sm:$0xff]  ;;  %v4272_v15 = vld [vmem:[#allocation6_spill] sm:$0xff] }
  0xe5   :  { %vm665_vm6 = vcmp.ge.f32.partialorder %v3218_v60, 0.0  ;;  %vm664_vm10 = vcmp.ge.f32.partialorder %v3232_v10, 0.0  ;;  %vm696_vm11 = vcmp.ge.f32.partialorder %v3259_v22, 0.0  ;;  %v3305_v37 = vsel %vm679_vm7, %v3199_v62, %v743_v59  ;;  %v4267_v40 = vld [vmem:[#allocation20_spill] sm:$0xff]  ;;  %v4274_v59 = vld [vmem:[#allocation25_spill] sm:$0xff] }
  0xe6   :  { %4261 = vst [vmem:[#allocation24_spill] sm:$0xff] %v3305_v37  ;;  %v914_v2 = vpack.c.bf16 %v3291_v13, %v3281_v14  ;;  %v3313_v46 = vsel %vm651_vm0, %v2823_v42, %v4262_v33  ;;  %v3319_v27 = vsel %vm682_vm1, %v2834_v48, %v4263_v0  ;;  %v913_v62 = vpack.c.bf16 %v3305_v37, %v3286_v19  ;;  %v4282_v0 = vld [vmem:[#allocation12_spill] sm:$0xff]  ;;  %v4298_v37 = vld [vmem:[#allocation45_spill] sm:$0xff] }
  0xe7   :  { %4264 = vst [vmem:[#allocation15_spill] sm:$0xff] %v3319_v27  ;;  %2364 = vmatmul.mubr.msk.bf16.gmra.mxu0 %vm923_vm5, %v898_v43  ;;  %v899_v42 = vpack.c.bf16 %v3313_v46, %v3297_v16  ;;  %vm4268_vm0 = vcmp.ge.f32.partialorder %v2827_v44, 0.0  ;;  %vm4271_vm1 = vcmp.ge.f32.partialorder %v2848_v8, 0.0  ;;  %vm4275_vm4 = vcmp.ge.f32.partialorder %v2842_v6, 0.0 }
  0xe8   :  { %v3333_v48 = vsel %vm4268_vm0, %v2827_v44, %v4267_v40  ;;  %v3339_v29 = vsel %vm4271_vm1, %v2848_v8, %v4270_v55  ;;  %v3349_v43 = vsel %vm4275_vm4, %v2842_v6, %v4274_v59  ;;  %v4276_v44 = vld [vmem:[#allocation34_spill] sm:$0xff]  ;;  %vm4277_vm0 = vcmp.ge.f32.partialorder %v2856_v12, 0.0  ;;  %v4279_v8 = vld [vmem:[#allocation29_spill] sm:$0xff]  ;;  %2395 = vmatprep.mubr.msk.bf16.mxu1 %vm923_vm5, %v913_v62  ;;  %v4290_v62 = vld [vmem:[#allocation35_spill] sm:$0xff] }
  0xe9   :  { %4269 = vst [vmem:[#allocation27_spill] sm:$0xff] %v3333_v48  ;;  %v915_v25 = vpack.c.bf16 %v3333_v48, %v3319_v27  ;;  %v3355_v56 = vsel %vm4277_vm0, %v2856_v12, %v4276_v44  ;;  %vm4280_vm1 = vcmp.ge.f32.partialorder %v2846_v5, 0.0  ;;  %v4283_v40 = vld [vmem:[#allocation13_spill] sm:$0xff]  ;;  %v4284_v55 = vld [vmem:[#allocation26_spill] sm:$0xff]  ;;  %v760_v6 = vmul.f32 0.01, %v3259_v22  ;;  %2367 = vmatprep.mubr.msk.bf16.mxu0 %vm923_vm5, %v899_v42  ;;  %2396 = vmatmul.mubr.msk.bf16.vlgmr.msra.gmra.mxu1 %vm923_vm5, %v914_v2 }
  0xea   :  { %4278 = vst [vmem:[#allocation17_spill] sm:$0xff] %v3355_v56  ;;  %v3361_v33 = vsel %vm4280_vm1, %v2846_v5, %v4279_v8  ;;  %v900_v12 = vpack.c.bf16 %v3349_v43, %v3339_v29  ;;  %v4285_v5 = vld [vmem:[#allocation38_spill] sm:$0xff]  ;;  %vm4286_vm4 = vcmp.ge.f32.partialorder %v2976_v32, 0.0  ;;  %v4287_v8 = vld [vmem:[#allocation16_spill] sm:$0xff]  ;;  %vm4291_vm14 = vcmp.ge.f32.partialorder %v2974_v23, 0.0 }
  0xeb   :  { %4281 = vst [vmem:[#allocation61_spill] sm:$0xff] %v3361_v33  ;;  %v916_v59 = vpack.c.bf16 %v3361_v33, %v3355_v56  ;;  %v3377_v44 = vsel %vm4286_vm4, %v2976_v32, %v4285_v5  ;;  %vm673_vm0 = vcmp.ge.f32.partialorder %v4287_v8, 0.0  ;;  %v4288_v48 = vld [vmem:[#allocation46_spill] sm:$0xff]  ;;  %v4289_v27 = vld [vmem:[#allocation48_spill] sm:$0xff]  ;;  %v3387_v42 = vsel %vm4291_vm14, %v2974_v23, %v4290_v62  ;;  %v4295_v5 = vld [vmem:[#allocation37_spill] sm:$0xff]  ;;  %2399 = vmatprep.mubr.msk.bf16.mxu1 %vm923_vm5, %v915_v25 }
  0xec   :  { %v4292_v33 = vld [vmem:[#allocation42_spill] sm:$0xff]  ;;  %vm4293_vm15 = vcmp.ge.f32.partialorder %v4252_v38, 0.0  ;;  %vm4296_vm4 = vcmp.ge.f32.partialorder %v2908_v39, 0.0  ;;  %vm4299_vm1 = vcmp.ge.f32.partialorder %v4253_v58, 0.0  ;;  %v4301_v62 = vld [vmem:[#allocation55_spill] sm:$0xff] }
  0xed   :  { %v3393_v32 = vsel %vm4293_vm15, %v4252_v38, %v4292_v33  ;;  %v3399_v56 = vsel %vm4296_vm4, %v2908_v39, %v4295_v5  ;;  %v3405_v2 = vsel %vm4299_vm1, %v4253_v58, %v4298_v37  ;;  %v4300_v23 = vld [vmem:[#allocation50_spill] sm:$0xff]  ;;  %vm676_vm7 = vcmp.ge.f32.partialorder %v4301_v62, 0.0  ;;  %v4302_v39 = vld [vmem:[#allocation43_spill] sm:$0xff]  ;;  %v4305_v58 = vld [vmem:[#allocation49_spill] sm:$0xff] }
  0xee   :  { %4294 = vst [vmem:[#allocation54_spill] sm:$0xff] %v3393_v32  ;;  %4297 = vst [vmem:[#allocation21_spill] sm:$0xff] %v3399_v56  ;;  %vm677_vm14 = vcmp.ge.f32.partialorder %v4300_v23, 0.0  ;;  %v901_v38 = vpack.c.bf16 %v3387_v42, %v3377_v44  ;;  %v917_v33 = vpack.c.bf16 %v3399_v56, %v3393_v32  ;;  %vm4303_vm15 = vcmp.ge.f32.partialorder %v4254_v4, 0.0  ;;  %v4311_v32 = vld [vmem:[#allocation56_spill] sm:$0xff] }
  0xef   :  { %v3418_v5 = vsel %vm4303_vm15, %v4254_v4, %v4302_v39  ;;  %vm4306_vm1 = vcmp.ge.f32.partialorder %v4255_v35, 0.0  ;;  %vm4309_vm4 = vcmp.ge.f32.partialorder %v4256_v7, 0.0  ;;  %vm4312_vm15 = vcmp.ge.f32.partialorder %v3092_v61, 0.0  ;;  %v4313_v39 = vld [vmem:[#allocation51_spill] sm:$0xff]  ;;  %2368 = vmatmul.mubr.msk.bf16.gmra.mxu0 %vm923_vm5, %v900_v12 }
  0xf0   :  { %4304 = vst [vmem:[#allocation18_spill] sm:$0xff] %v3418_v5  ;;  %v3424_v37 = vsel %vm4306_vm1, %v4255_v35, %v4305_v58  ;;  %v902_v25 = vpack.c.bf16 %v3418_v5, %v3405_v2  ;;  %v3432_v56 = vsel %vm4309_vm4, %v4256_v7, %v4308_v57  ;;  %v3438_v4 = vsel %vm4312_vm15, %v3092_v61, %v4311_v32  ;;  %v4315_v7 = vld [vmem:[#allocation58_spill] sm:$0xff]  ;;  %v4318_v61 = vld [vmem:[#allocation53_spill] sm:$0xff] }
  0xf1   :  { %4307 = vst [vmem:[#allocation23_spill] sm:$0xff] %v3424_v37  ;;  %4310 = vst [vmem:[#allocation4_spill] sm:$0xff] %v3432_v56  ;;  %vm4314_vm1 = vcmp.ge.f32.partialorder %v3088_v63, 0.0  ;;  %v918_v58 = vpack.c.bf16 %v3432_v56, %v3424_v37  ;;  %vm4316_vm4 = vcmp.ge.f32.partialorder %v3094_v50, 0.0  ;;  %vm4319_vm15 = vcmp.ge.f32.partialorder %v3090_v20, 0.0  ;;  %v4322_v37 = vld [vmem:[#allocation59_spill] sm:$0xff]  ;;  %2371 = vmatprep.mubr.msk.bf16.mxu0 %vm923_vm5, %v901_v38  ;;  %2400 = vmatmul.mubr.msk.bf16.gmra.mxu1 %vm923_vm5, %v916_v59 }
  0xf2   :  { %v3444_v35 = vsel %vm4314_vm1, %v3088_v63, %v4313_v39  ;;  %v3454_v57 = vsel %vm4316_vm4, %v3094_v50, %v4315_v7  ;;  %v3460_v32 = vsel %vm4319_vm15, %v3090_v20, %v4318_v61  ;;  %v4321_v39 = vld [vmem:[#allocation65_spill] sm:$0xff]  ;;  %vm4323_vm1 = vcmp.ge.f32.partialorder %v3107_v31, 0.0  ;;  %v4324_v7 = vld [vmem:[#allocation67_spill] sm:$0xff]  ;;  %2403 = vmatprep.mubr.msk.bf16.mxu1 %vm923_vm5, %v917_v33 }
  0xf3   :  { %v903_v5 = vpack.c.bf16 %v3444_v35, %v3438_v4  ;;  %4317 = vst [vmem:[#allocation5_spill] sm:$0xff] %v3454_v57  ;;  %4320 = vst [vmem:[#allocation20_spill] sm:$0xff] %v3460_v32  ;;  %v919_v63 = vpack.c.bf16 %v3460_v32, %v3454_v57  ;;  %v3468_v56 = vsel %vm660_vm9, %v3122_v11, %v4321_v39  ;;  %vm4325_vm4 = vcmp.ge.f32.partialorder %v4258_v36, 0.0  ;;  %v4327_v32 = vld [vmem:[#allocation62_spill] sm:$0xff]  ;;  %v4340_v38 = vld [vmem:[#allocation39_spill] sm:$0xff] }
  0xf4   :  { %v3474_v50 = vsel %vm4323_vm1, %v3107_v31, %v4322_v37  ;;  %v3480_v20 = vsel %vm4325_vm4, %v4258_v36, %v4324_v7  ;;  %v3489_v11 = vsel %vm693_vm8, %v4259_v30, %v4327_v32  ;;  %v3495_v31 = vsel %vm662_vm2, %v3206_v21, %v3227_v26  ;;  %v4343_v37 = vld [vmem:[#allocation36_spill] sm:$0xff]  ;;  %v4346_v32 = vld [vmem:[#allocation47_spill] sm:$0xff] }
  0xf5   :  { %4326 = vst [vmem:[#allocation30_spill] sm:$0xff] %v3480_v20  ;;  %v904_v61 = vpack.c.bf16 %v3474_v50, %v3468_v56  ;;  %4328 = vst [vmem:[#allocation6_spill] sm:$0xff] %v3489_v11  ;;  %v3501_v36 = vsel %vm663_vm3, %v3187_v1, %v3204_v9  ;;  %v920_v12 = vpack.c.bf16 %v3489_v11, %v3480_v20  ;;  %vm4329_vm2 = vcmp.ge.f32.partialorder %v3223_v17, 0.0  ;;  %v4349_v7 = vld [vmem:[#allocation3_spill] sm:$0xff] }
  0xf6   :  { %v905_v30 = vpack.c.bf16 %v3501_v36, %v3495_v31  ;;  %v3512_v21 = vsel %vm694_vm13, %v3212_v52, %v3230_v24  ;;  %v3518_v1 = vsel %vm695_vm12, %v3191_v45, %v3210_v51  ;;  %v3526_v26 = vsel %vm664_vm10, %v3232_v10, %v3262_v49  ;;  %v4330_v10 = vld [vmem:[#allocation22_spill] sm:$0xff] }
  0xf7   :  { %v921_v9 = vpack.c.bf16 %v3518_v1, %v3512_v21  ;;  %v3532_v52 = vsel %vm665_vm6, %v3218_v60, %v3239_v47  ;;  %v3537_v45 = vsel %vm696_vm11, %v3259_v22, %v760_v6  ;;  %v3546_v24 = vsel %vm4329_vm2, %v3223_v17, %v3244_v54  ;;  %v4332_v47 = vld [vmem:[#allocation19_spill] sm:$0xff]  ;;  %v4335_v54 = vld [vmem:[#allocation33_spill] sm:$0xff]  ;;  %v4337_v6 = vld [vmem:[#allocation28_spill] sm:$0xff]  ;;  %2372 = vmatmul.mubr.msk.bf16.gmra.mxu0 %vm923_vm5, %v902_v25 }
  0xf8   :  { %v906_v51 = vpack.c.bf16 %v3532_v52, %v3526_v26  ;;  %vm4331_vm3 = vcmp.ge.f32.partialorder %v4266_v28, 0.0  ;;  %vm4333_vm8 = vcmp.ge.f32.partialorder %v4265_v3, 0.0  ;;  %v922_v49 = vpack.c.bf16 %v3546_v24, %v3537_v45  ;;  %2375 = vmatprep.mubr.msk.bf16.mxu0 %vm923_vm5, %v903_v5 }
  0xf9   :  { %v3552_v60 = vsel %vm4331_vm3, %v4266_v28, %v4330_v10  ;;  %v3558_v22 = vsel %vm4333_vm8, %v4265_v3, %v4332_v47  ;;  %vm4336_vm12 = vcmp.ge.f32.partialorder %v4273_v41, 0.0  ;;  %vm4338_vm13 = vcmp.ge.f32.partialorder %v4272_v15, 0.0  ;;  %v4351_v10 = vld [vmem:[#allocation57_spill] sm:$0xff]  ;;  %v4354_v47 = vld [vmem:[#allocation52_spill] sm:$0xff]  ;;  %2404 = vmatmul.mubr.msk.bf16.gmra.mxu1 %vm923_vm5, %v918_v58 }
  0xfa   :  { %4334 = vst [vmem:[#allocation7_spill] sm:$0xff] %v3558_v22  ;;  %v907_v17 = vpack.c.bf16 %v3558_v22, %v3552_v60  ;;  %v3569_v28 = vsel %vm4336_vm12, %v4273_v41, %v4335_v54  ;;  %v3575_v3 = vsel %vm4338_vm13, %v4272_v15, %v4337_v6  ;;  %vm4341_vm9 = vcmp.ge.f32.partialorder %v4283_v40, 0.0  ;;  %2407 = vmatprep.mubr.msk.bf16.mxu1 %vm923_vm5, %v919_v63 }
  0xfb   :  { %4339 = vst [vmem:[#allocation25_spill] sm:$0xff] %v3575_v3  ;;  %v908_v59 = vpack.c.bf16 %v3575_v3, %v3569_v28  ;;  %v3583_v33 = vsel %vm4341_vm9, %v4283_v40, %v4340_v38  ;;  %vm4344_vm6 = vcmp.ge.f32.partialorder %v4282_v0, 0.0  ;;  %vm4347_vm10 = vcmp.ge.f32.partialorder %v4284_v55, 0.0 }
  0xfc   :  { %4342 = vst [vmem:[#allocation34_spill] sm:$0xff] %v3583_v33  ;;  %v3589_v41 = vsel %vm4344_vm6, %v4282_v0, %v4343_v37  ;;  %v3595_v15 = vsel %vm4347_vm10, %v4284_v55, %v4346_v32  ;;  %v3603_v40 = vsel %vm673_vm0, %v4287_v8, %v4349_v7  ;;  %vm4352_vm11 = vcmp.ge.f32.partialorder %v4289_v27, 0.0  ;;  %v4357_v8 = vld [vmem:[#allocation66_spill] sm:$0xff]  ;;  %v2545_v7 = vld [vmem:[%s4101_s5 + $0x10] sm:$0xff]  }
  0xfd   :  { %4345 = vst [vmem:[#allocation29_spill] sm:$0xff] %v3589_v41  ;;  %4348 = vst [vmem:[#allocation12_spill] sm:$0xff] %v3595_v15  ;;  %v909_v39 = vpack.c.bf16 %v3589_v41, %v3583_v33  ;;  %v3609_v0 = vsel %vm4352_vm11, %v4289_v27, %v4351_v10  ;;  %vm4355_vm15 = vcmp.ge.f32.partialorder %v4288_v48, 0.0  ;;  %v910_v54 = vpack.c.bf16 %v3603_v40, %v3595_v15  ;;  %v4359_v27 = vld [vmem:[#allocation60_spill] sm:$0xff]  ;;  %v2544_v32 = vld [vmem:[%s4101_s5 + $0x18] sm:$0xff]  }
  0xfe   :  { %4350 = vst [vmem:[#allocation13_spill] sm:$0xff] %v3603_v40  ;;  %4353 = vst [vmem:[#allocation26_spill] sm:$0xff] %v3609_v0  ;;  %v3615_v55 = vsel %vm4355_vm15, %v4288_v48, %v4354_v47  ;;  %v3625_v38 = vsel %vm676_vm7, %v4301_v62, %v4357_v8  ;;  %v3631_v37 = vsel %vm677_vm14, %v4300_v23, %v4359_v27  ;;  %v841_v47 = vmul.f32 0.05, %v3275_v53 }
  0xff   :  { %4356 = vst [vmem:[#allocation38_spill] sm:$0xff] %v3615_v55  ;;  %v911_v6 = vpack.c.bf16 %v3615_v55, %v3609_v0  ;;  %4358 = vst [vmem:[#allocation16_spill] sm:$0xff] %v3625_v38  ;;  %v912_v48 = vpack.c.bf16 %v3631_v37, %v3625_v38  ;;  %2376 = vmatmul.mubr.msk.bf16.gmra.mxu0 %vm923_vm5, %v904_v61  ;;  %v873_v27 = vmul.f32 0.05, %v3281_v14  ;;  %v874_v14 = vmul.f32 0.05, %v3291_v13 }
 0x100   :  { %4360 = vst [vmem:[#allocation46_spill] sm:$0xff] %v3631_v37  ;;  %2379 = vmatprep.mubr.msk.bf16.mxu0 %vm923_vm5, %v905_v30  ;;  %v2541_v30 = vld [vmem:[%s4101_s5 + $0x30] sm:$0xff]   ;;  %v843_v11 = vmul.f32 0.05, %v3297_v16  ;;  %v845_v33 = vmul.f32 0.05, %v3339_v29 }
 0x101   :  { %2408 = vmatmul.mubr.msk.bf16.gmra.mxu1 %vm923_vm5, %v920_v12  ;;  %v2540_v12 = vld [vmem:[%s4101_s5 + $0x38] sm:$0xff]   ;;  %v4362_v38 = vld [vmem:[#allocation9_spill] sm:$0xff]  ;;  %v846_v20 = vmul.f32 0.05, %v3349_v43  ;;  %v4367_v29 = vld [vmem:[#allocation11_spill] sm:$0xff]  ;;  %vm1882_vm1 = vcmask 80896  }
 0x102   :  { %2411 = vmatprep.mubr.msk.bf16.mxu1 %vm923_vm5, %v921_v9  ;;  %2415 = vmatprep.subr.bf16.mxu1 %v2540_v12  ;;  %v828_v41 = vmul.f32 0.05, %v4362_v38  ;;  %v4372_v43 = vld [vmem:[#allocation32_spill] sm:$0xff]  ;;  %vm1897_vm4 = vcmask 7168   ;;  %vm1923_vm2 = vcmask 80968   ;;  %vm1885_vm3 = vcmask 74752  }
 0x103   :  { %2416 = vmatpush3.bf16.msra.mxu1 %v2540_v12  ;;  %vm1900_vm8 = vcmask 1024   ;;  %vm1926_vm12 = vcmask 74824   ;;  %vm1998_vm13 = vcmask 72712   ;;  %vm2001_vm9 = vcmask 66568  }
 0x104   :  { %2417 = vmatprep.subr.bf16.mxu1 %v2541_v30  ;;  %vm2214_vm6 = vcmask 58368  }
 0x107   :  { %2380 = vmatmul.mubr.msk.bf16.gmra.mxu0 %vm923_vm5, %v906_v51  ;;  %v2542_v51 = vld [vmem:[%s4101_s5 + $0x28] sm:$0xff]   ;;  %2418 = vmatpush3.bf16.msra.mxu1 %v2541_v30  ;;  %v842_v30 = vmul.f32 0.05, %v3278_v34 }
 0x108   :  { %2383 = vmatprep.mubr.msk.bf16.mxu0 %vm923_vm5, %v907_v17  ;;  %2419 = vmatprep.subr.bf16.mxu1 %v2542_v51  ;;  %v2543_v17 = vld [vmem:[%s4101_s5 + $0x20] sm:$0xff]  }
 0x109   :  { %2412 = vmatmul.mubr.msk.bf16.gmra.mxu1 %vm923_vm5, %v922_v49 }
 0x10b   :  { %2420 = vmatpush3.bf16.msra.mxu1 %v2542_v51 }
 0x10c   :  { %2421 = vmatprep.subr.bf16.mxu1 %v2543_v17 }
 0x10f   :  { %2384 = vmatmul.mubr.msk.bf16.gmra.mxu0 %vm923_vm5, %v908_v59  ;;  %2422 = vmatpush3.bf16.msra.mxu1 %v2543_v17  ;;  %v2547_v17 = vld [vmem:[%s4101_s5] sm:$0xff]  }
 0x110   :  { %2387 = vmatprep.mubr.msk.bf16.mxu0 %vm923_vm5, %v909_v39  ;;  %2423 = vmatprep.subr.bf16.mxu1 %v2544_v32 }
 0x113   :  { %2424 = vmatpush3.bf16.msra.mxu1 %v2544_v32 }
 0x114   :  { %2425 = vmatprep.subr.bf16.mxu1 %v2545_v7 }
 0x117   :  { %2388 = vmatmul.mubr.msk.bf16.gmra.mxu0 %vm923_vm5, %v910_v54  ;;  %2426 = vmatpush3.bf16.msra.mxu1 %v2545_v7 }
 0x118   :  { %2391 = vmatprep.mubr.msk.bf16.mxu0 %vm923_vm5, %v911_v6  ;;  %v2546_v6 = vld [vmem:[%s4101_s5 + $0x8] sm:$0xff]  }
 0x119   :  { %2427 = vmatprep.subr.bf16.mxu1 %v2546_v6 }
 0x11b   :  { %2428 = vmatpush3.bf16.msra.mxu1 %v2546_v6 }
 0x11c   :  { %2429 = vmatprep.subr.bf16.mxu1 %v2547_v17 }
 0x11f   :  { %2392 = vmatmul.mubr.msk.bf16.gmra.mxu0 %vm923_vm5, %v912_v48  ;;  %2430 = vmatpush3.bf16.msra.mxu1 %v2547_v17 }
 0x15b   :  { %v3651_v23 = vpop.f32.mrf.mxu0 }
 0x15d   :  { %v1058_v62 = vpop.f32.mrf.mxu0 }
 0x15f   :  { %v3653_v5 = vpop.f32.mrf.mxu0 }
 0x161   :  { %v3655_v25 = vpop.f32.mrf.mxu0 }
 0x174   :  { %v3657_v58 = vpop.f32.mrf.mxu0 }
 0x176   :  { %v3659_v63 = vpop.f32.mrf.mxu0 }
 0x178   :  { %v3661_v61 = vpop.f32.mrf.mxu0 }
 0x17a   :  { %v3669_v9 = vpop.f32.mrf.mxu0 }
 0x18f   :  { %v3674_v49 = vpop.f32.mrf.mxu0 }
 0x191   :  { %v3679_v59 = vpop.f32.mrf.mxu0 }
 0x193   :  { %v3684_v39 = vpop.f32.mrf.mxu0 }
 0x195   :  { %v3689_v10 = vpop.f32.mrf.mxu0 }
 0x1a7   :  { %v2365_v54 = vpop.f32.mrf.mxu0 }
 0x1a8   :  { %v3695_v8 = vadd.f32 %v2365_v54, %v841_v47 }
 0x1a9   :  { %v3698_v48 = vpop.f32.mrf.mxu0  ;;  %v2397_v12 = vpop.f32.mrf.mxu1 }
 0x1aa   :  { %v3701_v51 = vadd.f32 %v2397_v12, %v873_v27  ;;  %v4361_v27 = vld [vmem:[#allocation8_spill] sm:$0xff] }
 0x1ab   :  { %v2366_v53 = vpop.f32.mrf.mxu0  ;;  %v3706_v32 = vpop.f32.mrf.mxu1  ;;  %v827_v12 = vmul.f32 0.05, %v4361_v27  ;;  %v1314_v27 = vadd.f32 %v3655_v25, %v828_v41  ;;  %v830_v25 = vmul.f32 0.05, %v4367_v29 }
 0x1ac   :  { %v3708_v47 = vadd.f32 %v2366_v53, %v842_v30 }
 0x1ad   :  { %v3711_v54 = vpop.f32.mrf.mxu0  ;;  %v2398_v55 = vpop.f32.mrf.mxu1  ;;  %v1313_v57 = vadd.f32 %v1058_v62, %v827_v12 }
 0x1ae   :  { %v3713_v34 = vadd.f32 %v2398_v55, %v874_v14  ;;  %v844_v14 = vmul.f32 0.05, %v3313_v46 }
 0x1af   :  { %v2369_v7 = vpop.f32.mrf.mxu0  ;;  %v3716_v37 = vpop.f32.mrf.mxu1 }
 0x1b0   :  { %v1331_v17 = vadd.f32 %v2369_v7, %v845_v33  ;;  %v4370_v7 = vld [vmem:[#allocation41_spill] sm:$0xff] }
 0x1b1   :  { %v1122_v0 = vpop.f32.mrf.mxu0  ;;  %v3719_v30 = vpop.f32.mrf.mxu1 }
 0x1b2   :  { %v1329_v53 = vadd.f32 %v1122_v0, %v843_v11  ;;  %v4364_v11 = vld [vmem:[#allocation10_spill] sm:$0xff] }
 0x1b3   :  { %v2370_v13 = vpop.f32.mrf.mxu0  ;;  %v3722_v55 = vpop.f32.mrf.mxu1  ;;  %v829_v0 = vmul.f32 0.05, %v4364_v11  ;;  %v4369_v11 = vld [vmem:[#allocation31_spill] sm:$0xff] }
 0x1b4   :  { %v2466_v6 = vpack.i.bf16 %v1329_v53, %v1313_v57  ;;  %v831_v33 = vmul.f32 0.05, %v4369_v11  ;;  %v1332_v15 = vadd.f32 %v2370_v13, %v846_v20  ;;  %v853_v11 = vmul.f32 0.05, %v3468_v56  ;;  %v4376_v13 = vld [vmem:[#allocation64_spill] sm:$0xff] }
 0x1b5   :  { %v1125_v40 = vpop.f32.mrf.mxu0  ;;  %v3727_v16 = vpop.f32.mrf.mxu1  ;;  %v1315_v46 = vadd.f32 %v3651_v23, %v829_v0  ;;  %v832_v0 = vmul.f32 0.05, %v4372_v43  ;;  %v851_v43 = vmul.f32 0.05, %v3438_v4  ;;  %v848_v56 = vmul.f32 0.05, %v3387_v42 }
 0x1b6   :  { %4363 = vst [vmem:[#allocation48_spill] sm:$0xff] %v3727_v16  ;;  %v1330_v62 = vadd.f32 %v1125_v40, %v844_v14  ;;  %2467 = vxpose.xlu0.b32.start [1/16] (narrow) %v2466_v6, 8  ;;  %v4368_v40 = vld [vmem:[#allocation40_spill] sm:$0xff]  ;;  %v847_v16 = vmul.f32 0.05, %v3377_v44 }
 0x1b7   :  { %v3729_v12 = vpop.f32.mrf.mxu0  ;;  %v3732_v57 = vpop.f32.mrf.mxu1  ;;  %v3740_v6 = vmul.f32 0.05, %v4368_v40  ;;  %v1316_v40 = vadd.f32 %v3653_v5, %v830_v25  ;;  %v839_v25 = vmul.f32 0.05, %v3250_v18  ;;  %v871_v42 = vmul.f32 0.05, %v3286_v19 }
 0x1b8   :  { %v2468_v38 = vpack.i.bf16 %v1330_v62, %v1314_v27  ;;  %4365 = vst [vmem:[#allocation35_spill] sm:$0xff] %v3732_v57  ;;  %v3746_v27 = vmul.f32 0.05, %v4370_v7  ;;  %v2470_v62 = vpack.i.bf16 %v1331_v17, %v1315_v46  ;;  %v4374_v57 = vld [vmem:[#allocation63_spill] sm:$0xff]  ;;  %v4375_v17 = vld [vmem:[#allocation69_spill] sm:$0xff] }
 0x1b9   :  { %v1138_v53 = vpop.f32.mrf.mxu0  ;;  %v3736_v41 = vpop.f32.mrf.mxu1  ;;  %v835_v29 = vmul.f32 0.05, %v4374_v57  ;;  %v838_v20 = vmul.f32 0.05, %v4375_v17  ;;  %v836_v46 = vmul.f32 0.05, %v4376_v13  ;;  %v2472_v57 = vpack.i.bf16 %v1332_v15, %v1316_v40 }
 0x1ba   :  { %4366 = vst [vmem:[#allocation42_spill] sm:$0xff] %v3736_v41  ;;  %2469 = vxpose.xlu0.b32.cont [2/16] (narrow) %v2468_v38, 8  ;;  %v4373_v41 = vld [vmem:[#allocation68_spill] sm:$0xff]  ;;  %v854_v17 = vmul.f32 0.05, %v3474_v50  ;;  %v1317_v13 = vadd.f32 %v3659_v63, %v831_v33 }
 0x1bb   :  { %v3742_v14 = vpop.f32.mrf.mxu0  ;;  %v3748_v23 = vpop.f32.mrf.mxu1  ;;  %v837_v38 = vmul.f32 0.05, %v4373_v41  ;;  %v3773_v4 = vadd.f32 %v3679_v59, %v835_v29  ;;  %v3782_v18 = vadd.f32 %v3684_v39, %v838_v20  ;;  %v852_v63 = vmul.f32 0.05, %v3444_v35 }
 0x1bc   :  { %4371 = vst [vmem:[#allocation37_spill] sm:$0xff] %v3748_v23  ;;  %v1333_v23 = vadd.f32 %v1138_v53, %v847_v16  ;;  %v4377_v53 = vld [vmem:[#allocation14_spill] sm:$0xff]  ;;  %v849_v39 = vmul.f32 0.05, %v3405_v2  ;;  %v857_v19 = vmul.f32 0.05, %v3526_v26  ;;  %v3798_v35 = vadd.f32 %v3689_v10, %v836_v46 }
 0x1bd   :  { %v1141_v22 = vpop.f32.mrf.mxu0  ;;  %v3755_v3 = vpop.f32.mrf.mxu1  ;;  %v3762_v41 = vadd.f32 %v3674_v49, %v837_v38  ;;  %v840_v50 = vmul.f32 0.05, %v4377_v53  ;;  %v855_v26 = vmul.f32 0.05, %v3495_v31  ;;  %v1319_v31 = vadd.f32 %v3657_v58, %v3740_v6 }
 0x1be   :  { %2471 = vxpose.xlu0.b32.cont [3/16] (narrow) %v2470_v62, 8  ;;  %v2474_v59 = vpack.i.bf16 %v1333_v23, %v1317_v13  ;;  %v1334_v33 = vadd.f32 %v1141_v22, %v848_v56  ;;  %v4380_v13 = vld [vmem:[#allocation15_spill] sm:$0xff] }
 0x1bf   :  { %v2377_v7 = vpop.f32.mrf.mxu0  ;;  %v3764_v5 = vpop.f32.mrf.mxu1  ;;  %v875_v2 = vmul.f32 0.05, %v4380_v13 }
 0x1c0   :  { %v3766_v44 = vadd.f32 %v2377_v7, %v853_v11  ;;  %v4378_v7 = vld [vmem:[#allocation24_spill] sm:$0xff] }
 0x1c1   :  { %v1154_v62 = vpop.f32.mrf.mxu0  ;;  %v3777_v49 = vpop.f32.mrf.mxu1 }
 0x1c2   :  { %v2486_v15 = vpack.i.bf16 %v3766_v44, %v3762_v41  ;;  %v3779_v16 = vadd.f32 %v1154_v62, %v851_v43  ;;  %2473 = vxpose.xlu0.b32.cont [4/16] (narrow) %v2472_v57, 8  ;;  %v872_v43 = vmul.f32 0.05, %v4378_v7  ;;  %v1318_v57 = vadd.f32 %v3669_v9, %v832_v0  ;;  %v4379_v62 = vld [vmem:[#allocation17_spill] sm:$0xff]  ;;  %v4403_v41 = vld [vmem:[#allocation46_spill] sm:$0xff] }
 0x1c3   :  { %v2378_v38 = vpop.f32.mrf.mxu0  ;;  %v3789_v40 = vpop.f32.mrf.mxu1  ;;  %v1335_v9 = vadd.f32 %v3729_v12, %v849_v39  ;;  %v3822_v12 = vadd.f32 %v3698_v48, %v839_v25  ;;  %v870_v44 = vmul.f32 0.05, %v4403_v41 }
 0x1c4   :  { %v2482_v29 = vpack.i.bf16 %v3779_v16, %v3773_v4  ;;  %v3791_v11 = vadd.f32 %v2378_v38, %v854_v17  ;;  %v877_v17 = vmul.f32 0.05, %v4379_v62  ;;  %v2476_v0 = vpack.i.bf16 %v1334_v33, %v1318_v57  ;;  %v4397_v16 = vld [vmem:[#allocation29_spill] sm:$0xff] }
 0x1c5   :  { %v1157_v20 = vpop.f32.mrf.mxu0  ;;  %v3802_v23 = vpop.f32.mrf.mxu1  ;;  %v858_v62 = vmul.f32 0.05, %v3532_v52  ;;  %v890_v52 = vmul.f32 0.05, %v3546_v24  ;;  %v2478_v58 = vpack.i.bf16 %v1335_v9, %v1319_v31  ;;  %v3849_v9 = vadd.f32 %v3711_v54, %v840_v50 }
 0x1c6   :  { %v2488_v22 = vpack.i.bf16 %v3791_v11, %v3782_v18  ;;  %v3804_v56 = vadd.f32 %v1157_v20, %v852_v63  ;;  %2475 = vxpose.xlu0.b32.cont [5/16] (narrow) %v2474_v59, 8  ;;  %v4381_v63 = vld [vmem:[#allocation18_spill] sm:$0xff]  ;;  %v889_v59 = vmul.f32 0.05, %v3537_v45  ;;  %v887_v45 = vmul.f32 0.05, %v3512_v21 }
 0x1c7   :  { %v2381_v53 = vpop.f32.mrf.mxu0  ;;  %v3812_v46 = vpop.f32.mrf.mxu1  ;;  %v850_v7 = vmul.f32 0.05, %v4381_v63  ;;  %v1363_v54 = vadd.f32 %v3719_v30, %v877_v17 }
 0x1c8   :  { %v2484_v10 = vpack.i.bf16 %v3804_v56, %v3798_v35  ;;  %v3814_v38 = vadd.f32 %v2381_v53, %v857_v19  ;;  %v856_v53 = vmul.f32 0.05, %v3501_v36  ;;  %v861_v36 = vmul.f32 0.05, %v3569_v28  ;;  %v4400_v35 = vld [vmem:[#allocation5_spill] sm:$0xff] }
 0x1c9   :  { %v1170_v20 = vpop.f32.mrf.mxu0  ;;  %v2413_v39 = vpop.f32.mrf.mxu1  ;;  %v1336_v48 = vadd.f32 %v3742_v14, %v850_v7  ;;  %v1320_v14 = vadd.f32 %v3661_v61, %v3746_v27  ;;  %v888_v28 = vmul.f32 0.05, %v3518_v1  ;;  %v859_v61 = vmul.f32 0.05, %v3552_v60 }
 0x1ca   :  { %v2494_v33 = vpack.i.bf16 %v3814_v38, %v3695_v8  ;;  %v3826_v57 = vadd.f32 %v1170_v20, %v855_v26  ;;  %2477 = vxpose.xlu0.b32.cont [6/16] (narrow) %v2476_v0, 8  ;;  %v3828_v19 = vadd.f32 %v2413_v39, %v889_v59  ;;  %v3839_v26 = vadd.f32 %v3706_v32, %v871_v42 }
 0x1cb   :  { %v2382_v13 = vpop.f32.mrf.mxu0  ;;  %v1298_v25 = vpop.f32.mrf.mxu1  ;;  %v2480_v27 = vpack.i.bf16 %v1336_v48, %v1320_v14  ;;  %v1361_v60 = vadd.f32 %v3722_v55, %v875_v2  ;;  %v4383_v48 = vld [vmem:[#allocation25_spill] sm:$0xff]  ;;  %v4385_v14 = vld [vmem:[#allocation23_spill] sm:$0xff]  ;;  %v4388_v55 = vld [vmem:[#allocation54_spill] sm:$0xff]  ;;  %v883_v56 = vmul.f32 0.05, %v4400_v35 }
 0x1cc   :  { %v2490_v6 = vpack.i.bf16 %v3826_v57, %v3822_v12  ;;  %v3836_v63 = vadd.f32 %v2382_v13, %v858_v62  ;;  %v3843_v0 = vadd.f32 %v1298_v25, %v887_v45  ;;  %v3865_v45 = vadd.f32 %v3716_v37, %v872_v43  ;;  %v4382_v13 = vld [vmem:[#allocation61_spill] sm:$0xff] }
 0x1cd   :  { %v1173_v24 = vpop.f32.mrf.mxu0  ;;  %v2414_v59 = vpop.f32.mrf.mxu1  ;;  %v862_v25 = vmul.f32 0.05, %v4383_v48  ;;  %v881_v37 = vmul.f32 0.05, %v4385_v14  ;;  %v879_v2 = vmul.f32 0.05, %v4388_v55  ;;  %v4409_v8 = vpack.i.bf16 %v3828_v19, %v3701_v51 }
 0x1ce   :  { %v3853_v32 = vadd.f32 %v1173_v24, %v856_v53  ;;  %2479 = vxpose.xlu0.b32.cont [7/16] (narrow) %v2478_v58, 8  ;;  %v3857_v20 = vadd.f32 %v2414_v59, %v890_v52  ;;  %v878_v53 = vmul.f32 0.05, %v4382_v13  ;;  %v4384_v24 = vld [vmem:[#allocation27_spill] sm:$0xff]  ;;  %v4395_v55 = vld [vmem:[#allocation13_spill] sm:$0xff]  ;;  %v4406_v11 = vpack.i.bf16 %v3836_v63, %v3708_v47  ;;  %v2550_v51 = vld [vmem:[%s4102_s7 + $0x28] sm:$0xff]  }
 0x1cf   :  { %v2385_v62 = vpop.f32.mrf.mxu0  ;;  %v1301_v31 = vpop.f32.mrf.mxu1  ;;  %v4387_v52 = vld [vmem:[#allocation7_spill] sm:$0xff]  ;;  %v2552_v19 = vld [vmem:[%s4102_s7 + $0x18] sm:$0xff]  }
 0x1d0   :  { %v2492_v50 = vpack.i.bf16 %v3853_v32, %v3849_v9  ;;  %v1347_v39 = vadd.f32 %v2385_v62, %v861_v36  ;;  %v3870_v1 = vadd.f32 %v1301_v31, %v888_v28  ;;  %v876_v36 = vmul.f32 0.05, %v4384_v24  ;;  %v4386_v62 = vld [vmem:[#allocation48_spill] sm:$0xff]  ;;  %v4391_v48 = vld [vmem:[#allocation35_spill] sm:$0xff]  ;;  %v2553_v9 = vld [vmem:[%s4102_s7 + $0x10] sm:$0xff]  }
 0x1d1   :  { %v1186_v58 = vpop.f32.mrf.mxu0  ;;  %v1364_v13 = vadd.f32 %v4386_v62, %v878_v53  ;;  %v860_v21 = vmul.f32 0.05, %v4387_v52  ;;  %v4392_v53 = vld [vmem:[#allocation12_spill] sm:$0xff]  ;;  %v4410_v47 = vpack.i.bf16 %v3857_v20, %v3713_v34  ;;  %v2551_v34 = vld [vmem:[%s4102_s7 + $0x20] sm:$0xff]  }
 0x1d2   :  { %v2507_v30 = vpack.i.bf16 %v1363_v54, %v1347_v39  ;;  %v1345_v17 = vadd.f32 %v1186_v58, %v859_v61  ;;  %2481 = vxpose.xlu0.b32.cont [8/16] (narrow) %v2480_v27, 8  ;;  %v4389_v61 = vld [vmem:[#allocation4_spill] sm:$0xff]  ;;  %v4390_v27 = vld [vmem:[#allocation21_spill] sm:$0xff]  ;;  %v1362_v24 = vadd.f32 %v4391_v48, %v876_v36  ;;  %v2555_v20 = vld [vmem:[%s4102_s7] sm:$0xff]  }
 0x1d3   :  { %v2386_v59 = vpop.f32.mrf.mxu0  ;;  %v882_v54 = vmul.f32 0.05, %v4389_v61  ;;  %v880_v39 = vmul.f32 0.05, %v4390_v27  ;;  %v866_v61 = vmul.f32 0.05, %v4395_v55 }
 0x1d4   :  { %v2503_v28 = vpack.i.bf16 %v1361_v60, %v1345_v17  ;;  %v1348_v31 = vadd.f32 %v2386_v59, %v862_v25  ;;  %v865_v60 = vmul.f32 0.05, %v4392_v53  ;;  %v4393_v17 = vld [vmem:[#allocation30_spill] sm:$0xff]  ;;  %v4399_v53 = vld [vmem:[#allocation16_spill] sm:$0xff] }
 0x1d5   :  { %v1189_v58 = vpop.f32.mrf.mxu0  ;;  %v885_v52 = vmul.f32 0.05, %v4393_v17  ;;  %v4394_v59 = vld [vmem:[#allocation34_spill] sm:$0xff]  ;;  %v2554_v32 = vld [vmem:[%s4102_s7 + $0x8] sm:$0xff]  }
 0x1d6   :  { %v2509_v14 = vpack.i.bf16 %v1364_v13, %v1348_v31  ;;  %v1346_v42 = vadd.f32 %v1189_v58, %v860_v21  ;;  %2504 = vxpose.xlu1.b32.start [1/16] (narrow) %v2503_v28, 8  ;;  %2483 = vxpose.xlu0.b32.cont [9/16] (narrow) %v2482_v29, 8  ;;  %v863_v62 = vmul.f32 0.05, %v4394_v59  ;;  %v4396_v27 = vld [vmem:[#allocation42_spill] sm:$0xff]  ;;  %v4398_v13 = vld [vmem:[#allocation37_spill] sm:$0xff] }
 0x1d7   :  { %v2389_v25 = vpop.f32.mrf.mxu0  ;;  %v1367_v43 = vadd.f32 %v4396_v27, %v881_v37  ;;  %v3895_v21 = vld [vmem:[%s4102_s7 + $0x38] sm:$0xff]   ;;  %v864_v29 = vmul.f32 0.05, %v4397_v16  ;;  %v1365_v28 = vadd.f32 %v4398_v13, %v879_v2 }
 0x1d8   :  { %v2505_v7 = vpack.i.bf16 %v1362_v24, %v1346_v42  ;;  %v1351_v36 = vadd.f32 %v2389_v25, %v865_v60  ;;  %2435 = vmatprep.subr.bf16.mxu1 %v3895_v21  ;;  %v1368_v42 = vadd.f32 %v3755_v3, %v882_v54  ;;  %v869_v60 = vmul.f32 0.05, %v4399_v53  ;;  %v4401_v59 = vld [vmem:[#allocation26_spill] sm:$0xff] }
 0x1d9   :  { %v1202_v4 = vpop.f32.mrf.mxu0  ;;  %v1366_v25 = vadd.f32 %v3764_v5, %v880_v39  ;;  %v4402_v55 = vld [vmem:[#allocation6_spill] sm:$0xff]  ;;  %v1369_v5 = vadd.f32 %v3789_v40, %v883_v56 }
 0x1da   :  { %v2515_v31 = vpack.i.bf16 %v1367_v43, %v1351_v36  ;;  %v1349_v58 = vadd.f32 %v1202_v4, %v863_v62  ;;  %2506 = vxpose.xlu1.b32.cont [2/16] (narrow) %v2505_v7, 8  ;;  %2485 = vxpose.xlu0.b32.cont [10/16] (narrow) %v2484_v10, 8  ;;  %v1371_v7 = vadd.f32 %v3777_v49, %v885_v52  ;;  %v867_v62 = vmul.f32 0.05, %v4401_v59 }
 0x1db   :  { %v2390_v37 = vpop.f32.mrf.mxu0 }
 0x1dc   :  { %v2511_v48 = vpack.i.bf16 %v1365_v28, %v1349_v58  ;;  %v1352_v24 = vadd.f32 %v2390_v37, %v866_v61  ;;  %v886_v61 = vmul.f32 0.05, %v4402_v55  ;;  %v2557_v55 = vmov 0.0  }
 0x1dd   :  { %v1205_v17 = vpop.f32.mrf.mxu0  ;;  %1883 = vst.msk [vmem:[#allocation2] sm:$0xff] %vm1882_vm1, %v2557_v55  ;;  %1884 = vst.msk [vmem:[#allocation2 + $0x8] sm:$0xff] %vm1882_vm1, %v2557_v55 }
 0x1de   :  { %v2517_v2 = vpack.i.bf16 %v1368_v42, %v1352_v24  ;;  %v1350_v43 = vadd.f32 %v1205_v17, %v864_v29  ;;  %2508 = vxpose.xlu1.b32.cont [3/16] (narrow) %v2507_v30, 8  ;;  %2487 = vxpose.xlu0.b32.cont [11/16] (narrow) %v2486_v15, 8  ;;  %v4404_v15 = vld [vmem:[#allocation20_spill] sm:$0xff]  ;;  %v1372_v36 = vadd.f32 %v3802_v23, %v886_v61  ;;  %v4405_v29 = vld [vmem:[#allocation38_spill] sm:$0xff] }
 0x1df   :  { %v2393_v10 = vpop.f32.mrf.mxu0  ;;  %v884_v49 = vmul.f32 0.05, %v4404_v15  ;;  %v868_v13 = vmul.f32 0.05, %v4405_v29  ;;  %v4408_v23 = vpack.i.bf16 %v3870_v1, %v3865_v45  ;;  %v2279_v45 = vld [vmem:[%s4103_s6] ss:$0 sm:$0xff] }
 0x1e0   :  { %v2513_v3 = vpack.i.bf16 %v1366_v25, %v1350_v43  ;;  %v1355_v54 = vadd.f32 %v2393_v10, %v869_v60  ;;  %1887 = vst.msk [vmem:[#allocation2 + $0x60] sm:$0xff] %vm1882_vm1, %v2557_v55  ;;  %1888 = vst.msk [vmem:[#allocation2 + $0x68] sm:$0xff] %vm1882_vm1, %v2557_v55  ;;  %s2558_s6 = smov 1  }
 0x1e1   :  { %v1218_v27 = vpop.f32.mrf.mxu0  ;;  %v1370_v40 = vadd.f32 %v3812_v46, %v884_v49  ;;  %1891 = vst.msk [vmem:[#allocation2 + $0x48] sm:$0xff] %vm1882_vm1, %v2557_v55  ;;  %1892 = vst.msk [vmem:[#allocation2 + $0x50] sm:$0xff] %vm1882_vm1, %v2557_v55 }
 0x1e2   :  { %v2523_v39 = vpack.i.bf16 %v1371_v7, %v1355_v54  ;;  %v1353_v30 = vadd.f32 %v1218_v27, %v867_v62  ;;  %2510 = vxpose.xlu1.b32.cont [4/16] (narrow) %v2509_v14, 8  ;;  %2489 = vxpose.xlu0.b32.cont [12/16] (narrow) %v2488_v22, 8  ;;  %v4407_v22 = vpack.i.bf16 %v3843_v0, %v3839_v26  ;;  %v2549_v0 = vld [vmem:[%s4102_s7 + $0x30] sm:$0xff]   ;;  %s2559_s7 = smov 127  }
 0x1e3   :  { %v2394_v52 = vpop.f32.mrf.mxu0  ;;  %1894 = vst.msk [vmem:[#allocation2 + $0xa8] sm:$0xff] %vm1882_vm1, %v2557_v55  ;;  %1895 = vst.msk [vmem:[#allocation2 + $0xb0] sm:$0xff] %vm1882_vm1, %v2557_v55 }
 0x1e4   :  { %v2519_v4 = vpack.i.bf16 %v1369_v5, %v1353_v30  ;;  %v1356_v16 = vadd.f32 %v2394_v52, %v870_v44  ;;  %1902 = vst.msk [vmem:[#allocation2 + $0x18] sm:$0xff] %vm1897_vm4, %v2557_v55  ;;  %1903 = vst.msk [vmem:[#allocation2 + $0x20] sm:$0xff] %vm1897_vm4, %v2557_v55 }
 0x1e5   :  { %v1221_v28 = vpop.f32.mrf.mxu0  ;;  %1905 = vst.msk [vmem:[#allocation2 + $0x30] sm:$0xff] %vm1897_vm4, %v2557_v55  ;;  %1906 = vst.msk [vmem:[#allocation2 + $0x38] sm:$0xff] %vm1897_vm4, %v2557_v55 }
 0x1e6   :  { %v2525_v58 = vpack.i.bf16 %v1372_v36, %v1356_v16  ;;  %v1354_v14 = vadd.f32 %v1221_v28, %v868_v13  ;;  %2512 = vxpose.xlu1.b32.cont [5/16] (narrow) %v2511_v48, 8  ;;  %2491 = vxpose.xlu0.b32.cont [13/16] (narrow) %v2490_v6, 8  ;;  %1914 = vst.msk [vmem:[#allocation2 + $0x78] sm:$0xff] %vm1897_vm4, %v2557_v55  ;;  %1915 = vst.msk [vmem:[#allocation2 + $0x80] sm:$0xff] %vm1897_vm4, %v2557_v55 }
 0x1e7   :  { %1917 = vst.msk [vmem:[#allocation2 + $0x90] sm:$0xff] %vm1897_vm4, %v2557_v55  ;;  %1918 = vst.msk [vmem:[#allocation2 + $0x98] sm:$0xff] %vm1897_vm4, %v2557_v55 }
 0x1e8   :  { %v2521_v18 = vpack.i.bf16 %v1370_v40, %v1354_v14  ;;  %1898 = vst.msk [vmem:[#allocation2] sm:$0xff] %vm1897_vm4, %v2557_v55  ;;  %1911 = vst.msk [vmem:[#allocation2 + $0x60] sm:$0xff] %vm1897_vm4, %v2557_v55 }
 0x1e9   :  { %1899 = vst.msk [vmem:[#allocation2 + $0x8] sm:$0xff] %vm1897_vm4, %v2557_v55  ;;  %1908 = vst.msk [vmem:[#allocation2 + $0x48] sm:$0xff] %vm1897_vm4, %v2557_v55 }
 0x1ea   :  { %2514 = vxpose.xlu1.b32.cont [6/16] (narrow) %v2513_v3, 8  ;;  %2493 = vxpose.xlu0.b32.cont [14/16] (narrow) %v2492_v50, 8  ;;  %1909 = vst.msk [vmem:[#allocation2 + $0x50] sm:$0xff] %vm1897_vm4, %v2557_v55  ;;  %1912 = vst.msk [vmem:[#allocation2 + $0x68] sm:$0xff] %vm1897_vm4, %v2557_v55 }
 0x1eb   :  { %1920 = vst.msk [vmem:[#allocation2 + $0xa8] sm:$0xff] %vm1897_vm4, %v2557_v55  ;;  %1921 = vst.msk [vmem:[#allocation2 + $0xb0] sm:$0xff] %vm1897_vm4, %v2557_v55 }
 0x1ec   :  { %1928 = vst.msk [vmem:[#allocation2 + $0x18] sm:$0xff] %vm1923_vm2, %v2557_v55  ;;  %1929 = vst.msk [vmem:[#allocation2 + $0x20] sm:$0xff] %vm1923_vm2, %v2557_v55 }
 0x1ed   :  { %1931 = vst.msk [vmem:[#allocation2 + $0x30] sm:$0xff] %vm1923_vm2, %v2557_v55  ;;  %1932 = vst.msk [vmem:[#allocation2 + $0x38] sm:$0xff] %vm1923_vm2, %v2557_v55 }
 0x1ee   :  { %2516 = vxpose.xlu1.b32.cont [7/16] (narrow) %v2515_v31, 8  ;;  %2495 = vxpose.xlu0.b32.cont [15/16] (narrow) %v2494_v33, 8  ;;  %1940 = vst.msk [vmem:[#allocation2 + $0x78] sm:$0xff] %vm1923_vm2, %v2557_v55  ;;  %1941 = vst.msk [vmem:[#allocation2 + $0x80] sm:$0xff] %vm1923_vm2, %v2557_v55 }
 0x1ef   :  { %1943 = vst.msk [vmem:[#allocation2 + $0x90] sm:$0xff] %vm1923_vm2, %v2557_v55  ;;  %1944 = vst.msk [vmem:[#allocation2 + $0x98] sm:$0xff] %vm1923_vm2, %v2557_v55 }
 0x1f0   :  { %1924 = vst.msk [vmem:[#allocation2] sm:$0xff] %vm1923_vm2, %v2557_v55  ;;  %1937 = vst.msk [vmem:[#allocation2 + $0x60] sm:$0xff] %vm1923_vm2, %v2557_v55 }
 0x1f1   :  { %1925 = vst.msk [vmem:[#allocation2 + $0x8] sm:$0xff] %vm1923_vm2, %v2557_v55  ;;  %1934 = vst.msk [vmem:[#allocation2 + $0x48] sm:$0xff] %vm1923_vm2, %v2557_v55 }
 0x1f2   :  { %2518 = vxpose.xlu1.b32.cont [8/16] (narrow) %v2517_v2, 8  ;;  %2497 = vxpose.xlu0.b32.end [16/16] (narrow) %v4406_v11, 8  ;;  %1935 = vst.msk [vmem:[#allocation2 + $0x50] sm:$0xff] %vm1923_vm2, %v2557_v55  ;;  %1938 = vst.msk [vmem:[#allocation2 + $0x68] sm:$0xff] %vm1923_vm2, %v2557_v55 }
 0x1f3   :  { %1946 = vst.msk [vmem:[#allocation2 + $0xa8] sm:$0xff] %vm1923_vm2, %v2557_v55  ;;  %1947 = vst.msk [vmem:[#allocation2 + $0xb0] sm:$0xff] %vm1923_vm2, %v2557_v55 }
 0x1f4   :  { %1893 = vst.msk [vmem:[#allocation2 + $0x58] sm:$0x3] %vm1885_vm3, %v2557_v55  ;;  %1896 = vst.msk [vmem:[#allocation2 + $0xb8] sm:$0x3] %vm1885_vm3, %v2557_v55 }
 0x1f5   :  { %1907 = vst.msk [vmem:[#allocation2 + $0x40] sm:$0x3] %vm1900_vm8, %v2557_v55  ;;  %1919 = vst.msk [vmem:[#allocation2 + $0xa0] sm:$0x3] %vm1900_vm8, %v2557_v55 }
 0x1f6   :  { %2520 = vxpose.xlu1.b32.cont [9/16] (narrow) %v2519_v4, 8  ;;  %1910 = vst.msk [vmem:[#allocation2 + $0x58] sm:$0x3] %vm1900_vm8, %v2557_v55  ;;  %1922 = vst.msk [vmem:[#allocation2 + $0xb8] sm:$0x3] %vm1900_vm8, %v2557_v55 }
 0x1f7   :  { %1933 = vst.msk [vmem:[#allocation2 + $0x40] sm:$0x3] %vm1926_vm12, %v2557_v55  ;;  %1945 = vst.msk [vmem:[#allocation2 + $0xa0] sm:$0x3] %vm1926_vm12, %v2557_v55  ;;  %v4015_v16 = vld [vmem:[#allocation2] sm:$0xff] }
 0x1f8   :  { %1936 = vst.msk [vmem:[#allocation2 + $0x58] sm:$0x3] %vm1926_vm12, %v2557_v55  ;;  %1948 = vst.msk [vmem:[#allocation2 + $0xb8] sm:$0x3] %vm1926_vm12, %v2557_v55  ;;  %v2068_v13 = vrot.slane %v4015_v16, 6  ;;  %v4020_v40 = vld [vmem:[#allocation2 + $0x60] sm:$0xff] }
 0x1f9   :  { %v2020_v29 = vld [vmem:[#allocation2 + $0x50] sm:$0xff]  ;;  %v2070_v14 = vrot.slane %v4020_v40, 6  ;;  %v2013_v11 = vld [vmem:[#allocation2 + $0x8] sm:$0xff] }
 0x1fa   :  { %2522 = vxpose.xlu1.b32.cont [10/16] (narrow) %v2521_v18, 8  ;;  %v2111_v28 = vrot.slane %v2020_v29, 2 }
 0x1fe   :  { %2524 = vxpose.xlu1.b32.cont [11/16] (narrow) %v2523_v39, 8 }
 0x202   :  { %2526 = vxpose.xlu1.b32.cont [12/16] (narrow) %v2525_v58, 8  ;;  %v2030_v58 = vld [vmem:[#allocation2 + $0xb0] sm:$0xff] }
 0x203   :  { %v2113_v18 = vrot.slane %v2030_v58, 2 }
 0x206   :  { %2528 = vxpose.xlu1.b32.cont [13/16] (narrow) %v4407_v22, 8  ;;  %v2132_v22 = vrot.slane %v2013_v11, 4 }
 0x20a   :  { %2530 = vxpose.xlu1.b32.cont [14/16] (narrow) %v4408_v23, 8  ;;  %v2023_v23 = vld [vmem:[#allocation2 + $0x68] sm:$0xff] }
 0x20e   :  { %2532 = vxpose.xlu1.b32.cont [15/16] (narrow) %v4409_v8, 8  ;;  %v2134_v8 = vrot.slane %v2023_v23, 4  ;;  %v2019_v23 = vld [vmem:[#allocation2 + $0x48] sm:$0xff] }
 0x212   :  { %2534 = vxpose.xlu1.b32.end [16/16] (narrow) %v4410_v47, 8  ;;  %v2192_v47 = vld [vmem:[%s4104_s8] sm:$0x3] }
 0x232   :  { %v2498_v46 = vpop.trf.xlu0 }
 0x233   :  { %v2502_v38 = vunpack.i.h.bf16 %v2498_v46  ;;  %v2499_v12 = vunpack.i.l.bf16 %v2498_v46  ;;  %v2021_v46 = vld [vmem:[#allocation2 + $0x58] sm:$0x3] }
 0x235   :  { %v1505_v33 = vpack.c.bf16 %v2502_v38, %v2499_v12 }
 0x237   :  { %2431 = vmatprep.mubr.bf16.mxu1 %v1505_v33 }
 0x252   :  { %v2535_v57 = vpop.trf.xlu1 }
 0x253   :  { %v2539_v6 = vunpack.i.h.bf16 %v2535_v57  ;;  %v2536_v63 = vunpack.i.l.bf16 %v2535_v57 }
 0x255   :  { %v1506_v26 = vpack.c.bf16 %v2539_v6, %v2536_v63 }
 0x257   :  { %2432 = vmatmul.mubr.bf16.vlgmr.msra.gmra.mxu1 %v1506_v26 }
 0x258   :  { %2436 = vmatpush3.bf16.msra.mxu1 %v3895_v21 }
 0x259   :  { %2437 = vmatprep.subr.bf16.mxu1 %v2549_v0 }
 0x25c   :  { %2438 = vmatpush3.bf16.msra.mxu1 %v2549_v0 }
 0x25d   :  { %2439 = vmatprep.subr.bf16.mxu1 %v2550_v51 }
 0x260   :  { %2440 = vmatpush3.bf16.msra.mxu1 %v2550_v51 }
 0x261   :  { %2441 = vmatprep.subr.bf16.mxu1 %v2551_v34 }
 0x264   :  { %2442 = vmatpush3.bf16.msra.mxu1 %v2551_v34 }
 0x265   :  { %2443 = vmatprep.subr.bf16.mxu1 %v2552_v19 }
 0x268   :  { %2444 = vmatpush3.bf16.msra.mxu1 %v2552_v19 }
 0x269   :  { %2445 = vmatprep.subr.bf16.mxu1 %v2553_v9 }
 0x26c   :  { %2446 = vmatpush3.bf16.msra.mxu1 %v2553_v9 }
 0x26d   :  { %2447 = vmatprep.subr.bf16.mxu1 %v2554_v32 }
 0x270   :  { %2448 = vmatpush3.bf16.msra.mxu1 %v2554_v32 }
 0x271   :  { %2449 = vmatprep.subr.bf16.mxu1 %v2555_v20 }
 0x274   :  { %2450 = vmatpush3.bf16.msra.mxu1 %v2555_v20 }
 0x317   :  { %v2433_v50 = vpop.f32.mrf.mxu1 }
 0x318   :  { %v1621_v31 = vadd.f32 %v2433_v50, %v2279_v45 }
 0x319   :  { %v1612_v1 = vpop.f32.mrf.mxu1 }
 0x31a   :  { %v1613_v21 = vadd.f32 %v2279_v45, %v1612_v1  ;;  %v1633_v17 = vmul.f32 0.01, %v1621_v31  ;;  %vm1629_vm0 = vcmp.ge.f32.partialorder %v1621_v31, 0.0 }
 0x31b   :  { %v2434_v37 = vpop.f32.mrf.mxu1 }
 0x31c   :  { %v1624_v42 = vadd.f32 %v2434_v37, %v2279_v45  ;;  %v1631_v24 = vmul.f32 0.01, %v1613_v21  ;;  %vm1627_vm7 = vcmp.ge.f32.partialorder %v1613_v21, 0.0  ;;  %v1637_v56 = vsel %vm1629_vm0, %v1621_v31, %v1633_v17 }
 0x31d   :  { %v1615_v48 = vpop.f32.mrf.mxu1 }
 0x31e   :  { %vm1630_vm5 = vcmp.ge.f32.partialorder %v1624_v42, 0.0  ;;  %v1634_v53 = vmul.f32 0.01, %v1624_v42  ;;  %v1616_v60 = vadd.f32 %v2279_v45, %v1615_v48  ;;  %v1635_v43 = vsel %vm1627_vm7, %v1613_v21, %v1631_v24 }
 0x320   :  { %vm1628_vm14 = vcmp.ge.f32.partialorder %v1616_v60, 0.0  ;;  %v1632_v25 = vmul.f32 0.01, %v1616_v60  ;;  %v1638_v2 = vsel %vm1630_vm5, %v1624_v42, %v1634_v53 }
 0x321   :  { %v1640_v7 = vpack.c.bf16 %v1638_v2, %v1637_v56  ;;  %v2031_v2 = vld [vmem:[#allocation2 + $0xb8] sm:$0x3] }
 0x322   :  { %v1636_v35 = vsel %vm1628_vm14, %v1616_v60, %v1632_v25 }
 0x323   :  { %v1639_v10 = vpack.c.bf16 %v1636_v35, %v1635_v43 }
 0x325   :  { %2451 = vmatprep.mubr.bf16.mxu1 %v1639_v10 }
 0x326   :  { %2452 = vmatmul.mubr.bf16.vlgmr.msra.gmra.mxu1 %v1640_v7 }
 0x3e6   :  { %v2453_v3 = vpop.f32.mrf.mxu1 }
 0x3e7   :  { %1818 = vxpose.xlu0.b32.start.end [1/1] (short) (narrow) %v2453_v3, 24 }
 0x3e8   :  { %v1739_v54 = vpop.f32.mrf.mxu1 }
 0x3ea   :  { %v2454_v59 = vpop.f32.mrf.mxu1 }
 0x3ec   :  { %v1742_v62 = vpop.f32.mrf.mxu1 }
 0x3ed   :  { %1786 = vxpose.xlu1.b32.start.end [1/1] (short) (narrow) %v1742_v62, 24 }
 0x3f0   :  { %1754 = vxpose.xlu0.b32.start.end [1/1] (short) (narrow) %v1739_v54, 24 }
 0x3f9   :  { %1850 = vxpose.xlu0.b32.start.end [1/1] (short) (narrow) %v2454_v59, 24 }
 0x463   :  { %v1834_v61 = vpop.trf.xlu0 }
 0x464   :  { %1973 = vrot.lane.b32.xlu0 %v1834_v61, %s2558_s6 }
 0x467   :  { %v1835_v27 = vpop.trf.xlu0 }
 0x469   :  { %v1802_v41 = vpop.trf.xlu1 }
 0x46b   :  { %v4004_v5 = vpop.trf.xlu0 }
 0x46d   :  { %v1803_v15 = vpop.trf.xlu1 }
 0x46f   :  { %v1770_v39 = vpop.trf.xlu0 }
 0x470   :  { %1961 = vrot.lane.b32.xlu1 %v1770_v39, %s2558_s6 }
 0x471   :  { %v1804_v36 = vpop.trf.xlu1 }
 0x473   :  { %v1771_v30 = vpop.trf.xlu0 }
 0x474   :  { %1975 = vrot.lane.b32.xlu1 %v1835_v27, %s2558_s6 }
 0x477   :  { %v4008_v44 = vpop.trf.xlu0 }
 0x478   :  { %1963 = vrot.lane.b32.xlu1 %v1771_v30, %s2558_s6 }
 0x47b   :  { %v1866_v49 = vpop.trf.xlu0 }
 0x47c   :  { %1969 = vrot.lane.b32.xlu1 %v1803_v15, %s2558_s6  ;;  %v2029_v15 = vld [vmem:[#allocation2 + $0xa8] sm:$0xff] }
 0x47f   :  { %v1867_v52 = vpop.trf.xlu0 }
 0x480   :  { %1981 = vrot.lane.b32.xlu1 %v1867_v52, %s2558_s6 }
 0x483   :  { %v1868_v4 = vpop.trf.xlu0 }
 0x484   :  { %1983 = vrot.lane.b32.xlu0 %v1868_v4, %s2558_s6  ;;  %1971 = vrot.lane.b32.xlu1 %v1804_v36, %s2558_s6  ;;  %v2057_v36 = vrot.slane %v2029_v15, 4 }
 0x488   :  { %1979 = vrot.lane.b32.xlu0 %v1866_v49, %s2558_s6  ;;  %1967 = vrot.lane.b32.xlu1 %v1802_v41, %s2558_s6 }
 0x48c   :  { %2072 = vrot.lane.b32.xlu1 %v2068_v13, %s2559_s7  ;;  %2116 = vrot.lane.b32.xlu0 %v2111_v28, %s2559_s7 }
 0x490   :  { %2076 = vrot.lane.b32.xlu1 %v2070_v14, %s2559_s7  ;;  %2120 = vrot.lane.b32.xlu0 %v2113_v18, %s2559_s7 }
 0x494   :  { %2136 = vrot.lane.b32.xlu1 %v2132_v22, %s2560_s17 }
 0x498   :  { %2140 = vrot.lane.b32.xlu1 %v2134_v8, %s2560_s17 }
 0x49c   :  { %2195 = vperm.xlu1 %2465, %v2192_v47  }
 0x4a0   :  { %2178 = vrot.lane.b32.xlu1 %v2021_v46, %s2560_s17 }
 0x4d6   :  { %v1974_v38 = vpop.permute.xlu0 %1973 }
 0x4d7   :  { %2006 = vst.msk [vmem:[#allocation2 + $0x78] sm:$0xff] %vm1998_vm13, %v1974_v38 }
 0x4de   :  { %v4034_v12 = vld [vmem:[#allocation2 + $0x78] sm:$0xff] }
 0x4df   :  { %v2071_v33 = vrot.slane %v4034_v12, 6  ;;  %v2042_v4 = vrot.slane %v4034_v12, 2 }
 0x4e1   :  { %2078 = vrot.lane.b32.xlu0 %v2071_v33, %s2559_s7  ;;  %v2050_v22 = vadd.f32 %v2042_v4, %v4020_v40 }
 0x4e2   :  { %v1962_v57 = vpop.permute.xlu1 %1961 }
 0x4e3   :  { %1999 = vst.msk [vmem:[#allocation2 + $0x18] sm:$0xff] %vm1998_vm13, %v1962_v57  ;;  %v2055_v57 = vrot.slane %v2019_v23, 4 }
 0x4e6   :  { %v1976_v6 = vpop.permute.xlu1 %1975 }
 0x4e7   :  { %2007 = vst.msk [vmem:[#allocation2 + $0x80] sm:$0xff] %vm1998_vm13, %v1976_v6 }
 0x4ea   :  { %v1964_v63 = vpop.permute.xlu1 %1963  ;;  %v4040_v26 = vld [vmem:[#allocation2 + $0x18] sm:$0xff] }
 0x4eb   :  { %2000 = vst.msk [vmem:[#allocation2 + $0x20] sm:$0xff] %vm1998_vm13, %v1964_v63  ;;  %v2069_v0 = vrot.slane %v4040_v26, 6 }
 0x4ed   :  { %2074 = vrot.lane.b32.xlu0 %v2069_v0, %s2559_s7 }
 0x4ee   :  { %v1970_v51 = vpop.permute.xlu1 %1969  ;;  %v2025_v34 = vld [vmem:[#allocation2 + $0x80] sm:$0xff] }
 0x4ef   :  { %2004 = vst.msk [vmem:[#allocation2 + $0x38] sm:$0xff] %vm1998_vm13, %v1970_v51  ;;  %2096 = vrot.lane.b32.xlu1 %v2025_v34, %s2559_s7  ;;  %v2135_v19 = vrot.slane %v2025_v34, 4  ;;  %v2154_v20 = vrot.slane %v2025_v34, 6 }
 0x4f1   :  { %2142 = vrot.lane.b32.xlu0 %v2135_v19, %s2560_s17 }
 0x4f2   :  { %v1982_v9 = vpop.permute.xlu1 %1981  ;;  %v2015_v32 = vld [vmem:[#allocation2 + $0x20] sm:$0xff] }
 0x4f3   :  { %2010 = vst.msk [vmem:[#allocation2 + $0x98] sm:$0xff] %vm1998_vm13, %v1982_v9  ;;  %2092 = vrot.lane.b32.xlu1 %v2015_v32, %s2559_s7  ;;  %v2133_v42 = vrot.slane %v2015_v32, 4  ;;  %v2152_v53 = vrot.slane %v2015_v32, 6 }
 0x4f5   :  { %2160 = vrot.lane.b32.xlu0 %v2154_v20, %s2560_s17 }
 0x4f6   :  { %v1984_v50 = vpop.permute.xlu0 %1983  ;;  %v1972_v45 = vpop.permute.xlu1 %1971  ;;  %v2017_v24 = vld [vmem:[#allocation2 + $0x38] sm:$0xff] }
 0x4f7   :  { %2011 = vst.msk [vmem:[#allocation2 + $0xa0] sm:$0x3] %vm2001_vm9, %v1984_v50  ;;  %2005 = vst.msk [vmem:[#allocation2 + $0x40] sm:$0x3] %vm2001_vm9, %v1972_v45  ;;  %v2110_v60 = vrot.slane %v2017_v24, 2  ;;  %v2153_v17 = vrot.slane %v2017_v24, 6 }
 0x4fa   :  { %v1980_v1 = vpop.permute.xlu0 %1979  ;;  %v1968_v21 = vpop.permute.xlu1 %1967  ;;  %v2027_v31 = vld [vmem:[#allocation2 + $0x98] sm:$0xff] }
 0x4fb   :  { %2009 = vst.msk [vmem:[#allocation2 + $0x90] sm:$0xff] %vm1998_vm13, %v1980_v1  ;;  %2003 = vst.msk [vmem:[#allocation2 + $0x30] sm:$0xff] %vm1998_vm13, %v1968_v21  ;;  %2098 = vrot.lane.b32.xlu0 %v2027_v31, %s2559_s7  ;;  %v2112_v37 = vrot.slane %v2027_v31, 2  ;;  %v2155_v48 = vrot.slane %v2027_v31, 6 }
 0x4fd   :  { %2118 = vrot.lane.b32.xlu1 %v2112_v37, %s2559_s7 }
 0x4fe   :  { %v2018_v25 = vld [vmem:[#allocation2 + $0x40] sm:$0x3]  ;;  %v2073_v35 = vpop.permute.xlu1 %2072  ;;  %v2117_v7 = vpop.permute.xlu0 %2116 }
 0x4ff   :  { %2138 = vrot.lane.b32.xlu0 %v2133_v42, %s2560_s17  ;;  %v2028_v43 = vld [vmem:[#allocation2 + $0xa0] sm:$0x3] }
 0x501   :  { %2162 = vrot.lane.b32.xlu1 %v2155_v48, %s2560_s17 }
 0x502   :  { %v2077_v56 = vpop.permute.xlu1 %2076  ;;  %v2121_v54 = vpop.permute.xlu0 %2120  ;;  %v2026_v27 = vld [vmem:[#allocation2 + $0x90] sm:$0xff] }
 0x503   :  { %2156 = vrot.lane.b32.xlu0 %v2152_v53, %s2560_s17  ;;  %v2043_v41 = vrot.slane %v2026_v27, 2  ;;  %v2056_v28 = vrot.slane %v2026_v27, 4 }
 0x505   :  { %2114 = vrot.lane.b32.xlu1 %v2110_v60, %s2559_s7  ;;  %v2051_v52 = vadd.f32 %v2043_v41, %v4034_v12  ;;  %v2064_v38 = vadd.f32 %v2056_v28, %v2050_v22 }
 0x506   :  { %v2137_v10 = vpop.permute.xlu1 %2136 }
 0x507   :  { %2094 = vrot.lane.b32.xlu0 %v2017_v24, %s2559_s7  ;;  %v2065_v18 = vadd.f32 %v2057_v36, %v2051_v52  ;;  %v2086_v51 = vadd.f32 %v2077_v56, %v2064_v38 }
 0x509   :  { %2158 = vrot.lane.b32.xlu1 %v2153_v17, %s2560_s17 }
 0x50a   :  { %v2141_v3 = vpop.permute.xlu1 %2140 }
 0x50b   :  { %2176 = vrot.lane.b32.xlu0 %v2018_v25, %s2560_s17 }
 0x50d   :  { %2182 = vrot.lane.b32.xlu1 %v2031_v2, %s2560_s17 }
 0x50f   :  { %2180 = vrot.lane.b32.xlu0 %v2028_v43, %s2560_s17 }
 0x511   :  { %1977 = vrot.lane.b32.xlu1 %v4004_v5, %s2558_s6  ;;  %v2016_v5 = vld [vmem:[#allocation2 + $0x30] sm:$0xff] }
 0x512   :  { %v2054_v13 = vrot.slane %v2016_v5, 4  ;;  %v2041_v11 = vrot.slane %v2016_v5, 2 }
 0x513   :  { %1965 = vrot.lane.b32.xlu0 %v4008_v44, %s2558_s6  ;;  %v2040_v44 = vrot.slane %v4040_v26, 2 }
 0x514   :  { %v2049_v6 = vadd.f32 %v2041_v11, %v4040_v26 }
 0x515   :  { %v2048_v14 = vadd.f32 %v2040_v44, %v4015_v16 }
 0x516   :  { %v2063_v19 = vadd.f32 %v2055_v57, %v2049_v6 }
 0x517   :  { %v4068_v59 = vpop.permute.xlu1 %2195  ;;  %v2062_v47 = vadd.f32 %v2054_v13, %v2048_v14 }
 0x519   :  { %v2084_v0 = vadd.f32 %v2073_v35, %v2062_v47 }
 0x51b   :  { %v2179_v55 = vpop.permute.xlu1 %2178 }
 0x553   :  { %v2079_v62 = vpop.permute.xlu0 %2078 }
 0x554   :  { %v2087_v46 = vadd.f32 %v2079_v62, %v2065_v18 }
 0x55f   :  { %v2075_v61 = vpop.permute.xlu0 %2074 }
 0x560   :  { %v2085_v40 = vadd.f32 %v2075_v61, %v2063_v19 }
 0x561   :  { %v2097_v30 = vpop.permute.xlu1 %2096 }
 0x562   :  { %v2106_v32 = vadd.f32 %v2097_v30, %v2086_v51 }
 0x563   :  { %v2143_v39 = vpop.permute.xlu0 %2142 }
 0x565   :  { %v2093_v29 = vpop.permute.xlu1 %2092 }
 0x566   :  { %v2104_v16 = vadd.f32 %v2093_v29, %v2084_v0 }
 0x567   :  { %v2161_v49 = vpop.permute.xlu0 %2160 }
 0x56d   :  { %v2099_v58 = vpop.permute.xlu0 %2098 }
 0x56e   :  { %v2107_v12 = vadd.f32 %v2099_v58, %v2087_v46 }
 0x56f   :  { %v2119_v8 = vpop.permute.xlu1 %2118 }
 0x570   :  { %v2129_v9 = vadd.f32 %v2121_v54, %v2107_v12  ;;  %v2128_v45 = vadd.f32 %v2119_v8, %v2106_v32 }
 0x571   :  { %v2139_v33 = vpop.permute.xlu0 %2138 }
 0x572   :  { %v2151_v21 = vadd.f32 %v2143_v39, %v2129_v9  ;;  %v2150_v24 = vadd.f32 %v2141_v3, %v2128_v45 }
 0x573   :  { %v2163_v63 = vpop.permute.xlu1 %2162 }
 0x574   :  { %v2171_v60 = vadd.f32 %v2163_v63, %v2151_v21  ;;  %v2170_v62 = vadd.f32 %v2161_v49, %v2150_v24 }
 0x575   :  { %v2157_v34 = vpop.permute.xlu0 %2156 }
 0x577   :  { %v2115_v20 = vpop.permute.xlu1 %2114 }
 0x578   :  { %v2126_v50 = vadd.f32 %v2115_v20, %v2104_v16 }
 0x579   :  { %v2095_v1 = vpop.permute.xlu0 %2094 }
 0x57a   :  { %v2148_v31 = vadd.f32 %v2137_v10, %v2126_v50  ;;  %v2105_v37 = vadd.f32 %v2095_v1, %v2085_v40 }
 0x57b   :  { %v2159_v42 = vpop.permute.xlu1 %2158 }
 0x57c   :  { %v2127_v48 = vadd.f32 %v2117_v7, %v2105_v37  ;;  %v2168_v26 = vadd.f32 %v2157_v34, %v2148_v31 }
 0x57d   :  { %v2177_v53 = vpop.permute.xlu0 %2176 }
 0x57e   :  { %v2149_v17 = vadd.f32 %v2139_v33, %v2127_v48  ;;  %v2188_v25 = vadd.f32 %v2177_v53, %v2168_v26 }
 0x57f   :  { %v2183_v2 = vpop.permute.xlu1 %2182 }
 0x580   :  { %v2169_v43 = vadd.f32 %v2159_v42, %v2149_v17  ;;  %v2198_v35 = vadd.f32 %v4068_v59, %v2188_v25  ;;  %v2191_v56 = vadd.f32 %v2183_v2, %v2171_v60 }
 0x581   :  { %v2181_v54 = vpop.permute.xlu0 %2180 }
 0x582   :  { %v2189_v61 = vadd.f32 %v2179_v55, %v2169_v43  ;;  %vm2202_vm10 = vcmp.ge.f32.partialorder %v2198_v35, 0.0  ;;  %v2206_v10 = vmul.f32 0.01, %v2198_v35  ;;  %v2201_v27 = vadd.f32 %v4068_v59, %v2191_v56 }
 0x583   :  { %v2190_v7 = vadd.f32 %v2181_v54, %v2170_v62  ;;  %v1978_v39 = vpop.permute.xlu1 %1977 }
 0x584   :  { %v2199_v3 = vadd.f32 %v4068_v59, %v2189_v61  ;;  %v2210_v30 = vsel %vm2202_vm10, %v2198_v35, %v2206_v10  ;;  %vm2205_vm11 = vcmp.ge.f32.partialorder %v2201_v27, 0.0  ;;  %v2209_v41 = vmul.f32 0.01, %v2201_v27 }
 0x585   :  { %2215 = vst.msk [vmem:[%s4105_s9] sm:$0x3] %vm2214_vm6, %v2210_v30  ;;  %v2200_v15 = vadd.f32 %v4068_v59, %v2190_v7  ;;  %v1966_v5 = vpop.permute.xlu0 %1965 }
 0x586   :  { %vm2203_vm15 = vcmp.ge.f32.partialorder %v2199_v3, 0.0  ;;  %v2207_v55 = vmul.f32 0.01, %v2199_v3  ;;  %v2213_v49 = vsel %vm2205_vm11, %v2201_v27, %v2209_v41 }
 0x587   :  { %2218 = vst.msk [vmem:[%s4105_s9 + $0x6] sm:$0x3] %vm2214_vm6, %v2213_v49  ;;  %vm2204_vm5 = vcmp.ge.f32.partialorder %v2200_v15, 0.0  ;;  %v2208_v44 = vmul.f32 0.01, %v2200_v15 }
 0x588   :  { %v2211_v52 = vsel %vm2203_vm15, %v2199_v3, %v2207_v55 }
 0x589   :  { %2216 = vst.msk [vmem:[%s4105_s9 + $0x2] sm:$0x3] %vm2214_vm6, %v2211_v52  ;;  %v2212_v36 = vsel %vm2204_vm5, %v2200_v15, %v2208_v44 }
 0x58a   :  { %2217 = vst.msk [vmem:[%s4105_s9 + $0x4] sm:$0x3] %vm2214_vm6, %v2212_v36 }

// kernel: multi_wave_gcunet_forward.4
= control target key start
LH: loop header
LB: loop body
LE: loop exit
PB: predicated region body
PF: predicated region fallthrough
CT: control target
= control target key end

     0   :  { %v2913_v0 = vmov 0   ;;  %vm934_vm0 = vcmask 1043456   ;;  %vm837_vm1 = vcmask 64512   ;;  %s4262_s3 = inlined_call_operand.vmem [shape: f32[2,64,1], index: 3, kind: input, shape index: {}]   ;;  %s4263_s4 = inlined_call_operand.vmem [shape: f32[64,1], index: 4, kind: input, shape index: {}]   ;;  %s4264_s2 = inlined_call_operand.vmem [shape: bf16[8,8], index: 2, kind: input, shape index: {}]   ;;  %s4265_s0 = inlined_call_operand.vmem [shape: f32[2,4,1,8], index: 0, kind: input, shape index: {}]   ;;  %s4266_s1 = inlined_call_operand.vmem [shape: f32[2,4,1,8], index: 1, kind: input, shape index: {}]   ;;  %s4267_s5 = inlined_call_operand.vmem [shape: bf16[64,64], index: 5, kind: input, shape index: {}]   ;;  %s4268_s8 = inlined_call_operand.<no memory space> [shape: f32[1,1], index: 8, kind: input, shape index: {}]   ;;  %s4269_s7 = inlined_call_operand.vmem [shape: bf16[64,9], index: 7, kind: input, shape index: {}]   ;;  %s4270_s6 = inlined_call_operand.vmem [shape: f32[1,64], index: 6, kind: input, shape index: {}]   ;;  %s4271_s9 = inlined_call_operand.vmem [shape: f32[2,4,1,8], index: 9, kind: output, shape index: {}]  }
   0x1   :  { %2820 = vset.pattern.permute.xlu1 %v2913_v0  ;;  %2819 = vset.pattern.permute.xlu0 %v2913_v0  ;;  %v2598_v1 = vld [vmem:[%s4262_s3 + $0x40] sm:$0xff]  ;;  %v2599_v3 = vld [vmem:[%s4262_s3 + $0x48] sm:$0xff]  ;;  %v54_v5 = vld [vmem:[%s4262_s3 + $0x18] sm:$0xff] }
   0x2   :  { %v51_v2 = vld [vmem:[%s4262_s3] sm:$0xff]  ;;  %270 = vperm.xlu1 %2820, %v2598_v1   ;;  %v52_v4 = vld [vmem:[%s4262_s3 + $0x8] sm:$0xff]  ;;  %v53_v6 = vld [vmem:[%s4262_s3 + $0x10] sm:$0xff] }
   0x3   :  { %109 = vperm.xlu0 %2819, %v51_v2   ;;  %v2601_v7 = vld [vmem:[%s4262_s3 + $0x58] sm:$0xff]  ;;  %v2600_v8 = vld [vmem:[%s4262_s3 + $0x50] sm:$0xff]  ;;  %v437_v9 = vld [vmem:[%s4263_s4 + $0x8] sm:$0xff] }
   0x4   :  { %v436_v10 = vld [vmem:[%s4263_s4] sm:$0xff]  ;;  %v439_v11 = vld [vmem:[%s4263_s4 + $0x18] sm:$0xff]  ;;  %v438_v12 = vld [vmem:[%s4263_s4 + $0x10] sm:$0xff] }
   0x5   :  { %v740_v13 = vld [vmem:[%s4264_s2] sm:$0xf]  ;;  %v56_v15 = vld [vmem:[%s4262_s3 + $0x28] sm:$0xff]  ;;  %v58_v19 = vld [vmem:[%s4262_s3 + $0x38] sm:$0xff] }
   0x6   :  { %275 = vperm.xlu1 %2820, %v2599_v3   ;;  %2812 = vmatprep.subr.msk.bf16.mxu0 %vm934_vm0, %v740_v13  ;;  %v936_v14 = vsel %vm934_vm0, %v740_v13, 0  ;;  %v55_v16 = vld [vmem:[%s4262_s3 + $0x20] sm:$0xff]  ;;  %v2603_v17 = vld [vmem:[%s4262_s3 + $0x68] sm:$0xff]  ;;  %v57_v20 = vld [vmem:[%s4262_s3 + $0x30] sm:$0xff] }
   0x7   :  { %114 = vperm.xlu0 %2819, %v52_v4   ;;  %2813 = vmatprep.subr.msk.bf16.mxu1 %vm934_vm0, %v740_v13  ;;  %v2602_v18 = vld [vmem:[%s4262_s3 + $0x60] sm:$0xff]  ;;  %v2605_v21 = vld [vmem:[%s4262_s3 + $0x78] sm:$0xff]  ;;  %v2604_v22 = vld [vmem:[%s4262_s3 + $0x70] sm:$0xff] }
   0x8   :  { %2713 = vmatpush3.bf16.msra.mxu0 %v936_v14  ;;  %2811 = vmatpush3.bf16.msra.mxu1 %v936_v14  ;;  %v441_v23 = vld [vmem:[%s4263_s4 + $0x28] sm:$0xff]  ;;  %v440_v24 = vld [vmem:[%s4263_s4 + $0x20] sm:$0xff]  ;;  %v443_v25 = vld [vmem:[%s4263_s4 + $0x38] sm:$0xff] }
   0x9   :  { %v442_v26 = vld [vmem:[%s4263_s4 + $0x30] sm:$0xff]  ;;  %v3046_v27 = vld [vmem:[%s4265_s0] ss:$0 sm:$0xff]  ;;  %v3056_v29 = vld [vmem:[%s4265_s0 + $0x5] ss:$0 sm:$0xff] }
   0xa   :  { %124 = vperm.xlu1 %2820, %v54_v5   ;;  %v3051_v28 = vld [vmem:[%s4266_s1] ss:$0 sm:$0xff]  ;;  %v3061_v30 = vld [vmem:[%s4266_s1 + $0x5] ss:$0 sm:$0xff]  ;;  %v3066_v31 = vld [vmem:[%s4265_s0 + $0x1] ss:$0 sm:$0xff] }
   0xb   :  { %119 = vperm.xlu0 %2819, %v53_v6   ;;  %v3071_v32 = vld [vmem:[%s4266_s1 + $0x1] ss:$0 sm:$0xff]  ;;  %v3076_v33 = vld [vmem:[%s4265_s0 + $0x6] ss:$0 sm:$0xff]  ;;  %v3090_v37 = vld [vmem:[%s4265_s0 + $0x2] ss:$0 sm:$0xff] }
   0xc   :  { %v3081_v34 = vld [vmem:[%s4266_s1 + $0x6] ss:$0 sm:$0xff]  ;;  %v3095_v38 = vld [vmem:[%s4266_s1 + $0x2] ss:$0 sm:$0xff]  ;;  %v3108_v43 = vld [vmem:[%s4265_s0 + $0x7] ss:$0 sm:$0xff] }
   0xd   :  { %4324 = vst [vmem:[#allocation6_spill] sm:$0xff] %v3108_v43  ;;  %v3113_v44 = vld [vmem:[%s4266_s1 + $0x7] ss:$0 sm:$0xff] }
   0xe   :  { %285 = vperm.xlu1 %2820, %v2601_v7  }
   0xf   :  { %280 = vperm.xlu0 %2819, %v2600_v8  }
  0x12   :  { %451 = vperm.xlu1 %2820, %v437_v9  }
  0x13   :  { %446 = vperm.xlu0 %2819, %v436_v10  }
  0x16   :  { %461 = vperm.xlu1 %2820, %v439_v11  }
  0x17   :  { %456 = vperm.xlu0 %2819, %v438_v12  }
  0x1a   :  { %134 = vperm.xlu1 %2820, %v56_v15  }
  0x1b   :  { %129 = vperm.xlu0 %2819, %v55_v16  }
  0x1e   :  { %295 = vperm.xlu1 %2820, %v2603_v17   ;;  %v3184_v17 = vld [vmem:[%s4265_s0 + $0x3] ss:$0 sm:$0xff] }
  0x1f   :  { %290 = vperm.xlu0 %2819, %v2602_v18   ;;  %4329 = vst [vmem:[#allocation11_spill] sm:$0xff] %v3184_v17 }
  0x22   :  { %144 = vperm.xlu1 %2820, %v58_v19  }
  0x23   :  { %139 = vperm.xlu0 %2819, %v57_v20  }
  0x26   :  { %305 = vperm.xlu1 %2820, %v2605_v21  }
  0x27   :  { %300 = vperm.xlu0 %2819, %v2604_v22  }
  0x2a   :  { %471 = vperm.xlu1 %2820, %v441_v23  }
  0x2b   :  { %466 = vperm.xlu0 %2819, %v440_v24  }
  0x2e   :  { %481 = vperm.xlu1 %2820, %v443_v25  }
  0x2f   :  { %476 = vperm.xlu0 %2819, %v442_v26  }
  0x7d   :  { %v3083_v35 = vpop.permute.xlu1 %270 }
  0x7e   :  { %4322 = vst [vmem:[#allocation4_spill] sm:$0xff] %v3083_v35  ;;  %v3085_v36 = vpop.permute.xlu0 %109  ;;  %v308_v40 = vmul.f32 %v3051_v28, %v3083_v35  ;;  %v348_v42 = vmul.f32 %v3061_v30, %v3083_v35  ;;  %v316_v46 = vmul.f32 %v3071_v32, %v3083_v35  ;;  %v356_v48 = vmul.f32 %v3081_v34, %v3083_v35 }
  0x7f   :  { %4323 = vst [vmem:[#allocation5_spill] sm:$0xff] %v3085_v36  ;;  %v147_v39 = vmul.f32 %v3046_v27, %v3085_v36  ;;  %v187_v41 = vmul.f32 %v3056_v29, %v3085_v36  ;;  %v155_v45 = vmul.f32 %v3066_v31, %v3085_v36  ;;  %v195_v47 = vmul.f32 %v3076_v33, %v3085_v36 }
  0x80   :  { %v163_v51 = vmul.f32 %v3090_v37, %v3085_v36  ;;  %v324_v52 = vmul.f32 %v3095_v38, %v3083_v35  ;;  %v203_v57 = vmul.f32 %v3108_v43, %v3085_v36  ;;  %v364_v58 = vmul.f32 %v3113_v44, %v3083_v35 }
  0x81   :  { %v3123_v49 = vadd.f32 %v308_v40, %v147_v39  ;;  %v3125_v50 = vadd.f32 %v348_v42, %v187_v41  ;;  %v3131_v53 = vpop.permute.xlu1 %275  ;;  %v3135_v55 = vadd.f32 %v316_v46, %v155_v45  ;;  %v3137_v56 = vadd.f32 %v356_v48, %v195_v47 }
  0x82   :  { %4325 = vst [vmem:[#allocation7_spill] sm:$0xff] %v3131_v53  ;;  %v3133_v54 = vpop.permute.xlu0 %114  ;;  %v309_v60 = vmul.f32 %v3051_v28, %v3131_v53  ;;  %v349_v62 = vmul.f32 %v3061_v30, %v3131_v53  ;;  %v317_v0 = vmul.f32 %v3071_v32, %v3131_v53  ;;  %v357_v2 = vmul.f32 %v3081_v34, %v3131_v53 }
  0x83   :  { %4326 = vst [vmem:[#allocation8_spill] sm:$0xff] %v3133_v54  ;;  %v148_v59 = vmul.f32 %v3046_v27, %v3133_v54  ;;  %v188_v61 = vmul.f32 %v3056_v29, %v3133_v54  ;;  %v156_v63 = vmul.f32 %v3066_v31, %v3133_v54  ;;  %v196_v1 = vmul.f32 %v3076_v33, %v3133_v54 }
  0x84   :  { %v164_v5 = vmul.f32 %v3090_v37, %v3133_v54  ;;  %v325_v6 = vmul.f32 %v3095_v38, %v3131_v53  ;;  %v3167_v11 = vadd.f32 %v324_v52, %v163_v51  ;;  %v3171_v12 = vmul.f32 %v3108_v43, %v3133_v54 }
  0x85   :  { %v373_v3 = vadd.f32 %v309_v60, %v148_v59  ;;  %v413_v4 = vadd.f32 %v349_v62, %v188_v61  ;;  %v3163_v7 = vpop.permute.xlu1 %124  ;;  %v381_v9 = vadd.f32 %v317_v0, %v156_v63  ;;  %v421_v10 = vadd.f32 %v357_v2, %v196_v1 }
  0x86   :  { %4327 = vst [vmem:[#allocation9_spill] sm:$0xff] %v3163_v7  ;;  %v3165_v8 = vpop.permute.xlu0 %119  ;;  %v150_v14 = vmul.f32 %v3046_v27, %v3163_v7  ;;  %v190_v16 = vmul.f32 %v3056_v29, %v3163_v7  ;;  %v158_v19 = vmul.f32 %v3066_v31, %v3163_v7  ;;  %v198_v21 = vmul.f32 %v3076_v33, %v3163_v7 }
  0x87   :  { %4328 = vst [vmem:[#allocation10_spill] sm:$0xff] %v3165_v8  ;;  %v149_v13 = vmul.f32 %v3046_v27, %v3165_v8  ;;  %v189_v15 = vmul.f32 %v3056_v29, %v3165_v8  ;;  %v157_v18 = vmul.f32 %v3066_v31, %v3165_v8  ;;  %v197_v20 = vmul.f32 %v3076_v33, %v3165_v8 }
  0x88   :  { %v3194_v22 = vadd.f32 %v325_v6, %v164_v5  ;;  %v3198_v23 = vmul.f32 %v3113_v44, %v3131_v53  ;;  %v3200_v24 = vadd.f32 %v364_v58, %v203_v57  ;;  %v3204_v25 = vmul.f32 %v3090_v37, %v3165_v8 }
  0x89   :  { %v3206_v26 = vpop.permute.xlu1 %285  ;;  %v3212_v40 = vmul.f32 %v3090_v37, %v3163_v7  ;;  %v3216_v41 = vmul.f32 %v3108_v43, %v3165_v8  ;;  %v3220_v42 = vmul.f32 %v3108_v43, %v3163_v7  ;;  %v3224_v45 = vmul.f32 %v3184_v17, %v3085_v36 }
  0x8a   :  { %v3208_v39 = vpop.permute.xlu0 %280  ;;  %v311_v47 = vmul.f32 %v3051_v28, %v3206_v26  ;;  %v351_v51 = vmul.f32 %v3061_v30, %v3206_v26  ;;  %v319_v57 = vmul.f32 %v3071_v32, %v3206_v26  ;;  %v359_v59 = vmul.f32 %v3081_v34, %v3206_v26 }
  0x8b   :  { %4330 = vst [vmem:[#allocation12_spill] sm:$0xff] %v3216_v41  ;;  %4331 = vst [vmem:[#allocation13_spill] sm:$0xff] %v3220_v42  ;;  %v310_v46 = vmul.f32 %v3051_v28, %v3208_v39  ;;  %v350_v48 = vmul.f32 %v3061_v30, %v3208_v39  ;;  %v318_v52 = vmul.f32 %v3071_v32, %v3208_v39 }
  0x8c   :  { %4332 = vst [vmem:[#allocation14_spill] sm:$0xff] %v3224_v45  ;;  %v358_v58 = vmul.f32 %v3081_v34, %v3208_v39  ;;  %v375_v61 = vadd.f32 %v311_v47, %v150_v14  ;;  %v415_v63 = vadd.f32 %v351_v51, %v190_v16  ;;  %v3248_v5 = vadd.f32 %v319_v57, %v158_v19 }
  0x8d   :  { %v374_v60 = vadd.f32 %v310_v46, %v149_v13  ;;  %v414_v62 = vadd.f32 %v350_v48, %v189_v15  ;;  %v3242_v0 = vpop.permute.xlu1 %451  ;;  %v3246_v2 = vadd.f32 %v318_v52, %v157_v18  ;;  %v3252_v36 = vadd.f32 %v359_v59, %v198_v21 }
  0x8e   :  { %v3244_v1 = vpop.permute.xlu0 %446  ;;  %v3250_v6 = vadd.f32 %v358_v58, %v197_v20  ;;  %v485_v13 = vadd.f32 %v3242_v0, %v373_v3  ;;  %v525_v15 = vadd.f32 %v3242_v0, %v413_v4  ;;  %v493_v18 = vadd.f32 %v3242_v0, %v381_v9 }
  0x8f   :  { %v484_v7 = vadd.f32 %v3244_v1, %v3123_v49  ;;  %v524_v14 = vadd.f32 %v3244_v1, %v3125_v50  ;;  %v492_v16 = vadd.f32 %v3244_v1, %v3135_v55  ;;  %v3265_v19 = vadd.f32 %v3244_v1, %v3137_v56 }
  0x90   :  { %v3268_v20 = vadd.f32 %v3242_v0, %v421_v10  ;;  %vm549_vm3 = vcmp.ge.f32.partialorder %v485_v13, 0.0  ;;  %v613_v3 = vmul.f32 0.01, %v485_v13  ;;  %vm589_vm5 = vcmp.ge.f32.partialorder %v525_v15, 0.0 }
  0x91   :  { %vm548_vm2 = vcmp.ge.f32.partialorder %v484_v7, 0.0  ;;  %v612_v49 = vmul.f32 0.01, %v484_v7  ;;  %v3270_v21 = vpop.permute.xlu1 %461  ;;  %vm588_vm4 = vcmp.ge.f32.partialorder %v524_v14, 0.0  ;;  %v652_v55 = vmul.f32 0.01, %v524_v14 }
  0x92   :  { %v3272_v50 = vpop.permute.xlu0 %456  ;;  %v653_v4 = vmul.f32 0.01, %v525_v15  ;;  %v3276_v46 = vsel %vm549_vm3, %v485_v13, %v613_v3  ;;  %v487_v10 = vadd.f32 %v3270_v21, %v375_v61  ;;  %v527_v61 = vadd.f32 %v3270_v21, %v415_v63 }
  0x93   :  { %v3274_v9 = vsel %vm548_vm2, %v484_v7, %v612_v49  ;;  %4334 = vst [vmem:[#allocation16_spill] sm:$0xff] %v3276_v46  ;;  %v486_v56 = vadd.f32 %v3272_v50, %v374_v60  ;;  %v3282_v48 = vsel %vm588_vm4, %v524_v14, %v652_v55  ;;  %v526_v52 = vadd.f32 %v3272_v50, %v414_v62 }
  0x94   :  { %4333 = vst [vmem:[#allocation15_spill] sm:$0xff] %v3274_v9  ;;  %v805_v47 = vpack.c.bf16 %v3276_v46, %v3274_v9  ;;  %4335 = vst [vmem:[#allocation17_spill] sm:$0xff] %v3282_v48  ;;  %v3284_v51 = vsel %vm589_vm5, %v525_v15, %v653_v4  ;;  %vm551_vm7 = vcmp.ge.f32.partialorder %v487_v10, 0.0  ;;  %v615_v60 = vmul.f32 0.01, %v487_v10 }
  0x95   :  { %4336 = vst [vmem:[#allocation18_spill] sm:$0xff] %v3284_v51  ;;  %v825_v57 = vpack.c.bf16 %v3284_v51, %v3282_v48  ;;  %vm550_vm6 = vcmp.ge.f32.partialorder %v486_v56, 0.0  ;;  %v614_v7 = vmul.f32 0.01, %v486_v56  ;;  %v3289_v58 = vpop.permute.xlu1 %134  ;;  %vm590_vm8 = vcmp.ge.f32.partialorder %v526_v52, 0.0 }
  0x96   :  { %v3291_v59 = vpop.permute.xlu0 %129  ;;  %2714 = vmatprep.mubr.msk.bf16.mxu0 %vm837_vm1, %v805_v47  ;;  %v654_v13 = vmul.f32 0.01, %v526_v52  ;;  %v152_v15 = vmul.f32 %v3046_v27, %v3289_v58  ;;  %v3304_v3 = vsel %vm551_vm7, %v487_v10, %v615_v60  ;;  %vm591_vm9 = vcmp.ge.f32.partialorder %v527_v61, 0.0 }
  0x97   :  { %2754 = vmatprep.mubr.msk.bf16.mxu1 %vm837_vm1, %v825_v57  ;;  %v3296_v62 = vsel %vm550_vm6, %v486_v56, %v614_v7  ;;  %v151_v14 = vmul.f32 %v3046_v27, %v3291_v59  ;;  %v191_v49 = vmul.f32 %v3056_v29, %v3291_v59  ;;  %4338 = vst [vmem:[#allocation20_spill] sm:$0xff] %v3304_v3  ;;  %v655_v55 = vmul.f32 0.01, %v527_v61 }
  0x98   :  { %4337 = vst [vmem:[#allocation19_spill] sm:$0xff] %v3296_v62  ;;  %v3306_v63 = vsel %vm590_vm8, %v526_v52, %v654_v13  ;;  %v806_v4 = vpack.c.bf16 %v3304_v3, %v3296_v62  ;;  %v192_v56 = vmul.f32 %v3056_v29, %v3289_v58  ;;  %vm556_vm10 = vcmp.ge.f32.partialorder %v492_v16, 0.0 }
  0x99   :  { %4339 = vst [vmem:[#allocation21_spill] sm:$0xff] %v3306_v63  ;;  %vm557_vm11 = vcmp.ge.f32.partialorder %v493_v18, 0.0  ;;  %v3312_v47 = vpop.permute.xlu1 %295  ;;  %v3316_v7 = vsel %vm591_vm9, %v527_v61, %v655_v55  ;;  %v620_v10 = vmul.f32 0.01, %v492_v16  ;;  %v621_v60 = vmul.f32 0.01, %v493_v18 }
  0x9a   :  { %v3314_v57 = vpop.permute.xlu0 %290  ;;  %4340 = vst [vmem:[#allocation22_spill] sm:$0xff] %v3316_v7  ;;  %vm596_vm12 = vcmp.ge.f32.partialorder %v3265_v19, 0.0  ;;  %2715 = vmatmul.mubr.msk.bf16.vlgmr.msra.gmra.mxu0 %vm837_vm1, %v806_v4  ;;  %v826_v52 = vpack.c.bf16 %v3316_v7, %v3306_v63  ;;  %v313_v51 = vmul.f32 %v3051_v28, %v3312_v47  ;;  %v353_v61 = vmul.f32 %v3061_v30, %v3312_v47 }
  0x9b   :  { %v312_v13 = vmul.f32 %v3051_v28, %v3314_v57  ;;  %v352_v48 = vmul.f32 %v3061_v30, %v3314_v57  ;;  %v3330_v55 = vsel %vm556_vm10, %v492_v16, %v620_v10  ;;  %v3332_v3 = vsel %vm557_vm11, %v493_v18, %v621_v60 }
  0x9c   :  { %vm597_vm13 = vcmp.ge.f32.partialorder %v3268_v20, 0.0  ;;  %2755 = vmatmul.mubr.msk.bf16.vlgmr.msra.gmra.mxu1 %vm837_vm1, %v826_v52  ;;  %v377_v7 = vadd.f32 %v313_v51, %v152_v15  ;;  %v417_v8 = vadd.f32 %v353_v61, %v192_v56  ;;  %v660_v16 = vmul.f32 0.01, %v3265_v19 }
  0x9d   :  { %v376_v4 = vadd.f32 %v312_v13, %v151_v14  ;;  %v416_v63 = vadd.f32 %v352_v48, %v191_v49  ;;  %v3338_v46 = vpop.permute.xlu1 %144  ;;  %v661_v18 = vmul.f32 0.01, %v3268_v20  ;;  %v494_v10 = vadd.f32 %v3272_v50, %v3246_v2 }
  0x9e   :  { %v3340_v9 = vpop.permute.xlu0 %139  ;;  %v154_v48 = vmul.f32 %v3046_v27, %v3338_v46  ;;  %v194_v15 = vmul.f32 %v3056_v29, %v3338_v46  ;;  %v3357_v49 = vsel %vm596_vm12, %v3265_v19, %v660_v16  ;;  %v495_v56 = vadd.f32 %v3270_v21, %v3248_v5 }
  0x9f   :  { %v153_v14 = vmul.f32 %v3046_v27, %v3340_v9  ;;  %v193_v51 = vmul.f32 %v3056_v29, %v3340_v9  ;;  %4341 = vst [vmem:[#allocation23_spill] sm:$0xff] %v3357_v49  ;;  %v3362_v2 = vsel %vm597_vm13, %v3268_v20, %v661_v18  ;;  %vm558_vm14 = vcmp.ge.f32.partialorder %v494_v10, 0.0 }
  0xa0   :  { %4342 = vst [vmem:[#allocation24_spill] sm:$0xff] %v3362_v2  ;;  %v622_v60 = vmul.f32 0.01, %v494_v10  ;;  %v534_v29 = vadd.f32 %v3272_v50, %v3250_v6  ;;  %v535_v19 = vadd.f32 %v3270_v21, %v3252_v36  ;;  %vm559_vm15 = vcmp.ge.f32.partialorder %v495_v56, 0.0 }
  0xa1   :  { %v3372_v52 = vpop.permute.xlu1 %305  ;;  %v623_v20 = vmul.f32 0.01, %v495_v56  ;;  %v159_v5 = vmul.f32 %v3066_v31, %v3291_v59  ;;  %v160_v61 = vmul.f32 %v3066_v31, %v3289_v58 }
  0xa2   :  { %v3374_v13 = vpop.permute.xlu0 %300  ;;  %v315_v6 = vmul.f32 %v3051_v28, %v3372_v52  ;;  %v355_v18 = vmul.f32 %v3061_v30, %v3372_v52  ;;  %v3388_v27 = vsel %vm558_vm14, %v494_v10, %v622_v60  ;;  %vm598_vm0 = vcmp.ge.f32.partialorder %v534_v29, 0.0 }
  0xa3   :  { %v314_v16 = vmul.f32 %v3051_v28, %v3374_v13  ;;  %v354_v36 = vmul.f32 %v3061_v30, %v3374_v13  ;;  %v3390_v62 = vsel %vm559_vm15, %v495_v56, %v623_v20  ;;  %vm599_vm2 = vcmp.ge.f32.partialorder %v535_v19, 0.0 }
  0xa4   :  { %v379_v53 = vadd.f32 %v315_v6, %v154_v48  ;;  %v419_v17 = vadd.f32 %v355_v18, %v194_v15  ;;  %v662_v42 = vmul.f32 0.01, %v534_v29  ;;  %v663_v41 = vmul.f32 0.01, %v535_v19 }
  0xa5   :  { %v378_v45 = vadd.f32 %v314_v16, %v153_v14  ;;  %v418_v35 = vadd.f32 %v354_v36, %v193_v51  ;;  %v3392_v54 = vpop.permute.xlu1 %471  ;;  %v320_v30 = vmul.f32 %v3071_v32, %v3314_v57  ;;  %v321_v60 = vmul.f32 %v3071_v32, %v3312_v47 }
  0xa6   :  { %v3394_v43 = vpop.permute.xlu0 %466  ;;  %v489_v56 = vadd.f32 %v3392_v54, %v377_v7  ;;  %v529_v48 = vadd.f32 %v3392_v54, %v417_v8  ;;  %v3405_v51 = vsel %vm598_vm0, %v534_v29, %v662_v42  ;;  %v3408_v15 = vsel %vm599_vm2, %v535_v19, %v663_v41 }
  0xa7   :  { %v488_v10 = vadd.f32 %v3394_v43, %v376_v4  ;;  %v528_v14 = vadd.f32 %v3394_v43, %v416_v63  ;;  %4343 = vst [vmem:[#allocation25_spill] sm:$0xff] %v3405_v51  ;;  %4344 = vst [vmem:[#allocation26_spill] sm:$0xff] %v3408_v15  ;;  %v384_v20 = vadd.f32 %v320_v30, %v159_v5 }
  0xa8   :  { %vm553_vm4 = vcmp.ge.f32.partialorder %v489_v56, 0.0  ;;  %v617_v4 = vmul.f32 0.01, %v489_v56  ;;  %vm593_vm6 = vcmp.ge.f32.partialorder %v529_v48, 0.0  ;;  %v657_v42 = vmul.f32 0.01, %v529_v48 }
  0xa9   :  { %vm552_vm3 = vcmp.ge.f32.partialorder %v488_v10, 0.0  ;;  %v616_v16 = vmul.f32 0.01, %v488_v10  ;;  %v3412_v6 = vpop.permute.xlu1 %481  ;;  %vm592_vm5 = vcmp.ge.f32.partialorder %v528_v14, 0.0  ;;  %v656_v8 = vmul.f32 0.01, %v528_v14 }
  0xaa   :  { %v3414_v7 = vpop.permute.xlu0 %476  ;;  %v3418_v41 = vsel %vm553_vm4, %v489_v56, %v617_v4  ;;  %v491_v19 = vadd.f32 %v3412_v6, %v379_v53  ;;  %v3426_v18 = vsel %vm593_vm6, %v529_v48, %v657_v42  ;;  %v531_v53 = vadd.f32 %v3412_v6, %v419_v17 }
  0xab   :  { %v3416_v63 = vsel %vm552_vm3, %v488_v10, %v616_v16  ;;  %v490_v29 = vadd.f32 %v3414_v7, %v378_v45  ;;  %v3424_v36 = vsel %vm592_vm5, %v528_v14, %v656_v8  ;;  %4346 = vst [vmem:[#allocation28_spill] sm:$0xff] %v3426_v18  ;;  %v530_v30 = vadd.f32 %v3414_v7, %v418_v35 }
  0xac   :  { %v807_v5 = vpack.c.bf16 %v3418_v41, %v3416_v63  ;;  %4345 = vst [vmem:[#allocation27_spill] sm:$0xff] %v3424_v36  ;;  %v827_v28 = vpack.c.bf16 %v3426_v18, %v3424_v36  ;;  %vm555_vm8 = vcmp.ge.f32.partialorder %v491_v19, 0.0  ;;  %v619_v45 = vmul.f32 0.01, %v491_v19 }
  0xad   :  { %vm554_vm7 = vcmp.ge.f32.partialorder %v490_v29, 0.0  ;;  %v618_v10 = vmul.f32 0.01, %v490_v29  ;;  %vm594_vm9 = vcmp.ge.f32.partialorder %v530_v30, 0.0  ;;  %v658_v56 = vmul.f32 0.01, %v530_v30 }
  0xae   :  { %2718 = vmatprep.mubr.msk.bf16.mxu0 %vm837_vm1, %v807_v5  ;;  %2758 = vmatprep.mubr.msk.bf16.mxu1 %vm837_vm1, %v827_v28  ;;  %v830_v35 = vpack.c.bf16 %v3408_v15, %v3405_v51  ;;  %v385_v48 = vadd.f32 %v321_v60, %v160_v61  ;;  %v496_v16 = vadd.f32 %v3394_v43, %v384_v20  ;;  %vm595_vm10 = vcmp.ge.f32.partialorder %v531_v53, 0.0 }
  0xaf   :  { %v3434_v14 = vsel %vm554_vm7, %v490_v29, %v618_v10  ;;  %v3439_v4 = vsel %vm555_vm8, %v491_v19, %v619_v45  ;;  %v659_v8 = vmul.f32 0.01, %v531_v53  ;;  %v3441_v42 = vsel %vm594_vm9, %v530_v30, %v658_v56 }
  0xb0   :  { %4347 = vst [vmem:[#allocation29_spill] sm:$0xff] %v3441_v42  ;;  %v808_v17 = vpack.c.bf16 %v3439_v4, %v3434_v14  ;;  %v497_v5 = vadd.f32 %v3392_v54, %v385_v48  ;;  %vm560_vm11 = vcmp.ge.f32.partialorder %v496_v16, 0.0  ;;  %v624_v28 = vmul.f32 0.01, %v496_v16 }
  0xb1   :  { %v3446_v29 = vsel %vm595_vm10, %v531_v53, %v659_v8  ;;  %v199_v61 = vmul.f32 %v3076_v33, %v3291_v59  ;;  %v200_v60 = vmul.f32 %v3076_v33, %v3289_v58  ;;  %v360_v20 = vmul.f32 %v3081_v34, %v3314_v57 }
  0xb2   :  { %4348 = vst [vmem:[#allocation30_spill] sm:$0xff] %v3446_v29  ;;  %2719 = vmatmul.mubr.msk.bf16.gmra.mxu0 %vm837_vm1, %v808_v17  ;;  %v828_v19 = vpack.c.bf16 %v3446_v29, %v3441_v42  ;;  %vm561_vm12 = vcmp.ge.f32.partialorder %v497_v5, 0.0  ;;  %v625_v30 = vmul.f32 0.01, %v497_v5  ;;  %v3457_v10 = vsel %vm560_vm11, %v496_v16, %v624_v28 }
  0xb3   :  { %v4349_v45 = vpack.c.bf16 %v3332_v3, %v3330_v55  ;;  %v361_v53 = vmul.f32 %v3081_v34, %v3312_v47  ;;  %v424_v56 = vadd.f32 %v360_v20, %v199_v61  ;;  %v161_v48 = vmul.f32 %v3066_v31, %v3340_v9 }
  0xb4   :  { %v162_v8 = vmul.f32 %v3066_v31, %v3338_v46  ;;  %2759 = vmatmul.mubr.msk.bf16.gmra.mxu1 %vm837_vm1, %v828_v19  ;;  %v3470_v17 = vsel %vm561_vm12, %v497_v5, %v625_v30  ;;  %v322_v16 = vmul.f32 %v3071_v32, %v3374_v13  ;;  %v323_v28 = vmul.f32 %v3071_v32, %v3372_v52 }
  0xb5   :  { %2722 = vmatprep.mubr.msk.bf16.mxu0 %vm837_vm1, %v4349_v45  ;;  %v201_v45 = vmul.f32 %v3076_v33, %v3340_v9  ;;  %v4350_v61 = vpack.c.bf16 %v3362_v2, %v3357_v49  ;;  %v811_v31 = vpack.c.bf16 %v3470_v17, %v3457_v10  ;;  %v425_v20 = vadd.f32 %v361_v53, %v200_v60 }
  0xb6   :  { %v536_v5 = vadd.f32 %v3394_v43, %v424_v56  ;;  %v202_v19 = vmul.f32 %v3076_v33, %v3338_v46  ;;  %v386_v30 = vadd.f32 %v322_v16, %v161_v48  ;;  %v387_v15 = vadd.f32 %v323_v28, %v162_v8 }
  0xb7   :  { %2762 = vmatprep.mubr.msk.bf16.mxu1 %vm837_vm1, %v4350_v61  ;;  %v362_v32 = vmul.f32 %v3081_v34, %v3374_v13  ;;  %v363_v29 = vmul.f32 %v3081_v34, %v3372_v52  ;;  %v537_v51 = vadd.f32 %v3392_v54, %v425_v20  ;;  %v500_v60 = vadd.f32 %v3244_v1, %v3167_v11 }
  0xb8   :  { %vm600_vm13 = vcmp.ge.f32.partialorder %v536_v5, 0.0  ;;  %v664_v61 = vmul.f32 0.01, %v536_v5  ;;  %v498_v53 = vadd.f32 %v3414_v7, %v386_v30  ;;  %v499_v56 = vadd.f32 %v3412_v6, %v387_v15 }
  0xb9   :  { %v426_v33 = vadd.f32 %v362_v32, %v201_v45  ;;  %v427_v48 = vadd.f32 %v363_v29, %v202_v19  ;;  %vm601_vm14 = vcmp.ge.f32.partialorder %v537_v51, 0.0  ;;  %v665_v8 = vmul.f32 0.01, %v537_v51 }
  0xba   :  { %v3496_v16 = vsel %vm600_vm13, %v536_v5, %v664_v61  ;;  %v501_v34 = vadd.f32 %v3242_v0, %v3194_v22  ;;  %v4352_v28 = vpack.c.bf16 %v3390_v62, %v3388_v27  ;;  %vm562_vm15 = vcmp.ge.f32.partialorder %v498_v53, 0.0 }
  0xbb   :  { %4351 = vst [vmem:[#allocation31_spill] sm:$0xff] %v3496_v16  ;;  %vm563_vm0 = vcmp.ge.f32.partialorder %v499_v56, 0.0  ;;  %v626_v11 = vmul.f32 0.01, %v498_v53  ;;  %v627_v20 = vmul.f32 0.01, %v499_v56  ;;  %v3505_v15 = vsel %vm601_vm14, %v537_v51, %v665_v8 }
  0xbc   :  { %2723 = vmatmul.mubr.msk.bf16.gmra.mxu0 %vm837_vm1, %v4352_v28  ;;  %4353 = vst [vmem:[#allocation32_spill] sm:$0xff] %v3505_v15  ;;  %v538_v29 = vadd.f32 %v3414_v7, %v426_v33  ;;  %v539_v45 = vadd.f32 %v3412_v6, %v427_v48  ;;  %vm564_vm2 = vcmp.ge.f32.partialorder %v500_v60, 0.0  ;;  %2763 = vmatmul.mubr.msk.bf16.gmra.mxu1 %vm837_vm1, %v830_v35  ;;  %vm565_vm3 = vcmp.ge.f32.partialorder %v501_v34, 0.0 }
  0xbd   :  { %2726 = vmatprep.mubr.msk.bf16.mxu0 %vm837_vm1, %v811_v31  ;;  %v831_v22 = vpack.c.bf16 %v3505_v15, %v3496_v16  ;;  %v3512_v5 = vsel %vm562_vm15, %v498_v53, %v626_v11  ;;  %v3514_v19 = vsel %vm563_vm0, %v499_v56, %v627_v20  ;;  %v628_v32 = vmul.f32 0.01, %v500_v60 }
  0xbe   :  { %v812_v31 = vpack.c.bf16 %v3514_v19, %v3512_v5  ;;  %vm602_vm4 = vcmp.ge.f32.partialorder %v538_v29, 0.0  ;;  %vm603_vm5 = vcmp.ge.f32.partialorder %v539_v45, 0.0  ;;  %v666_v51 = vmul.f32 0.01, %v538_v29 }
  0xbf   :  { %2766 = vmatprep.mubr.msk.bf16.mxu1 %vm837_vm1, %v831_v22  ;;  %v667_v30 = vmul.f32 0.01, %v539_v45  ;;  %v629_v61 = vmul.f32 0.01, %v501_v34  ;;  %v429_v35 = vadd.f32 %v3198_v23, %v3171_v12  ;;  %v540_v53 = vadd.f32 %v3244_v1, %v3200_v24 }
  0xc0   :  { %v3521_v33 = vsel %vm602_vm4, %v538_v29, %v666_v51  ;;  %v326_v56 = vmul.f32 %v3095_v38, %v3208_v39  ;;  %v327_v48 = vmul.f32 %v3095_v38, %v3206_v26  ;;  %v3532_v28 = vsel %vm564_vm2, %v500_v60, %v628_v32 }
  0xc1   :  { %v3529_v8 = vsel %vm603_vm5, %v539_v45, %v667_v30  ;;  %v3535_v11 = vsel %vm565_vm3, %v501_v34, %v629_v61  ;;  %v541_v12 = vadd.f32 %v3242_v0, %v429_v35  ;;  %vm604_vm6 = vcmp.ge.f32.partialorder %v540_v53, 0.0  ;;  %v4357_v35 = vld [vmem:[#allocation12_spill] sm:$0xff] }
  0xc2   :  { %4354 = vst [vmem:[#allocation33_spill] sm:$0xff] %v3535_v11  ;;  %v832_v23 = vpack.c.bf16 %v3529_v8, %v3521_v33  ;;  %v813_v24 = vpack.c.bf16 %v3535_v11, %v3532_v28  ;;  %v668_v20 = vmul.f32 0.01, %v540_v53  ;;  %v390_v60 = vadd.f32 %v326_v56, %v3204_v25  ;;  %v4358_v56 = vld [vmem:[#allocation13_spill] sm:$0xff] }
  0xc3   :  { %vm605_vm7 = vcmp.ge.f32.partialorder %v541_v12, 0.0  ;;  %v669_v29 = vmul.f32 0.01, %v541_v12  ;;  %v391_v45 = vadd.f32 %v327_v48, %v3212_v40  ;;  %v366_v22 = vmul.f32 %v3113_v44, %v3208_v39 }
  0xc4   :  { %2727 = vmatmul.mubr.msk.bf16.gmra.mxu0 %vm837_vm1, %v812_v31  ;;  %v3546_v34 = vsel %vm604_vm6, %v540_v53, %v668_v20  ;;  %v367_v51 = vmul.f32 %v3113_v44, %v3206_v26  ;;  %v167_v30 = vmul.f32 %v3090_v37, %v3291_v59  ;;  %2767 = vmatmul.mubr.msk.bf16.gmra.mxu1 %vm837_vm1, %v832_v23 }
  0xc5   :  { %2730 = vmatprep.mubr.msk.bf16.mxu0 %vm837_vm1, %v813_v24  ;;  %4355 = vst [vmem:[#allocation34_spill] sm:$0xff] %v3546_v34  ;;  %v3555_v31 = vsel %vm605_vm7, %v541_v12, %v669_v29  ;;  %v502_v25 = vadd.f32 %v3272_v50, %v390_v60  ;;  %v503_v40 = vadd.f32 %v3270_v21, %v391_v45 }
  0xc6   :  { %4356 = vst [vmem:[#allocation35_spill] sm:$0xff] %v3555_v31  ;;  %v168_v32 = vmul.f32 %v3090_v37, %v3289_v58  ;;  %v833_v61 = vpack.c.bf16 %v3555_v31, %v3546_v34  ;;  %v430_v53 = vadd.f32 %v366_v22, %v4357_v35  ;;  %v431_v48 = vadd.f32 %v367_v51, %v4358_v56  ;;  %v4360_v35 = vld [vmem:[#allocation6_spill] sm:$0xff] }
  0xc7   :  { %v328_v24 = vmul.f32 %v3095_v38, %v3314_v57  ;;  %vm566_vm8 = vcmp.ge.f32.partialorder %v502_v25, 0.0  ;;  %vm567_vm9 = vcmp.ge.f32.partialorder %v503_v40, 0.0  ;;  %v630_v12 = vmul.f32 0.01, %v502_v25  ;;  %v4373_v34 = vld [vmem:[#allocation10_spill] sm:$0xff] }
  0xc8   :  { %v631_v23 = vmul.f32 0.01, %v503_v40  ;;  %2770 = vmatprep.mubr.msk.bf16.mxu1 %vm837_vm1, %v833_v61  ;;  %v542_v20 = vadd.f32 %v3272_v50, %v430_v53  ;;  %v543_v29 = vadd.f32 %v3270_v21, %v431_v48  ;;  %v329_v60 = vmul.f32 %v3095_v38, %v3312_v47 }
  0xc9   :  { %v392_v45 = vadd.f32 %v328_v24, %v167_v30  ;;  %v3572_v22 = vsel %vm566_vm8, %v502_v25, %v630_v12  ;;  %v207_v56 = vmul.f32 %v4360_v35, %v3291_v59  ;;  %v208_v15 = vmul.f32 %v4360_v35, %v3289_v58 }
  0xca   :  { %v3574_v51 = vsel %vm567_vm9, %v503_v40, %v631_v23  ;;  %vm606_vm10 = vcmp.ge.f32.partialorder %v542_v20, 0.0  ;;  %vm607_vm11 = vcmp.ge.f32.partialorder %v543_v29, 0.0  ;;  %v670_v53 = vmul.f32 0.01, %v542_v20 }
  0xcb   :  { %4359 = vst [vmem:[#allocation12_spill] sm:$0xff] %v3574_v51  ;;  %v814_v61 = vpack.c.bf16 %v3574_v51, %v3572_v22  ;;  %v671_v48 = vmul.f32 0.01, %v543_v29  ;;  %v393_v16 = vadd.f32 %v329_v60, %v168_v32  ;;  %v504_v30 = vadd.f32 %v3394_v43, %v392_v45 }
  0xcc   :  { %v368_v25 = vmul.f32 %v3113_v44, %v3314_v57  ;;  %v3586_v40 = vsel %vm606_vm10, %v542_v20, %v670_v53  ;;  %v369_v24 = vmul.f32 %v3113_v44, %v3312_v47  ;;  %v169_v12 = vmul.f32 %v3090_v37, %v3340_v9 }
  0xcd   :  { %2731 = vmatmul.mubr.msk.bf16.gmra.mxu0 %vm837_vm1, %v814_v61  ;;  %4361 = vst [vmem:[#allocation13_spill] sm:$0xff] %v3586_v40  ;;  %v170_v23 = vmul.f32 %v3090_v37, %v3338_v46  ;;  %v3594_v42 = vsel %vm607_vm11, %v543_v29, %v671_v48  ;;  %v505_v32 = vadd.f32 %v3392_v54, %v393_v16  ;;  %vm568_vm12 = vcmp.ge.f32.partialorder %v504_v30, 0.0 }
  0xce   :  { %4362 = vst [vmem:[#allocation6_spill] sm:$0xff] %v3594_v42  ;;  %v632_v60 = vmul.f32 0.01, %v504_v30  ;;  %v834_v45 = vpack.c.bf16 %v3594_v42, %v3586_v40  ;;  %v432_v20 = vadd.f32 %v368_v25, %v207_v56  ;;  %v433_v61 = vadd.f32 %v369_v24, %v208_v15  ;;  %v4368_v42 = vld [vmem:[#allocation4_spill] sm:$0xff] }
  0xcf   :  { %v330_v53 = vmul.f32 %v3095_v38, %v3374_v13  ;;  %vm569_vm13 = vcmp.ge.f32.partialorder %v505_v32, 0.0  ;;  %v633_v2 = vmul.f32 0.01, %v505_v32  ;;  %v331_v37 = vmul.f32 %v3095_v38, %v3372_v52  ;;  %v3619_v38 = vld [vmem:[%s4266_s1 + $0x3] ss:$0 sm:$0xff] }
  0xd0   :  { %v3601_v18 = vsel %vm568_vm12, %v504_v30, %v632_v60  ;;  %2771 = vmatmul.mubr.msk.bf16.gmra.mxu1 %vm837_vm1, %v834_v45  ;;  %v544_v16 = vadd.f32 %v3394_v43, %v432_v20  ;;  %v545_v29 = vadd.f32 %v3392_v54, %v433_v61  ;;  %v209_v15 = vmul.f32 %v4360_v35, %v3340_v9  ;;  %v4366_v61 = vld [vmem:[#allocation8_spill] sm:$0xff] }
  0xd1   :  { %4363 = vst [vmem:[#allocation36_spill] sm:$0xff] %v3601_v18  ;;  %v394_v48 = vadd.f32 %v330_v53, %v169_v12  ;;  %v3610_v56 = vsel %vm569_vm13, %v505_v32, %v633_v2  ;;  %v395_v25 = vadd.f32 %v331_v37, %v170_v23  ;;  %v210_v30 = vmul.f32 %v4360_v35, %v3338_v46  ;;  %v4367_v53 = vld [vmem:[#allocation11_spill] sm:$0xff] }
  0xd2   :  { %4364 = vst [vmem:[#allocation37_spill] sm:$0xff] %v3610_v56  ;;  %v370_v24 = vmul.f32 %v3113_v44, %v3374_v13  ;;  %v815_v12 = vpack.c.bf16 %v3610_v56, %v3601_v18  ;;  %vm608_vm14 = vcmp.ge.f32.partialorder %v544_v16, 0.0  ;;  %vm609_vm15 = vcmp.ge.f32.partialorder %v545_v29, 0.0 }
  0xd3   :  { %v672_v60 = vmul.f32 0.01, %v544_v16  ;;  %v673_v2 = vmul.f32 0.01, %v545_v29  ;;  %v506_v23 = vadd.f32 %v3414_v7, %v394_v48  ;;  %v507_v32 = vadd.f32 %v3412_v6, %v395_v25 }
  0xd4   :  { %v371_v35 = vmul.f32 %v3113_v44, %v3372_v52  ;;  %2734 = vmatprep.mubr.msk.bf16.mxu0 %vm837_vm1, %v815_v12  ;;  %v434_v20 = vadd.f32 %v370_v24, %v209_v15  ;;  %v172_v37 = vmul.f32 %v4367_v53, %v4366_v61  ;;  %v332_v40 = vmul.f32 %v3619_v38, %v4368_v42  ;;  %v4371_v15 = vld [vmem:[#allocation7_spill] sm:$0xff] }
  0xd5   :  { %v3628_v45 = vsel %vm608_vm14, %v544_v16, %v672_v60  ;;  %v3634_v31 = vsel %vm609_vm15, %v545_v29, %v673_v2  ;;  %vm570_vm0 = vcmp.ge.f32.partialorder %v506_v23, 0.0  ;;  %vm571_vm2 = vcmp.ge.f32.partialorder %v507_v32, 0.0  ;;  %v4372_v60 = vld [vmem:[#allocation14_spill] sm:$0xff] }
  0xd6   :  { %4365 = vst [vmem:[#allocation38_spill] sm:$0xff] %v3628_v45  ;;  %4369 = vst [vmem:[#allocation8_spill] sm:$0xff] %v3634_v31  ;;  %v634_v48 = vmul.f32 0.01, %v506_v23  ;;  %v835_v25 = vpack.c.bf16 %v3634_v31, %v3628_v45  ;;  %v635_v44 = vmul.f32 0.01, %v507_v32  ;;  %v435_v49 = vadd.f32 %v371_v35, %v210_v30 }
  0xd7   :  { %v546_v16 = vadd.f32 %v3414_v7, %v434_v20  ;;  %v333_v24 = vmul.f32 %v3619_v38, %v4371_v15  ;;  %v396_v36 = vadd.f32 %v332_v40, %v4372_v60  ;;  %v173_v29 = vmul.f32 %v4367_v53, %v4373_v34 }
  0xd8   :  { %v3639_v12 = vsel %vm570_vm0, %v506_v23, %v634_v48  ;;  %2774 = vmatprep.mubr.msk.bf16.mxu1 %vm837_vm1, %v835_v25  ;;  %v3647_v2 = vsel %vm571_vm2, %v507_v32, %v635_v44  ;;  %v547_v31 = vadd.f32 %v3412_v6, %v435_v49  ;;  %v4375_v48 = vld [vmem:[#allocation9_spill] sm:$0xff]  ;;  %v334_v32 = vmul.f32 %v3619_v38, %v3208_v39 }
  0xd9   :  { %4370 = vst [vmem:[#allocation11_spill] sm:$0xff] %v3639_v12  ;;  %4374 = vst [vmem:[#allocation4_spill] sm:$0xff] %v3647_v2  ;;  %vm610_vm3 = vcmp.ge.f32.partialorder %v546_v16, 0.0  ;;  %v674_v30 = vmul.f32 0.01, %v546_v16  ;;  %v816_v23 = vpack.c.bf16 %v3647_v2, %v3639_v12  ;;  %v397_v35 = vadd.f32 %v333_v24, %v172_v37 }
  0xda   :  { %v508_v20 = vadd.f32 %v3244_v1, %v396_v36  ;;  %v174_v40 = vmul.f32 %v4367_v53, %v4375_v48  ;;  %vm611_vm4 = vcmp.ge.f32.partialorder %v547_v31, 0.0  ;;  %v675_v60 = vmul.f32 0.01, %v547_v31  ;;  %v3700_v12 = vld [vmem:[%s4266_s1 + $0x4] ss:$0 sm:$0xff] }
  0xdb   :  { %v3655_v45 = vsel %vm610_vm3, %v546_v16, %v674_v30  ;;  %2735 = vmatmul.mubr.msk.bf16.gmra.mxu0 %vm837_vm1, %v816_v23  ;;  %v509_v49 = vadd.f32 %v3242_v0, %v397_v35  ;;  %v335_v37 = vmul.f32 %v3619_v38, %v3206_v26  ;;  %v398_v44 = vadd.f32 %v334_v32, %v173_v29 }
  0xdc   :  { %vm572_vm5 = vcmp.ge.f32.partialorder %v508_v20, 0.0  ;;  %v636_v25 = vmul.f32 0.01, %v508_v20  ;;  %v3663_v36 = vsel %vm611_vm4, %v547_v31, %v675_v60  ;;  %v175_v24 = vmul.f32 %v4367_v53, %v3291_v59 }
  0xdd   :  { %v176_v16 = vmul.f32 %v4367_v53, %v3289_v58  ;;  %v836_v30 = vpack.c.bf16 %v3663_v36, %v3655_v45  ;;  %vm573_vm6 = vcmp.ge.f32.partialorder %v509_v49, 0.0  ;;  %v637_v23 = vmul.f32 0.01, %v509_v49 }
  0xde   :  { %v3671_v35 = vsel %vm572_vm5, %v508_v20, %v636_v25  ;;  %v399_v56 = vadd.f32 %v335_v37, %v174_v40  ;;  %v510_v2 = vadd.f32 %v3272_v50, %v398_v44  ;;  %v336_v31 = vmul.f32 %v3619_v38, %v3314_v57  ;;  %v3690_v25 = vld [vmem:[%s4265_s0 + $0x4] ss:$0 sm:$0xff] }
  0xdf   :  { %v337_v29 = vmul.f32 %v3619_v38, %v3312_v47  ;;  %2775 = vmatmul.mubr.msk.bf16.gmra.mxu1 %vm837_vm1, %v836_v30  ;;  %v3679_v60 = vsel %vm573_vm6, %v509_v49, %v637_v23  ;;  %v177_v32 = vmul.f32 %v4367_v53, %v3340_v9  ;;  %v178_v20 = vmul.f32 %v4367_v53, %v3338_v46 }
  0xe0   :  { %4376 = vst [vmem:[#allocation7_spill] sm:$0xff] %v3679_v60  ;;  %v338_v40 = vmul.f32 %v3619_v38, %v3374_v13  ;;  %v817_v37 = vpack.c.bf16 %v3679_v60, %v3671_v35  ;;  %v511_v49 = vadd.f32 %v3270_v21, %v399_v56  ;;  %vm574_vm7 = vcmp.ge.f32.partialorder %v510_v2, 0.0  ;;  %v4377_v56 = vld [vmem:[#allocation5_spill] sm:$0xff] }
  0xe1   :  { %v638_v44 = vmul.f32 0.01, %v510_v2  ;;  %v400_v30 = vadd.f32 %v336_v31, %v175_v24  ;;  %v401_v23 = vadd.f32 %v337_v29, %v176_v16  ;;  %v339_v53 = vmul.f32 %v3619_v38, %v3372_v52 }
  0xe2   :  { %v402_v18 = vadd.f32 %v338_v40, %v177_v32  ;;  %2738 = vmatprep.mubr.msk.bf16.mxu0 %vm837_vm1, %v817_v37  ;;  %vm575_vm8 = vcmp.ge.f32.partialorder %v511_v49, 0.0  ;;  %v639_v11 = vmul.f32 0.01, %v511_v49  ;;  %v179_v51 = vmul.f32 %v3690_v25, %v4377_v56 }
  0xe3   :  { %v3703_v60 = vsel %vm574_vm7, %v510_v2, %v638_v44  ;;  %v512_v24 = vadd.f32 %v3394_v43, %v400_v30  ;;  %v513_v16 = vadd.f32 %v3392_v54, %v401_v23  ;;  %v403_v38 = vadd.f32 %v339_v53, %v178_v20 }
  0xe4   :  { %v514_v31 = vadd.f32 %v3414_v7, %v402_v18  ;;  %v3710_v29 = vsel %vm575_vm8, %v511_v49, %v639_v11  ;;  %v180_v32 = vmul.f32 %v3690_v25, %v4366_v61  ;;  %v340_v40 = vmul.f32 %v3700_v12, %v4368_v42 }
  0xe5   :  { %v341_v2 = vmul.f32 %v3700_v12, %v4371_v15  ;;  %v818_v37 = vpack.c.bf16 %v3710_v29, %v3703_v60  ;;  %vm576_vm9 = vcmp.ge.f32.partialorder %v512_v24, 0.0  ;;  %vm577_vm10 = vcmp.ge.f32.partialorder %v513_v16, 0.0 }
  0xe6   :  { %v640_v44 = vmul.f32 0.01, %v512_v24  ;;  %v641_v20 = vmul.f32 0.01, %v513_v16  ;;  %v515_v18 = vadd.f32 %v3412_v6, %v403_v38  ;;  %vm578_vm11 = vcmp.ge.f32.partialorder %v514_v31, 0.0 }
  0xe7   :  { %v642_v11 = vmul.f32 0.01, %v514_v31  ;;  %2739 = vmatmul.mubr.msk.bf16.gmra.mxu0 %vm837_vm1, %v818_v37  ;;  %v404_v49 = vadd.f32 %v340_v40, %v179_v51  ;;  %v405_v42 = vadd.f32 %v341_v2, %v180_v32  ;;  %v181_v23 = vmul.f32 %v3690_v25, %v4373_v34 }
  0xe8   :  { %v3722_v61 = vsel %vm576_vm9, %v512_v24, %v640_v44  ;;  %v3724_v30 = vsel %vm577_vm10, %v513_v16, %v641_v20  ;;  %vm579_vm12 = vcmp.ge.f32.partialorder %v515_v18, 0.0  ;;  %v643_v15 = vmul.f32 0.01, %v515_v18 }
  0xe9   :  { %v819_v53 = vpack.c.bf16 %v3724_v30, %v3722_v61  ;;  %v3730_v56 = vsel %vm578_vm11, %v514_v31, %v642_v11  ;;  %v516_v38 = vadd.f32 %v3244_v1, %v404_v49  ;;  %v517_v37 = vadd.f32 %v3242_v0, %v405_v42 }
  0xea   :  { %v3734_v24 = vsel %vm579_vm12, %v515_v18, %v643_v15  ;;  %v182_v51 = vmul.f32 %v3690_v25, %v4375_v48  ;;  %v342_v16 = vmul.f32 %v3700_v12, %v3208_v39  ;;  %v343_v34 = vmul.f32 %v3700_v12, %v3206_v26 }
  0xeb   :  { %2742 = vmatprep.mubr.msk.bf16.mxu0 %vm837_vm1, %v819_v53  ;;  %vm580_vm13 = vcmp.ge.f32.partialorder %v516_v38, 0.0  ;;  %vm581_vm14 = vcmp.ge.f32.partialorder %v517_v37, 0.0  ;;  %v644_v31 = vmul.f32 0.01, %v516_v38  ;;  %v183_v1 = vmul.f32 %v3690_v25, %v3291_v59 }
  0xec   :  { %v820_v0 = vpack.c.bf16 %v3734_v24, %v3730_v56  ;;  %v645_v32 = vmul.f32 0.01, %v517_v37  ;;  %v406_v40 = vadd.f32 %v342_v16, %v181_v23  ;;  %v407_v48 = vadd.f32 %v343_v34, %v182_v51 }
  0xed   :  { %v3747_v2 = vsel %vm580_vm13, %v516_v38, %v644_v31  ;;  %v184_v39 = vmul.f32 %v3690_v25, %v3289_v58  ;;  %v344_v26 = vmul.f32 %v3700_v12, %v3314_v57  ;;  %v345_v44 = vmul.f32 %v3700_v12, %v3312_v47 }
  0xee   :  { %v3755_v20 = vsel %vm581_vm14, %v517_v37, %v645_v32  ;;  %v518_v59 = vadd.f32 %v3272_v50, %v406_v40  ;;  %v519_v18 = vadd.f32 %v3270_v21, %v407_v48  ;;  %v185_v11 = vmul.f32 %v3690_v25, %v3340_v9 }
  0xef   :  { %2743 = vmatmul.mubr.msk.bf16.gmra.mxu0 %vm837_vm1, %v820_v0  ;;  %v821_v58 = vpack.c.bf16 %v3755_v20, %v3747_v2  ;;  %v408_v49 = vadd.f32 %v344_v26, %v183_v1  ;;  %v409_v42 = vadd.f32 %v345_v44, %v184_v39  ;;  %v346_v57 = vmul.f32 %v3700_v12, %v3374_v13  ;;  %v2905_v39 = vld [vmem:[%s4267_s5 + $0x18] sm:$0xff]  }
  0xf0   :  { %vm582_vm15 = vcmp.ge.f32.partialorder %v518_v59, 0.0  ;;  %vm583_vm0 = vcmp.ge.f32.partialorder %v519_v18, 0.0  ;;  %v646_v47 = vmul.f32 0.01, %v518_v59  ;;  %v647_v15 = vmul.f32 0.01, %v519_v18  ;;  %2778 = vmatprep.subr.bf16.mxu1 %v2905_v39 }
  0xf1   :  { %2746 = vmatprep.mubr.msk.bf16.mxu0 %vm837_vm1, %v821_v58  ;;  %v520_v21 = vadd.f32 %v3394_v43, %v408_v49  ;;  %v521_v50 = vadd.f32 %v3392_v54, %v409_v42  ;;  %v347_v9 = vmul.f32 %v3700_v12, %v3372_v52  ;;  %v186_v13 = vmul.f32 %v3690_v25, %v3338_v46 }
  0xf2   :  { %v3771_v23 = vsel %vm582_vm15, %v518_v59, %v646_v47  ;;  %v3773_v53 = vsel %vm583_vm0, %v519_v18, %v647_v15  ;;  %v410_v38 = vadd.f32 %v346_v57, %v185_v11  ;;  %vm2061_vm6 = vcmask 80896   ;;  %2779 = vmatpush3.bf16.msra.mxu1 %v2905_v39 }
  0xf3   :  { %vm584_vm2 = vcmp.ge.f32.partialorder %v520_v21, 0.0  ;;  %vm585_vm3 = vcmp.ge.f32.partialorder %v521_v50, 0.0  ;;  %v648_v37 = vmul.f32 0.01, %v520_v21  ;;  %v649_v51 = vmul.f32 0.01, %v521_v50 }
  0xf4   :  { %v411_v16 = vadd.f32 %v347_v9, %v186_v13  ;;  %v522_v43 = vadd.f32 %v3414_v7, %v410_v38  ;;  %v822_v54 = vpack.c.bf16 %v3773_v53, %v3771_v23  ;;  %vm2072_vm7 = vcmask 7168   ;;  %v4382_v13 = vld [vmem:[#allocation15_spill] sm:$0xff] }
  0xf5   :  { %v3780_v34 = vsel %vm584_vm2, %v520_v21, %v648_v37  ;;  %v3782_v52 = vsel %vm585_vm3, %v521_v50, %v649_v51  ;;  %vm2098_vm8 = vcmask 80968   ;;  %v4318_v26 = vmov 0.0  }
  0xf6   :  { %v523_v12 = vadd.f32 %v3412_v6, %v411_v16  ;;  %v650_v31 = vmul.f32 0.01, %v522_v43  ;;  %v823_v46 = vpack.c.bf16 %v3782_v52, %v3780_v34  ;;  %vm586_vm4 = vcmp.ge.f32.partialorder %v522_v43, 0.0  ;;  %2062 = vst.msk [vmem:[#allocation2] sm:$0xff] %vm2061_vm6, %v4318_v26  ;;  %2065 = vst.msk [vmem:[#allocation2 + $0x60] sm:$0xff] %vm2061_vm6, %v4318_v26 }
  0xf7   :  { %2747 = vmatmul.mubr.msk.bf16.gmra.mxu0 %vm837_vm1, %v822_v54  ;;  %2068 = vst.msk [vmem:[#allocation2 + $0x50] sm:$0xff] %vm2061_vm6, %v4318_v26  ;;  %2070 = vst.msk [vmem:[#allocation2 + $0xb0] sm:$0xff] %vm2061_vm6, %v4318_v26  ;;  %v741_v38 = vmul.f32 0.05, %v4382_v13  ;;  %v749_v37 = vmul.f32 0.05, %v3330_v55 }
  0xf8   :  { %vm587_vm5 = vcmp.ge.f32.partialorder %v523_v12, 0.0  ;;  %v651_v25 = vmul.f32 0.01, %v523_v12  ;;  %2750 = vmatprep.mubr.msk.bf16.mxu0 %vm837_vm1, %v823_v46  ;;  %v3789_v7 = vsel %vm586_vm4, %v522_v43, %v650_v31  ;;  %2076 = vst.msk [vmem:[#allocation2 + $0x10] sm:$0xff] %vm2072_vm7, %v4318_v26  ;;  %2078 = vst.msk [vmem:[#allocation2 + $0x20] sm:$0xff] %vm2072_vm7, %v4318_v26  ;;  %v4384_v46 = vld [vmem:[#allocation16_spill] sm:$0xff] }
  0xf9   :  { %4378 = vst [vmem:[#allocation14_spill] sm:$0xff] %v3789_v7  ;;  %2080 = vst.msk [vmem:[#allocation2 + $0x30] sm:$0xff] %vm2072_vm7, %v4318_v26  ;;  %v750_v39 = vmul.f32 0.05, %v3332_v3  ;;  %v751_v13 = vmul.f32 0.05, %v3388_v27 }
  0xfa   :  { %v3791_v1 = vsel %vm587_vm5, %v523_v12, %v651_v25  ;;  %2082 = vst.msk [vmem:[#allocation2 + $0x40] sm:$0xff] %vm2072_vm7, %v4318_v26  ;;  %2088 = vst.msk [vmem:[#allocation2 + $0x70] sm:$0xff] %vm2072_vm7, %v4318_v26  ;;  %v742_v25 = vmul.f32 0.05, %v4384_v46  ;;  %vm2063_vm9 = vcmask 73728   ;;  %vm2074_vm10 = vcmask 0  }
  0xfb   :  { %4379 = vst [vmem:[#allocation10_spill] sm:$0xff] %v3791_v1  ;;  %v824_v0 = vpack.c.bf16 %v3791_v1, %v3789_v7  ;;  %2090 = vst.msk [vmem:[#allocation2 + $0x80] sm:$0xff] %vm2072_vm7, %v4318_v26  ;;  %vm2100_vm11 = vcmask 73800   ;;  %vm2189_vm5 = vcmask 72712   ;;  %vm2191_vm6 = vcmask 65544  }
  0xfc   :  { %2092 = vst.msk [vmem:[#allocation2 + $0x90] sm:$0xff] %vm2072_vm7, %v4318_v26  ;;  %2094 = vst.msk [vmem:[#allocation2 + $0xa0] sm:$0xff] %vm2072_vm7, %v4318_v26 }
  0xfd   :  { %2073 = vst.msk [vmem:[#allocation2] sm:$0xff] %vm2072_vm7, %v4318_v26  ;;  %2084 = vst.msk [vmem:[#allocation2 + $0x50] sm:$0xff] %vm2072_vm7, %v4318_v26 }
  0xfe   :  { %2086 = vst.msk [vmem:[#allocation2 + $0x60] sm:$0xff] %vm2072_vm7, %v4318_v26  ;;  %2096 = vst.msk [vmem:[#allocation2 + $0xb0] sm:$0xff] %vm2072_vm7, %v4318_v26  ;;  %vm2577_vm7 = vcmask 57344  }
  0xff   :  { %2751 = vmatmul.mubr.msk.bf16.gmra.mxu0 %vm837_vm1, %v824_v0  ;;  %2102 = vst.msk [vmem:[#allocation2 + $0x10] sm:$0xff] %vm2098_vm8, %v4318_v26  ;;  %2104 = vst.msk [vmem:[#allocation2 + $0x20] sm:$0xff] %vm2098_vm8, %v4318_v26  ;;  %vm1590_vm1 = vcmask 523264  }
 0x100   :  { %2106 = vst.msk [vmem:[#allocation2 + $0x30] sm:$0xff] %vm2098_vm8, %v4318_v26  ;;  %2108 = vst.msk [vmem:[#allocation2 + $0x40] sm:$0xff] %vm2098_vm8, %v4318_v26 }
 0x101   :  { %2114 = vst.msk [vmem:[#allocation2 + $0x70] sm:$0xff] %vm2098_vm8, %v4318_v26  ;;  %2116 = vst.msk [vmem:[#allocation2 + $0x80] sm:$0xff] %vm2098_vm8, %v4318_v26 }
 0x102   :  { %2118 = vst.msk [vmem:[#allocation2 + $0x90] sm:$0xff] %vm2098_vm8, %v4318_v26  ;;  %2120 = vst.msk [vmem:[#allocation2 + $0xa0] sm:$0xff] %vm2098_vm8, %v4318_v26 }
 0x103   :  { %2099 = vst.msk [vmem:[#allocation2] sm:$0xff] %vm2098_vm8, %v4318_v26  ;;  %2110 = vst.msk [vmem:[#allocation2 + $0x50] sm:$0xff] %vm2098_vm8, %v4318_v26 }
 0x104   :  { %2112 = vst.msk [vmem:[#allocation2 + $0x60] sm:$0xff] %vm2098_vm8, %v4318_v26  ;;  %2122 = vst.msk [vmem:[#allocation2 + $0xb0] sm:$0xff] %vm2098_vm8, %v4318_v26 }
 0x15a   :  { %v3796_v6 = vpop.f32.mrf.mxu0 }
 0x15c   :  { %v3798_v32 = vpop.f32.mrf.mxu1  ;;  %v972_v40 = vpop.f32.mrf.mxu0 }
 0x15d   :  { %v1227_v43 = vadd.f32 %v972_v40, %v741_v38  ;;  %v4385_v38 = vld [vmem:[#allocation19_spill] sm:$0xff] }
 0x15e   :  { %v3800_v48 = vpop.f32.mrf.mxu1  ;;  %v2717_v44 = vpop.f32.mrf.mxu0 }
 0x160   :  { %v3857_v59 = vpop.f32.mrf.mxu1  ;;  %v975_v18 = vpop.f32.mrf.mxu0 }
 0x161   :  { %v1228_v1 = vadd.f32 %v975_v18, %v742_v25 }
 0x162   :  { %v3859_v11 = vpop.f32.mrf.mxu1 }
 0x172   :  { %v3861_v58 = vpop.f32.mrf.mxu0 }
 0x174   :  { %v3863_v49 = vpop.f32.mrf.mxu1  ;;  %v988_v42 = vpop.f32.mrf.mxu0 }
 0x175   :  { %4380 = vst [vmem:[#allocation9_spill] sm:$0xff] %v3863_v49 }
 0x176   :  { %v3865_v57 = vpop.f32.mrf.mxu1  ;;  %v3867_v47 = vpop.f32.mrf.mxu0 }
 0x178   :  { %v3869_v15 = vpop.f32.mrf.mxu1  ;;  %v991_v21 = vpop.f32.mrf.mxu0 }
 0x179   :  { %4381 = vst [vmem:[#allocation5_spill] sm:$0xff] %v3869_v15 }
 0x17a   :  { %v3871_v50 = vpop.f32.mrf.mxu1 }
 0x17c   :  { %v2724_v9 = vpop.f32.mrf.mxu0  ;;  %v3875_v51 = vpop.f32.mrf.mxu1 }
 0x17d   :  { %4383 = vst [vmem:[#allocation15_spill] sm:$0xff] %v3875_v51 }
 0x17e   :  { %v1004_v16 = vpop.f32.mrf.mxu0  ;;  %v3877_v12 = vpop.f32.mrf.mxu1 }
 0x17f   :  { %v1235_v54 = vadd.f32 %v1004_v16, %v749_v37  ;;  %v743_v37 = vmul.f32 0.05, %v4385_v38  ;;  %v1237_v16 = vadd.f32 %v2724_v9, %v751_v13  ;;  %v2906_v9 = vld [vmem:[%s4267_s5 + $0x10] sm:$0xff]  }
 0x180   :  { %v2725_v31 = vpop.f32.mrf.mxu0  ;;  %v3881_v26 = vpop.f32.mrf.mxu1  ;;  %2780 = vmatprep.subr.bf16.mxu1 %v2906_v9 }
 0x181   :  { %v2821_v0 = vpack.i.bf16 %v1235_v54, %v1227_v43  ;;  %v1229_v3 = vadd.f32 %v3796_v6, %v743_v37  ;;  %v752_v54 = vmul.f32 0.05, %v3390_v62  ;;  %v753_v6 = vmul.f32 0.05, %v3457_v10  ;;  %2781 = vmatpush3.bf16.msra.mxu1 %v2906_v9 }
 0x182   :  { %v1007_v15 = vpop.f32.mrf.mxu0  ;;  %v3884_v51 = vpop.f32.mrf.mxu1  ;;  %v745_v62 = vmul.f32 0.05, %v3416_v63  ;;  %v14_v37 = vstv %s4268_s8 }
 0x183   :  { %v1236_v55 = vadd.f32 %v1007_v15, %v750_v39  ;;  %2822 = vxpose.xlu0.b32.start [1/8] (short) (narrow) %v2821_v0, 8  ;;  %v4386_v15 = vld [vmem:[#allocation20_spill] sm:$0xff]  ;;  %v2825_v25 = vpack.i.bf16 %v1237_v16, %v1229_v3  ;;  %v1238_v0 = vadd.f32 %v2725_v31, %v752_v54  ;;  %v754_v3 = vmul.f32 0.05, %v3470_v17  ;;  %15 = vst [vmem:[#allocation3] sm:$0x1] %v14_v37 }
 0x184   :  { %v2728_v40 = vpop.f32.mrf.mxu0  ;;  %v3887_v7 = vpop.f32.mrf.mxu1  ;;  %v744_v46 = vmul.f32 0.05, %v4386_v15  ;;  %v1231_v16 = vadd.f32 %v988_v42, %v745_v62  ;;  %v755_v17 = vmul.f32 0.05, %v3512_v5  ;;  %v748_v5 = vmul.f32 0.05, %v3439_v4 }
 0x185   :  { %v2823_v49 = vpack.i.bf16 %v1236_v55, %v1228_v1 }
 0x186   :  { %v1020_v43 = vpop.f32.mrf.mxu0  ;;  %v3891_v18 = vpop.f32.mrf.mxu1  ;;  %v1230_v13 = vadd.f32 %v2717_v44, %v744_v46  ;;  %v746_v44 = vmul.f32 0.05, %v3418_v41  ;;  %v2908_v46 = vld [vmem:[%s4267_s5] sm:$0xff]   ;;  %v1241_v9 = vadd.f32 %v2728_v40, %v755_v17  ;;  %v1234_v37 = vadd.f32 %v3867_v47, %v748_v5 }
 0x187   :  { %2824 = vxpose.xlu0.b32.cont [2/8] (short) (narrow) %v2823_v49, 8  ;;  %v1239_v55 = vadd.f32 %v1020_v43, %v753_v6  ;;  %v2907_v43 = vld [vmem:[%s4267_s5 + $0x8] sm:$0xff]   ;;  %v756_v6 = vmul.f32 0.05, %v3514_v19  ;;  %v803_v19 = vmul.f32 0.05, %v3655_v45 }
 0x188   :  { %v2729_v27 = vpop.f32.mrf.mxu0  ;;  %v3897_v1 = vpop.f32.mrf.mxu1  ;;  %v2827_v49 = vpack.i.bf16 %v1238_v0, %v1230_v13  ;;  %v1232_v42 = vadd.f32 %v991_v21, %v746_v44  ;;  %2782 = vmatprep.subr.bf16.mxu1 %v2907_v43  ;;  %v747_v0 = vmul.f32 0.05, %v3434_v14  ;;  %v796_v47 = vmul.f32 0.05, %v3529_v8  ;;  %v4387_v5 = vld [vmem:[#allocation12_spill] sm:$0xff]  ;;  %s2915_s5 = smov 127  }
 0x189   :  { %v2829_v54 = vpack.i.bf16 %v1239_v55, %v1231_v16  ;;  %2783 = vmatpush3.bf16.msra.mxu1 %v2907_v43  ;;  %v1242_v55 = vadd.f32 %v2729_v27, %v756_v6 }
 0x18a   :  { %v1023_v39 = vpop.f32.mrf.mxu0  ;;  %v3901_v38 = vpop.f32.mrf.mxu1  ;;  %2784 = vmatprep.subr.bf16.mxu1 %v2908_v46  ;;  %v1233_v13 = vadd.f32 %v3861_v58, %v747_v0  ;;  %v795_v58 = vmul.f32 0.05, %v3521_v33  ;;  %v3942_v45 = vadd.f32 %v3897_v1, %v796_v47 }
 0x18b   :  { %2826 = vxpose.xlu0.b32.cont [3/8] (short) (narrow) %v2825_v25, 8  ;;  %v1240_v15 = vadd.f32 %v1023_v39, %v754_v3  ;;  %v2835_v16 = vpack.i.bf16 %v1242_v55, %v1234_v37 }
 0x18d   :  { %v2732_v31 = vpop.f32.mrf.mxu0  ;;  %v2831_v39 = vpack.i.bf16 %v1240_v15, %v1232_v42  ;;  %2785 = vmatpush3.bf16.msra.mxu1 %v2908_v46  ;;  %v3931_v15 = vadd.f32 %v3887_v7, %v795_v58  ;;  %v804_v46 = vmul.f32 0.05, %v3663_v36  ;;  %v759_v7 = vmul.f32 0.05, %v3572_v22  ;;  %v4388_v58 = vld [vmem:[#allocation33_spill] sm:$0xff] }
 0x18e   :  { %v765_v36 = vmul.f32 0.05, %v3671_v35  ;;  %v768_v22 = vmul.f32 0.05, %v3710_v29 }
 0x18f   :  { %2828 = vxpose.xlu0.b32.cont [4/8] (short) (narrow) %v2827_v49, 8  ;;  %v1036_v10 = vpop.f32.mrf.mxu0  ;;  %v2833_v49 = vpack.i.bf16 %v1241_v9, %v1233_v13  ;;  %v767_v9 = vmul.f32 0.05, %v3703_v60  ;;  %v757_v13 = vmul.f32 0.05, %v3532_v28  ;;  %v4390_v28 = vld [vmem:[#allocation11_spill] sm:$0xff] }
 0x190   :  { %v3908_v63 = vpop.f32.mrf.mxu1 }
 0x191   :  { %v2733_v41 = vpop.f32.mrf.mxu0  ;;  %v1243_v55 = vadd.f32 %v1036_v10, %v757_v13  ;;  %v771_v10 = vmul.f32 0.05, %v3730_v56 }
 0x192   :  { %v3917_v25 = vpop.f32.mrf.mxu1 }
 0x193   :  { %2830 = vxpose.xlu0.b32.cont [5/8] (short) (narrow) %v2829_v54, 8  ;;  %v1039_v21 = vpop.f32.mrf.mxu0 }
 0x194   :  { %v3922_v62 = vpop.f32.mrf.mxu1 }
 0x196   :  { %v3926_v14 = vpop.f32.mrf.mxu1 }
 0x197   :  { %2832 = vxpose.xlu0.b32.cont [6/8] (short) (narrow) %v2831_v39, 8  ;;  %v1245_v39 = vadd.f32 %v2732_v31, %v759_v7  ;;  %v4389_v31 = vld [vmem:[#allocation7_spill] sm:$0xff]  ;;  %v763_v7 = vmul.f32 0.05, %v4390_v28 }
 0x19b   :  { %2834 = vxpose.xlu0.b32.cont [7/8] (short) (narrow) %v2833_v49, 8  ;;  %v2736_v40 = vpop.f32.mrf.mxu0  ;;  %v760_v49 = vmul.f32 0.05, %v4387_v5 }
 0x19d   :  { %v1052_v3 = vpop.f32.mrf.mxu0  ;;  %v1246_v47 = vadd.f32 %v2733_v41, %v760_v49  ;;  %v769_v41 = vmul.f32 0.05, %v3722_v61  ;;  %v4392_v49 = vld [vmem:[#allocation4_spill] sm:$0xff] }
 0x19f   :  { %2836 = vxpose.xlu0.b32.end [8/8] (short) (narrow) %v2835_v16, 8  ;;  %v2776_v44 = vpop.f32.mrf.mxu1  ;;  %v2737_v54 = vpop.f32.mrf.mxu0 }
 0x1a0   :  { %v3933_v4 = vadd.f32 %v2776_v44, %v803_v19  ;;  %v758_v19 = vmul.f32 0.05, %v4388_v58 }
 0x1a1   :  { %v3935_v27 = vpop.f32.mrf.mxu1  ;;  %v1055_v42 = vpop.f32.mrf.mxu0 }
 0x1a2   :  { %v2896_v43 = vpack.i.bf16 %v3933_v4, %v3931_v15  ;;  %v1244_v35 = vadd.f32 %v1039_v21, %v758_v19  ;;  %v772_v21 = vmul.f32 0.05, %v3734_v24  ;;  %v4393_v19 = vld [vmem:[#allocation37_spill] sm:$0xff]  ;;  %v2535_v4 = vld [vmem:[#allocation3] sm:$0x1] }
 0x1a3   :  { %v2777_v33 = vpop.f32.mrf.mxu1 }
 0x1a4   :  { %v3944_v17 = vadd.f32 %v2777_v33, %v804_v46  ;;  %v766_v33 = vmul.f32 0.05, %v4389_v31 }
 0x1a6   :  { %v2898_v0 = vpack.i.bf16 %v3944_v17, %v3942_v45 }
 0x1a7   :  { %v2740_v8 = vpop.f32.mrf.mxu0 }
 0x1a8   :  { %v1253_v6 = vadd.f32 %v2740_v8, %v767_v9 }
 0x1a9   :  { %v1068_v1 = vpop.f32.mrf.mxu0 }
 0x1aa   :  { %v2846_v37 = vpack.i.bf16 %v1253_v6, %v1245_v39  ;;  %v1251_v16 = vadd.f32 %v1068_v1, %v765_v36  ;;  %v4391_v39 = vld [vmem:[#allocation36_spill] sm:$0xff]  ;;  %v1249_v6 = vadd.f32 %v2736_v40, %v763_v7  ;;  %v770_v40 = vmul.f32 0.05, %v3724_v30 }
 0x1ab   :  { %v2741_v44 = vpop.f32.mrf.mxu0  ;;  %v761_v13 = vmul.f32 0.05, %v4391_v39 }
 0x1ac   :  { %v2842_v60 = vpack.i.bf16 %v1251_v16, %v1243_v55  ;;  %v1254_v46 = vadd.f32 %v2741_v44, %v768_v22  ;;  %v764_v55 = vmul.f32 0.05, %v4392_v49  ;;  %v4396_v49 = vld [vmem:[#allocation21_spill] sm:$0xff] }
 0x1ad   :  { %v1071_v9 = vpop.f32.mrf.mxu0  ;;  %v1247_v22 = vadd.f32 %v1052_v3, %v761_v13  ;;  %v4394_v3 = vld [vmem:[#allocation17_spill] sm:$0xff] }
 0x1ae   :  { %v2848_v8 = vpack.i.bf16 %v1254_v46, %v1246_v47  ;;  %v1252_v5 = vadd.f32 %v1071_v9, %v766_v33  ;;  %2843 = vxpose.xlu1.b32.start [1/8] (short) (narrow) %v2842_v60, 8  ;;  %v762_v47 = vmul.f32 0.05, %v4393_v19  ;;  %v1250_v60 = vadd.f32 %v2737_v54, %v764_v55 }
 0x1af   :  { %v2744_v29 = vpop.f32.mrf.mxu0  ;;  %v783_v55 = vmul.f32 0.05, %v4396_v49 }
 0x1b0   :  { %v2844_v36 = vpack.i.bf16 %v1252_v5, %v1244_v35  ;;  %v1257_v1 = vadd.f32 %v2744_v29, %v771_v10  ;;  %v1248_v28 = vadd.f32 %v1055_v42, %v762_v47  ;;  %v781_v35 = vmul.f32 0.05, %v4394_v3  ;;  %v4395_v29 = vld [vmem:[#allocation18_spill] sm:$0xff] }
 0x1b1   :  { %v1084_v16 = vpop.f32.mrf.mxu0  ;;  %v773_v10 = vmul.f32 0.05, %v3747_v2  ;;  %v774_v42 = vmul.f32 0.05, %v3755_v20  ;;  %v4397_v20 = vld [vmem:[#allocation22_spill] sm:$0xff] }
 0x1b2   :  { %v2854_v58 = vpack.i.bf16 %v1257_v1, %v1249_v6  ;;  %v1255_v44 = vadd.f32 %v1084_v16, %v769_v41  ;;  %2845 = vxpose.xlu1.b32.cont [2/8] (short) (narrow) %v2844_v36, 8  ;;  %v1267_v39 = vadd.f32 %v3800_v48, %v781_v35  ;;  %v782_v6 = vmul.f32 0.05, %v4395_v29 }
 0x1b3   :  { %v2745_v56 = vpop.f32.mrf.mxu0  ;;  %v775_v1 = vmul.f32 0.05, %v3771_v23 }
 0x1b4   :  { %v2850_v46 = vpack.i.bf16 %v1255_v44, %v1247_v22  ;;  %v1258_v31 = vadd.f32 %v2745_v56, %v772_v21  ;;  %v1269_v22 = vadd.f32 %v3798_v32, %v783_v55  ;;  %v776_v44 = vmul.f32 0.05, %v3773_v53  ;;  %v4398_v56 = vld [vmem:[#allocation34_spill] sm:$0xff]  ;;  %v4400_v32 = vld [vmem:[#allocation23_spill] sm:$0xff] }
 0x1b5   :  { %v1087_v33 = vpop.f32.mrf.mxu0  ;;  %v784_v21 = vmul.f32 0.05, %v4397_v20 }
 0x1b6   :  { %v2856_v61 = vpack.i.bf16 %v1258_v31, %v1250_v60  ;;  %v1256_v7 = vadd.f32 %v1087_v33, %v770_v40  ;;  %2847 = vxpose.xlu1.b32.cont [3/8] (short) (narrow) %v2846_v37, 8  ;;  %v1268_v37 = vadd.f32 %v3859_v11, %v782_v6  ;;  %v797_v60 = vmul.f32 0.05, %v4398_v56  ;;  %v4399_v31 = vld [vmem:[#allocation27_spill] sm:$0xff] }
 0x1b7   :  { %v2748_v9 = vpop.f32.mrf.mxu0  ;;  %v1270_v47 = vadd.f32 %v3857_v59, %v784_v21  ;;  %v785_v40 = vmul.f32 0.05, %v4399_v31  ;;  %v789_v33 = vmul.f32 0.05, %v4400_v32  ;;  %v4401_v59 = vld [vmem:[#allocation35_spill] sm:$0xff]  ;;  %v4412_v21 = vld [vmem:[#allocation30_spill] sm:$0xff] }
 0x1b8   :  { %v2852_v5 = vpack.i.bf16 %v1256_v7, %v1248_v28  ;;  %v1261_v48 = vadd.f32 %v2748_v9, %v775_v1  ;;  %v1283_v53 = vadd.f32 %v3917_v25, %v797_v60  ;;  %v4415_v32 = vld [vmem:[#allocation38_spill] sm:$0xff] }
 0x1b9   :  { %v1100_v24 = vpop.f32.mrf.mxu0  ;;  %v1271_v3 = vadd.f32 %v3865_v57, %v785_v40  ;;  %v1275_v35 = vadd.f32 %v3877_v12, %v789_v33  ;;  %v4404_v12 = vld [vmem:[#allocation13_spill] sm:$0xff]  ;;  %v801_v33 = vmul.f32 0.05, %v4415_v32 }
 0x1ba   :  { %v1259_v13 = vadd.f32 %v1100_v24, %v773_v10  ;;  %2849 = vxpose.xlu1.b32.cont [4/8] (short) (narrow) %v2848_v8, 8  ;;  %v2867_v11 = vpack.i.bf16 %v1269_v22, %v1261_v48  ;;  %v778_v10 = vmul.f32 0.05, %v3782_v52  ;;  %v4403_v24 = vld [vmem:[#allocation24_spill] sm:$0xff]  ;;  %v4406_v52 = vld [vmem:[#allocation29_spill] sm:$0xff] }
 0x1bb   :  { %v2749_v54 = vpop.f32.mrf.mxu0  ;;  %v4408_v48 = vld [vmem:[#allocation9_spill] sm:$0xff] }
 0x1bc   :  { %v2863_v30 = vpack.i.bf16 %v1267_v39, %v1259_v13  ;;  %v1262_v19 = vadd.f32 %v2749_v54, %v776_v44  ;;  %v790_v39 = vmul.f32 0.05, %v4403_v24  ;;  %v2884_v13 = vpack.i.bf16 %v1283_v53, %v1275_v35  ;;  %v4411_v44 = vld [vmem:[#allocation10_spill] sm:$0xff]  ;;  %v4416_v53 = vld [vmem:[#allocation31_spill] sm:$0xff]  ;;  %v1215_v35 = vpop.f32.mrf.mxu1 }
 0x1bd   :  { %v1103_v36 = vpop.f32.mrf.mxu0  ;;  %v780_v20 = vmul.f32 0.05, %v4411_v44  ;;  %v2646_v44 = vld [vmem:[%s4270_s6] ss:$0 sm:$0xff]  ;;  %s2917_s6 = smov 1  }
 0x1be   :  { %v1260_v41 = vadd.f32 %v1103_v36, %v774_v42  ;;  %2851 = vxpose.xlu1.b32.cont [5/8] (short) (narrow) %v2850_v46, 8  ;;  %2864 = vxpose.xlu0.b32.start [1/8] (short) (narrow) %v2863_v30, 8  ;;  %v777_v46 = vmul.f32 0.05, %v3780_v34  ;;  %v2869_v28 = vpack.i.bf16 %v1270_v47, %v1262_v19  ;;  %v4402_v34 = vld [vmem:[#allocation28_spill] sm:$0xff]  ;;  %v1276_v57 = vadd.f32 %v3884_v51, %v790_v39  ;;  %v4405_v42 = vld [vmem:[#allocation14_spill] sm:$0xff] }
 0x1bf   :  { %v2752_v2 = vpop.f32.mrf.mxu0  ;;  %v799_v30 = vmul.f32 0.05, %v4404_v12  ;;  %v779_v36 = vmul.f32 0.05, %v4405_v42  ;;  %v4410_v51 = vld [vmem:[#allocation6_spill] sm:$0xff] }
 0x1c0   :  { %v2865_v16 = vpack.i.bf16 %v1268_v37, %v1260_v41  ;;  %v4407_v37 = vld [vmem:[#allocation25_spill] sm:$0xff]  ;;  %v800_v22 = vmul.f32 0.05, %v4410_v51  ;;  %v4413_v19 = vld [vmem:[#allocation26_spill] sm:$0xff] }
 0x1c1   :  { %v1116_v8 = vpop.f32.mrf.mxu0  ;;  %v791_v1 = vmul.f32 0.05, %v4407_v37  ;;  %v1285_v41 = vadd.f32 %v3908_v63, %v799_v30  ;;  %v792_v47 = vmul.f32 0.05, %v4413_v19  ;;  %v2910_v37 = vld [vmem:[%s4269_s7 + $0x10] sm:$0xff]  }
 0x1c2   :  { %2853 = vxpose.xlu1.b32.cont [6/8] (short) (narrow) %v2852_v5, 8  ;;  %2866 = vxpose.xlu0.b32.cont [2/8] (short) (narrow) %v2865_v16, 8  ;;  %v1263_v7 = vadd.f32 %v1116_v8, %v777_v46  ;;  %v798_v5 = vmul.f32 0.05, %v4401_v59  ;;  %v1286_v63 = vadd.f32 %v3922_v62, %v800_v22  ;;  %v4414_v46 = vld [vmem:[#allocation5_spill] sm:$0xff]  ;;  %v4417_v62 = vld [vmem:[#allocation8_spill] sm:$0xff] }
 0x1c3   :  { %v2753_v23 = vpop.f32.mrf.mxu0  ;;  %v1278_v40 = vadd.f32 %v3881_v26, %v792_v47 }
 0x1c4   :  { %v1284_v25 = vadd.f32 %v3926_v14, %v798_v5  ;;  %v2871_v54 = vpack.i.bf16 %v1271_v3, %v1263_v7  ;;  %v1265_v14 = vadd.f32 %v2752_v2, %v779_v36  ;;  %v1266_v2 = vadd.f32 %v2753_v23, %v780_v20  ;;  %v4418_v23 = vld [vmem:[#allocation32_spill] sm:$0xff] }
 0x1c5   :  { %v1119_v9 = vpop.f32.mrf.mxu0  ;;  %v2890_v7 = vpack.i.bf16 %v1286_v63, %v1278_v40  ;;  %v802_v5 = vmul.f32 0.05, %v4417_v62 }
 0x1c6   :  { %2855 = vxpose.xlu1.b32.cont [7/8] (short) (narrow) %v2854_v58, 8  ;;  %2868 = vxpose.xlu0.b32.cont [3/8] (short) (narrow) %v2867_v11, 8  ;;  %v786_v58 = vmul.f32 0.05, %v4402_v34  ;;  %v1264_v29 = vadd.f32 %v1119_v9, %v778_v10  ;;  %v2886_v49 = vpack.i.bf16 %v1284_v25, %v1276_v57  ;;  %v788_v11 = vmul.f32 0.05, %v4412_v21 }
 0x1c7   :  { %v1287_v9 = vadd.f32 %v3935_v27, %v801_v33  ;;  %v794_v10 = vmul.f32 0.05, %v4418_v23  ;;  %v1288_v34 = vadd.f32 %v1215_v35, %v802_v5 }
 0x1c8   :  { %v1272_v6 = vadd.f32 %v3871_v50, %v786_v58  ;;  %v4409_v50 = vld [vmem:[#allocation15_spill] sm:$0xff]  ;;  %v1274_v31 = vadd.f32 %v4414_v46, %v788_v11 }
 0x1c9   :  { %v1277_v8 = vadd.f32 %v4409_v50, %v791_v1  ;;  %v1280_v58 = vadd.f32 %v3901_v38, %v794_v10  ;;  %v2911_v1 = vld [vmem:[%s4269_s7 + $0x8] sm:$0xff]  }
 0x1ca   :  { %2857 = vxpose.xlu1.b32.end [8/8] (short) (narrow) %v2856_v61, 8  ;;  %2870 = vxpose.xlu0.b32.cont [4/8] (short) (narrow) %v2869_v28, 8  ;;  %v787_v61 = vmul.f32 0.05, %v4406_v52  ;;  %v2873_v55 = vpack.i.bf16 %v1272_v6, %v1264_v29  ;;  %v793_v28 = vmul.f32 0.05, %v4416_v53  ;;  %v2877_v3 = vpack.i.bf16 %v1274_v31, %v1266_v2 }
 0x1cb   :  { %v2888_v56 = vpack.i.bf16 %v1285_v41, %v1277_v8  ;;  %v2894_v24 = vpack.i.bf16 %v1288_v34, %v1280_v58  ;;  %v2912_v41 = vld [vmem:[%s4269_s7] sm:$0xff]  }
 0x1cc   :  { %v1273_v16 = vadd.f32 %v4408_v48, %v787_v61  ;;  %v1279_v59 = vadd.f32 %v3891_v18, %v793_v28  ;;  %v4419_v48 = vmov 0.0  }
 0x1cd   :  { %2069 = vst.msk [vmem:[#allocation2 + $0x58] sm:$0x1] %vm2063_vm9, %v4419_v48  ;;  %2071 = vst.msk [vmem:[#allocation2 + $0xb8] sm:$0x1] %vm2063_vm9, %v4419_v48 }
 0x1ce   :  { %2885 = vxpose.xlu1.b32.start [1/8] (short) (narrow) %v2884_v13, 8  ;;  %2872 = vxpose.xlu0.b32.cont [5/8] (short) (narrow) %v2871_v54, 8  ;;  %v2875_v60 = vpack.i.bf16 %v1273_v16, %v1265_v14  ;;  %v2892_v26 = vpack.i.bf16 %v1287_v9, %v1279_v59  ;;  %v4017_v13 = vld [vmem:[#allocation2] sm:$0xff]  ;;  %v4043_v14 = vld [vmem:[#allocation2 + $0xb0] sm:$0xff]  ;;  %2085 = vst.msk [vmem:[#allocation2 + $0x58] sm:$0x1] %vm2074_vm10, %v4419_v48 }
 0x1cf   :  { %v2295_v38 = vrot.slane %v4017_v13, 3  ;;  %v4021_v54 = vld [vmem:[#allocation2 + $0x60] sm:$0xff]  ;;  %2079 = vst.msk [vmem:[#allocation2 + $0x28] sm:$0x1] %vm2074_vm10, %v4419_v48  ;;  %2081 = vst.msk [vmem:[#allocation2 + $0x38] sm:$0x1] %vm2074_vm10, %v4419_v48 }
 0x1d0   :  { %v2299_v15 = vrot.slane %v4021_v54, 3  ;;  %2083 = vst.msk [vmem:[#allocation2 + $0x48] sm:$0x1] %vm2074_vm10, %v4419_v48  ;;  %2091 = vst.msk [vmem:[#allocation2 + $0x88] sm:$0x1] %vm2074_vm10, %v4419_v48  ;;  %v2382_v16 = vrot.slane %v4043_v14, 5 }
 0x1d1   :  { %2093 = vst.msk [vmem:[#allocation2 + $0x98] sm:$0x1] %vm2074_vm10, %v4419_v48  ;;  %2095 = vst.msk [vmem:[#allocation2 + $0xa8] sm:$0x1] %vm2074_vm10, %v4419_v48  ;;  %v2415_v50 = vrot.slane %v4017_v13, 6  ;;  %v2419_v51 = vrot.slane %v4021_v54, 6 }
 0x1d2   :  { %2887 = vxpose.xlu1.b32.cont [2/8] (short) (narrow) %v2886_v49, 8  ;;  %2874 = vxpose.xlu0.b32.cont [6/8] (short) (narrow) %v2873_v55, 8  ;;  %v4041_v49 = vld [vmem:[#allocation2 + $0x50] sm:$0xff]  ;;  %2097 = vst.msk [vmem:[#allocation2 + $0xb8] sm:$0x1] %vm2074_vm10, %v4419_v48 }
 0x1d3   :  { %v2378_v55 = vrot.slane %v4041_v49, 5  ;;  %2111 = vst.msk [vmem:[#allocation2 + $0x58] sm:$0x1] %vm2100_vm11, %v4419_v48  ;;  %2105 = vst.msk [vmem:[#allocation2 + $0x28] sm:$0x1] %vm2100_vm11, %v4419_v48 }
 0x1d4   :  { %2107 = vst.msk [vmem:[#allocation2 + $0x38] sm:$0x1] %vm2100_vm11, %v4419_v48  ;;  %2109 = vst.msk [vmem:[#allocation2 + $0x48] sm:$0x1] %vm2100_vm11, %v4419_v48 }
 0x1d5   :  { %2117 = vst.msk [vmem:[#allocation2 + $0x88] sm:$0x1] %vm2100_vm11, %v4419_v48  ;;  %2119 = vst.msk [vmem:[#allocation2 + $0x98] sm:$0x1] %vm2100_vm11, %v4419_v48 }
 0x1d6   :  { %2889 = vxpose.xlu1.b32.cont [3/8] (short) (narrow) %v2888_v56, 8  ;;  %2876 = vxpose.xlu0.b32.cont [7/8] (short) (narrow) %v2875_v60, 8  ;;  %2121 = vst.msk [vmem:[#allocation2 + $0xa8] sm:$0x1] %vm2100_vm11, %v4419_v48  ;;  %2123 = vst.msk [vmem:[#allocation2 + $0xb8] sm:$0x1] %vm2100_vm11, %v4419_v48 }
 0x1da   :  { %2891 = vxpose.xlu1.b32.cont [4/8] (short) (narrow) %v2890_v7, 8  ;;  %2878 = vxpose.xlu0.b32.end [8/8] (short) (narrow) %v2877_v3, 8  ;;  %v2216_v8 = vld [vmem:[#allocation2 + $0x58] sm:$0x1] }
 0x1de   :  { %2893 = vxpose.xlu1.b32.cont [5/8] (short) (narrow) %v2892_v26, 8 }
 0x1e2   :  { %2895 = vxpose.xlu1.b32.cont [6/8] (short) (narrow) %v2894_v24, 8 }
 0x1e6   :  { %2897 = vxpose.xlu1.b32.cont [7/8] (short) (narrow) %v2896_v43, 8  ;;  %v2909_v43 = vld [vmem:[%s4269_s7 + $0x18] sm:$0xff]   ;;  %s2916_s7 = smov 126  }
 0x1e7   :  { %2794 = vmatprep.subr.bf16.mxu1 %v2909_v43 }
 0x1ea   :  { %2899 = vxpose.xlu1.b32.end [8/8] (short) (narrow) %v2898_v0, 8 }
 0x1ff   :  { %v2837_v18 = vpop.trf.xlu0 }
 0x200   :  { %v2841_v27 = vunpack.i.h.bf16 %v2837_v18  ;;  %v2838_v39 = vunpack.i.l.bf16 %v2837_v18 }
 0x202   :  { %v1547_v25 = vpack.c.bf16 %v2841_v27, %v2838_v39 }
 0x203   :  { %2389 = vrot.lane.b32.xlu0 %v2378_v55, %s2915_s5 }
 0x204   :  { %2786 = vmatprep.mubr.msk.bf16.mxu1 %vm1590_vm1, %v1547_v25 }
 0x207   :  { %2397 = vrot.lane.b32.xlu0 %v2382_v16, %s2915_s5 }
 0x208   :  { %2303 = vrot.lane.b32.xlu1 %v2295_v38, %s2915_s5 }
 0x20b   :  { %2423 = vrot.lane.b32.xlu0 %v2415_v50, %s2916_s7 }
 0x20c   :  { %2311 = vrot.lane.b32.xlu1 %v2299_v15, %s2915_s5 }
 0x20f   :  { %2431 = vrot.lane.b32.xlu0 %v2419_v51, %s2916_s7 }
 0x210   :  { %2538 = vperm.xlu1 %2820, %v2535_v4  }
 0x214   :  { %2509 = vrot.lane.b32.xlu1 %v2216_v8, %s2916_s7 }
 0x22a   :  { %v2858_v45 = vpop.trf.xlu1 }
 0x22b   :  { %v2862_v17 = vunpack.i.h.bf16 %v2858_v45  ;;  %v2859_v0 = vunpack.i.l.bf16 %v2858_v45 }
 0x22d   :  { %v1548_v29 = vpack.c.bf16 %v2862_v17, %v2859_v0 }
 0x22f   :  { %2787 = vmatmul.mubr.msk.bf16.vlgmr.msra.gmra.mxu1 %vm1590_vm1, %v1548_v29 }
 0x230   :  { %2795 = vmatpush3.bf16.msra.mxu1 %v2909_v43 }
 0x231   :  { %2796 = vmatprep.subr.bf16.mxu1 %v2910_v37 }
 0x234   :  { %2797 = vmatpush3.bf16.msra.mxu1 %v2910_v37 }
 0x235   :  { %2798 = vmatprep.subr.bf16.mxu1 %v2911_v1 }
 0x238   :  { %2799 = vmatpush3.bf16.msra.mxu1 %v2911_v1 }
 0x239   :  { %2800 = vmatprep.subr.bf16.mxu1 %v2912_v41 }
 0x23a   :  { %v2879_v6 = vpop.trf.xlu0 }
 0x23b   :  { %v2883_v57 = vunpack.i.h.bf16 %v2879_v6  ;;  %v2880_v12 = vunpack.i.l.bf16 %v2879_v6 }
 0x23c   :  { %2801 = vmatpush3.bf16.msra.mxu1 %v2912_v41 }
 0x23d   :  { %v1549_v30 = vpack.c.bf16 %v2883_v57, %v2880_v12 }
 0x23f   :  { %2790 = vmatprep.mubr.msk.bf16.mxu1 %vm1590_vm1, %v1549_v30 }
 0x24a   :  { %v2900_v42 = vpop.trf.xlu1 }
 0x24b   :  { %v2904_v36 = vunpack.i.h.bf16 %v2900_v42  ;;  %v2901_v52 = vunpack.i.l.bf16 %v2900_v42 }
 0x24d   :  { %v1550_v61 = vpack.c.bf16 %v2904_v36, %v2901_v52 }
 0x24f   :  { %2791 = vmatmul.mubr.msk.bf16.gmra.mxu1 %vm1590_vm1, %v1550_v61 }
 0x275   :  { %v4087_v12 = vpop.permute.xlu0 %2389 }
 0x279   :  { %v4089_v30 = vpop.permute.xlu0 %2397 }
 0x27a   :  { %v4097_v1 = vpop.permute.xlu1 %2303 }
 0x27d   :  { %v4091_v42 = vpop.permute.xlu0 %2423 }
 0x27e   :  { %v4101_v48 = vpop.permute.xlu1 %2311 }
 0x281   :  { %v4093_v36 = vpop.permute.xlu0 %2431 }
 0x28b   :  { %v4103_v50 = vpop.permute.xlu1 %2538 }
 0x28f   :  { %v4106_v51 = vpop.permute.xlu1 %2509 }
 0x2ef   :  { %v2788_v22 = vpop.f32.mrf.mxu1 }
 0x2f0   :  { %v1646_v11 = vadd.f32 %v2788_v22, %v2646_v44 }
 0x2f1   :  { %v1637_v20 = vpop.f32.mrf.mxu1 }
 0x2f2   :  { %v1638_v21 = vadd.f32 %v2646_v44, %v1637_v20  ;;  %v1678_v46 = vmul.f32 0.01, %v1646_v11  ;;  %vm1670_vm14 = vcmp.ge.f32.partialorder %v1646_v11, 0.0 }
 0x2f3   :  { %v2789_v19 = vpop.f32.mrf.mxu1 }
 0x2f4   :  { %v1649_v47 = vadd.f32 %v2789_v19, %v2646_v44  ;;  %v1676_v63 = vmul.f32 0.01, %v1638_v21  ;;  %vm1668_vm13 = vcmp.ge.f32.partialorder %v1638_v21, 0.0  ;;  %v1686_v53 = vsel %vm1670_vm14, %v1646_v11, %v1678_v46 }
 0x2f5   :  { %v1640_v56 = vpop.f32.mrf.mxu1 }
 0x2f6   :  { %vm1671_vm12 = vcmp.ge.f32.partialorder %v1649_v47, 0.0  ;;  %v1679_v60 = vmul.f32 0.01, %v1649_v47  ;;  %v1641_v2 = vadd.f32 %v2646_v44, %v1640_v56  ;;  %v1684_v32 = vsel %vm1668_vm13, %v1638_v21, %v1676_v63 }
 0x2f8   :  { %vm1669_vm15 = vcmp.ge.f32.partialorder %v1641_v2, 0.0  ;;  %v1677_v31 = vmul.f32 0.01, %v1641_v2  ;;  %v1687_v40 = vsel %vm1671_vm12, %v1649_v47, %v1679_v60 }
 0x2f9   :  { %v1693_v7 = vpack.c.bf16 %v1687_v40, %v1686_v53 }
 0x2fa   :  { %v1685_v33 = vsel %vm1669_vm15, %v1641_v2, %v1677_v31 }
 0x2fb   :  { %v1692_v28 = vpack.c.bf16 %v1685_v33, %v1684_v32 }
 0x2fd   :  { %2802 = vmatprep.mubr.msk.bf16.mxu1 %vm1590_vm1, %v1692_v28 }
 0x2fe   :  { %2803 = vmatmul.mubr.msk.bf16.vlgmr.msra.gmra.mxu1 %vm1590_vm1, %v1693_v7 }
 0x30f   :  { %v2792_v9 = vpop.f32.mrf.mxu1 }
 0x310   :  { %v1662_v3 = vadd.f32 %v2792_v9, %v2646_v44 }
 0x311   :  { %v1653_v35 = vpop.f32.mrf.mxu1 }
 0x312   :  { %v1654_v59 = vadd.f32 %v2646_v44, %v1653_v35  ;;  %v1682_v62 = vmul.f32 0.01, %v1662_v3  ;;  %vm1674_vm0 = vcmp.ge.f32.partialorder %v1662_v3, 0.0 }
 0x313   :  { %v2793_v5 = vpop.f32.mrf.mxu1 }
 0x314   :  { %v1680_v23 = vmul.f32 0.01, %v1654_v59  ;;  %v1665_v10 = vadd.f32 %v2793_v5, %v2646_v44  ;;  %vm1672_vm2 = vcmp.ge.f32.partialorder %v1654_v59, 0.0  ;;  %v1690_v24 = vsel %vm1674_vm0, %v1662_v3, %v1682_v62 }
 0x315   :  { %v1656_v26 = vpop.f32.mrf.mxu1 }
 0x316   :  { %vm1675_vm3 = vcmp.ge.f32.partialorder %v1665_v10, 0.0  ;;  %v1683_v34 = vmul.f32 0.01, %v1665_v10  ;;  %v1657_v58 = vadd.f32 %v2646_v44, %v1656_v26  ;;  %v1688_v18 = vsel %vm1672_vm2, %v1654_v59, %v1680_v23 }
 0x318   :  { %v1691_v27 = vsel %vm1675_vm3, %v1665_v10, %v1683_v34  ;;  %vm1673_vm4 = vcmp.ge.f32.partialorder %v1657_v58, 0.0  ;;  %v1681_v39 = vmul.f32 0.01, %v1657_v58 }
 0x319   :  { %v1695_v25 = vpack.c.bf16 %v1691_v27, %v1690_v24 }
 0x31a   :  { %v1689_v38 = vsel %vm1673_vm4, %v1657_v58, %v1681_v39 }
 0x31b   :  { %v1694_v15 = vpack.c.bf16 %v1689_v38, %v1688_v18 }
 0x31d   :  { %2806 = vmatprep.mubr.msk.bf16.mxu1 %vm1590_vm1, %v1694_v15 }
 0x31e   :  { %2807 = vmatmul.mubr.msk.bf16.gmra.mxu1 %vm1590_vm1, %v1695_v25 }
 0x3be   :  { %v2804_v4 = vpop.f32.mrf.mxu1 }
 0x3bf   :  { %1869 = vxpose.xlu0.b32.start.end [1/1] (short) (narrow) %v2804_v4, 16 }
 0x3c0   :  { %v1774_v43 = vpop.f32.mrf.mxu1 }
 0x3c2   :  { %v2805_v45 = vpop.f32.mrf.mxu1 }
 0x3c4   :  { %1805 = vxpose.xlu0.b32.start.end [1/1] (short) (narrow) %v1774_v43, 16  ;;  %v1777_v17 = vpop.f32.mrf.mxu1 }
 0x3c9   :  { %1901 = vxpose.xlu0.b32.start.end [1/1] (short) (narrow) %v2805_v45, 16 }
 0x3ce   :  { %1837 = vxpose.xlu0.b32.start.end [1/1] (short) (narrow) %v1777_v17, 16 }
 0x3de   :  { %v2808_v0 = vpop.f32.mrf.mxu1 }
 0x3df   :  { %1997 = vxpose.xlu1.b32.start.end [1/1] (short) (narrow) %v2808_v0, 16 }
 0x3e0   :  { %v1790_v29 = vpop.f32.mrf.mxu1 }
 0x3e2   :  { %v2809_v6 = vpop.f32.mrf.mxu1 }
 0x3e4   :  { %1933 = vxpose.xlu1.b32.start.end [1/1] (short) (narrow) %v1790_v29, 16  ;;  %v1793_v57 = vpop.f32.mrf.mxu1 }
 0x3e5   :  { %1965 = vxpose.xlu0.b32.start.end [1/1] (short) (narrow) %v1793_v57, 16 }
 0x3e9   :  { %2029 = vxpose.xlu1.b32.start.end [1/1] (short) (narrow) %v2809_v6, 16 }
 0x43b   :  { %v1885_v52 = vpop.trf.xlu0 }
 0x43c   :  { %2148 = vrot.lane.b32.xlu1 %v1885_v52, %s2917_s6 }
 0x43f   :  { %v1886_v61 = vpop.trf.xlu0 }
 0x443   :  { %v1821_v37 = vpop.trf.xlu0 }
 0x444   :  { %2140 = vrot.lane.b32.xlu0 %v1821_v37, %s2917_s6 }
 0x447   :  { %v1822_v41 = vpop.trf.xlu0 }
 0x448   :  { %2150 = vrot.lane.b32.xlu0 %v1886_v61, %s2917_s6 }
 0x44b   :  { %v1917_v55 = vpop.trf.xlu0 }
 0x44c   :  { %2152 = vrot.lane.b32.xlu1 %v1917_v55, %s2917_s6 }
 0x44f   :  { %v1918_v16 = vpop.trf.xlu0 }
 0x453   :  { %v1853_v8 = vpop.trf.xlu0 }
 0x454   :  { %2144 = vrot.lane.b32.xlu1 %v1853_v8, %s2917_s6 }
 0x457   :  { %v1854_v44 = vpop.trf.xlu0 }
 0x458   :  { %2142 = vrot.lane.b32.xlu1 %v1822_v41, %s2917_s6 }
 0x45b   :  { %v2013_v22 = vpop.trf.xlu1 }
 0x45c   :  { %2154 = vrot.lane.b32.xlu1 %v1918_v16, %s2917_s6  ;;  %2164 = vrot.lane.b32.xlu0 %v2013_v22, %s2917_s6 }
 0x45f   :  { %v2014_v20 = vpop.trf.xlu1 }
 0x460   :  { %2146 = vrot.lane.b32.xlu1 %v1854_v44, %s2917_s6 }
 0x461   :  { %v1981_v19 = vpop.trf.xlu0 }
 0x463   :  { %v1949_v21 = vpop.trf.xlu1 }
 0x464   :  { %2156 = vrot.lane.b32.xlu1 %v1949_v21, %s2917_s6 }
 0x465   :  { %v1982_v63 = vpop.trf.xlu0 }
 0x467   :  { %v1950_v11 = vpop.trf.xlu1 }
 0x468   :  { %2166 = vrot.lane.b32.xlu1 %v2014_v20, %s2917_s6 }
 0x46b   :  { %v2045_v47 = vpop.trf.xlu1 }
 0x46c   :  { %2168 = vrot.lane.b32.xlu0 %v2045_v47, %s2917_s6  ;;  %2160 = vrot.lane.b32.xlu1 %v1981_v19, %s2917_s6 }
 0x46f   :  { %v2046_v56 = vpop.trf.xlu1 }
 0x470   :  { %2158 = vrot.lane.b32.xlu0 %v1950_v11, %s2917_s6 }
 0x474   :  { %2170 = vrot.lane.b32.xlu0 %v2046_v56, %s2917_s6 }
 0x478   :  { %2162 = vrot.lane.b32.xlu0 %v1982_v63, %s2917_s6 }
 0x4ae   :  { %v2149_v60 = vpop.permute.xlu1 %2148 }
 0x4af   :  { %2195 = vst.msk [vmem:[#allocation2 + $0x30] sm:$0xff] %vm2189_vm5, %v2149_v60 }
 0x4b6   :  { %v2141_v2 = vpop.permute.xlu0 %2140  ;;  %v4120_v46 = vld [vmem:[#allocation2 + $0x30] sm:$0xff] }
 0x4b7   :  { %2190 = vst.msk [vmem:[#allocation2 + $0x10] sm:$0xff] %vm2189_vm5, %v2141_v2  ;;  %v2337_v31 = vrot.slane %v4120_v46, 4  ;;  %v2298_v40 = vrot.slane %v4120_v46, 3  ;;  %v2418_v33 = vrot.slane %v4120_v46, 6  ;;  %v2376_v53 = vrot.slane %v4120_v46, 5 }
 0x4b8   :  { %v2457_v9 = vrot.slane %v4120_v46, 7  ;;  %v2245_v15 = vrot.slane %v4120_v46, 1  ;;  %v2270_v55 = vrot.slane %v4120_v46, 2 }
 0x4b9   :  { %2347 = vrot.lane.b32.xlu1 %v2337_v31, %s2915_s5  ;;  %2309 = vrot.lane.b32.xlu0 %v2298_v40, %s2915_s5 }
 0x4ba   :  { %v2151_v32 = vpop.permute.xlu0 %2150 }
 0x4bb   :  { %2196 = vst.msk [vmem:[#allocation2 + $0x38] sm:$0x1] %vm2191_vm6, %v2151_v32 }
 0x4bd   :  { %2429 = vrot.lane.b32.xlu1 %v2418_v33, %s2916_s7  ;;  %2385 = vrot.lane.b32.xlu0 %v2376_v53, %s2915_s5 }
 0x4be   :  { %v2153_v28 = vpop.permute.xlu1 %2152  ;;  %v2208_v7 = vld [vmem:[#allocation2 + $0x10] sm:$0xff] }
 0x4bf   :  { %2197 = vst.msk [vmem:[#allocation2 + $0x40] sm:$0xff] %vm2189_vm5, %v2153_v28  ;;  %v2335_v3 = vrot.slane %v2208_v7, 4  ;;  %v2416_v35 = vrot.slane %v2208_v7, 6  ;;  %v2296_v59 = vrot.slane %v2208_v7, 3  ;;  %v2455_v23 = vrot.slane %v2208_v7, 7 }
 0x4c0   :  { %v2243_v27 = vrot.slane %v2208_v7, 1 }
 0x4c1   :  { %2467 = vrot.lane.b32.xlu0 %v2457_v9, %s2916_s7  ;;  %2343 = vrot.lane.b32.xlu1 %v2335_v3, %s2915_s5 }
 0x4c2   :  { %v2212_v26 = vld [vmem:[#allocation2 + $0x38] sm:$0x1]  ;;  %v2259_v45 = vadd.f32 %v2243_v27, %v4017_v13 }
 0x4c5   :  { %2425 = vrot.lane.b32.xlu1 %v2416_v35, %s2916_s7  ;;  %2305 = vrot.lane.b32.xlu0 %v2296_v59, %s2915_s5 }
 0x4c6   :  { %v2145_v62 = vpop.permute.xlu1 %2144  ;;  %v2213_v5 = vld [vmem:[#allocation2 + $0x40] sm:$0xff] }
 0x4c7   :  { %2193 = vst.msk [vmem:[#allocation2 + $0x20] sm:$0xff] %vm2189_vm5, %v2145_v62  ;;  %v2246_v10 = vrot.slane %v2213_v5, 1  ;;  %v2338_v34 = vrot.slane %v2213_v5, 4  ;;  %v2377_v58 = vrot.slane %v2213_v5, 5  ;;  %v2458_v43 = vrot.slane %v2213_v5, 7 }
 0x4c8   :  { %v2271_v6 = vrot.slane %v2213_v5, 2 }
 0x4c9   :  { %2463 = vrot.lane.b32.xlu0 %v2455_v23, %s2916_s7  ;;  %2505 = vrot.lane.b32.xlu1 %v2212_v26, %s2916_s7  ;;  %v4142_v24 = vadd.f32 %v2246_v10, %v4120_v46 }
 0x4ca   :  { %v2143_v18 = vpop.permute.xlu1 %2142 }
 0x4cd   :  { %2349 = vrot.lane.b32.xlu0 %v2338_v34, %s2915_s5  ;;  %2387 = vrot.lane.b32.xlu1 %v2377_v58, %s2915_s5 }
 0x4ce   :  { %v2155_v39 = vpop.permute.xlu1 %2154  ;;  %v2209_v25 = vld [vmem:[#allocation2 + $0x20] sm:$0xff]  ;;  %v2165_v38 = vpop.permute.xlu0 %2164 }
 0x4cf   :  { %2198 = vst.msk [vmem:[#allocation2 + $0x48] sm:$0x1] %vm2191_vm6, %v2155_v39  ;;  %v2336_v4 = vrot.slane %v2209_v25, 4  ;;  %v2269_v17 = vrot.slane %v2209_v25, 2  ;;  %v2244_v0 = vrot.slane %v2209_v25, 1  ;;  %v2261_v29 = vadd.f32 %v2245_v15, %v2209_v25 }
 0x4d0   :  { %2203 = vst.msk [vmem:[#allocation2 + $0x90] sm:$0xff] %vm2189_vm5, %v2165_v38  ;;  %v2417_v57 = vrot.slane %v2209_v25, 6  ;;  %v2297_v52 = vrot.slane %v2209_v25, 3  ;;  %v2375_v22 = vrot.slane %v2209_v25, 5  ;;  %v2456_v19 = vrot.slane %v2209_v25, 7 }
 0x4d1   :  { %2345 = vrot.lane.b32.xlu0 %v2336_v4, %s2915_s5  ;;  %2469 = vrot.lane.b32.xlu1 %v2458_v43, %s2916_s7  ;;  %v4152_v37 = vadd.f32 %v2269_v17, %v2259_v45  ;;  %v2260_v41 = vadd.f32 %v2244_v0, %v2208_v7  ;;  %v4155_v16 = vadd.f32 %v2271_v6, %v2261_v29 }
 0x4d2   :  { %v2147_v61 = vpop.permute.xlu1 %2146 }
 0x4d3   :  { %2194 = vst.msk [vmem:[#allocation2 + $0x28] sm:$0x1] %vm2191_vm6, %v2147_v61  ;;  %v4158_v13 = vadd.f32 %v2270_v55, %v2260_v41  ;;  %v2226_v55 = vld [vmem:[#allocation2 + $0xb8] sm:$0x1] }
 0x4d5   :  { %2427 = vrot.lane.b32.xlu0 %v2417_v57, %s2916_s7  ;;  %2307 = vrot.lane.b32.xlu1 %v2297_v52, %s2915_s5 }
 0x4d6   :  { %v2157_v8 = vpop.permute.xlu1 %2156  ;;  %v2214_v44 = vld [vmem:[#allocation2 + $0x48] sm:$0x1] }
 0x4d7   :  { %2199 = vst.msk [vmem:[#allocation2 + $0x70] sm:$0xff] %vm2189_vm5, %v2157_v8  ;;  %v2221_v11 = vld [vmem:[#allocation2 + $0x90] sm:$0xff] }
 0x4d8   :  { %v2341_v47 = vrot.slane %v2221_v11, 4  ;;  %v2302_v56 = vrot.slane %v2221_v11, 3  ;;  %v2422_v31 = vrot.slane %v2221_v11, 6  ;;  %v2380_v40 = vrot.slane %v2221_v11, 5 }
 0x4d9   :  { %2507 = vrot.lane.b32.xlu0 %v2214_v44, %s2916_s7  ;;  %2383 = vrot.lane.b32.xlu1 %v2375_v22, %s2915_s5  ;;  %v2461_v9 = vrot.slane %v2221_v11, 7  ;;  %v2249_v35 = vrot.slane %v2221_v11, 1  ;;  %v2274_v34 = vrot.slane %v2221_v11, 2 }
 0x4da   :  { %v2167_v20 = vpop.permute.xlu1 %2166  ;;  %v2210_v21 = vld [vmem:[#allocation2 + $0x28] sm:$0x1] }
 0x4db   :  { %2204 = vst.msk [vmem:[#allocation2 + $0x98] sm:$0x1] %vm2191_vm6, %v2167_v20 }
 0x4dd   :  { %2503 = vrot.lane.b32.xlu0 %v2210_v21, %s2916_s7  ;;  %2465 = vrot.lane.b32.xlu1 %v2456_v19, %s2916_s7 }
 0x4de   :  { %v2161_v63 = vpop.permute.xlu1 %2160  ;;  %v2169_v60 = vpop.permute.xlu0 %2168  ;;  %v2218_v2 = vld [vmem:[#allocation2 + $0x70] sm:$0xff] }
 0x4df   :  { %2201 = vst.msk [vmem:[#allocation2 + $0x80] sm:$0xff] %vm2189_vm5, %v2161_v63  ;;  %2205 = vst.msk [vmem:[#allocation2 + $0xa0] sm:$0xff] %vm2189_vm5, %v2169_v60  ;;  %v2247_v32 = vrot.slane %v2218_v2, 1  ;;  %v2339_v33 = vrot.slane %v2218_v2, 4  ;;  %v2420_v10 = vrot.slane %v2218_v2, 6  ;;  %v2300_v18 = vrot.slane %v2218_v2, 3 }
 0x4e0   :  { %v2459_v15 = vrot.slane %v2218_v2, 7 }
 0x4e1   :  { %2355 = vrot.lane.b32.xlu1 %v2341_v47, %s2915_s5  ;;  %2317 = vrot.lane.b32.xlu0 %v2302_v56, %s2915_s5  ;;  %v2263_v3 = vadd.f32 %v2247_v32, %v4021_v54  ;;  %v2272_v56 = vrot.slane %v4041_v49, 2 }
 0x4e2   :  { %v2159_v46 = vpop.permute.xlu0 %2158  ;;  %v2222_v4 = vld [vmem:[#allocation2 + $0x98] sm:$0x1] }
 0x4e3   :  { %v2288_v46 = vadd.f32 %v2272_v56, %v4142_v24  ;;  %v2327_v24 = vadd.f32 %v4097_v1, %v4152_v37 }
 0x4e5   :  { %2437 = vrot.lane.b32.xlu1 %v2422_v31, %s2916_s7  ;;  %2393 = vrot.lane.b32.xlu0 %v2380_v40, %s2915_s5 }
 0x4e6   :  { %v2171_v53 = vpop.permute.xlu0 %2170  ;;  %v2223_v28 = vld [vmem:[#allocation2 + $0xa0] sm:$0xff] }
 0x4e7   :  { %v2219_v7 = vld [vmem:[#allocation2 + $0x80] sm:$0xff]  ;;  %2206 = vst.msk [vmem:[#allocation2 + $0xa8] sm:$0x1] %vm2191_vm6, %v2171_v53  ;;  %v2250_v59 = vrot.slane %v2223_v28, 1  ;;  %v2275_v58 = vrot.slane %v2223_v28, 2  ;;  %v2381_v43 = vrot.slane %v2223_v28, 5 }
 0x4e8   :  { %v2273_v62 = vrot.slane %v2219_v7, 2  ;;  %v2248_v5 = vrot.slane %v2219_v7, 1  ;;  %v2265_v23 = vadd.f32 %v2249_v35, %v2219_v7  ;;  %v2342_v45 = vrot.slane %v2223_v28, 4 }
 0x4e9   :  { %2351 = vrot.lane.b32.xlu1 %v2339_v33, %s2915_s5  ;;  %2475 = vrot.lane.b32.xlu0 %v2461_v9, %s2916_s7  ;;  %v4179_v27 = vadd.f32 %v2250_v59, %v2221_v11  ;;  %v2340_v17 = vrot.slane %v2219_v7, 4  ;;  %v2462_v0 = vrot.slane %v2223_v28, 7  ;;  %v2301_v29 = vrot.slane %v2219_v7, 3 }
 0x4ea   :  { %v2163_v26 = vpop.permute.xlu0 %2162  ;;  %v4181_v39 = vadd.f32 %v2273_v62, %v2263_v3  ;;  %v2264_v54 = vadd.f32 %v2248_v5, %v2218_v2  ;;  %v4183_v25 = vadd.f32 %v2275_v58, %v2265_v23  ;;  %v2421_v6 = vrot.slane %v2219_v7, 6 }
 0x4eb   :  { %2202 = vst.msk [vmem:[#allocation2 + $0x88] sm:$0x1] %vm2191_vm6, %v2163_v26  ;;  %v2379_v52 = vrot.slane %v2219_v7, 5  ;;  %v2460_v61 = vrot.slane %v2219_v7, 7  ;;  %v2541_v2 = vlaneseq }
 0x4ec   :  { %v4187_v38 = vadd.f32 %v2274_v34, %v2264_v54 }
 0x4ed   :  { %2433 = vrot.lane.b32.xlu1 %v2420_v10, %s2916_s7  ;;  %2313 = vrot.lane.b32.xlu0 %v2300_v18, %s2915_s5  ;;  %v2542_v33 = vshrl.u32 %v2541_v2, 7 }
 0x4ee   :  { %v2224_v41 = vld [vmem:[#allocation2 + $0xa8] sm:$0x1] }
 0x4ef   :  { %v2543_v3 = vsub.s32 0, %v2542_v33  ;;  %v2276_v33 = vrot.slane %v4043_v14, 2 }
 0x4f1   :  { %2513 = vrot.lane.b32.xlu1 %v2222_v4, %s2916_s7  ;;  %2471 = vrot.lane.b32.xlu0 %v2459_v15, %s2916_s7  ;;  %v4207_v10 = vrot.slane %v4103_v50, %v2543_v3 }
 0x4f2   :  { %v2220_v57 = vld [vmem:[#allocation2 + $0x88] sm:$0x1] }
 0x4f5   :  { %2395 = vrot.lane.b32.xlu1 %v2381_v43, %s2915_s5  ;;  %2357 = vrot.lane.b32.xlu0 %v2342_v45, %s2915_s5 }
 0x4f9   :  { %2477 = vrot.lane.b32.xlu1 %v2462_v0, %s2916_s7  ;;  %2353 = vrot.lane.b32.xlu0 %v2340_v17, %s2915_s5 }
 0x4fd   :  { %2315 = vrot.lane.b32.xlu1 %v2301_v29, %s2915_s5  ;;  %2435 = vrot.lane.b32.xlu0 %v2421_v6, %s2916_s7 }
 0x501   :  { %2391 = vrot.lane.b32.xlu1 %v2379_v52, %s2915_s5  ;;  %2511 = vrot.lane.b32.xlu0 %v2220_v57, %s2916_s7 }
 0x505   :  { %2473 = vrot.lane.b32.xlu1 %v2460_v61, %s2916_s7  ;;  %2515 = vrot.lane.b32.xlu0 %v2224_v41, %s2916_s7 }
 0x509   :  { %2517 = vrot.lane.b32.xlu1 %v2226_v55, %s2916_s7 }
 0x52b   :  { %v2348_v8 = vpop.permute.xlu1 %2347  ;;  %v2310_v22 = vpop.permute.xlu0 %2309 }
 0x52c   :  { %v2330_v31 = vadd.f32 %v2310_v22, %v2288_v46 }
 0x52f   :  { %v2430_v44 = vpop.permute.xlu1 %2429  ;;  %v2386_v20 = vpop.permute.xlu0 %2385 }
 0x533   :  { %v2344_v21 = vpop.permute.xlu1 %2343  ;;  %v2468_v11 = vpop.permute.xlu0 %2467 }
 0x534   :  { %v2367_v34 = vadd.f32 %v2344_v21, %v2327_v24  ;;  %v2331_v24 = vadd.f32 %v4101_v48, %v4181_v39 }
 0x537   :  { %v2426_v19 = vpop.permute.xlu1 %2425  ;;  %v2306_v47 = vpop.permute.xlu0 %2305 }
 0x538   :  { %v2328_v35 = vadd.f32 %v2306_v47, %v4158_v13 }
 0x53b   :  { %v2506_v63 = vpop.permute.xlu1 %2505  ;;  %v2464_v60 = vpop.permute.xlu0 %2463 }
 0x53f   :  { %v2388_v40 = vpop.permute.xlu1 %2387  ;;  %v2350_v32 = vpop.permute.xlu0 %2349 }
 0x540   :  { %v2370_v53 = vadd.f32 %v2350_v32, %v2330_v31 }
 0x542   :  { %v2410_v28 = vadd.f32 %v4087_v12, %v2370_v53 }
 0x543   :  { %v2470_v7 = vpop.permute.xlu1 %2469  ;;  %v2346_v9 = vpop.permute.xlu0 %2345 }
 0x544   :  { %v2450_v59 = vadd.f32 %v2430_v44, %v2410_v28  ;;  %v2368_v49 = vadd.f32 %v2346_v9, %v2328_v35 }
 0x546   :  { %v2490_v62 = vadd.f32 %v2470_v7, %v2450_v59  ;;  %v2408_v18 = vadd.f32 %v2386_v20, %v2368_v49  ;;  %v2292_v7 = vadd.f32 %v2276_v33, %v4179_v27 }
 0x547   :  { %v2308_v5 = vpop.permute.xlu1 %2307  ;;  %v2428_v23 = vpop.permute.xlu0 %2427 }
 0x548   :  { %v2530_v26 = vadd.f32 %v4106_v51, %v2490_v62  ;;  %v2329_v12 = vadd.f32 %v2308_v5, %v4155_v16  ;;  %v2448_v37 = vadd.f32 %v2426_v19, %v2408_v18 }
 0x54a   :  { %v2548_v58 = vadd.f32 %v4207_v10, %v2530_v26  ;;  %v2369_v13 = vadd.f32 %v2348_v8, %v2329_v12 }
 0x54b   :  { %v2384_v54 = vpop.permute.xlu1 %2383  ;;  %v2508_v15 = vpop.permute.xlu0 %2507 }
 0x54c   :  { %vm2556_vm8 = vcmp.ge.f32.partialorder %v2548_v58, 0.0  ;;  %v2564_v4 = vmul.f32 0.01, %v2548_v58  ;;  %v2409_v43 = vadd.f32 %v2388_v40, %v2369_v13  ;;  %v2407_v50 = vadd.f32 %v2384_v54, %v2367_v34 }
 0x54e   :  { %v2572_v45 = vsel %vm2556_vm8, %v2548_v58, %v2564_v4  ;;  %v2449_v17 = vadd.f32 %v2428_v23, %v2409_v43  ;;  %v2447_v1 = vadd.f32 %v4091_v42, %v2407_v50 }
 0x54f   :  { %2581 = vst.msk [vmem:[%s4271_s9 + $0x3] sm:$0x1] %vm2577_vm7, %v2572_v45  ;;  %v2466_v51 = vpop.permute.xlu1 %2465  ;;  %v2504_v16 = vpop.permute.xlu0 %2503 }
 0x550   :  { %v2489_v0 = vadd.f32 %v2468_v11, %v2449_v17  ;;  %v2488_v29 = vadd.f32 %v2466_v51, %v2448_v37  ;;  %v2487_v6 = vadd.f32 %v2464_v60, %v2447_v1 }
 0x552   :  { %v2529_v57 = vadd.f32 %v2508_v15, %v2489_v0  ;;  %v2528_v52 = vadd.f32 %v2506_v63, %v2488_v29  ;;  %v2527_v61 = vadd.f32 %v2504_v16, %v2487_v6 }
 0x553   :  { %v2356_v41 = vpop.permute.xlu1 %2355  ;;  %v2318_v55 = vpop.permute.xlu0 %2317 }
 0x554   :  { %v2547_v8 = vadd.f32 %v4207_v10, %v2529_v57  ;;  %v2546_v42 = vadd.f32 %v4207_v10, %v2528_v52  ;;  %v2545_v22 = vadd.f32 %v4207_v10, %v2527_v61  ;;  %v2334_v35 = vadd.f32 %v2318_v55, %v2292_v7 }
 0x556   :  { %vm2555_vm1 = vcmp.ge.f32.partialorder %v2547_v8, 0.0  ;;  %v2563_v44 = vmul.f32 0.01, %v2547_v8  ;;  %vm2554_vm9 = vcmp.ge.f32.partialorder %v2546_v42, 0.0  ;;  %v2562_v20 = vmul.f32 0.01, %v2546_v42 }
 0x557   :  { %vm2553_vm10 = vcmp.ge.f32.partialorder %v2545_v22, 0.0  ;;  %v2561_v21 = vmul.f32 0.01, %v2545_v22  ;;  %v2438_v11 = vpop.permute.xlu1 %2437  ;;  %v2394_v19 = vpop.permute.xlu0 %2393 }
 0x558   :  { %v2571_v47 = vsel %vm2555_vm1, %v2547_v8, %v2563_v44  ;;  %v2570_v56 = vsel %vm2554_vm9, %v2546_v42, %v2562_v20 }
 0x559   :  { %2580 = vst.msk [vmem:[%s4271_s9 + $0x2] sm:$0x1] %vm2577_vm7, %v2571_v47  ;;  %2579 = vst.msk [vmem:[%s4271_s9 + $0x1] sm:$0x1] %vm2577_vm7, %v2570_v56  ;;  %v2569_v63 = vsel %vm2553_vm10, %v2545_v22, %v2561_v21 }
 0x55a   :  { %2578 = vst.msk [vmem:[%s4271_s9] sm:$0x1] %vm2577_vm7, %v2569_v63 }
 0x55b   :  { %v2352_v60 = vpop.permute.xlu1 %2351  ;;  %v2476_v2 = vpop.permute.xlu0 %2475 }
 0x55c   :  { %v2371_v12 = vadd.f32 %v2352_v60, %v2331_v24 }
 0x55f   :  { %v2434_v46 = vpop.permute.xlu1 %2433  ;;  %v2314_v31 = vpop.permute.xlu0 %2313 }
 0x560   :  { %v2332_v59 = vadd.f32 %v2314_v31, %v4187_v38 }
 0x563   :  { %v2514_v40 = vpop.permute.xlu1 %2513  ;;  %v2472_v32 = vpop.permute.xlu0 %2471 }
 0x567   :  { %v2396_v53 = vpop.permute.xlu1 %2395  ;;  %v2358_v28 = vpop.permute.xlu0 %2357 }
 0x568   :  { %v2374_v62 = vadd.f32 %v2358_v28, %v2334_v35 }
 0x56a   :  { %v2414_v14 = vadd.f32 %v4089_v30, %v2374_v62 }
 0x56b   :  { %v2478_v9 = vpop.permute.xlu1 %2477  ;;  %v2354_v3 = vpop.permute.xlu0 %2353 }
 0x56c   :  { %v2372_v49 = vadd.f32 %v2354_v3, %v2332_v59  ;;  %v2454_v15 = vadd.f32 %v2438_v11, %v2414_v14 }
 0x56e   :  { %v2412_v34 = vadd.f32 %v2394_v19, %v2372_v49 }
 0x56f   :  { %v2316_v5 = vpop.permute.xlu1 %2315  ;;  %v2436_v23 = vpop.permute.xlu0 %2435 }
 0x570   :  { %v2333_v26 = vadd.f32 %v2316_v5, %v4183_v25  ;;  %v2452_v43 = vadd.f32 %v2434_v46, %v2412_v34  ;;  %v2494_v25 = vadd.f32 %v2478_v9, %v2454_v15 }
 0x572   :  { %v2373_v58 = vadd.f32 %v2356_v41, %v2333_v26 }
 0x573   :  { %v2392_v27 = vpop.permute.xlu1 %2391  ;;  %v2512_v18 = vpop.permute.xlu0 %2511 }
 0x574   :  { %v2413_v13 = vadd.f32 %v2396_v53, %v2373_v58  ;;  %v2411_v54 = vadd.f32 %v2392_v27, %v2371_v12 }
 0x576   :  { %v2453_v38 = vadd.f32 %v2436_v23, %v2413_v13  ;;  %v2451_v4 = vadd.f32 %v4093_v36, %v2411_v54 }
 0x577   :  { %v2474_v50 = vpop.permute.xlu1 %2473  ;;  %v2516_v39 = vpop.permute.xlu0 %2515 }
 0x578   :  { %v2491_v45 = vadd.f32 %v2472_v32, %v2451_v4  ;;  %v2492_v17 = vadd.f32 %v2474_v50, %v2452_v43  ;;  %v2493_v48 = vadd.f32 %v2476_v2, %v2453_v38 }
 0x57a   :  { %v2531_v1 = vadd.f32 %v2512_v18, %v2491_v45  ;;  %v2532_v37 = vadd.f32 %v2514_v40, %v2492_v17  ;;  %v2533_v30 = vadd.f32 %v2516_v39, %v2493_v48 }
 0x57b   :  { %v2518_v51 = vpop.permute.xlu1 %2517 }
 0x57c   :  { %v2549_v16 = vadd.f32 %v4207_v10, %v2531_v1  ;;  %v2550_v0 = vadd.f32 %v4207_v10, %v2532_v37  ;;  %v2551_v29 = vadd.f32 %v4207_v10, %v2533_v30  ;;  %v2534_v6 = vadd.f32 %v2518_v51, %v2494_v25 }
 0x57e   :  { %vm2557_vm11 = vcmp.ge.f32.partialorder %v2549_v16, 0.0  ;;  %v2565_v36 = vmul.f32 0.01, %v2549_v16  ;;  %vm2558_vm12 = vcmp.ge.f32.partialorder %v2550_v0, 0.0  ;;  %v2566_v57 = vmul.f32 0.01, %v2550_v0 }
 0x57f   :  { %vm2559_vm13 = vcmp.ge.f32.partialorder %v2551_v29, 0.0  ;;  %v2567_v52 = vmul.f32 0.01, %v2551_v29  ;;  %v2552_v61 = vadd.f32 %v4207_v10, %v2534_v6 }
 0x580   :  { %v2573_v41 = vsel %vm2557_vm11, %v2549_v16, %v2565_v36  ;;  %v2574_v55 = vsel %vm2558_vm12, %v2550_v0, %v2566_v57 }
 0x581   :  { %2582 = vst.msk [vmem:[%s4271_s9 + $0x4] sm:$0x1] %vm2577_vm7, %v2573_v41  ;;  %2583 = vst.msk [vmem:[%s4271_s9 + $0x5] sm:$0x1] %vm2577_vm7, %v2574_v55  ;;  %v2575_v8 = vsel %vm2559_vm13, %v2551_v29, %v2567_v52  ;;  %vm2560_vm14 = vcmp.ge.f32.partialorder %v2552_v61, 0.0 }
 0x582   :  { %v2568_v42 = vmul.f32 0.01, %v2552_v61  ;;  %2584 = vst.msk [vmem:[%s4271_s9 + $0x6] sm:$0x1] %vm2577_vm7, %v2575_v8 }
 0x584   :  { %v2576_v10 = vsel %vm2560_vm14, %v2552_v61, %v2568_v42 }
 0x585   :  { %2585 = vst.msk [vmem:[%s4271_s9 + $0x7] sm:$0x1] %vm2577_vm7, %v2576_v10 }

// kernel: multi_wave_gcunet_forward.3
= control target key start
LH: loop header
LB: loop body
LE: loop exit
PB: predicated region body
PF: predicated region fallthrough
CT: control target
= control target key end

     0   :  { %v4073_v0 = vmov 0   ;;  %vm974_vm0 = vcmask 1043456   ;;  %vm877_vm1 = vcmask 64512   ;;  %s4076_s26 = smov 126   ;;  %s5610_s3 = inlined_call_operand.vmem [shape: f32[2,32,1], index: 3, kind: input, shape index: {}]   ;;  %s5611_s4 = inlined_call_operand.vmem [shape: f32[32,1], index: 4, kind: input, shape index: {}]   ;;  %s5612_s2 = inlined_call_operand.vmem [shape: bf16[8,8], index: 2, kind: input, shape index: {}]   ;;  %s5613_s0 = inlined_call_operand.vmem [shape: f32[2,8,1,8], index: 0, kind: input, shape index: {}]   ;;  %s5614_s1 = inlined_call_operand.vmem [shape: f32[2,8,1,8], index: 1, kind: input, shape index: {}]   ;;  %s5615_s5 = inlined_call_operand.vmem [shape: bf16[32,32], index: 5, kind: input, shape index: {}]   ;;  %s5616_s8 = inlined_call_operand.<no memory space> [shape: f32[1,1], index: 8, kind: input, shape index: {}]   ;;  %s5617_s7 = inlined_call_operand.vmem [shape: bf16[32,9], index: 7, kind: input, shape index: {}]   ;;  %s5618_s6 = inlined_call_operand.vmem [shape: f32[1,32], index: 6, kind: input, shape index: {}]   ;;  %s5619_s9 = inlined_call_operand.vmem [shape: f32[2,8,1,8], index: 9, kind: output, shape index: {}]  }
   0x1   :  { %3960 = vset.pattern.permute.xlu1 %v4073_v0  ;;  %3959 = vset.pattern.permute.xlu0 %v4073_v0  ;;  %v3718_v1 = vld [vmem:[%s5610_s3 + $0x20] sm:$0xff]  ;;  %v3719_v3 = vld [vmem:[%s5610_s3 + $0x28] sm:$0xff]  ;;  %v70_v5 = vld [vmem:[%s5610_s3 + $0x18] sm:$0xff] }
   0x2   :  { %v67_v2 = vld [vmem:[%s5610_s3] sm:$0xff]  ;;  %354 = vperm.xlu1 %3960, %v3718_v1   ;;  %v68_v4 = vld [vmem:[%s5610_s3 + $0x8] sm:$0xff]  ;;  %v69_v6 = vld [vmem:[%s5610_s3 + $0x10] sm:$0xff] }
   0x3   :  { %169 = vperm.xlu0 %3959, %v67_v2   ;;  %v3721_v7 = vld [vmem:[%s5610_s3 + $0x38] sm:$0xff]  ;;  %v3720_v8 = vld [vmem:[%s5610_s3 + $0x30] sm:$0xff]  ;;  %v501_v9 = vld [vmem:[%s5611_s4 + $0x8] sm:$0xff] }
   0x4   :  { %v500_v10 = vld [vmem:[%s5611_s4] sm:$0xff]  ;;  %v503_v12 = vld [vmem:[%s5611_s4 + $0x18] sm:$0xff]  ;;  %v502_v13 = vld [vmem:[%s5611_s4 + $0x10] sm:$0xff] }
   0x5   :  { %v780_v11 = vld [vmem:[%s5612_s2] sm:$0xf]  ;;  %v3714_v17 = vld [vmem:[%s5613_s0 + $0xc] ss:$0 sm:$0xff]  ;;  %v3715_v21 = vld [vmem:[%s5613_s0 + $0xd] ss:$0 sm:$0xff] }
   0x6   :  { %359 = vperm.xlu1 %3960, %v3719_v3   ;;  %3952 = vmatprep.subr.msk.bf16.mxu0 %vm974_vm0, %v780_v11  ;;  %v976_v14 = vsel %vm974_vm0, %v780_v11, 0  ;;  %v3702_v15 = vld [vmem:[%s5613_s0] ss:$0 sm:$0xff]  ;;  %v4181_v18 = vld [vmem:[%s5614_s1 + $0xc] ss:$0 sm:$0xff] }
   0x7   :  { %174 = vperm.xlu0 %3959, %v68_v4   ;;  %3953 = vmatprep.subr.msk.bf16.mxu1 %vm974_vm0, %v780_v11  ;;  %v4173_v16 = vld [vmem:[%s5614_s1] ss:$0 sm:$0xff]  ;;  %v3703_v19 = vld [vmem:[%s5613_s0 + $0x1] ss:$0 sm:$0xff]  ;;  %v4197_v22 = vld [vmem:[%s5614_s1 + $0xd] ss:$0 sm:$0xff] }
   0x8   :  { %3845 = vmatpush3.bf16.msra.mxu0 %v976_v14  ;;  %3951 = vmatpush3.bf16.msra.mxu1 %v976_v14  ;;  %v4189_v20 = vld [vmem:[%s5614_s1 + $0x1] ss:$0 sm:$0xff]  ;;  %v3704_v25 = vld [vmem:[%s5613_s0 + $0x2] ss:$0 sm:$0xff]  ;;  %v3716_v31 = vld [vmem:[%s5613_s0 + $0xe] ss:$0 sm:$0xff] }
   0x9   :  { %v4209_v26 = vld [vmem:[%s5614_s1 + $0x2] ss:$0 sm:$0xff]  ;;  %v4223_v32 = vld [vmem:[%s5614_s1 + $0xe] ss:$0 sm:$0xff] }
   0xa   :  { %184 = vperm.xlu1 %3960, %v70_v5   ;;  %v4280_v5 = vld [vmem:[%s5613_s0 + $0x3] ss:$0 sm:$0xff] }
   0xb   :  { %179 = vperm.xlu0 %3959, %v69_v6  }
   0xe   :  { %369 = vperm.xlu1 %3960, %v3721_v7  }
   0xf   :  { %364 = vperm.xlu0 %3959, %v3720_v8  }
  0x12   :  { %511 = vperm.xlu1 %3960, %v501_v9  }
  0x13   :  { %506 = vperm.xlu0 %3959, %v500_v10  }
  0x16   :  { %521 = vperm.xlu1 %3960, %v503_v12  }
  0x17   :  { %516 = vperm.xlu0 %3959, %v502_v13  }
  0x7d   :  { %v4199_v23 = vpop.permute.xlu1 %354 }
  0x7e   :  { %v4201_v24 = vpop.permute.xlu0 %169  ;;  %v372_v28 = vmul.f32 %v4173_v16, %v4199_v23  ;;  %v420_v30 = vmul.f32 %v4181_v18, %v4199_v23  ;;  %v376_v34 = vmul.f32 %v4189_v20, %v4199_v23  ;;  %v424_v36 = vmul.f32 %v4197_v22, %v4199_v23 }
  0x7f   :  { %v187_v27 = vmul.f32 %v3702_v15, %v4201_v24  ;;  %v235_v29 = vmul.f32 %v3714_v17, %v4201_v24  ;;  %v191_v33 = vmul.f32 %v3703_v19, %v4201_v24  ;;  %v239_v35 = vmul.f32 %v3715_v21, %v4201_v24 }
  0x80   :  { %v195_v39 = vmul.f32 %v3704_v25, %v4201_v24  ;;  %v380_v40 = vmul.f32 %v4209_v26, %v4199_v23  ;;  %v243_v45 = vmul.f32 %v3716_v31, %v4201_v24  ;;  %v428_v46 = vmul.f32 %v4223_v32, %v4199_v23 }
  0x81   :  { %v4231_v37 = vadd.f32 %v372_v28, %v187_v27  ;;  %v4233_v38 = vadd.f32 %v420_v30, %v235_v29  ;;  %v4238_v41 = vpop.permute.xlu1 %359  ;;  %v4242_v43 = vadd.f32 %v376_v34, %v191_v33  ;;  %v4244_v44 = vadd.f32 %v424_v36, %v239_v35 }
  0x82   :  { %v4240_v42 = vpop.permute.xlu0 %174  ;;  %v373_v48 = vmul.f32 %v4173_v16, %v4238_v41  ;;  %v421_v50 = vmul.f32 %v4181_v18, %v4238_v41  ;;  %v377_v52 = vmul.f32 %v4189_v20, %v4238_v41  ;;  %v425_v54 = vmul.f32 %v4197_v22, %v4238_v41 }
  0x83   :  { %v188_v47 = vmul.f32 %v3702_v15, %v4240_v42  ;;  %v236_v49 = vmul.f32 %v3714_v17, %v4240_v42  ;;  %v192_v51 = vmul.f32 %v3703_v19, %v4240_v42  ;;  %v240_v53 = vmul.f32 %v3715_v21, %v4240_v42 }
  0x84   :  { %v196_v57 = vmul.f32 %v3704_v25, %v4240_v42  ;;  %v381_v58 = vmul.f32 %v4209_v26, %v4238_v41  ;;  %v4268_v63 = vadd.f32 %v380_v40, %v195_v39  ;;  %v4271_v0 = vmul.f32 %v3716_v31, %v4240_v42 }
  0x85   :  { %v437_v55 = vadd.f32 %v373_v48, %v188_v47  ;;  %v485_v56 = vadd.f32 %v421_v50, %v236_v49  ;;  %v4264_v59 = vpop.permute.xlu1 %184  ;;  %v441_v61 = vadd.f32 %v377_v52, %v192_v51  ;;  %v489_v62 = vadd.f32 %v425_v54, %v240_v53 }
  0x86   :  { %v4266_v60 = vpop.permute.xlu0 %179  ;;  %v190_v2 = vmul.f32 %v3702_v15, %v4264_v59  ;;  %v238_v4 = vmul.f32 %v3714_v17, %v4264_v59  ;;  %v194_v7 = vmul.f32 %v3703_v19, %v4264_v59  ;;  %v242_v9 = vmul.f32 %v3715_v21, %v4264_v59 }
  0x87   :  { %v189_v1 = vmul.f32 %v3702_v15, %v4266_v60  ;;  %v237_v3 = vmul.f32 %v3714_v17, %v4266_v60  ;;  %v193_v6 = vmul.f32 %v3703_v19, %v4266_v60  ;;  %v241_v8 = vmul.f32 %v3715_v21, %v4266_v60 }
  0x88   :  { %v4286_v10 = vadd.f32 %v381_v58, %v196_v57  ;;  %v4290_v11 = vmul.f32 %v4223_v32, %v4238_v41  ;;  %v4292_v12 = vadd.f32 %v428_v46, %v243_v45  ;;  %v4295_v13 = vmul.f32 %v3704_v25, %v4266_v60 }
  0x89   :  { %v4297_v14 = vpop.permute.xlu1 %369  ;;  %v4302_v17 = vmul.f32 %v3704_v25, %v4264_v59  ;;  %v4305_v19 = vmul.f32 %v3716_v31, %v4266_v60  ;;  %v4308_v21 = vmul.f32 %v3716_v31, %v4264_v59  ;;  %v4312_v27 = vmul.f32 %v4280_v5, %v4201_v24 }
  0x8a   :  { %v4299_v15 = vpop.permute.xlu0 %364  ;;  %v375_v29 = vmul.f32 %v4173_v16, %v4297_v14  ;;  %v423_v30 = vmul.f32 %v4181_v18, %v4297_v14  ;;  %v379_v33 = vmul.f32 %v4189_v20, %v4297_v14  ;;  %v427_v35 = vmul.f32 %v4197_v22, %v4297_v14 }
  0x8b   :  { %v374_v28 = vmul.f32 %v4173_v16, %v4299_v15  ;;  %v422_v25 = vmul.f32 %v4181_v18, %v4299_v15  ;;  %v378_v31 = vmul.f32 %v4189_v20, %v4299_v15  ;;  %v426_v34 = vmul.f32 %v4197_v22, %v4299_v15 }
  0x8c   :  { %v439_v16 = vadd.f32 %v375_v29, %v190_v2  ;;  %v487_v40 = vadd.f32 %v423_v30, %v238_v4  ;;  %v443_v47 = vadd.f32 %v379_v33, %v194_v7  ;;  %v4336_v49 = vadd.f32 %v427_v35, %v242_v9 }
  0x8d   :  { %v438_v36 = vadd.f32 %v374_v28, %v189_v1  ;;  %v486_v39 = vadd.f32 %v422_v25, %v237_v3  ;;  %v4330_v45 = vpop.permute.xlu1 %511  ;;  %v442_v18 = vadd.f32 %v378_v31, %v193_v6  ;;  %v4334_v48 = vadd.f32 %v426_v34, %v241_v8 }
  0x8e   :  { %v4332_v46 = vpop.permute.xlu0 %506  ;;  %v525_v50 = vadd.f32 %v4330_v45, %v437_v55  ;;  %v573_v51 = vadd.f32 %v4330_v45, %v485_v56  ;;  %v529_v53 = vadd.f32 %v4330_v45, %v441_v61  ;;  %v577_v57 = vadd.f32 %v4330_v45, %v489_v62 }
  0x8f   :  { %v524_v20 = vadd.f32 %v4332_v46, %v4231_v37  ;;  %v572_v22 = vadd.f32 %v4332_v46, %v4233_v38  ;;  %v528_v52 = vadd.f32 %v4332_v46, %v4242_v43  ;;  %v576_v54 = vadd.f32 %v4332_v46, %v4244_v44 }
  0x90   :  { %vm589_vm3 = vcmp.ge.f32.partialorder %v525_v50, 0.0  ;;  %v653_v58 = vmul.f32 0.01, %v525_v50  ;;  %vm637_vm5 = vcmp.ge.f32.partialorder %v573_v51, 0.0  ;;  %v701_v56 = vmul.f32 0.01, %v573_v51 }
  0x91   :  { %vm588_vm2 = vcmp.ge.f32.partialorder %v524_v20, 0.0  ;;  %v652_v37 = vmul.f32 0.01, %v524_v20  ;;  %v4350_v55 = vpop.permute.xlu1 %521  ;;  %vm636_vm4 = vcmp.ge.f32.partialorder %v572_v22, 0.0  ;;  %v700_v38 = vmul.f32 0.01, %v572_v22 }
  0x92   :  { %v4352_v1 = vpop.permute.xlu0 %516  ;;  %v4356_v61 = vsel %vm589_vm3, %v525_v50, %v653_v58  ;;  %v527_v62 = vadd.f32 %v4350_v55, %v439_v16  ;;  %v4364_v4 = vsel %vm637_vm5, %v573_v51, %v701_v56  ;;  %v575_v28 = vadd.f32 %v4350_v55, %v487_v40 }
  0x93   :  { %v4354_v43 = vsel %vm588_vm2, %v524_v20, %v652_v37  ;;  %v526_v44 = vadd.f32 %v4352_v1, %v438_v36  ;;  %v4362_v3 = vsel %vm636_vm4, %v572_v22, %v700_v38  ;;  %5645 = vst [vmem:[#allocation5_spill] sm:$0xff] %v4364_v4  ;;  %v574_v6 = vadd.f32 %v4352_v1, %v486_v39 }
  0x94   :  { %v845_v2 = vpack.c.bf16 %v4356_v61, %v4354_v43  ;;  %5644 = vst [vmem:[#allocation4_spill] sm:$0xff] %v4362_v3  ;;  %v869_v7 = vpack.c.bf16 %v4364_v4, %v4362_v3  ;;  %vm591_vm7 = vcmp.ge.f32.partialorder %v527_v62, 0.0  ;;  %v655_v9 = vmul.f32 0.01, %v527_v62 }
  0x95   :  { %vm590_vm6 = vcmp.ge.f32.partialorder %v526_v44, 0.0  ;;  %v654_v8 = vmul.f32 0.01, %v526_v44  ;;  %vm638_vm8 = vcmp.ge.f32.partialorder %v574_v6, 0.0  ;;  %v702_v29 = vmul.f32 0.01, %v574_v6 }
  0x96   :  { %3846 = vmatprep.mubr.msk.bf16.mxu0 %vm877_vm1, %v845_v2  ;;  %3894 = vmatprep.mubr.msk.bf16.mxu1 %vm877_vm1, %v869_v7  ;;  %vm592_vm9 = vcmp.ge.f32.partialorder %v528_v52, 0.0  ;;  %vm593_vm10 = vcmp.ge.f32.partialorder %v529_v53, 0.0  ;;  %v656_v30 = vmul.f32 0.01, %v528_v52  ;;  %v4374_v31 = vsel %vm591_vm7, %v527_v62, %v655_v9 }
  0x97   :  { %v4372_v25 = vsel %vm590_vm6, %v526_v44, %v654_v8  ;;  %vm639_vm11 = vcmp.ge.f32.partialorder %v575_v28, 0.0  ;;  %v703_v33 = vmul.f32 0.01, %v575_v28  ;;  %v4376_v34 = vsel %vm638_vm8, %v574_v6, %v702_v29 }
  0x98   :  { %5646 = vst [vmem:[#allocation6_spill] sm:$0xff] %v4376_v34  ;;  %v846_v35 = vpack.c.bf16 %v4374_v31, %v4372_v25  ;;  %v657_v36 = vmul.f32 0.01, %v529_v53  ;;  %v4380_v16 = vsel %vm592_vm9, %v528_v52, %v656_v30  ;;  %vm640_vm12 = vcmp.ge.f32.partialorder %v576_v54, 0.0 }
  0x99   :  { %v4382_v39 = vsel %vm639_vm11, %v575_v28, %v703_v33  ;;  %vm641_vm13 = vcmp.ge.f32.partialorder %v577_v57, 0.0  ;;  %v704_v40 = vmul.f32 0.01, %v576_v54  ;;  %v705_v20 = vmul.f32 0.01, %v577_v57 }
  0x9a   :  { %5647 = vst [vmem:[#allocation7_spill] sm:$0xff] %v4382_v39  ;;  %3847 = vmatmul.mubr.msk.bf16.vlgmr.msra.gmra.mxu0 %vm877_vm1, %v846_v35  ;;  %v870_v50 = vpack.c.bf16 %v4382_v39, %v4376_v34  ;;  %v4388_v22 = vsel %vm593_vm10, %v529_v53, %v657_v36  ;;  %v530_v51 = vadd.f32 %v4352_v1, %v442_v18  ;;  %v3725_v36 = vld [vmem:[%s5614_s1 + $0x3] ss:$0 sm:$0xff] }
  0x9b   :  { %v531_v37 = vadd.f32 %v4350_v55, %v443_v47  ;;  %v847_v52 = vpack.c.bf16 %v4388_v22, %v4380_v16  ;;  %v4394_v58 = vsel %vm640_vm12, %v576_v54, %v704_v40  ;;  %v4396_v38 = vsel %vm641_vm13, %v577_v57, %v705_v20 }
  0x9c   :  { %5648 = vst [vmem:[#allocation8_spill] sm:$0xff] %v4394_v58  ;;  %5649 = vst [vmem:[#allocation9_spill] sm:$0xff] %v4396_v38  ;;  %v578_v56 = vadd.f32 %v4352_v1, %v4334_v48  ;;  %3895 = vmatmul.mubr.msk.bf16.vlgmr.msra.gmra.mxu1 %vm877_vm1, %v870_v50  ;;  %v871_v53 = vpack.c.bf16 %v4396_v38, %v4394_v58  ;;  %vm594_vm14 = vcmp.ge.f32.partialorder %v530_v51, 0.0  ;;  %v658_v18 = vmul.f32 0.01, %v530_v51 }
  0x9d   :  { %vm595_vm15 = vcmp.ge.f32.partialorder %v531_v37, 0.0  ;;  %3850 = vmatprep.mubr.msk.bf16.mxu0 %vm877_vm1, %v847_v52  ;;  %v659_v47 = vmul.f32 0.01, %v531_v37  ;;  %v579_v54 = vadd.f32 %v4350_v55, %v4336_v49  ;;  %v532_v48 = vadd.f32 %v4332_v46, %v4268_v63 }
  0x9e   :  { %vm642_vm0 = vcmp.ge.f32.partialorder %v578_v56, 0.0  ;;  %v706_v57 = vmul.f32 0.01, %v578_v56  ;;  %3898 = vmatprep.mubr.msk.bf16.mxu1 %vm877_vm1, %v871_v53  ;;  %v4407_v44 = vsel %vm594_vm14, %v530_v51, %v658_v18  ;;  %v533_v62 = vadd.f32 %v4330_v45, %v4286_v10 }
  0x9f   :  { %v493_v2 = vadd.f32 %v4290_v11, %v4271_v0  ;;  %v4415_v6 = vsel %vm595_vm15, %v531_v37, %v659_v47  ;;  %vm643_vm2 = vcmp.ge.f32.partialorder %v579_v54, 0.0  ;;  %v707_v7 = vmul.f32 0.01, %v579_v54 }
  0xa0   :  { %v4417_v49 = vsel %vm642_vm0, %v578_v56, %v706_v57  ;;  %v848_v8 = vpack.c.bf16 %v4415_v6, %v4407_v44  ;;  %vm596_vm3 = vcmp.ge.f32.partialorder %v532_v48, 0.0  ;;  %vm597_vm4 = vcmp.ge.f32.partialorder %v533_v62, 0.0 }
  0xa1   :  { %5650 = vst [vmem:[#allocation10_spill] sm:$0xff] %v4417_v49  ;;  %v660_v9 = vmul.f32 0.01, %v532_v48  ;;  %v4421_v28 = vsel %vm643_vm2, %v579_v54, %v707_v7  ;;  %v661_v63 = vmul.f32 0.01, %v533_v62  ;;  %v580_v10 = vadd.f32 %v4332_v46, %v4292_v12 }
  0xa2   :  { %5651 = vst [vmem:[#allocation11_spill] sm:$0xff] %v4421_v28  ;;  %v581_v0 = vadd.f32 %v4330_v45, %v493_v2  ;;  %3851 = vmatmul.mubr.msk.bf16.gmra.mxu0 %vm877_vm1, %v848_v8  ;;  %v872_v11 = vpack.c.bf16 %v4421_v28, %v4417_v49  ;;  %v382_v30 = vmul.f32 %v4209_v26, %v4299_v15 }
  0xa3   :  { %v4429_v29 = vsel %vm596_vm3, %v532_v48, %v660_v9  ;;  %v383_v33 = vmul.f32 %v4209_v26, %v4297_v14  ;;  %v4435_v35 = vsel %vm597_vm4, %v533_v62, %v661_v63  ;;  %vm644_vm5 = vcmp.ge.f32.partialorder %v580_v10, 0.0  ;;  %v3717_v48 = vld [vmem:[%s5613_s0 + $0xf] ss:$0 sm:$0xff] }
  0xa4   :  { %vm645_vm6 = vcmp.ge.f32.partialorder %v581_v0, 0.0  ;;  %v708_v12 = vmul.f32 0.01, %v580_v10  ;;  %3899 = vmatmul.mubr.msk.bf16.gmra.mxu1 %vm877_vm1, %v872_v11  ;;  %v849_v40 = vpack.c.bf16 %v4435_v35, %v4429_v29  ;;  %v709_v20 = vmul.f32 0.01, %v581_v0 }
  0xa5   :  { %v446_v50 = vadd.f32 %v382_v30, %v4295_v13  ;;  %v447_v51 = vadd.f32 %v383_v33, %v4302_v17  ;;  %v430_v37 = vmul.f32 %v4223_v32, %v4299_v15  ;;  %v431_v52 = vmul.f32 %v4223_v32, %v4297_v14 }
  0xa6   :  { %v4445_v26 = vsel %vm644_vm5, %v580_v10, %v708_v12  ;;  %v200_v56 = vmul.f32 %v4280_v5, %v4240_v42  ;;  %3854 = vmatprep.mubr.msk.bf16.mxu0 %vm877_vm1, %v849_v40  ;;  %v4454_v53 = vsel %vm645_vm6, %v581_v0, %v709_v20  ;;  %v384_v17 = vmul.f32 %v3725_v36, %v4199_v23 }
  0xa7   :  { %5652 = vst [vmem:[#allocation12_spill] sm:$0xff] %v4445_v26  ;;  %5653 = vst [vmem:[#allocation13_spill] sm:$0xff] %v4454_v53  ;;  %v534_v18 = vadd.f32 %v4352_v1, %v446_v50  ;;  %v535_v13 = vadd.f32 %v4350_v55, %v447_v51  ;;  %v873_v47 = vpack.c.bf16 %v4454_v53, %v4445_v26 }
  0xa8   :  { %v494_v54 = vadd.f32 %v430_v37, %v4305_v19  ;;  %v495_v32 = vadd.f32 %v431_v52, %v4308_v21  ;;  %v385_v57 = vmul.f32 %v3725_v36, %v4238_v41  ;;  %v448_v19 = vadd.f32 %v384_v17, %v4312_v27  ;;  %v3737_v21 = vld [vmem:[%s5614_s1 + $0xf] ss:$0 sm:$0xff] }
  0xa9   :  { %vm598_vm7 = vcmp.ge.f32.partialorder %v534_v18, 0.0  ;;  %vm599_vm8 = vcmp.ge.f32.partialorder %v535_v13, 0.0  ;;  %v662_v62 = vmul.f32 0.01, %v534_v18  ;;  %v663_v2 = vmul.f32 0.01, %v535_v13  ;;  %3902 = vmatprep.mubr.msk.bf16.mxu1 %vm877_vm1, %v873_v47 }
  0xaa   :  { %v582_v7 = vadd.f32 %v4352_v1, %v494_v54  ;;  %v583_v8 = vadd.f32 %v4350_v55, %v495_v32  ;;  %v449_v9 = vadd.f32 %v385_v57, %v200_v56  ;;  %v247_v0 = vmul.f32 %v3717_v48, %v4201_v24 }
  0xab   :  { %v4474_v63 = vsel %vm598_vm7, %v534_v18, %v662_v62  ;;  %v4476_v10 = vsel %vm599_vm8, %v535_v13, %v663_v2  ;;  %v248_v11 = vmul.f32 %v3717_v48, %v4240_v42  ;;  %v536_v12 = vadd.f32 %v4332_v46, %v448_v19 }
  0xac   :  { %v850_v30 = vpack.c.bf16 %v4476_v10, %v4474_v63  ;;  %vm646_vm9 = vcmp.ge.f32.partialorder %v582_v7, 0.0  ;;  %vm647_vm10 = vcmp.ge.f32.partialorder %v583_v8, 0.0  ;;  %v710_v33 = vmul.f32 0.01, %v582_v7 }
  0xad   :  { %v711_v27 = vmul.f32 0.01, %v583_v8  ;;  %v537_v40 = vadd.f32 %v4330_v45, %v449_v9  ;;  %v432_v20 = vmul.f32 %v3737_v21, %v4199_v23  ;;  %v433_v51 = vmul.f32 %v3737_v21, %v4238_v41 }
  0xae   :  { %3855 = vmatmul.mubr.msk.bf16.gmra.mxu0 %vm877_vm1, %v850_v30  ;;  %v4486_v50 = vsel %vm646_vm9, %v582_v7, %v710_v33  ;;  %v201_v37 = vmul.f32 %v4280_v5, %v4266_v60  ;;  %v202_v52 = vmul.f32 %v4280_v5, %v4264_v59  ;;  %vm600_vm11 = vcmp.ge.f32.partialorder %v536_v12, 0.0 }
  0xaf   :  { %5654 = vst [vmem:[#allocation14_spill] sm:$0xff] %v4486_v50  ;;  %v4493_v56 = vsel %vm647_vm10, %v583_v8, %v711_v27  ;;  %vm601_vm12 = vcmp.ge.f32.partialorder %v537_v40, 0.0  ;;  %v664_v18 = vmul.f32 0.01, %v536_v12  ;;  %v665_v17 = vmul.f32 0.01, %v537_v40 }
  0xb0   :  { %5655 = vst [vmem:[#allocation15_spill] sm:$0xff] %v4493_v56  ;;  %v874_v13 = vpack.c.bf16 %v4493_v56, %v4486_v50  ;;  %v496_v47 = vadd.f32 %v432_v20, %v247_v0  ;;  %v497_v54 = vadd.f32 %v433_v51, %v248_v11  ;;  %v386_v57 = vmul.f32 %v3725_v36, %v4299_v15  ;;  %v3726_v51 = vld [vmem:[%s5614_s1 + $0x4] ss:$0 sm:$0xff] }
  0xb1   :  { %v4497_v32 = vsel %vm600_vm11, %v536_v12, %v664_v18  ;;  %v387_v62 = vmul.f32 %v3725_v36, %v4297_v14  ;;  %v249_v2 = vmul.f32 %v3717_v48, %v4266_v60  ;;  %v4503_v5 = vsel %vm601_vm12, %v537_v40, %v665_v17  ;;  %v3706_v36 = vld [vmem:[%s5613_s0 + $0x4] ss:$0 sm:$0xff] }
  0xb2   :  { %3903 = vmatmul.mubr.msk.bf16.gmra.mxu1 %vm877_vm1, %v874_v13  ;;  %v584_v7 = vadd.f32 %v4332_v46, %v496_v47  ;;  %v585_v8 = vadd.f32 %v4330_v45, %v497_v54  ;;  %v250_v19 = vmul.f32 %v3717_v48, %v4264_v59  ;;  %v851_v9 = vpack.c.bf16 %v4503_v5, %v4497_v32 }
  0xb3   :  { %v450_v0 = vadd.f32 %v386_v57, %v201_v37  ;;  %v451_v11 = vadd.f32 %v387_v62, %v202_v52  ;;  %v434_v30 = vmul.f32 %v3737_v21, %v4299_v15  ;;  %v435_v40 = vmul.f32 %v3737_v21, %v4297_v14 }
  0xb4   :  { %vm648_vm13 = vcmp.ge.f32.partialorder %v584_v7, 0.0  ;;  %vm649_vm14 = vcmp.ge.f32.partialorder %v585_v8, 0.0  ;;  %v712_v33 = vmul.f32 0.01, %v584_v7  ;;  %v713_v27 = vmul.f32 0.01, %v585_v8  ;;  %3858 = vmatprep.mubr.msk.bf16.mxu0 %vm877_vm1, %v851_v9 }
  0xb5   :  { %v538_v12 = vadd.f32 %v4352_v1, %v450_v0  ;;  %v539_v48 = vadd.f32 %v4350_v55, %v451_v11  ;;  %v498_v20 = vadd.f32 %v434_v30, %v249_v2  ;;  %v203_v18 = vmul.f32 %v3706_v36, %v4201_v24  ;;  %v3707_v30 = vld [vmem:[%s5613_s0 + $0x5] ss:$0 sm:$0xff] }
  0xb6   :  { %v4521_v37 = vsel %vm648_vm13, %v584_v7, %v712_v33  ;;  %v4523_v52 = vsel %vm649_vm14, %v585_v8, %v713_v27  ;;  %v204_v13 = vmul.f32 %v3706_v36, %v4240_v42  ;;  %v499_v54 = vadd.f32 %v435_v40, %v250_v19 }
  0xb7   :  { %5656 = vst [vmem:[#allocation16_spill] sm:$0xff] %v4521_v37  ;;  %5657 = vst [vmem:[#allocation17_spill] sm:$0xff] %v4523_v52  ;;  %v875_v17 = vpack.c.bf16 %v4523_v52, %v4521_v37  ;;  %vm602_vm15 = vcmp.ge.f32.partialorder %v538_v12, 0.0  ;;  %vm603_vm0 = vcmp.ge.f32.partialorder %v539_v48, 0.0  ;;  %v666_v47 = vmul.f32 0.01, %v538_v12 }
  0xb8   :  { %v667_v21 = vmul.f32 0.01, %v539_v48  ;;  %v586_v57 = vadd.f32 %v4352_v1, %v498_v20  ;;  %v388_v62 = vmul.f32 %v3726_v51, %v4199_v23  ;;  %v389_v7 = vmul.f32 %v3726_v51, %v4238_v41 }
  0xb9   :  { %3906 = vmatprep.mubr.msk.bf16.mxu1 %vm877_vm1, %v875_v17  ;;  %v4532_v2 = vsel %vm602_vm15, %v538_v12, %v666_v47  ;;  %v205_v8 = vmul.f32 %v3706_v36, %v4266_v60  ;;  %v206_v9 = vmul.f32 %v3706_v36, %v4264_v59  ;;  %v587_v11 = vadd.f32 %v4350_v55, %v499_v54  ;;  %v3727_v36 = vld [vmem:[%s5614_s1 + $0x5] ss:$0 sm:$0xff] }
  0xba   :  { %v4537_v0 = vsel %vm603_vm0, %v539_v48, %v667_v21  ;;  %vm650_vm2 = vcmp.ge.f32.partialorder %v586_v57, 0.0  ;;  %v714_v19 = vmul.f32 0.01, %v586_v57  ;;  %v452_v27 = vadd.f32 %v388_v62, %v203_v18 }
  0xbb   :  { %v852_v33 = vpack.c.bf16 %v4537_v0, %v4532_v2  ;;  %v453_v12 = vadd.f32 %v389_v7, %v204_v13  ;;  %v390_v40 = vmul.f32 %v3726_v51, %v4299_v15  ;;  %vm651_vm3 = vcmp.ge.f32.partialorder %v587_v11, 0.0 }
  0xbc   :  { %v715_v48 = vmul.f32 0.01, %v587_v11  ;;  %v4549_v20 = vsel %vm650_vm2, %v586_v57, %v714_v19  ;;  %v391_v17 = vmul.f32 %v3726_v51, %v4297_v14  ;;  %v540_v47 = vadd.f32 %v4332_v46, %v452_v27 }
  0xbd   :  { %5658 = vst [vmem:[#allocation18_spill] sm:$0xff] %v4549_v20  ;;  %3859 = vmatmul.mubr.msk.bf16.gmra.mxu0 %vm877_vm1, %v852_v33  ;;  %v541_v21 = vadd.f32 %v4330_v45, %v453_v12  ;;  %v454_v18 = vadd.f32 %v390_v40, %v205_v8  ;;  %v207_v13 = vmul.f32 %v3707_v30, %v4201_v24 }
  0xbe   :  { %v4556_v54 = vsel %vm651_vm3, %v587_v11, %v715_v48  ;;  %v455_v62 = vadd.f32 %v391_v17, %v206_v9  ;;  %v208_v7 = vmul.f32 %v3707_v30, %v4240_v42  ;;  %v392_v39 = vmul.f32 %v3727_v36, %v4199_v23  ;;  %v3708_v48 = vld [vmem:[%s5613_s0 + $0x6] ss:$0 sm:$0xff] }
  0xbf   :  { %5659 = vst [vmem:[#allocation19_spill] sm:$0xff] %v4556_v54  ;;  %v876_v57 = vpack.c.bf16 %v4556_v54, %v4549_v20  ;;  %vm604_vm4 = vcmp.ge.f32.partialorder %v540_v47, 0.0  ;;  %vm605_vm5 = vcmp.ge.f32.partialorder %v541_v21, 0.0  ;;  %v668_v51 = vmul.f32 0.01, %v540_v47 }
  0xc0   :  { %v669_v19 = vmul.f32 0.01, %v541_v21  ;;  %v542_v33 = vadd.f32 %v4352_v1, %v454_v18  ;;  %v543_v8 = vadd.f32 %v4350_v55, %v455_v62  ;;  %v393_v27 = vmul.f32 %v3727_v36, %v4238_v41 }
  0xc1   :  { %3907 = vmatmul.mubr.msk.bf16.gmra.mxu1 %vm877_vm1, %v876_v57  ;;  %v4566_v9 = vsel %vm604_vm4, %v540_v47, %v668_v51  ;;  %v456_v11 = vadd.f32 %v392_v39, %v207_v13  ;;  %v209_v12 = vmul.f32 %v3707_v30, %v4266_v60  ;;  %v210_v40 = vmul.f32 %v3707_v30, %v4264_v59 }
  0xc2   :  { %v4573_v17 = vsel %vm605_vm5, %v541_v21, %v669_v19  ;;  %vm606_vm6 = vcmp.ge.f32.partialorder %v542_v33, 0.0  ;;  %vm607_vm7 = vcmp.ge.f32.partialorder %v543_v8, 0.0  ;;  %v670_v18 = vmul.f32 0.01, %v542_v33  ;;  %v3728_v21 = vld [vmem:[%s5614_s1 + $0x6] ss:$0 sm:$0xff] }
  0xc3   :  { %v853_v62 = vpack.c.bf16 %v4573_v17, %v4566_v9  ;;  %v671_v57 = vmul.f32 0.01, %v543_v8  ;;  %v457_v47 = vadd.f32 %v393_v27, %v208_v7  ;;  %v544_v39 = vadd.f32 %v4332_v46, %v456_v11 }
  0xc4   :  { %v4578_v13 = vsel %vm606_vm6, %v542_v33, %v670_v18  ;;  %v394_v30 = vmul.f32 %v3727_v36, %v4299_v15  ;;  %v395_v51 = vmul.f32 %v3727_v36, %v4297_v14  ;;  %v211_v19 = vmul.f32 %v3708_v48, %v4201_v24 }
  0xc5   :  { %3862 = vmatprep.mubr.msk.bf16.mxu0 %vm877_vm1, %v853_v62  ;;  %v4587_v28 = vsel %vm607_vm7, %v543_v8, %v671_v57  ;;  %v545_v7 = vadd.f32 %v4330_v45, %v457_v47  ;;  %vm608_vm8 = vcmp.ge.f32.partialorder %v544_v39, 0.0  ;;  %v672_v27 = vmul.f32 0.01, %v544_v39 }
  0xc6   :  { %v854_v33 = vpack.c.bf16 %v4587_v28, %v4578_v13  ;;  %v458_v11 = vadd.f32 %v394_v30, %v209_v12  ;;  %v459_v18 = vadd.f32 %v395_v51, %v210_v40  ;;  %v212_v36 = vmul.f32 %v3708_v48, %v4240_v42  ;;  %v3709_v51 = vld [vmem:[%s5613_s0 + $0x7] ss:$0 sm:$0xff] }
  0xc7   :  { %vm609_vm9 = vcmp.ge.f32.partialorder %v545_v7, 0.0  ;;  %v673_v34 = vmul.f32 0.01, %v545_v7  ;;  %v4593_v49 = vsel %vm608_vm8, %v544_v39, %v672_v27  ;;  %v396_v4 = vmul.f32 %v3728_v21, %v4199_v23 }
  0xc8   :  { %3863 = vmatmul.mubr.msk.bf16.gmra.mxu0 %vm877_vm1, %v854_v33  ;;  %v546_v8 = vadd.f32 %v4352_v1, %v458_v11  ;;  %v547_v62 = vadd.f32 %v4350_v55, %v459_v18  ;;  %v397_v57 = vmul.f32 %v3728_v21, %v4238_v41  ;;  %v213_v47 = vmul.f32 %v3708_v48, %v4266_v60 }
  0xc9   :  { %v4601_v12 = vsel %vm609_vm9, %v545_v7, %v673_v34  ;;  %v460_v40 = vadd.f32 %v396_v4, %v211_v19  ;;  %v214_v30 = vmul.f32 %v3708_v48, %v4264_v59  ;;  %v398_v39 = vmul.f32 %v3728_v21, %v4299_v15  ;;  %v3729_v48 = vld [vmem:[%s5614_s1 + $0x7] ss:$0 sm:$0xff] }
  0xca   :  { %v855_v27 = vpack.c.bf16 %v4601_v12, %v4593_v49  ;;  %vm610_vm10 = vcmp.ge.f32.partialorder %v546_v8, 0.0  ;;  %vm611_vm11 = vcmp.ge.f32.partialorder %v547_v62, 0.0  ;;  %v674_v33 = vmul.f32 0.01, %v546_v8 }
  0xcb   :  { %v675_v11 = vmul.f32 0.01, %v547_v62  ;;  %v461_v18 = vadd.f32 %v397_v57, %v212_v36  ;;  %v548_v34 = vadd.f32 %v4332_v46, %v460_v40  ;;  %v399_v4 = vmul.f32 %v3728_v21, %v4297_v14 }
  0xcc   :  { %3866 = vmatprep.mubr.msk.bf16.mxu0 %vm877_vm1, %v855_v27  ;;  %v4616_v19 = vsel %vm610_vm10, %v546_v8, %v674_v33  ;;  %v462_v7 = vadd.f32 %v398_v39, %v213_v47  ;;  %v215_v38 = vmul.f32 %v3709_v51, %v4201_v24  ;;  %v216_v3 = vmul.f32 %v3709_v51, %v4240_v42 }
  0xcd   :  { %v4620_v58 = vsel %vm611_vm11, %v547_v62, %v675_v11  ;;  %v549_v36 = vadd.f32 %v4330_v45, %v461_v18  ;;  %vm612_vm12 = vcmp.ge.f32.partialorder %v548_v34, 0.0  ;;  %v676_v57 = vmul.f32 0.01, %v548_v34 }
  0xce   :  { %v856_v21 = vpack.c.bf16 %v4620_v58, %v4616_v19  ;;  %v463_v40 = vadd.f32 %v399_v4, %v214_v30  ;;  %v550_v56 = vadd.f32 %v4352_v1, %v462_v7  ;;  %v400_v8 = vmul.f32 %v3729_v48, %v4199_v23 }
  0xcf   :  { %vm613_vm13 = vcmp.ge.f32.partialorder %v549_v36, 0.0  ;;  %v677_v47 = vmul.f32 0.01, %v549_v36  ;;  %v4627_v39 = vsel %vm612_vm12, %v548_v34, %v676_v57  ;;  %v401_v27 = vmul.f32 %v3729_v48, %v4238_v41  ;;  %v3710_v34 = vld [vmem:[%s5613_s0 + $0x8] ss:$0 sm:$0xff] }
  0xd0   :  { %3867 = vmatmul.mubr.msk.bf16.gmra.mxu0 %vm877_vm1, %v856_v21  ;;  %v551_v62 = vadd.f32 %v4350_v55, %v463_v40  ;;  %vm614_vm14 = vcmp.ge.f32.partialorder %v550_v56, 0.0  ;;  %v678_v33 = vmul.f32 0.01, %v550_v56  ;;  %v464_v11 = vadd.f32 %v400_v8, %v215_v38  ;;  %v3730_v57 = vld [vmem:[%s5614_s1 + $0x8] ss:$0 sm:$0xff] }
  0xd1   :  { %v4632_v18 = vsel %vm613_vm13, %v549_v36, %v677_v47  ;;  %v465_v30 = vadd.f32 %v401_v27, %v216_v3  ;;  %v217_v4 = vmul.f32 %v3709_v51, %v4266_v60  ;;  %v218_v7 = vmul.f32 %v3709_v51, %v4264_v59 }
  0xd2   :  { %5660 = vst [vmem:[#allocation20_spill] sm:$0xff] %v4632_v18  ;;  %v857_v21 = vpack.c.bf16 %v4632_v18, %v4627_v39  ;;  %vm615_vm15 = vcmp.ge.f32.partialorder %v551_v62, 0.0  ;;  %v679_v38 = vmul.f32 0.01, %v551_v62  ;;  %v4644_v36 = vsel %vm614_vm14, %v550_v56, %v678_v33 }
  0xd3   :  { %v552_v3 = vadd.f32 %v4332_v46, %v464_v11  ;;  %v553_v40 = vadd.f32 %v4330_v45, %v465_v30  ;;  %v402_v51 = vmul.f32 %v3729_v48, %v4299_v15  ;;  %v403_v8 = vmul.f32 %v3729_v48, %v4297_v14 }
  0xd4   :  { %3870 = vmatprep.mubr.msk.bf16.mxu0 %vm877_vm1, %v857_v21  ;;  %v4651_v47 = vsel %vm615_vm15, %v551_v62, %v679_v38  ;;  %v219_v27 = vmul.f32 %v3710_v34, %v4201_v24  ;;  %v220_v54 = vmul.f32 %v3710_v34, %v4240_v42  ;;  %v404_v50 = vmul.f32 %v3730_v57, %v4199_v23 }
  0xd5   :  { %5661 = vst [vmem:[#allocation21_spill] sm:$0xff] %v4651_v47  ;;  %v858_v56 = vpack.c.bf16 %v4651_v47, %v4644_v36  ;;  %vm616_vm0 = vcmp.ge.f32.partialorder %v552_v3, 0.0  ;;  %vm617_vm2 = vcmp.ge.f32.partialorder %v553_v40, 0.0  ;;  %v680_v33 = vmul.f32 0.01, %v552_v3 }
  0xd6   :  { %v681_v11 = vmul.f32 0.01, %v553_v40  ;;  %v466_v30 = vadd.f32 %v402_v51, %v217_v4  ;;  %v467_v20 = vadd.f32 %v403_v8, %v218_v7  ;;  %v405_v48 = vmul.f32 %v3730_v57, %v4238_v41 }
  0xd7   :  { %v4659_v21 = vsel %vm616_vm0, %v552_v3, %v680_v33  ;;  %v468_v62 = vadd.f32 %v404_v50, %v219_v27  ;;  %v221_v38 = vmul.f32 %v3710_v34, %v4266_v60  ;;  %v222_v53 = vmul.f32 %v3710_v34, %v4264_v59  ;;  %v3711_v34 = vld [vmem:[%s5613_s0 + $0x9] ss:$0 sm:$0xff] }
  0xd8   :  { %3871 = vmatmul.mubr.msk.bf16.gmra.mxu0 %vm877_vm1, %v858_v56  ;;  %v4664_v52 = vsel %vm617_vm2, %v553_v40, %v681_v11  ;;  %v554_v26 = vadd.f32 %v4352_v1, %v466_v30  ;;  %v555_v37 = vadd.f32 %v4350_v55, %v467_v20  ;;  %v469_v18 = vadd.f32 %v405_v48, %v220_v54  ;;  %v3731_v27 = vld [vmem:[%s5614_s1 + $0x9] ss:$0 sm:$0xff] }
  0xd9   :  { %5662 = vst [vmem:[#allocation22_spill] sm:$0xff] %v4664_v52  ;;  %v859_v4 = vpack.c.bf16 %v4664_v52, %v4659_v21  ;;  %v556_v7 = vadd.f32 %v4332_v46, %v468_v62  ;;  %v406_v50 = vmul.f32 %v3730_v57, %v4299_v15  ;;  %v407_v3 = vmul.f32 %v3730_v57, %v4297_v14 }
  0xda   :  { %vm618_vm3 = vcmp.ge.f32.partialorder %v554_v26, 0.0  ;;  %vm619_vm4 = vcmp.ge.f32.partialorder %v555_v37, 0.0  ;;  %v682_v40 = vmul.f32 0.01, %v554_v26  ;;  %v683_v51 = vmul.f32 0.01, %v555_v37 }
  0xdb   :  { %3874 = vmatprep.mubr.msk.bf16.mxu0 %vm877_vm1, %v859_v4  ;;  %v557_v20 = vadd.f32 %v4330_v45, %v469_v18  ;;  %vm620_vm5 = vcmp.ge.f32.partialorder %v556_v7, 0.0  ;;  %v684_v54 = vmul.f32 0.01, %v556_v7  ;;  %v470_v8 = vadd.f32 %v406_v50, %v221_v38 }
  0xdc   :  { %v4681_v57 = vsel %vm618_vm3, %v554_v26, %v682_v40  ;;  %v4683_v56 = vsel %vm619_vm4, %v555_v37, %v683_v51  ;;  %v471_v33 = vadd.f32 %v407_v3, %v222_v53  ;;  %v223_v11 = vmul.f32 %v3711_v34, %v4201_v24 }
  0xdd   :  { %5663 = vst [vmem:[#allocation23_spill] sm:$0xff] %v4683_v56  ;;  %v860_v30 = vpack.c.bf16 %v4683_v56, %v4681_v57  ;;  %vm621_vm6 = vcmp.ge.f32.partialorder %v557_v20, 0.0  ;;  %v685_v48 = vmul.f32 0.01, %v557_v20  ;;  %v4688_v18 = vsel %vm620_vm5, %v556_v7, %v684_v54  ;;  %v3712_v7 = vld [vmem:[%s5613_s0 + $0xa] ss:$0 sm:$0xff] }
  0xde   :  { %5664 = vst [vmem:[#allocation24_spill] sm:$0xff] %v4688_v18  ;;  %v558_v62 = vadd.f32 %v4352_v1, %v470_v8  ;;  %v559_v38 = vadd.f32 %v4350_v55, %v471_v33  ;;  %v224_v4 = vmul.f32 %v3711_v34, %v4240_v42  ;;  %v408_v26 = vmul.f32 %v3731_v27, %v4199_v23 }
  0xdf   :  { %v4694_v37 = vsel %vm621_vm6, %v557_v20, %v685_v48  ;;  %v409_v53 = vmul.f32 %v3731_v27, %v4238_v41  ;;  %v225_v50 = vmul.f32 %v3711_v34, %v4266_v60  ;;  %v226_v3 = vmul.f32 %v3711_v34, %v4264_v59  ;;  %v3732_v34 = vld [vmem:[%s5614_s1 + $0xa] ss:$0 sm:$0xff] }
  0xe0   :  { %5665 = vst [vmem:[#allocation25_spill] sm:$0xff] %v4694_v37  ;;  %3875 = vmatmul.mubr.msk.bf16.gmra.mxu0 %vm877_vm1, %v860_v30  ;;  %v861_v40 = vpack.c.bf16 %v4694_v37, %v4688_v18  ;;  %vm622_vm7 = vcmp.ge.f32.partialorder %v558_v62, 0.0  ;;  %vm623_vm8 = vcmp.ge.f32.partialorder %v559_v38, 0.0  ;;  %v686_v51 = vmul.f32 0.01, %v558_v62 }
  0xe1   :  { %v687_v20 = vmul.f32 0.01, %v559_v38  ;;  %v472_v54 = vadd.f32 %v408_v26, %v223_v11  ;;  %v473_v8 = vadd.f32 %v409_v53, %v224_v4  ;;  %v410_v33 = vmul.f32 %v3731_v27, %v4299_v15 }
  0xe2   :  { %3878 = vmatprep.mubr.msk.bf16.mxu0 %vm877_vm1, %v861_v40  ;;  %v4710_v48 = vsel %vm622_vm7, %v558_v62, %v686_v51  ;;  %v411_v30 = vmul.f32 %v3731_v27, %v4297_v14  ;;  %v227_v37 = vmul.f32 %v3712_v7, %v4201_v24  ;;  %v228_v18 = vmul.f32 %v3712_v7, %v4240_v42 }
  0xe3   :  { %v4715_v52 = vsel %vm623_vm8, %v559_v38, %v687_v20  ;;  %v560_v11 = vadd.f32 %v4332_v46, %v472_v54  ;;  %v561_v4 = vadd.f32 %v4330_v45, %v473_v8  ;;  %v474_v26 = vadd.f32 %v410_v33, %v225_v50 }
  0xe4   :  { %5666 = vst [vmem:[#allocation26_spill] sm:$0xff] %v4715_v52  ;;  %v862_v53 = vpack.c.bf16 %v4715_v52, %v4710_v48  ;;  %v475_v56 = vadd.f32 %v411_v30, %v226_v3  ;;  %v412_v62 = vmul.f32 %v3732_v34, %v4199_v23  ;;  %v413_v40 = vmul.f32 %v3732_v34, %v4238_v41  ;;  %v3713_v30 = vld [vmem:[%s5613_s0 + $0xb] ss:$0 sm:$0xff] }
  0xe5   :  { %vm624_vm9 = vcmp.ge.f32.partialorder %v560_v11, 0.0  ;;  %vm625_vm10 = vcmp.ge.f32.partialorder %v561_v4, 0.0  ;;  %v688_v27 = vmul.f32 0.01, %v560_v11  ;;  %v689_v51 = vmul.f32 0.01, %v561_v4 }
  0xe6   :  { %v562_v38 = vadd.f32 %v4352_v1, %v474_v26  ;;  %v563_v20 = vadd.f32 %v4350_v55, %v475_v56  ;;  %v476_v54 = vadd.f32 %v412_v62, %v227_v37  ;;  %v477_v47 = vadd.f32 %v413_v40, %v228_v18 }
  0xe7   :  { %v4725_v8 = vsel %vm624_vm9, %v560_v11, %v688_v27  ;;  %v4727_v50 = vsel %vm625_vm10, %v561_v4, %v689_v51  ;;  %v229_v3 = vmul.f32 %v3712_v7, %v4266_v60  ;;  %v230_v33 = vmul.f32 %v3712_v7, %v4264_v59 }
  0xe8   :  { %5667 = vst [vmem:[#allocation27_spill] sm:$0xff] %v4727_v50  ;;  %3879 = vmatmul.mubr.msk.bf16.gmra.mxu0 %vm877_vm1, %v862_v53  ;;  %v863_v26 = vpack.c.bf16 %v4727_v50, %v4725_v8  ;;  %vm626_vm11 = vcmp.ge.f32.partialorder %v562_v38, 0.0  ;;  %vm627_vm12 = vcmp.ge.f32.partialorder %v563_v20, 0.0  ;;  %v690_v56 = vmul.f32 0.01, %v562_v38 }
  0xe9   :  { %v691_v18 = vmul.f32 0.01, %v563_v20  ;;  %v564_v37 = vadd.f32 %v4332_v46, %v476_v54  ;;  %v565_v11 = vadd.f32 %v4330_v45, %v477_v47  ;;  %v414_v4 = vmul.f32 %v3732_v34, %v4299_v15  ;;  %v3733_v53 = vld [vmem:[%s5614_s1 + $0xb] ss:$0 sm:$0xff]  ;;  %s4075_s1 = smov 127  }
  0xea   :  { %3882 = vmatprep.mubr.msk.bf16.mxu0 %vm877_vm1, %v863_v26  ;;  %v4741_v7 = vsel %vm626_vm11, %v562_v38, %v690_v56  ;;  %v415_v62 = vmul.f32 %v3732_v34, %v4297_v14  ;;  %v231_v40 = vmul.f32 %v3713_v30, %v4201_v24  ;;  %v232_v27 = vmul.f32 %v3713_v30, %v4240_v42 }
  0xeb   :  { %v4749_v51 = vsel %vm627_vm12, %v563_v20, %v691_v18  ;;  %vm628_vm13 = vcmp.ge.f32.partialorder %v564_v37, 0.0  ;;  %vm629_vm14 = vcmp.ge.f32.partialorder %v565_v11, 0.0  ;;  %v692_v47 = vmul.f32 0.01, %v564_v37 }
  0xec   :  { %v693_v54 = vmul.f32 0.01, %v565_v11  ;;  %v478_v50 = vadd.f32 %v414_v4, %v229_v3  ;;  %v479_v26 = vadd.f32 %v415_v62, %v230_v33  ;;  %v864_v38 = vpack.c.bf16 %v4749_v51, %v4741_v7 }
  0xed   :  { %v4753_v34 = vsel %vm628_vm13, %v564_v37, %v692_v47  ;;  %v416_v56 = vmul.f32 %v3733_v53, %v4199_v23  ;;  %v417_v52 = vmul.f32 %v3733_v53, %v4238_v41  ;;  %v233_v18 = vmul.f32 %v3713_v30, %v4266_v60 }
  0xee   :  { %v4757_v24 = vsel %vm629_vm14, %v565_v11, %v693_v54  ;;  %v566_v42 = vadd.f32 %v4352_v1, %v478_v50  ;;  %v567_v20 = vadd.f32 %v4350_v55, %v479_v26  ;;  %v418_v37 = vmul.f32 %v3733_v53, %v4299_v15 }
  0xef   :  { %v865_v3 = vpack.c.bf16 %v4757_v24, %v4753_v34  ;;  %v480_v33 = vadd.f32 %v416_v56, %v231_v40  ;;  %v481_v4 = vadd.f32 %v417_v52, %v232_v27  ;;  %v234_v60 = vmul.f32 %v3713_v30, %v4264_v59 }
  0xf0   :  { %3883 = vmatmul.mubr.msk.bf16.gmra.mxu0 %vm877_vm1, %v864_v38  ;;  %vm630_vm15 = vcmp.ge.f32.partialorder %v566_v42, 0.0  ;;  %vm631_vm0 = vcmp.ge.f32.partialorder %v567_v20, 0.0  ;;  %v694_v23 = vmul.f32 0.01, %v566_v42  ;;  %v695_v41 = vmul.f32 0.01, %v567_v20 }
  0xf1   :  { %3886 = vmatprep.mubr.msk.bf16.mxu0 %vm877_vm1, %v865_v3  ;;  %v568_v50 = vadd.f32 %v4332_v46, %v480_v33  ;;  %v569_v11 = vadd.f32 %v4330_v45, %v481_v4  ;;  %v419_v62 = vmul.f32 %v3733_v53, %v4297_v14  ;;  %v482_v52 = vadd.f32 %v418_v37, %v233_v18 }
  0xf2   :  { %v4771_v40 = vsel %vm630_vm15, %v566_v42, %v694_v23  ;;  %vm2701_vm2 = vcmask 80896   ;;  %v4773_v15 = vsel %vm631_vm0, %v567_v20, %v695_v41  ;;  %v4074_v47 = vmov 0.0   ;;  %v4065_v23 = vld [vmem:[%s5615_s5 + $0x8] sm:$0xff]   ;;  %v4066_v41 = vld [vmem:[%s5615_s5] sm:$0xff]  }
  0xf3   :  { %vm632_vm3 = vcmp.ge.f32.partialorder %v568_v50, 0.0  ;;  %vm633_vm4 = vcmp.ge.f32.partialorder %v569_v11, 0.0  ;;  %v696_v27 = vmul.f32 0.01, %v568_v50  ;;  %2702 = vst.msk [vmem:[#allocation2] sm:$0xff] %vm2701_vm2, %v4074_v47  ;;  %2705 = vst.msk [vmem:[#allocation2 + $0xa0] sm:$0xff] %vm2701_vm2, %v4074_v47  ;;  %v483_v14 = vadd.f32 %v419_v62, %v234_v60  ;;  %3910 = vmatprep.subr.bf16.mxu1 %v4065_v23 }
  0xf4   :  { %2708 = vst.msk [vmem:[#allocation2 + $0x90] sm:$0xff] %vm2701_vm2, %v4074_v47  ;;  %2710 = vst.msk [vmem:[#allocation2 + $0x130] sm:$0xff] %vm2701_vm2, %v4074_v47  ;;  %v697_v59 = vmul.f32 0.01, %v569_v11  ;;  %v570_v45 = vadd.f32 %v4352_v1, %v482_v52  ;;  %vm2712_vm5 = vcmask 7168   ;;  %vm2754_vm6 = vcmask 80968   ;;  %3911 = vmatpush3.bf16.msra.mxu1 %v4065_v23 }
  0xf5   :  { %v4780_v46 = vsel %vm632_vm3, %v568_v50, %v696_v27  ;;  %2713 = vst.msk [vmem:[#allocation2] sm:$0xff] %vm2712_vm5, %v4074_v47  ;;  %2716 = vst.msk [vmem:[#allocation2 + $0x10] sm:$0xff] %vm2712_vm5, %v4074_v47  ;;  %v866_v1 = vpack.c.bf16 %v4773_v15, %v4771_v40  ;;  %v571_v53 = vadd.f32 %v4350_v55, %v483_v14  ;;  %3912 = vmatprep.subr.bf16.mxu1 %v4066_v41  ;;  %vm2703_vm9 = vcmask 73728  }
  0xf6   :  { %2718 = vst.msk [vmem:[#allocation2 + $0x20] sm:$0xff] %vm2712_vm5, %v4074_v47  ;;  %2720 = vst.msk [vmem:[#allocation2 + $0x30] sm:$0xff] %vm2712_vm5, %v4074_v47  ;;  %v4825_v30 = vsel %vm633_vm4, %v569_v11, %v697_v59  ;;  %v698_v54 = vmul.f32 0.01, %v570_v45  ;;  %vm634_vm7 = vcmp.ge.f32.partialorder %v570_v45, 0.0  ;;  %vm2714_vm10 = vcmask 0  }
  0xf7   :  { %2722 = vst.msk [vmem:[#allocation2 + $0x40] sm:$0xff] %vm2712_vm5, %v4074_v47  ;;  %2724 = vst.msk [vmem:[#allocation2 + $0x50] sm:$0xff] %vm2712_vm5, %v4074_v47  ;;  %v867_v55 = vpack.c.bf16 %v4825_v30, %v4780_v46  ;;  %vm635_vm8 = vcmp.ge.f32.partialorder %v571_v53, 0.0  ;;  %v699_v26 = vmul.f32 0.01, %v571_v53  ;;  %vm2756_vm11 = vcmask 73800  }
  0xf8   :  { %2726 = vst.msk [vmem:[#allocation2 + $0x60] sm:$0xff] %vm2712_vm5, %v4074_v47  ;;  %2728 = vst.msk [vmem:[#allocation2 + $0x70] sm:$0xff] %vm2712_vm5, %v4074_v47  ;;  %3887 = vmatmul.mubr.msk.bf16.gmra.mxu0 %vm877_vm1, %v866_v1  ;;  %v4872_v38 = vsel %vm634_vm7, %v570_v45, %v698_v54  ;;  %3913 = vmatpush3.bf16.msra.mxu1 %v4066_v41  ;;  %v781_v27 = vmul.f32 0.05, %v4354_v43  ;;  %v785_v59 = vmul.f32 0.05, %v4380_v16 }
  0xf9   :  { %2730 = vst.msk [vmem:[#allocation2 + $0x80] sm:$0xff] %vm2712_vm5, %v4074_v47  ;;  %2736 = vst.msk [vmem:[#allocation2 + $0xb0] sm:$0xff] %vm2712_vm5, %v4074_v47  ;;  %3890 = vmatprep.mubr.msk.bf16.mxu0 %vm877_vm1, %v867_v55  ;;  %v4874_v56 = vsel %vm635_vm8, %v571_v53, %v699_v26  ;;  %v782_v55 = vmul.f32 0.05, %v4356_v61  ;;  %v786_v26 = vmul.f32 0.05, %v4388_v22 }
  0xfa   :  { %2738 = vst.msk [vmem:[#allocation2 + $0xc0] sm:$0xff] %vm2712_vm5, %v4074_v47  ;;  %2740 = vst.msk [vmem:[#allocation2 + $0xd0] sm:$0xff] %vm2712_vm5, %v4074_v47  ;;  %v868_v18 = vpack.c.bf16 %v4874_v56, %v4872_v38  ;;  %v784_v61 = vmul.f32 0.05, %v4374_v31  ;;  %v793_v31 = vmul.f32 0.05, %v4497_v32 }
  0xfb   :  { %2742 = vst.msk [vmem:[#allocation2 + $0xe0] sm:$0xff] %vm2712_vm5, %v4074_v47  ;;  %2744 = vst.msk [vmem:[#allocation2 + $0xf0] sm:$0xff] %vm2712_vm5, %v4074_v47 }
  0xfc   :  { %2746 = vst.msk [vmem:[#allocation2 + $0x100] sm:$0xff] %vm2712_vm5, %v4074_v47  ;;  %2748 = vst.msk [vmem:[#allocation2 + $0x110] sm:$0xff] %vm2712_vm5, %v4074_v47 }
  0xfd   :  { %2750 = vst.msk [vmem:[#allocation2 + $0x120] sm:$0xff] %vm2712_vm5, %v4074_v47  ;;  %2734 = vst.msk [vmem:[#allocation2 + $0xa0] sm:$0xff] %vm2712_vm5, %v4074_v47 }
  0xfe   :  { %2732 = vst.msk [vmem:[#allocation2 + $0x90] sm:$0xff] %vm2712_vm5, %v4074_v47  ;;  %2752 = vst.msk [vmem:[#allocation2 + $0x130] sm:$0xff] %vm2712_vm5, %v4074_v47 }
  0xff   :  { %2755 = vst.msk [vmem:[#allocation2] sm:$0xff] %vm2754_vm6, %v4074_v47  ;;  %2776 = vst.msk [vmem:[#allocation2 + $0xa0] sm:$0xff] %vm2754_vm6, %v4074_v47 }
 0x100   :  { %2758 = vst.msk [vmem:[#allocation2 + $0x10] sm:$0xff] %vm2754_vm6, %v4074_v47  ;;  %2760 = vst.msk [vmem:[#allocation2 + $0x20] sm:$0xff] %vm2754_vm6, %v4074_v47  ;;  %3891 = vmatmul.mubr.msk.bf16.gmra.mxu0 %vm877_vm1, %v868_v18  ;;  %v787_v18 = vmul.f32 0.05, %v4407_v44  ;;  %vm1874_vm1 = vcmask 261120  }
 0x101   :  { %2762 = vst.msk [vmem:[#allocation2 + $0x30] sm:$0xff] %vm2754_vm6, %v4074_v47  ;;  %2764 = vst.msk [vmem:[#allocation2 + $0x40] sm:$0xff] %vm2754_vm6, %v4074_v47 }
 0x102   :  { %2766 = vst.msk [vmem:[#allocation2 + $0x50] sm:$0xff] %vm2754_vm6, %v4074_v47  ;;  %2768 = vst.msk [vmem:[#allocation2 + $0x60] sm:$0xff] %vm2754_vm6, %v4074_v47 }
 0x103   :  { %2770 = vst.msk [vmem:[#allocation2 + $0x70] sm:$0xff] %vm2754_vm6, %v4074_v47  ;;  %2772 = vst.msk [vmem:[#allocation2 + $0x80] sm:$0xff] %vm2754_vm6, %v4074_v47 }
 0x104   :  { %2778 = vst.msk [vmem:[#allocation2 + $0xb0] sm:$0xff] %vm2754_vm6, %v4074_v47  ;;  %2780 = vst.msk [vmem:[#allocation2 + $0xc0] sm:$0xff] %vm2754_vm6, %v4074_v47 }
 0x105   :  { %2782 = vst.msk [vmem:[#allocation2 + $0xd0] sm:$0xff] %vm2754_vm6, %v4074_v47  ;;  %2784 = vst.msk [vmem:[#allocation2 + $0xe0] sm:$0xff] %vm2754_vm6, %v4074_v47 }
 0x106   :  { %2786 = vst.msk [vmem:[#allocation2 + $0xf0] sm:$0xff] %vm2754_vm6, %v4074_v47  ;;  %2788 = vst.msk [vmem:[#allocation2 + $0x100] sm:$0xff] %vm2754_vm6, %v4074_v47  ;;  %v2959_v42 = vld [vmem:[#allocation2] sm:$0xff] }
 0x107   :  { %2790 = vst.msk [vmem:[#allocation2 + $0x110] sm:$0xff] %vm2754_vm6, %v4074_v47  ;;  %2792 = vst.msk [vmem:[#allocation2 + $0x120] sm:$0xff] %vm2754_vm6, %v4074_v47  ;;  %v2977_v20 = vld [vmem:[#allocation2 + $0xa0] sm:$0xff]  ;;  %v3127_v3 = vrot.slane %v2959_v42, 3  ;;  %v3367_v4 = vrot.slane %v2959_v42, 6 }
 0x108   :  { %2774 = vst.msk [vmem:[#allocation2 + $0x90] sm:$0xff] %vm2754_vm6, %v4074_v47  ;;  %2794 = vst.msk [vmem:[#allocation2 + $0x130] sm:$0xff] %vm2754_vm6, %v4074_v47  ;;  %v3135_v33 = vrot.slane %v2977_v20, 3  ;;  %v3375_v37 = vrot.slane %v2977_v20, 6 }
 0x109   :  { %3143 = vrot.lane.b32.xlu1 %v3127_v3, %s4075_s1  ;;  %2709 = vst.msk [vmem:[#allocation2 + $0x98] sm:$0x1] %vm2703_vm9, %v4074_v47  ;;  %2711 = vst.msk [vmem:[#allocation2 + $0x138] sm:$0x1] %vm2703_vm9, %v4074_v47 }
 0x10a   :  { %2719 = vst.msk [vmem:[#allocation2 + $0x28] sm:$0x1] %vm2714_vm10, %v4074_v47  ;;  %2721 = vst.msk [vmem:[#allocation2 + $0x38] sm:$0x1] %vm2714_vm10, %v4074_v47 }
 0x10b   :  { %2723 = vst.msk [vmem:[#allocation2 + $0x48] sm:$0x1] %vm2714_vm10, %v4074_v47  ;;  %2725 = vst.msk [vmem:[#allocation2 + $0x58] sm:$0x1] %vm2714_vm10, %v4074_v47 }
 0x10c   :  { %2727 = vst.msk [vmem:[#allocation2 + $0x68] sm:$0x1] %vm2714_vm10, %v4074_v47  ;;  %2729 = vst.msk [vmem:[#allocation2 + $0x78] sm:$0x1] %vm2714_vm10, %v4074_v47 }
 0x10d   :  { %3159 = vrot.lane.b32.xlu1 %v3135_v33, %s4075_s1  ;;  %v783_v33 = vmul.f32 0.05, %v4372_v25  ;;  %2731 = vst.msk [vmem:[#allocation2 + $0x88] sm:$0x1] %vm2714_vm10, %v4074_v47  ;;  %2739 = vst.msk [vmem:[#allocation2 + $0xc8] sm:$0x1] %vm2714_vm10, %v4074_v47 }
 0x10e   :  { %2741 = vst.msk [vmem:[#allocation2 + $0xd8] sm:$0x1] %vm2714_vm10, %v4074_v47  ;;  %2743 = vst.msk [vmem:[#allocation2 + $0xe8] sm:$0x1] %vm2714_vm10, %v4074_v47 }
 0x10f   :  { %2745 = vst.msk [vmem:[#allocation2 + $0xf8] sm:$0x1] %vm2714_vm10, %v4074_v47  ;;  %2747 = vst.msk [vmem:[#allocation2 + $0x108] sm:$0x1] %vm2714_vm10, %v4074_v47 }
 0x110   :  { %2749 = vst.msk [vmem:[#allocation2 + $0x118] sm:$0x1] %vm2714_vm10, %v4074_v47  ;;  %2751 = vst.msk [vmem:[#allocation2 + $0x128] sm:$0x1] %vm2714_vm10, %v4074_v47 }
 0x111   :  { %3383 = vrot.lane.b32.xlu1 %v3367_v4, %s4076_s26  ;;  %2733 = vst.msk [vmem:[#allocation2 + $0x98] sm:$0x1] %vm2714_vm10, %v4074_v47  ;;  %2753 = vst.msk [vmem:[#allocation2 + $0x138] sm:$0x1] %vm2714_vm10, %v4074_v47 }
 0x112   :  { %2761 = vst.msk [vmem:[#allocation2 + $0x28] sm:$0x1] %vm2756_vm11, %v4074_v47  ;;  %2763 = vst.msk [vmem:[#allocation2 + $0x38] sm:$0x1] %vm2756_vm11, %v4074_v47 }
 0x113   :  { %2765 = vst.msk [vmem:[#allocation2 + $0x48] sm:$0x1] %vm2756_vm11, %v4074_v47  ;;  %2767 = vst.msk [vmem:[#allocation2 + $0x58] sm:$0x1] %vm2756_vm11, %v4074_v47 }
 0x114   :  { %2769 = vst.msk [vmem:[#allocation2 + $0x68] sm:$0x1] %vm2756_vm11, %v4074_v47  ;;  %2771 = vst.msk [vmem:[#allocation2 + $0x78] sm:$0x1] %vm2756_vm11, %v4074_v47 }
 0x115   :  { %3399 = vrot.lane.b32.xlu1 %v3375_v37, %s4076_s26  ;;  %v788_v37 = vmul.f32 0.05, %v4415_v6  ;;  %v789_v6 = vmul.f32 0.05, %v4429_v29  ;;  %v14_v29 = vstv %s5616_s8  ;;  %2773 = vst.msk [vmem:[#allocation2 + $0x88] sm:$0x1] %vm2756_vm11, %v4074_v47 }
 0x116   :  { %15 = vst [vmem:[#allocation3] sm:$0x1] %v14_v29  ;;  %2781 = vst.msk [vmem:[#allocation2 + $0xc8] sm:$0x1] %vm2756_vm11, %v4074_v47 }
 0x117   :  { %2783 = vst.msk [vmem:[#allocation2 + $0xd8] sm:$0x1] %vm2756_vm11, %v4074_v47  ;;  %2785 = vst.msk [vmem:[#allocation2 + $0xe8] sm:$0x1] %vm2756_vm11, %v4074_v47 }
 0x118   :  { %2787 = vst.msk [vmem:[#allocation2 + $0xf8] sm:$0x1] %vm2756_vm11, %v4074_v47  ;;  %2789 = vst.msk [vmem:[#allocation2 + $0x108] sm:$0x1] %vm2756_vm11, %v4074_v47 }
 0x119   :  { %2791 = vst.msk [vmem:[#allocation2 + $0x118] sm:$0x1] %vm2756_vm11, %v4074_v47  ;;  %2793 = vst.msk [vmem:[#allocation2 + $0x128] sm:$0x1] %vm2756_vm11, %v4074_v47 }
 0x11a   :  { %2775 = vst.msk [vmem:[#allocation2 + $0x98] sm:$0x1] %vm2756_vm11, %v4074_v47  ;;  %2795 = vst.msk [vmem:[#allocation2 + $0x138] sm:$0x1] %vm2756_vm11, %v4074_v47 }
 0x15a   :  { %v3848_v50 = vpop.f32.mrf.mxu0 }
 0x15b   :  { %v1269_v16 = vadd.f32 %v3848_v50, %v783_v33 }
 0x15c   :  { %v1012_v11 = vpop.f32.mrf.mxu0 }
 0x15d   :  { %v1267_v45 = vadd.f32 %v1012_v11, %v781_v27 }
 0x15e   :  { %v3849_v60 = vpop.f32.mrf.mxu0 }
 0x15f   :  { %v1270_v27 = vadd.f32 %v3849_v60, %v784_v61 }
 0x160   :  { %v1015_v62 = vpop.f32.mrf.mxu0 }
 0x161   :  { %v1268_v20 = vadd.f32 %v1015_v62, %v782_v55 }
 0x162   :  { %v3852_v52 = vpop.f32.mrf.mxu0 }
 0x163   :  { %v1273_v43 = vadd.f32 %v3852_v52, %v787_v18 }
 0x164   :  { %v1028_v14 = vpop.f32.mrf.mxu0 }
 0x165   :  { %v1271_v1 = vadd.f32 %v1028_v14, %v785_v59  ;;  %v3965_v41 = vpack.i.bf16 %v1273_v43, %v1269_v16  ;;  %v4897_v59 = vpop.f32.mrf.mxu1  ;;  %v791_v43 = vmul.f32 0.05, %v4474_v63 }
 0x166   :  { %v3853_v53 = vpop.f32.mrf.mxu0 }
 0x167   :  { %v3961_v54 = vpack.i.bf16 %v1271_v1, %v1267_v45  ;;  %v1274_v11 = vadd.f32 %v3853_v53, %v788_v37  ;;  %v4899_v52 = vpop.f32.mrf.mxu1 }
 0x168   :  { %v1031_v42 = vpop.f32.mrf.mxu0 }
 0x169   :  { %v1272_v3 = vadd.f32 %v1031_v42, %v786_v26  ;;  %3962 = vxpose.xlu0.b32.start [1/4] (short) (narrow) %v3961_v54, 8  ;;  %v3967_v62 = vpack.i.bf16 %v1274_v11, %v1270_v27  ;;  %v4901_v14 = vpop.f32.mrf.mxu1  ;;  %v790_v54 = vmul.f32 0.05, %v4435_v35  ;;  %v794_v42 = vmul.f32 0.05, %v4503_v5 }
 0x16a   :  { %v796_v5 = vmul.f32 0.05, %v4537_v0  ;;  %v803_v0 = vmul.f32 0.05, %v4616_v19  ;;  %v798_v19 = vmul.f32 0.05, %v4573_v17 }
 0x16b   :  { %v3963_v4 = vpack.i.bf16 %v1272_v3, %v1268_v20  ;;  %v4905_v55 = vpop.f32.mrf.mxu1  ;;  %v795_v3 = vmul.f32 0.05, %v4532_v2  ;;  %v792_v2 = vmul.f32 0.05, %v4476_v10 }
 0x16d   :  { %3964 = vxpose.xlu0.b32.cont [2/4] (short) (narrow) %v3963_v4, 8  ;;  %v4913_v32 = vpop.f32.mrf.mxu1 }
 0x16e   :  { %v3856_v23 = vpop.f32.mrf.mxu0 }
 0x16f   :  { %v1277_v35 = vadd.f32 %v3856_v23, %v791_v43  ;;  %v4917_v61 = vpop.f32.mrf.mxu1  ;;  %v799_v23 = vmul.f32 0.05, %v4578_v13  ;;  %v804_v13 = vmul.f32 0.05, %v4620_v58 }
 0x170   :  { %v1044_v22 = vpop.f32.mrf.mxu0 }
 0x171   :  { %3966 = vxpose.xlu0.b32.cont [3/4] (short) (narrow) %v3965_v41, 8  ;;  %v1275_v1 = vadd.f32 %v1044_v22, %v789_v6 }
 0x172   :  { %v3857_v44 = vpop.f32.mrf.mxu0 }
 0x173   :  { %v1278_v27 = vadd.f32 %v3857_v44, %v792_v2  ;;  %v800_v44 = vmul.f32 0.05, %v4587_v28 }
 0x174   :  { %v1047_v25 = vpop.f32.mrf.mxu0 }
 0x175   :  { %3968 = vxpose.xlu0.b32.end [4/4] (short) (narrow) %v3967_v62, 8  ;;  %v1276_v18 = vadd.f32 %v1047_v25, %v790_v54  ;;  %v4920_v25 = vpop.f32.mrf.mxu1 }
 0x17d   :  { %v3860_v50 = vpop.f32.mrf.mxu0 }
 0x17e   :  { %v1281_v4 = vadd.f32 %v3860_v50, %v795_v3 }
 0x17f   :  { %v1060_v45 = vpop.f32.mrf.mxu0 }
 0x180   :  { %v1279_v53 = vadd.f32 %v1060_v45, %v793_v31  ;;  %v4017_v41 = vpack.i.bf16 %v1281_v4, %v1277_v35  ;;  %v797_v45 = vmul.f32 0.05, %v4566_v9  ;;  %v802_v9 = vmul.f32 0.05, %v4601_v12 }
 0x181   :  { %v3861_v60 = vpop.f32.mrf.mxu0  ;;  %v811_v12 = vmul.f32 0.05, %v4681_v57 }
 0x182   :  { %v4013_v26 = vpack.i.bf16 %v1279_v53, %v1275_v1  ;;  %v1282_v11 = vadd.f32 %v3861_v60, %v796_v5  ;;  %v801_v1 = vmul.f32 0.05, %v4593_v49  ;;  %v4926_v53 = vpop.f32.mrf.mxu1 }
 0x183   :  { %v1063_v20 = vpop.f32.mrf.mxu0 }
 0x184   :  { %v1280_v33 = vadd.f32 %v1063_v20, %v794_v42  ;;  %4014 = vxpose.xlu1.b32.start [1/4] (short) (narrow) %v4013_v26, 8  ;;  %v4019_v63 = vpack.i.bf16 %v1282_v11, %v1278_v27  ;;  %v4932_v29 = vpop.f32.mrf.mxu1  ;;  %v805_v27 = vmul.f32 0.05, %v4627_v39  ;;  %v5671_v39 = vld [vmem:[#allocation22_spill] sm:$0xff] }
 0x186   :  { %v4015_v16 = vpack.i.bf16 %v1280_v33, %v1276_v18  ;;  %v1236_v5 = vpop.f32.mrf.mxu1 }
 0x188   :  { %v3864_v37 = vpop.f32.mrf.mxu0  ;;  %4016 = vxpose.xlu1.b32.cont [2/4] (short) (narrow) %v4015_v16, 8  ;;  %v4934_v17 = vpop.f32.mrf.mxu1 }
 0x189   :  { %v1285_v31 = vadd.f32 %v3864_v37, %v799_v23  ;;  %v5668_v23 = vld [vmem:[#allocation21_spill] sm:$0xff] }
 0x18a   :  { %v1076_v22 = vpop.f32.mrf.mxu0 }
 0x18b   :  { %v1283_v54 = vadd.f32 %v1076_v22, %v797_v45 }
 0x18c   :  { %v3865_v62 = vpop.f32.mrf.mxu0  ;;  %4018 = vxpose.xlu1.b32.cont [3/4] (short) (narrow) %v4017_v41, 8  ;;  %v807_v41 = vmul.f32 0.05, %v4644_v36 }
 0x18d   :  { %v1286_v18 = vadd.f32 %v3865_v62, %v800_v44  ;;  %v5670_v44 = vld [vmem:[#allocation20_spill] sm:$0xff] }
 0x18e   :  { %v1079_v50 = vpop.f32.mrf.mxu0 }
 0x18f   :  { %v1284_v43 = vadd.f32 %v1079_v50, %v798_v19  ;;  %v1239_v50 = vpop.f32.mrf.mxu1 }
 0x190   :  { %v3868_v6 = vpop.f32.mrf.mxu0  ;;  %4020 = vxpose.xlu1.b32.end [4/4] (short) (narrow) %v4019_v63, 8  ;;  %v809_v63 = vmul.f32 0.05, %v4659_v21 }
 0x191   :  { %v1289_v10 = vadd.f32 %v3868_v6, %v803_v0  ;;  %v808_v0 = vmul.f32 0.05, %v5668_v23  ;;  %v3908_v19 = vpop.f32.mrf.mxu1 }
 0x192   :  { %v1092_v60 = vpop.f32.mrf.mxu0 }
 0x193   :  { %v3978_v26 = vpack.i.bf16 %v1289_v10, %v1285_v31  ;;  %v1287_v42 = vadd.f32 %v1092_v60, %v801_v1  ;;  %v5669_v1 = vld [vmem:[#allocation23_spill] sm:$0xff]  ;;  %v806_v60 = vmul.f32 0.05, %v5670_v44 }
 0x194   :  { %v3869_v20 = vpop.f32.mrf.mxu0  ;;  %v812_v36 = vmul.f32 0.05, %v5669_v1 }
 0x195   :  { %v3974_v3 = vpack.i.bf16 %v1287_v42, %v1283_v54  ;;  %v1290_v33 = vadd.f32 %v3869_v20, %v804_v13  ;;  %v810_v13 = vmul.f32 0.05, %v5671_v39  ;;  %v5678_v39 = vld [vmem:[#allocation25_spill] sm:$0xff] }
 0x196   :  { %v1095_v49 = vpop.f32.mrf.mxu0 }
 0x197   :  { %v3980_v4 = vpack.i.bf16 %v1290_v33, %v1286_v18  ;;  %v1288_v28 = vadd.f32 %v1095_v49, %v802_v9  ;;  %3975 = vxpose.xlu0.b32.start [1/4] (short) (narrow) %v3974_v3, 8  ;;  %v1252_v49 = vpop.f32.mrf.mxu1 }
 0x198   :  { %v3872_v16 = vpop.f32.mrf.mxu0 }
 0x199   :  { %v3976_v35 = vpack.i.bf16 %v1288_v28, %v1284_v43  ;;  %v1293_v22 = vadd.f32 %v3872_v16, %v807_v41  ;;  %v5672_v28 = vld [vmem:[#allocation16_spill] sm:$0xff]  ;;  %v819_v41 = vmul.f32 0.05, %v4741_v7 }
 0x19a   :  { %v1108_v37 = vpop.f32.mrf.mxu0  ;;  %v841_v16 = vmul.f32 0.05, %v5672_v28 }
 0x19b   :  { %3977 = vxpose.xlu0.b32.cont [2/4] (short) (narrow) %v3976_v35, 8  ;;  %v1291_v31 = vadd.f32 %v1108_v37, %v805_v27  ;;  %v3909_v35 = vpop.f32.mrf.mxu1 }
 0x19c   :  { %v3873_v58 = vpop.f32.mrf.mxu0 }
 0x19d   :  { %v1294_v54 = vadd.f32 %v3873_v58, %v808_v0  ;;  %v815_v58 = vmul.f32 0.05, %v4710_v48  ;;  %v817_v0 = vmul.f32 0.05, %v4725_v8  ;;  %v1255_v1 = vpop.f32.mrf.mxu1  ;;  %v5679_v8 = vld [vmem:[#allocation27_spill] sm:$0xff] }
 0x19e   :  { %v1111_v2 = vpop.f32.mrf.mxu0 }
 0x19f   :  { %3979 = vxpose.xlu0.b32.cont [3/4] (short) (narrow) %v3978_v26, 8  ;;  %v1292_v20 = vadd.f32 %v1111_v2, %v806_v60 }
 0x1a0   :  { %v3876_v11 = vpop.f32.mrf.mxu0 }
 0x1a1   :  { %v1297_v62 = vadd.f32 %v3876_v11, %v811_v12  ;;  %v5673_v12 = vld [vmem:[#allocation12_spill] sm:$0xff]  ;;  %v1327_v11 = vadd.f32 %v1252_v49, %v841_v16 }
 0x1a2   :  { %v1124_v6 = vpop.f32.mrf.mxu0  ;;  %v837_v2 = vmul.f32 0.05, %v5673_v12  ;;  %v5681_v12 = vld [vmem:[#allocation14_spill] sm:$0xff] }
 0x1a3   :  { %v4030_v45 = vpack.i.bf16 %v1297_v62, %v1293_v22  ;;  %v1295_v10 = vadd.f32 %v1124_v6, %v809_v63  ;;  %3981 = vxpose.xlu0.b32.end [4/4] (short) (narrow) %v3980_v4, 8  ;;  %v5674_v62 = vld [vmem:[#allocation24_spill] sm:$0xff] }
 0x1a4   :  { %v3877_v57 = vpop.f32.mrf.mxu0  ;;  %v813_v63 = vmul.f32 0.05, %v5674_v62  ;;  %v1323_v6 = vadd.f32 %v1236_v5, %v837_v2  ;;  %v818_v5 = vmul.f32 0.05, %v5679_v8  ;;  %v839_v2 = vmul.f32 0.05, %v5681_v12 }
 0x1a5   :  { %v4026_v26 = vpack.i.bf16 %v1295_v10, %v1291_v31  ;;  %v1298_v42 = vadd.f32 %v3877_v57, %v812_v36  ;;  %v5675_v31 = vld [vmem:[#allocation17_spill] sm:$0xff]  ;;  %v5676_v36 = vld [vmem:[#allocation26_spill] sm:$0xff]  ;;  %v820_v57 = vmul.f32 0.05, %v4749_v51 }
 0x1a6   :  { %v1127_v21 = vpop.f32.mrf.mxu0  ;;  %v842_v10 = vmul.f32 0.05, %v5675_v31  ;;  %v816_v44 = vmul.f32 0.05, %v5676_v36  ;;  %v5689_v12 = vld [vmem:[#allocation6_spill] sm:$0xff] }
 0x1a7   :  { %v4032_v18 = vpack.i.bf16 %v1298_v42, %v1294_v54  ;;  %v1296_v3 = vadd.f32 %v1127_v21, %v810_v13  ;;  %4027 = vxpose.xlu1.b32.start [1/4] (short) (narrow) %v4026_v26, 8  ;;  %v5677_v54 = vld [vmem:[#allocation13_spill] sm:$0xff]  ;;  %v4039_v42 = vpack.i.bf16 %v1327_v11, %v1323_v6  ;;  %v814_v13 = vmul.f32 0.05, %v5678_v39 }
 0x1a8   :  { %v3880_v33 = vpop.f32.mrf.mxu0  ;;  %v838_v26 = vmul.f32 0.05, %v5677_v54  ;;  %v825_v39 = vmul.f32 0.05, %v4780_v46 }
 0x1a9   :  { %v4028_v9 = vpack.i.bf16 %v1296_v3, %v1292_v20  ;;  %v1301_v27 = vadd.f32 %v3880_v33, %v815_v58  ;;  %v1328_v20 = vadd.f32 %v1255_v1, %v842_v10  ;;  %v5684_v10 = vld [vmem:[#allocation8_spill] sm:$0xff] }
 0x1aa   :  { %v1140_v43 = vpop.f32.mrf.mxu0  ;;  %v1324_v49 = vadd.f32 %v1239_v50, %v838_v26  ;;  %v833_v1 = vmul.f32 0.05, %v5684_v10  ;;  %v2975_v10 = vld [vmem:[#allocation2 + $0x90] sm:$0xff] }
 0x1ab   :  { %4029 = vxpose.xlu1.b32.cont [2/4] (short) (narrow) %v4028_v9, 8 }
 0x1ac   :  { %v3881_v4 = vpop.f32.mrf.mxu0 }
 0x1ad   :  { %v1302_v3 = vadd.f32 %v3881_v4, %v816_v44  ;;  %v1325_v4 = vadd.f32 %v4932_v29, %v839_v2  ;;  %v827_v29 = vmul.f32 0.05, %v4872_v38 }
 0x1ae   :  { %v1143_v37 = vpop.f32.mrf.mxu0 }
 0x1af   :  { %4031 = vxpose.xlu1.b32.cont [3/4] (short) (narrow) %v4030_v45, 8  ;;  %v1299_v45 = vadd.f32 %v1140_v43, %v813_v63  ;;  %v5680_v43 = vld [vmem:[#allocation18_spill] sm:$0xff]  ;;  %v1300_v58 = vadd.f32 %v1143_v37, %v814_v13  ;;  %v5682_v63 = vld [vmem:[#allocation19_spill] sm:$0xff]  ;;  %v5686_v13 = vld [vmem:[#allocation9_spill] sm:$0xff] }
 0x1b0   :  { %v3884_v22 = vpop.f32.mrf.mxu0  ;;  %v843_v16 = vmul.f32 0.05, %v5680_v43 }
 0x1b1   :  { %v1305_v23 = vadd.f32 %v3884_v22, %v819_v41  ;;  %v4041_v22 = vpack.i.bf16 %v1328_v20, %v1324_v49 }
 0x1b2   :  { %v1156_v48 = vpop.f32.mrf.mxu0  ;;  %v1329_v11 = vadd.f32 %v3908_v19, %v843_v16  ;;  %v823_v19 = vmul.f32 0.05, %v4771_v40  ;;  %v834_v40 = vmul.f32 0.05, %v5686_v13 }
 0x1b3   :  { %v3991_v60 = vpack.i.bf16 %v1305_v23, %v1301_v27  ;;  %v1303_v7 = vadd.f32 %v1156_v48, %v817_v0  ;;  %4033 = vxpose.xlu1.b32.end [4/4] (short) (narrow) %v4032_v18, 8  ;;  %v844_v23 = vmul.f32 0.05, %v5682_v63  ;;  %v5683_v0 = vld [vmem:[#allocation15_spill] sm:$0xff]  ;;  %v5685_v48 = vld [vmem:[#allocation4_spill] sm:$0xff] }
 0x1b4   :  { %v3885_v21 = vpop.f32.mrf.mxu0  ;;  %v840_v37 = vmul.f32 0.05, %v5683_v0  ;;  %v4043_v6 = vpack.i.bf16 %v1329_v11, %v1325_v4 }
 0x1b5   :  { %v3987_v33 = vpack.i.bf16 %v1303_v7, %v1299_v45  ;;  %v1306_v9 = vadd.f32 %v3885_v21, %v820_v57  ;;  %v1330_v31 = vadd.f32 %v3909_v35, %v844_v23  ;;  %v829_v45 = vmul.f32 0.05, %v5685_v48 }
 0x1b6   :  { %v1159_v28 = vpop.f32.mrf.mxu0  ;;  %v1326_v44 = vadd.f32 %v4934_v17, %v840_v37  ;;  %v1319_v7 = vadd.f32 %v4917_v61, %v833_v1  ;;  %v821_v57 = vmul.f32 0.05, %v4753_v34  ;;  %v828_v34 = vmul.f32 0.05, %v4874_v56  ;;  %v5687_v61 = vld [vmem:[#allocation5_spill] sm:$0xff] }
 0x1b7   :  { %v3993_v18 = vpack.i.bf16 %v1306_v9, %v1302_v3  ;;  %v1304_v41 = vadd.f32 %v1159_v28, %v818_v5  ;;  %4040 = vxpose.xlu1.b32.start [1/4] (short) (narrow) %v4039_v42, 8  ;;  %3988 = vxpose.xlu0.b32.start [1/4] (short) (narrow) %v3987_v33, 8  ;;  %v1315_v17 = vadd.f32 %v4899_v52, %v829_v45  ;;  %v830_v20 = vmul.f32 0.05, %v5687_v61  ;;  %v2993_v1 = vld [vmem:[#allocation2 + $0x130] sm:$0xff] }
 0x1b8   :  { %v3888_v51 = vpop.f32.mrf.mxu0  ;;  %v4045_v26 = vpack.i.bf16 %v1330_v31, %v1326_v44  ;;  %v822_v33 = vmul.f32 0.05, %v4757_v24  ;;  %v826_v52 = vmul.f32 0.05, %v4825_v30  ;;  %v1320_v9 = vadd.f32 %v4926_v53, %v834_v40 }
 0x1b9   :  { %v3989_v27 = vpack.i.bf16 %v1304_v41, %v1300_v58  ;;  %v1309_v35 = vadd.f32 %v3888_v51, %v823_v19  ;;  %v4000_v3 = vpack.i.bf16 %v1319_v7, %v1315_v17  ;;  %v1316_v43 = vadd.f32 %v4905_v55, %v830_v20  ;;  %v5688_v58 = vld [vmem:[#allocation10_spill] sm:$0xff]  ;;  %v5691_v55 = vld [vmem:[#allocation7_spill] sm:$0xff]  ;;  %v4067_v7 = vld [vmem:[%s5617_s7 + $0x8] sm:$0xff]  }
 0x1ba   :  { %v1172_v62 = vpop.f32.mrf.mxu0  ;;  %v831_v24 = vmul.f32 0.05, %v5689_v12  ;;  %v3302_v44 = vrot.slane %v2993_v1, 5  ;;  %3930 = vmatprep.subr.bf16.mxu1 %v4067_v7 }
 0x1bb   :  { %4042 = vxpose.xlu1.b32.cont [2/4] (short) (narrow) %v4041_v22, 8  ;;  %3990 = vxpose.xlu0.b32.cont [2/4] (short) (narrow) %v3989_v27, 8  ;;  %v1307_v38 = vadd.f32 %v1172_v62, %v821_v57  ;;  %v4002_v30 = vpack.i.bf16 %v1320_v9, %v1316_v43  ;;  %v5690_v22 = vld [vmem:[#allocation11_spill] sm:$0xff]  ;;  %v832_v62 = vmul.f32 0.05, %v5691_v55 }
 0x1bc   :  { %v3889_v50 = vpop.f32.mrf.mxu0  ;;  %v1317_v53 = vadd.f32 %v4897_v59, %v831_v24  ;;  %v836_v27 = vmul.f32 0.05, %v5690_v22 }
 0x1bd   :  { %v1318_v23 = vadd.f32 %v4901_v14, %v832_v62  ;;  %v3294_v14 = vrot.slane %v2975_v10, 5 }
 0x1be   :  { %v1175_v36 = vpop.f32.mrf.mxu0  ;;  %v1322_v63 = vadd.f32 %v4920_v25, %v836_v27 }
 0x1bf   :  { %4044 = vxpose.xlu1.b32.cont [3/4] (short) (narrow) %v4043_v6, 8  ;;  %3992 = vxpose.xlu0.b32.cont [3/4] (short) (narrow) %v3991_v60, 8  ;;  %v824_v60 = vmul.f32 0.05, %v4773_v15  ;;  %v1308_v41 = vadd.f32 %v1175_v36, %v822_v33  ;;  %v4986_v6 = vpop.permute.xlu1 %3143 }
 0x1c0   :  { %v3892_v54 = vpop.f32.mrf.mxu0 }
 0x1c1   :  { %v1313_v42 = vadd.f32 %v3892_v54, %v827_v29  ;;  %v1310_v49 = vadd.f32 %v3889_v50, %v824_v60  ;;  %v4006_v50 = vpack.i.bf16 %v1322_v63, %v1318_v23  ;;  %v3607_v29 = vld [vmem:[#allocation3] sm:$0x1] }
 0x1c2   :  { %v1188_v21 = vpop.f32.mrf.mxu0  ;;  %v4068_v54 = vld [vmem:[%s5617_s7] sm:$0xff]  }
 0x1c3   :  { %v4056_v8 = vpack.i.bf16 %v1313_v42, %v1309_v35  ;;  %v1311_v5 = vadd.f32 %v1188_v21, %v825_v39  ;;  %4046 = vxpose.xlu1.b32.end [4/4] (short) (narrow) %v4045_v26, 8  ;;  %3994 = vxpose.xlu0.b32.end [4/4] (short) (narrow) %v3993_v18, 8  ;;  %v835_v18 = vmul.f32 0.05, %v5688_v58  ;;  %v4989_v31 = vpop.permute.xlu1 %3159 }
 0x1c4   :  { %v3893_v46 = vpop.f32.mrf.mxu0 }
 0x1c5   :  { %v4052_v15 = vpack.i.bf16 %v1311_v5, %v1307_v38  ;;  %v1314_v28 = vadd.f32 %v3893_v46, %v828_v34  ;;  %v1321_v2 = vadd.f32 %v4913_v32, %v835_v18  ;;  %v5080_v18 = vld [vmem:[%s5618_s6] ss:$0 sm:$0xff]  ;;  %s4077_s6 = smov 1  }
 0x1c6   :  { %v1191_v16 = vpop.f32.mrf.mxu0 }
 0x1c7   :  { %v4058_v56 = vpack.i.bf16 %v1314_v28, %v1310_v49  ;;  %v1312_v51 = vadd.f32 %v1191_v16, %v826_v52  ;;  %4053 = vxpose.xlu1.b32.start [1/4] (short) (narrow) %v4052_v15, 8  ;;  %4001 = vxpose.xlu0.b32.start [1/4] (short) (narrow) %v4000_v3, 8  ;;  %v4004_v4 = vpack.i.bf16 %v1321_v2, %v1317_v53  ;;  %v4991_v25 = vpop.permute.xlu1 %3383  ;;  %v2976_v16 = vld [vmem:[#allocation2 + $0x98] sm:$0x1] }
 0x1c9   :  { %v4054_v11 = vpack.i.bf16 %v1312_v51, %v1308_v41 }
 0x1cb   :  { %4055 = vxpose.xlu1.b32.cont [2/4] (short) (narrow) %v4054_v11, 8  ;;  %4003 = vxpose.xlu0.b32.cont [2/4] (short) (narrow) %v4002_v30, 8  ;;  %v4993_v36 = vpop.permute.xlu1 %3399 }
 0x1cf   :  { %4057 = vxpose.xlu1.b32.cont [3/4] (short) (narrow) %v4056_v8, 8  ;;  %4005 = vxpose.xlu0.b32.cont [3/4] (short) (narrow) %v4004_v4, 8 }
 0x1d3   :  { %4059 = vxpose.xlu1.b32.end [4/4] (short) (narrow) %v4058_v56, 8  ;;  %4007 = vxpose.xlu0.b32.end [4/4] (short) (narrow) %v4006_v50, 8 }
 0x1e5   :  { %v3969_v32 = vpop.trf.xlu0 }
 0x1e6   :  { %v3973_v0 = vunpack.i.h.bf16 %v3969_v32  ;;  %v3970_v37 = vunpack.i.l.bf16 %v3969_v32 }
 0x1e8   :  { %v1843_v59 = vpack.c.bf16 %v3973_v0, %v3970_v37 }
 0x1ea   :  { %3914 = vmatprep.mubr.msk.bf16.mxu1 %vm1874_vm1, %v1843_v59 }
 0x1f1   :  { %3557 = vrot.lane.b32.xlu1 %v2976_v16, %s4076_s26 }
 0x1fc   :  { %3317 = vrot.lane.b32.xlu0 %v3294_v14, %s4075_s1 }
 0x200   :  { %3333 = vrot.lane.b32.xlu0 %v3302_v44, %s4075_s1  ;;  %v4021_v19 = vpop.trf.xlu1 }
 0x201   :  { %v4025_v48 = vunpack.i.h.bf16 %v4021_v19  ;;  %v4022_v45 = vunpack.i.l.bf16 %v4021_v19 }
 0x203   :  { %v1844_v57 = vpack.c.bf16 %v4025_v48, %v4022_v45 }
 0x204   :  { %3610 = vperm.xlu0 %3959, %v3607_v29  }
 0x205   :  { %3915 = vmatmul.mubr.msk.bf16.vlgmr.msra.gmra.mxu1 %vm1874_vm1, %v1844_v57 }
 0x206   :  { %3931 = vmatpush3.bf16.msra.mxu1 %v4067_v7 }
 0x207   :  { %3932 = vmatprep.subr.bf16.mxu1 %v4068_v54 }
 0x20a   :  { %3933 = vmatpush3.bf16.msra.mxu1 %v4068_v54 }
 0x213   :  { %v3982_v26 = vpop.trf.xlu0 }
 0x214   :  { %v3986_v35 = vunpack.i.h.bf16 %v3982_v26  ;;  %v3983_v42 = vunpack.i.l.bf16 %v3982_v26 }
 0x216   :  { %v1845_v39 = vpack.c.bf16 %v3986_v35, %v3983_v42 }
 0x218   :  { %3918 = vmatprep.mubr.msk.bf16.mxu1 %vm1874_vm1, %v1845_v39 }
 0x223   :  { %v4034_v17 = vpop.trf.xlu1 }
 0x224   :  { %v4038_v13 = vunpack.i.h.bf16 %v4034_v17  ;;  %v4035_v40 = vunpack.i.l.bf16 %v4034_v17 }
 0x226   :  { %v1846_v60 = vpack.c.bf16 %v4038_v13, %v4035_v40 }
 0x228   :  { %3919 = vmatmul.mubr.msk.bf16.gmra.mxu1 %vm1874_vm1, %v1846_v60 }
 0x233   :  { %v4047_v21 = vpop.trf.xlu1  ;;  %v3995_v38 = vpop.trf.xlu0 }
 0x234   :  { %v3999_v8 = vunpack.i.h.bf16 %v3995_v38  ;;  %v3996_v5 = vunpack.i.l.bf16 %v3995_v38  ;;  %v4051_v15 = vunpack.i.h.bf16 %v4047_v21  ;;  %v4048_v28 = vunpack.i.l.bf16 %v4047_v21 }
 0x236   :  { %v1847_v34 = vpack.c.bf16 %v3999_v8, %v3996_v5  ;;  %v1850_v43 = vpack.c.bf16 %v4051_v15, %v4048_v28 }
 0x238   :  { %3922 = vmatprep.mubr.msk.bf16.mxu1 %vm1874_vm1, %v1847_v34 }
 0x243   :  { %v4060_v61 = vpop.trf.xlu1  ;;  %v4008_v33 = vpop.trf.xlu0 }
 0x244   :  { %v4064_v20 = vunpack.i.h.bf16 %v4060_v61  ;;  %v4061_v3 = vunpack.i.l.bf16 %v4060_v61  ;;  %v4012_v46 = vunpack.i.h.bf16 %v4008_v33  ;;  %v4009_v52 = vunpack.i.l.bf16 %v4008_v33 }
 0x246   :  { %v1848_v9 = vpack.c.bf16 %v4064_v20, %v4061_v3  ;;  %v1849_v49 = vpack.c.bf16 %v4012_v46, %v4009_v52 }
 0x248   :  { %3923 = vmatmul.mubr.msk.bf16.gmra.mxu1 %vm1874_vm1, %v1848_v9 }
 0x249   :  { %3926 = vmatprep.mubr.msk.bf16.mxu1 %vm1874_vm1, %v1849_v49 }
 0x250   :  { %3927 = vmatmul.mubr.msk.bf16.gmra.mxu1 %vm1874_vm1, %v1850_v43 }
 0x2c5   :  { %v3916_v58 = vpop.f32.mrf.mxu1 }
 0x2c6   :  { %v1942_v51 = vadd.f32 %v3916_v58, %v5080_v18 }
 0x2c7   :  { %v1933_v41 = vpop.f32.mrf.mxu1 }
 0x2c8   :  { %v1934_v56 = vadd.f32 %v5080_v18, %v1933_v41  ;;  %v2014_v53 = vmul.f32 0.01, %v1942_v51  ;;  %vm1998_vm14 = vcmp.ge.f32.partialorder %v1942_v51, 0.0 }
 0x2c9   :  { %v3917_v12 = vpop.f32.mrf.mxu1 }
 0x2ca   :  { %v1945_v24 = vadd.f32 %v3917_v12, %v5080_v18  ;;  %v2012_v30 = vmul.f32 0.01, %v1934_v56  ;;  %vm1996_vm13 = vcmp.ge.f32.partialorder %v1934_v56, 0.0  ;;  %v2030_v4 = vsel %vm1998_vm14, %v1942_v51, %v2014_v53 }
 0x2cb   :  { %v1936_v2 = vpop.f32.mrf.mxu1  ;;  %vm3681_vm14 = vcmask 57344  }
 0x2cc   :  { %vm1999_vm12 = vcmp.ge.f32.partialorder %v1945_v24, 0.0  ;;  %v2015_v47 = vmul.f32 0.01, %v1945_v24  ;;  %v1937_v11 = vadd.f32 %v5080_v18, %v1936_v2  ;;  %v2028_v55 = vsel %vm1996_vm13, %v1934_v56, %v2012_v30 }
 0x2cd   :  { %vm2927_vm13 = vcmask 65544  }
 0x2ce   :  { %vm1997_vm15 = vcmp.ge.f32.partialorder %v1937_v11, 0.0  ;;  %v2013_v22 = vmul.f32 0.01, %v1937_v11  ;;  %v2031_v27 = vsel %vm1999_vm12, %v1945_v24, %v2015_v47 }
 0x2cf   :  { %v2045_v23 = vpack.c.bf16 %v2031_v27, %v2030_v4 }
 0x2d0   :  { %v2029_v62 = vsel %vm1997_vm15, %v1937_v11, %v2013_v22 }
 0x2d1   :  { %v2044_v63 = vpack.c.bf16 %v2029_v62, %v2028_v55 }
 0x2d3   :  { %3934 = vmatprep.mubr.msk.bf16.mxu1 %vm1874_vm1, %v2044_v63 }
 0x2d4   :  { %3935 = vmatmul.mubr.msk.bf16.vlgmr.msra.gmra.mxu1 %vm1874_vm1, %v2045_v23 }
 0x2e8   :  { %v3920_v50 = vpop.f32.mrf.mxu1 }
 0x2e9   :  { %v1958_v32 = vadd.f32 %v3920_v50, %v5080_v18 }
 0x2ea   :  { %v1949_v0 = vpop.f32.mrf.mxu1 }
 0x2eb   :  { %v1950_v37 = vadd.f32 %v5080_v18, %v1949_v0  ;;  %v2018_v59 = vmul.f32 0.01, %v1958_v32  ;;  %vm2002_vm0 = vcmp.ge.f32.partialorder %v1958_v32, 0.0 }
 0x2ec   :  { %v3921_v10 = vpop.f32.mrf.mxu1 }
 0x2ed   :  { %v2016_v14 = vmul.f32 0.01, %v1950_v37  ;;  %v1961_v1 = vadd.f32 %v3921_v10, %v5080_v18  ;;  %vm2000_vm2 = vcmp.ge.f32.partialorder %v1950_v37, 0.0  ;;  %v2034_v48 = vsel %vm2002_vm0, %v1958_v32, %v2018_v59  ;;  %v5106_v59 = vpop.permute.xlu0 %3317 }
 0x2ee   :  { %v1952_v44 = vpop.f32.mrf.mxu1 }
 0x2ef   :  { %vm2003_vm3 = vcmp.ge.f32.partialorder %v1961_v1, 0.0  ;;  %v2019_v19 = vmul.f32 0.01, %v1961_v1  ;;  %v1953_v29 = vadd.f32 %v5080_v18, %v1952_v44  ;;  %v2032_v45 = vsel %vm2000_vm2, %v1950_v37, %v2016_v14 }
 0x2f1   :  { %v2035_v7 = vsel %vm2003_vm3, %v1961_v1, %v2019_v19  ;;  %vm2001_vm4 = vcmp.ge.f32.partialorder %v1953_v29, 0.0  ;;  %v2017_v57 = vmul.f32 0.01, %v1953_v29  ;;  %v5108_v10 = vpop.permute.xlu0 %3333 }
 0x2f2   :  { %v2047_v54 = vpack.c.bf16 %v2035_v7, %v2034_v48 }
 0x2f3   :  { %v2033_v26 = vsel %vm2001_vm4, %v1953_v29, %v2017_v57 }
 0x2f4   :  { %v2046_v35 = vpack.c.bf16 %v2033_v26, %v2032_v45 }
 0x2f5   :  { %v5110_v14 = vpop.permute.xlu0 %3610 }
 0x2f6   :  { %3938 = vmatprep.mubr.msk.bf16.mxu1 %vm1874_vm1, %v2046_v35 }
 0x2f7   :  { %3939 = vmatmul.mubr.msk.bf16.gmra.mxu1 %vm1874_vm1, %v2047_v54  ;;  %v5115_v54 = vpop.permute.xlu1 %3557 }
 0x308   :  { %v3924_v42 = vpop.f32.mrf.mxu1 }
 0x309   :  { %v1974_v39 = vadd.f32 %v3924_v42, %v5080_v18 }
 0x30a   :  { %v1965_v17 = vpop.f32.mrf.mxu1 }
 0x30b   :  { %v1966_v13 = vadd.f32 %v5080_v18, %v1965_v17  ;;  %v2022_v40 = vmul.f32 0.01, %v1974_v39  ;;  %vm2006_vm5 = vcmp.ge.f32.partialorder %v1974_v39, 0.0 }
 0x30c   :  { %v3925_v60 = vpop.f32.mrf.mxu1 }
 0x30d   :  { %vm2004_vm6 = vcmp.ge.f32.partialorder %v1966_v13, 0.0  ;;  %v2020_v21 = vmul.f32 0.01, %v1966_v13  ;;  %v1977_v38 = vadd.f32 %v3925_v60, %v5080_v18  ;;  %v2038_v61 = vsel %vm2006_vm5, %v1974_v39, %v2022_v40 }
 0x30e   :  { %v1968_v8 = vpop.f32.mrf.mxu1 }
 0x30f   :  { %vm2007_vm7 = vcmp.ge.f32.partialorder %v1977_v38, 0.0  ;;  %v2023_v5 = vmul.f32 0.01, %v1977_v38  ;;  %v1969_v34 = vadd.f32 %v5080_v18, %v1968_v8  ;;  %v2036_v20 = vsel %vm2004_vm6, %v1966_v13, %v2020_v21 }
 0x310   :  { %v3928_v3 = vpop.f32.mrf.mxu1 }
 0x311   :  { %v2039_v33 = vsel %vm2007_vm7, %v1977_v38, %v2023_v5  ;;  %vm2005_vm8 = vcmp.ge.f32.partialorder %v1969_v34, 0.0  ;;  %v2021_v46 = vmul.f32 0.01, %v1969_v34  ;;  %v1990_v52 = vadd.f32 %v3928_v3, %v5080_v18 }
 0x312   :  { %v1981_v9 = vpop.f32.mrf.mxu1  ;;  %v2049_v49 = vpack.c.bf16 %v2039_v33, %v2038_v61 }
 0x313   :  { %v2037_v15 = vsel %vm2005_vm8, %v1969_v34, %v2021_v46  ;;  %v1982_v28 = vadd.f32 %v5080_v18, %v1981_v9  ;;  %v2026_v16 = vmul.f32 0.01, %v1990_v52  ;;  %vm2010_vm9 = vcmp.ge.f32.partialorder %v1990_v52, 0.0 }
 0x314   :  { %v2048_v43 = vpack.c.bf16 %v2037_v15, %v2036_v20  ;;  %v3929_v58 = vpop.f32.mrf.mxu1 }
 0x315   :  { %v2024_v41 = vmul.f32 0.01, %v1982_v28  ;;  %v1993_v56 = vadd.f32 %v3929_v58, %v5080_v18  ;;  %vm2008_vm10 = vcmp.ge.f32.partialorder %v1982_v28, 0.0  ;;  %v2042_v2 = vsel %vm2010_vm9, %v1990_v52, %v2026_v16 }
 0x316   :  { %3942 = vmatprep.mubr.msk.bf16.mxu1 %vm1874_vm1, %v2048_v43  ;;  %v1984_v51 = vpop.f32.mrf.mxu1 }
 0x317   :  { %3943 = vmatmul.mubr.msk.bf16.gmra.mxu1 %vm1874_vm1, %v2049_v49  ;;  %vm2011_vm11 = vcmp.ge.f32.partialorder %v1993_v56, 0.0  ;;  %v2027_v12 = vmul.f32 0.01, %v1993_v56  ;;  %v1985_v24 = vadd.f32 %v5080_v18, %v1984_v51  ;;  %v2040_v30 = vsel %vm2008_vm10, %v1982_v28, %v2024_v41 }
 0x319   :  { %v2043_v47 = vsel %vm2011_vm11, %v1993_v56, %v2027_v12  ;;  %vm2009_vm12 = vcmp.ge.f32.partialorder %v1985_v24, 0.0  ;;  %v2025_v11 = vmul.f32 0.01, %v1985_v24 }
 0x31a   :  { %v2051_v53 = vpack.c.bf16 %v2043_v47, %v2042_v2 }
 0x31b   :  { %v2041_v22 = vsel %vm2009_vm12, %v1985_v24, %v2025_v11 }
 0x31c   :  { %v2050_v27 = vpack.c.bf16 %v2041_v22, %v2040_v30 }
 0x31e   :  { %3946 = vmatprep.mubr.msk.bf16.mxu1 %vm1874_vm1, %v2050_v27 }
 0x31f   :  { %3947 = vmatmul.mubr.msk.bf16.gmra.mxu1 %vm1874_vm1, %v2051_v53  ;;  %vm2925_vm1 = vcmask 72712  }
 0x394   :  { %v3936_v55 = vpop.f32.mrf.mxu1 }
 0x395   :  { %2253 = vxpose.xlu0.b32.start.end [1/1] (short) (narrow) %v3936_v55, 16 }
 0x396   :  { %v2126_v62 = vpop.f32.mrf.mxu1 }
 0x398   :  { %v3937_v4 = vpop.f32.mrf.mxu1 }
 0x399   :  { %2285 = vxpose.xlu1.b32.start.end [1/1] (short) (narrow) %v3937_v4, 16 }
 0x39a   :  { %2189 = vxpose.xlu0.b32.start.end [1/1] (short) (narrow) %v2126_v62, 16  ;;  %v2129_v63 = vpop.f32.mrf.mxu1 }
 0x39f   :  { %2221 = vxpose.xlu0.b32.start.end [1/1] (short) (narrow) %v2129_v63, 16 }
 0x3b7   :  { %v3940_v18 = vpop.f32.mrf.mxu1 }
 0x3b8   :  { %2381 = vxpose.xlu0.b32.start.end [1/1] (short) (narrow) %v3940_v18, 16 }
 0x3b9   :  { %v2142_v23 = vpop.f32.mrf.mxu1 }
 0x3bb   :  { %v3941_v50 = vpop.f32.mrf.mxu1 }
 0x3bc   :  { %2413 = vxpose.xlu1.b32.start.end [1/1] (short) (narrow) %v3941_v50, 16 }
 0x3bd   :  { %2317 = vxpose.xlu0.b32.start.end [1/1] (short) (narrow) %v2142_v23, 16  ;;  %v2145_v32 = vpop.f32.mrf.mxu1 }
 0x3c1   :  { %2349 = vxpose.xlu1.b32.start.end [1/1] (short) (narrow) %v2145_v32, 16 }
 0x3d7   :  { %v3944_v0 = vpop.f32.mrf.mxu1 }
 0x3d8   :  { %2509 = vxpose.xlu0.b32.start.end [1/1] (short) (narrow) %v3944_v0, 16 }
 0x3d9   :  { %v2158_v37 = vpop.f32.mrf.mxu1 }
 0x3db   :  { %v3945_v29 = vpop.f32.mrf.mxu1 }
 0x3dd   :  { %2445 = vxpose.xlu0.b32.start.end [1/1] (short) (narrow) %v2158_v37, 16  ;;  %v2161_v48 = vpop.f32.mrf.mxu1 }
 0x3df   :  { %v3948_v45 = vpop.f32.mrf.mxu1 }
 0x3e1   :  { %v2174_v3 = vpop.f32.mrf.mxu1 }
 0x3e3   :  { %v3949_v16 = vpop.f32.mrf.mxu1 }
 0x3e5   :  { %v2177_v41 = vpop.f32.mrf.mxu1 }
 0x411   :  { %v2269_v1 = vpop.trf.xlu0 }
 0x412   :  { %2836 = vrot.lane.b32.xlu1 %v2269_v1, %s4077_s6 }
 0x415   :  { %v2270_v44 = vpop.trf.xlu0  ;;  %v2301_v35 = vpop.trf.xlu1 }
 0x419   :  { %v2205_v19 = vpop.trf.xlu0  ;;  %v2302_v17 = vpop.trf.xlu1 }
 0x41a   :  { %2828 = vrot.lane.b32.xlu0 %v2205_v19, %s4077_s6 }
 0x41d   :  { %v2206_v7 = vpop.trf.xlu0 }
 0x41e   :  { %2838 = vrot.lane.b32.xlu0 %v2270_v44, %s4077_s6 }
 0x421   :  { %v2237_v57 = vpop.trf.xlu0 }
 0x425   :  { %v2238_v26 = vpop.trf.xlu0 }
 0x434   :  { %v2397_v42 = vpop.trf.xlu0 }
 0x438   :  { %v2398_v39 = vpop.trf.xlu0  ;;  %v2429_v40 = vpop.trf.xlu1 }
 0x43b   :  { %2541 = vxpose.xlu1.b32.start.end [1/1] (short) (narrow) %v3945_v29, 16 }
 0x43c   :  { %2637 = vxpose.xlu0.b32.start.end [1/1] (short) (narrow) %v3948_v45, 16  ;;  %v2333_v13 = vpop.trf.xlu0  ;;  %v2430_v21 = vpop.trf.xlu1 }
 0x440   :  { %v2334_v60 = vpop.trf.xlu0  ;;  %v2365_v8 = vpop.trf.xlu1 }
 0x444   :  { %v2366_v34 = vpop.trf.xlu1 }
 0x454   :  { %v2525_v38 = vpop.trf.xlu0 }
 0x458   :  { %v2526_v5 = vpop.trf.xlu0 }
 0x45c   :  { %v2461_v61 = vpop.trf.xlu0 }
 0x45d   :  { %2840 = vrot.lane.b32.xlu1 %v2301_v35, %s4077_s6 }
 0x460   :  { %v2462_v33 = vpop.trf.xlu0 }
 0x469   :  { %2842 = vrot.lane.b32.xlu0 %v2302_v17, %s4077_s6 }
 0x484   :  { %v2837_v20 = vpop.permute.xlu1 %2836 }
 0x485   :  { %2931 = vst.msk [vmem:[#allocation2 + $0x30] sm:$0xff] %vm2925_vm1, %v2837_v20 }
 0x486   :  { %2477 = vxpose.xlu1.b32.start.end [1/1] (short) (narrow) %v2161_v48, 16 }
 0x487   :  { %2573 = vxpose.xlu0.b32.start.end [1/1] (short) (narrow) %v2174_v3, 16 }
 0x48c   :  { %v2829_v46 = vpop.permute.xlu0 %2828  ;;  %v5157_v50 = vld [vmem:[#allocation2 + $0x30] sm:$0xff] }
 0x48d   :  { %2926 = vst.msk [vmem:[#allocation2 + $0x10] sm:$0xff] %vm2925_vm1, %v2829_v46  ;;  %v3209_v32 = vrot.slane %v5157_v50, 4  ;;  %v3130_v44 = vrot.slane %v5157_v50, 3  ;;  %v3288_v19 = vrot.slane %v5157_v50, 5 }
 0x490   :  { %v2839_v52 = vpop.permute.xlu0 %2838 }
 0x491   :  { %2932 = vst.msk [vmem:[#allocation2 + $0x38] sm:$0x1] %vm2927_vm13, %v2839_v52 }
 0x494   :  { %v5161_v37 = vld [vmem:[#allocation2 + $0x10] sm:$0xff] }
 0x495   :  { %v3207_v1 = vrot.slane %v5161_v37, 4 }
 0x498   :  { %v2964_v29 = vld [vmem:[#allocation2 + $0x38] sm:$0x1] }
 0x4a8   :  { %2830 = vrot.lane.b32.xlu1 %v2206_v7, %s4077_s6  ;;  %v3370_v7 = vrot.slane %v5157_v50, 6 }
 0x4ac   :  { %2832 = vrot.lane.b32.xlu1 %v2237_v57, %s4077_s6 }
 0x4b0   :  { %2834 = vrot.lane.b32.xlu1 %v2238_v26, %s4077_s6  ;;  %v3449_v26 = vrot.slane %v5157_v50, 7 }
 0x4b4   :  { %2854 = vrot.lane.b32.xlu0 %v2398_v39, %s4077_s6  ;;  %v3128_v39 = vrot.slane %v5161_v37, 3 }
 0x4b7   :  { %v2557_v9 = vpop.trf.xlu1 }
 0x4b8   :  { %2846 = vrot.lane.b32.xlu0 %v2334_v60, %s4077_s6  ;;  %v2653_v28 = vpop.trf.xlu0 }
 0x4bb   :  { %v2558_v49 = vpop.trf.xlu1 }
 0x4bc   :  { %2858 = vrot.lane.b32.xlu0 %v2430_v21, %s4077_s6  ;;  %v2654_v43 = vpop.trf.xlu0 }
 0x4c0   :  { %2850 = vrot.lane.b32.xlu0 %v2366_v34, %s4077_s6 }
 0x4c4   :  { %2870 = vrot.lane.b32.xlu0 %v2526_v5, %s4077_s6  ;;  %v3447_v5 = vrot.slane %v5161_v37, 7 }
 0x4c8   :  { %2862 = vrot.lane.b32.xlu0 %v2462_v33, %s4077_s6 }
 0x4cc   :  { %2874 = vrot.lane.b32.xlu0 %v2558_v49, %s4077_s6 }
 0x4cf   :  { %v2841_v15 = vpop.permute.xlu1 %2840 }
 0x4d0   :  { %2933 = vst.msk [vmem:[#allocation2 + $0x40] sm:$0xff] %vm2925_vm1, %v2841_v15 }
 0x4d7   :  { %v5170_v48 = vld [vmem:[#allocation2 + $0x40] sm:$0xff] }
 0x4d8   :  { %v3131_v45 = vrot.slane %v5170_v48, 3  ;;  %v3289_v57 = vrot.slane %v5170_v48, 5  ;;  %v3210_v3 = vrot.slane %v5170_v48, 4 }
 0x4d9   :  { %2669 = vxpose.xlu1.b32.start.end [1/1] (short) (narrow) %v3949_v16, 16 }
 0x4db   :  { %v2843_v58 = vpop.permute.xlu0 %2842 }
 0x4dc   :  { %2934 = vst.msk [vmem:[#allocation2 + $0x48] sm:$0x1] %vm2927_vm13, %v2843_v58 }
 0x4de   :  { %2605 = vxpose.xlu1.b32.start.end [1/1] (short) (narrow) %v2177_v41, 16 }
 0x500   :  { %2852 = vrot.lane.b32.xlu1 %v2397_v42, %s4077_s6  ;;  %v3371_v42 = vrot.slane %v5170_v48, 6 }
 0x502   :  { %v2493_v56 = vpop.trf.xlu1 }
 0x503   :  { %v2589_v12 = vpop.trf.xlu0 }
 0x504   :  { %2844 = vrot.lane.b32.xlu1 %v2333_v13, %s4077_s6  ;;  %v3450_v13 = vrot.slane %v5170_v48, 7 }
 0x506   :  { %v2494_v51 = vpop.trf.xlu1 }
 0x507   :  { %2866 = vrot.lane.b32.xlu0 %v2494_v51, %s4077_s6  ;;  %v2590_v24 = vpop.trf.xlu0 }
 0x508   :  { %2856 = vrot.lane.b32.xlu1 %v2429_v40, %s4077_s6  ;;  %v3368_v40 = vrot.slane %v5161_v37, 6 }
 0x50b   :  { %2886 = vrot.lane.b32.xlu0 %v2654_v43, %s4077_s6 }
 0x50c   :  { %2848 = vrot.lane.b32.xlu1 %v2365_v8, %s4077_s6 }
 0x50f   :  { %2878 = vrot.lane.b32.xlu0 %v2590_v24, %s4077_s6 }
 0x510   :  { %2868 = vrot.lane.b32.xlu1 %v2525_v38, %s4077_s6 }
 0x514   :  { %2860 = vrot.lane.b32.xlu1 %v2461_v61, %s4077_s6 }
 0x518   :  { %2872 = vrot.lane.b32.xlu1 %v2557_v9, %s4077_s6 }
 0x51a   :  { %v2831_v2 = vpop.permute.xlu1 %2830 }
 0x51c   :  { %2864 = vrot.lane.b32.xlu1 %v2493_v56, %s4077_s6 }
 0x51e   :  { %v2833_v30 = vpop.permute.xlu1 %2832 }
 0x51f   :  { %2929 = vst.msk [vmem:[#allocation2 + $0x20] sm:$0xff] %vm2925_vm1, %v2833_v30 }
 0x520   :  { %2884 = vrot.lane.b32.xlu1 %v2653_v28, %s4077_s6 }
 0x522   :  { %v2835_v47 = vpop.permute.xlu1 %2834 }
 0x523   :  { %2930 = vst.msk [vmem:[#allocation2 + $0x28] sm:$0x1] %vm2927_vm13, %v2835_v47 }
 0x524   :  { %2876 = vrot.lane.b32.xlu1 %v2589_v12, %s4077_s6 }
 0x526   :  { %v2855_v11 = vpop.permute.xlu0 %2854  ;;  %v5190_v60 = vld [vmem:[#allocation2 + $0x20] sm:$0xff] }
 0x527   :  { %2940 = vst.msk [vmem:[#allocation2 + $0x78] sm:$0x1] %vm2927_vm13, %v2855_v11  ;;  %v3129_v8 = vrot.slane %v5190_v60, 3  ;;  %v3287_v20 = vrot.slane %v5190_v60, 5  ;;  %v3369_v15 = vrot.slane %v5190_v60, 6  ;;  %v3208_v28 = vrot.slane %v5190_v60, 4 }
 0x528   :  { %v3448_v12 = vrot.slane %v5190_v60, 7 }
 0x52a   :  { %v2847_v53 = vpop.permute.xlu0 %2846 }
 0x52b   :  { %2936 = vst.msk [vmem:[#allocation2 + $0x58] sm:$0x1] %vm2927_vm13, %v2847_v53  ;;  %v2966_v53 = vld [vmem:[#allocation2 + $0x48] sm:$0x1] }
 0x52e   :  { %v2859_v22 = vpop.permute.xlu0 %2858 }
 0x52f   :  { %2942 = vst.msk [vmem:[#allocation2 + $0x88] sm:$0x1] %vm2927_vm13, %v2859_v22 }
 0x532   :  { %v2851_v27 = vpop.permute.xlu0 %2850 }
 0x533   :  { %2938 = vst.msk [vmem:[#allocation2 + $0x68] sm:$0x1] %vm2927_vm13, %v2851_v27 }
 0x536   :  { %v2871_v55 = vpop.permute.xlu0 %2870 }
 0x537   :  { %2948 = vst.msk [vmem:[#allocation2 + $0xd8] sm:$0x1] %vm2927_vm13, %v2871_v55 }
 0x53a   :  { %v2863_v62 = vpop.permute.xlu0 %2862 }
 0x53e   :  { %v2875_v4 = vpop.permute.xlu0 %2874 }
 0x53f   :  { %2950 = vst.msk [vmem:[#allocation2 + $0xe8] sm:$0x1] %vm2927_vm13, %v2875_v4 }
 0x555   :  { %v2685_v63 = vpop.trf.xlu1 }
 0x556   :  { %2888 = vrot.lane.b32.xlu1 %v2685_v63, %s4077_s6 }
 0x559   :  { %v2686_v18 = vpop.trf.xlu1 }
 0x55a   :  { %2890 = vrot.lane.b32.xlu0 %v2686_v18, %s4077_s6 }
 0x55d   :  { %v2621_v23 = vpop.trf.xlu1 }
 0x55e   :  { %2880 = vrot.lane.b32.xlu1 %v2621_v23, %s4077_s6  ;;  %v2962_v23 = vld [vmem:[#allocation2 + $0x28] sm:$0x1] }
 0x561   :  { %v2622_v0 = vpop.trf.xlu1 }
 0x562   :  { %3227 = vrot.lane.b32.xlu1 %v3209_v32, %s4075_s1  ;;  %2882 = vrot.lane.b32.xlu0 %v2622_v0, %s4077_s6 }
 0x566   :  { %3223 = vrot.lane.b32.xlu1 %v3207_v1, %s4075_s1  ;;  %3149 = vrot.lane.b32.xlu0 %v3130_v44, %s4075_s1 }
 0x56a   :  { %3545 = vrot.lane.b32.xlu1 %v2964_v29, %s4076_s26  ;;  %3305 = vrot.lane.b32.xlu0 %v3288_v19, %s4075_s1 }
 0x56e   :  { %3151 = vrot.lane.b32.xlu1 %v3131_v45, %s4075_s1  ;;  %3389 = vrot.lane.b32.xlu0 %v3370_v7, %s4076_s26  ;;  %v2972_v7 = vld [vmem:[#allocation2 + $0x78] sm:$0x1] }
 0x572   :  { %3307 = vrot.lane.b32.xlu1 %v3289_v57, %s4075_s1  ;;  %3467 = vrot.lane.b32.xlu0 %v3449_v26, %s4076_s26  ;;  %v2853_v35 = vpop.permute.xlu1 %2852 }
 0x573   :  { %2939 = vst.msk [vmem:[#allocation2 + $0x70] sm:$0xff] %vm2925_vm1, %v2853_v35 }
 0x576   :  { %3391 = vrot.lane.b32.xlu1 %v3371_v42, %s4076_s26  ;;  %3145 = vrot.lane.b32.xlu0 %v3128_v39, %s4075_s1  ;;  %v2845_v17 = vpop.permute.xlu1 %2844  ;;  %v4069_v39 = vld [vmem:[#allocation2 + $0xa0] sm:$0xff] }
 0x577   :  { %2935 = vst.msk [vmem:[#allocation2 + $0x50] sm:$0xff] %vm2925_vm1, %v2845_v17 }
 0x579   :  { %v2867_v21 = vpop.permute.xlu0 %2866 }
 0x57a   :  { %3469 = vrot.lane.b32.xlu1 %v3450_v13, %s4076_s26  ;;  %3385 = vrot.lane.b32.xlu0 %v3368_v40, %s4076_s26  ;;  %v2857_v38 = vpop.permute.xlu1 %2856  ;;  %2946 = vst.msk [vmem:[#allocation2 + $0xc8] sm:$0x1] %vm2927_vm13, %v2867_v21  ;;  %v5215_v43 = vld [vmem:[#allocation2 + $0x70] sm:$0xff] }
 0x57b   :  { %2941 = vst.msk [vmem:[#allocation2 + $0x80] sm:$0xff] %vm2925_vm1, %v2857_v38  ;;  %v3033_v41 = vrot.slane %v5215_v43, 1  ;;  %v3082_v24 = vrot.slane %v5215_v43, 2  ;;  %v3213_v55 = vrot.slane %v5215_v43, 4  ;;  %v3134_v0 = vrot.slane %v5215_v43, 3 }
 0x57c   :  { %v3292_v45 = vrot.slane %v5215_v43, 5  ;;  %v3374_v13 = vrot.slane %v5215_v43, 6 }
 0x57d   :  { %v2887_v34 = vpop.permute.xlu0 %2886 }
 0x57e   :  { %3147 = vrot.lane.b32.xlu1 %v3129_v8, %s4075_s1  ;;  %3463 = vrot.lane.b32.xlu0 %v3447_v5, %s4076_s26  ;;  %v2849_v61 = vpop.permute.xlu1 %2848  ;;  %2956 = vst.msk [vmem:[#allocation2 + $0x118] sm:$0x1] %vm2927_vm13, %v2887_v34  ;;  %v5204_v33 = vld [vmem:[#allocation2 + $0x50] sm:$0xff] }
 0x57f   :  { %2937 = vst.msk [vmem:[#allocation2 + $0x60] sm:$0xff] %vm2925_vm1, %v2849_v61  ;;  %v3031_v16 = vrot.slane %v5204_v33, 1  ;;  %v3211_v1 = vrot.slane %v5204_v33, 4  ;;  %v3453_v61 = vrot.slane %v5215_v43, 7 }
 0x581   :  { %v2879_v46 = vpop.permute.xlu0 %2878  ;;  %v3063_v2 = vadd.f32 %v3031_v16, %v5170_v48  ;;  %v3132_v16 = vrot.slane %v5204_v33, 3 }
 0x582   :  { %3303 = vrot.lane.b32.xlu1 %v3287_v20, %s4075_s1  ;;  %3229 = vrot.lane.b32.xlu0 %v3210_v3, %s4075_s1  ;;  %v2869_v52 = vpop.permute.xlu1 %2868  ;;  %v5208_v9 = vld [vmem:[#allocation2 + $0x80] sm:$0xff]  ;;  %2952 = vst.msk [vmem:[#allocation2 + $0xf8] sm:$0x1] %vm2927_vm13, %v2879_v46 }
 0x583   :  { %2947 = vst.msk [vmem:[#allocation2 + $0xd0] sm:$0xff] %vm2925_vm1, %v2869_v52  ;;  %v3034_v49 = vrot.slane %v5208_v9, 1  ;;  %v3083_v11 = vrot.slane %v5208_v9, 2  ;;  %v3293_v57 = vrot.slane %v5208_v9, 5  ;;  %v3454_v5 = vrot.slane %v5208_v9, 7 }
 0x585   :  { %v5219_v58 = vadd.f32 %v3034_v49, %v5215_v43 }
 0x586   :  { %3387 = vrot.lane.b32.xlu1 %v3369_v15, %s4076_s26  ;;  %3225 = vrot.lane.b32.xlu0 %v3208_v28, %s4075_s1  ;;  %v2861_v56 = vpop.permute.xlu1 %2860  ;;  %v5224_v51 = vld [vmem:[#allocation2 + $0x60] sm:$0xff]  ;;  %v2968_v15 = vld [vmem:[#allocation2 + $0x58] sm:$0x1] }
 0x587   :  { %2943 = vst.msk [vmem:[#allocation2 + $0xb0] sm:$0xff] %vm2925_vm1, %v2861_v56  ;;  %v3081_v30 = vrot.slane %v5224_v51, 2  ;;  %v3032_v47 = vrot.slane %v5224_v51, 1  ;;  %v3065_v22 = vadd.f32 %v3033_v41, %v5224_v51 }
 0x589   :  { %v5237_v62 = vadd.f32 %v3081_v30, %v3063_v2  ;;  %v3064_v4 = vadd.f32 %v3032_v47, %v5204_v33  ;;  %v5243_v18 = vadd.f32 %v3083_v11, %v3065_v22  ;;  %v3290_v11 = vrot.slane %v5204_v33, 5 }
 0x58a   :  { %3465 = vrot.lane.b32.xlu1 %v3448_v12, %s4076_s26  ;;  %3547 = vrot.lane.b32.xlu0 %v2966_v53, %s4076_s26  ;;  %v2873_v27 = vpop.permute.xlu1 %2872  ;;  %v5267_v21 = vld [vmem:[#allocation2 + $0xd0] sm:$0xff]  ;;  %v3372_v53 = vrot.slane %v5204_v33, 6  ;;  %v3291_v22 = vrot.slane %v5224_v51, 5 }
 0x58b   :  { %2949 = vst.msk [vmem:[#allocation2 + $0xe0] sm:$0xff] %vm2925_vm1, %v2873_v27  ;;  %v5241_v63 = vadd.f32 %v3082_v24, %v3064_v4  ;;  %v3086_v3 = vrot.slane %v5267_v21, 2  ;;  %v3037_v52 = vrot.slane %v5267_v21, 1  ;;  %v3133_v24 = vrot.slane %v5224_v51, 3 }
 0x58c   :  { %v3451_v27 = vrot.slane %v5204_v33, 7  ;;  %v3214_v4 = vrot.slane %v5208_v9, 4  ;;  %v2970_v9 = vld [vmem:[#allocation2 + $0x68] sm:$0x1] }
 0x58e   :  { %3543 = vrot.lane.b32.xlu0 %v2962_v23, %s4076_s26  ;;  %3235 = vrot.lane.b32.xlu1 %v3213_v55, %s4075_s1  ;;  %v2865_v32 = vpop.permute.xlu1 %2864  ;;  %v5250_v44 = vld [vmem:[#allocation2 + $0xb0] sm:$0xff]  ;;  %v3373_v55 = vrot.slane %v5224_v51, 6  ;;  %v3452_v23 = vrot.slane %v5224_v51, 7 }
 0x58f   :  { %2945 = vst.msk [vmem:[#allocation2 + $0xc0] sm:$0xff] %vm2925_vm1, %v2865_v32  ;;  %v3035_v29 = vrot.slane %v5250_v44, 1  ;;  %v3212_v32 = vrot.slane %v5224_v51, 4  ;;  %v3138_v51 = vrot.slane %v5267_v21, 3 }
 0x591   :  { %v3067_v17 = vadd.f32 %v4069_v39, %v3035_v29  ;;  %v2982_v29 = vld [vmem:[#allocation2 + $0xd8] sm:$0x1]  ;;  %v3378_v39 = vrot.slane %v5267_v21, 6 }
 0x592   :  { %3157 = vrot.lane.b32.xlu0 %v3134_v0, %s4075_s1  ;;  %3231 = vrot.lane.b32.xlu1 %v3211_v1, %s4075_s1  ;;  %v2885_v19 = vpop.permute.xlu1 %2884  ;;  %v5260_v35 = vld [vmem:[#allocation2 + $0xe0] sm:$0xff]  ;;  %v3217_v0 = vrot.slane %v5267_v21, 4  ;;  %v3215_v1 = vrot.slane %v5250_v44, 4 }
 0x593   :  { %2955 = vst.msk [vmem:[#allocation2 + $0x110] sm:$0xff] %vm2925_vm1, %v2885_v19  ;;  %v3038_v38 = vrot.slane %v5260_v35, 1  ;;  %v3087_v28 = vrot.slane %v5260_v35, 2  ;;  %v2974_v19 = vld [vmem:[#allocation2 + $0x88] sm:$0x1] }
 0x595   :  { %v3070_v20 = vadd.f32 %v3038_v38, %v5267_v21  ;;  %v3458_v38 = vrot.slane %v5260_v35, 7 }
 0x596   :  { %3313 = vrot.lane.b32.xlu0 %v3292_v45, %s4075_s1  ;;  %3553 = vrot.lane.b32.xlu1 %v2972_v7, %s4076_s26  ;;  %v2877_v26 = vpop.permute.xlu1 %2876  ;;  %v5262_v42 = vld [vmem:[#allocation2 + $0xc0] sm:$0xff]  ;;  %v3139_v45 = vrot.slane %v5260_v35, 3  ;;  %v3296_v7 = vrot.slane %v5267_v21, 5 }
 0x597   :  { %2951 = vst.msk [vmem:[#allocation2 + $0xf0] sm:$0xff] %vm2925_vm1, %v2877_v26  ;;  %v3085_v40 = vrot.slane %v5262_v42, 2  ;;  %v3036_v8 = vrot.slane %v5262_v42, 1  ;;  %v3069_v12 = vadd.f32 %v3037_v52, %v5262_v42 }
 0x599   :  { %v5274_v34 = vadd.f32 %v3085_v40, %v3067_v17  ;;  %v3068_v46 = vadd.f32 %v3036_v8, %v5250_v44  ;;  %v5300_v47 = vadd.f32 %v3087_v28, %v3069_v12  ;;  %v3379_v17 = vrot.slane %v5260_v35, 6 }
 0x59a   :  { %3397 = vrot.lane.b32.xlu0 %v3374_v13, %s4076_s26  ;;  %3315 = vrot.lane.b32.xlu1 %v3293_v57, %s4075_s1  ;;  %v3297_v57 = vrot.slane %v5260_v35, 5  ;;  %v3457_v40 = vrot.slane %v5267_v21, 7  ;;  %v5352_v21 = vld [vmem:[#allocation2 + $0x110] sm:$0xff]  ;;  %v3376_v28 = vrot.slane %v5250_v44, 6  ;;  %v3455_v12 = vrot.slane %v5250_v44, 7 }
 0x59b   :  { %v5289_v56 = vadd.f32 %v3086_v3, %v3068_v46 }
 0x59e   :  { %3475 = vrot.lane.b32.xlu0 %v3453_v61, %s4076_s26  ;;  %3477 = vrot.lane.b32.xlu1 %v3454_v5, %s4076_s26  ;;  %v5283_v49 = vld [vmem:[#allocation2 + $0xf0] sm:$0xff]  ;;  %v3136_v5 = vrot.slane %v5250_v44, 3  ;;  %v3137_v61 = vrot.slane %v5262_v42, 3 }
 0x59f   :  { %v3088_v43 = vrot.slane %v5283_v49, 2  ;;  %v3039_v41 = vrot.slane %v5283_v49, 1 }
 0x5a1   :  { %v5295_v2 = vadd.f32 %v3088_v43, %v3070_v20  ;;  %v5298_v30 = vadd.f32 %v3039_v41, %v5260_v35 }
 0x5a2   :  { %3153 = vrot.lane.b32.xlu0 %v3132_v16, %s4075_s1  ;;  %3549 = vrot.lane.b32.xlu1 %v2968_v15, %s4076_s26  ;;  %v3295_v16 = vrot.slane %v5262_v42, 5 }
 0x5a6   :  { %3309 = vrot.lane.b32.xlu0 %v3290_v11, %s4075_s1  ;;  %3155 = vrot.lane.b32.xlu1 %v3133_v24, %s4075_s1  ;;  %v3377_v24 = vrot.slane %v5262_v42, 6 }
 0x5aa   :  { %3393 = vrot.lane.b32.xlu0 %v3372_v53, %s4076_s26  ;;  %3311 = vrot.lane.b32.xlu1 %v3291_v22, %s4075_s1  ;;  %v3041_v53 = vrot.slane %v5352_v21, 1 }
 0x5ae   :  { %3471 = vrot.lane.b32.xlu0 %v3451_v27, %s4076_s26  ;;  %3395 = vrot.lane.b32.xlu1 %v3373_v55, %s4076_s26 }
 0x5b2   :  { %3237 = vrot.lane.b32.xlu0 %v3214_v4, %s4075_s1  ;;  %3473 = vrot.lane.b32.xlu1 %v3452_v23, %s4076_s26 }
 0x5b6   :  { %3233 = vrot.lane.b32.xlu0 %v3212_v32, %s4075_s1  ;;  %3243 = vrot.lane.b32.xlu1 %v3217_v0, %s4075_s1  ;;  %v3218_v32 = vrot.slane %v5260_v35, 4  ;;  %v3456_v0 = vrot.slane %v5262_v42, 7 }
 0x5ba   :  { %3555 = vrot.lane.b32.xlu0 %v2974_v19, %s4076_s26  ;;  %3239 = vrot.lane.b32.xlu1 %v3215_v1, %s4075_s1  ;;  %v3090_v19 = vrot.slane %v5352_v21, 2 }
 0x5be   :  { %3551 = vrot.lane.b32.xlu0 %v2970_v9, %s4076_s26  ;;  %3561 = vrot.lane.b32.xlu1 %v2982_v29, %s4076_s26 }
 0x5c2   :  { %3165 = vrot.lane.b32.xlu0 %v3138_v51, %s4075_s1  ;;  %3167 = vrot.lane.b32.xlu1 %v3139_v45, %s4075_s1 }
 0x5c6   :  { %3321 = vrot.lane.b32.xlu0 %v3296_v7, %s4075_s1  ;;  %3323 = vrot.lane.b32.xlu1 %v3297_v57, %s4075_s1  ;;  %v3216_v7 = vrot.slane %v5262_v42, 4 }
 0x5c8   :  { %v2889_v26 = vpop.permute.xlu1 %2888 }
 0x5c9   :  { %2957 = vst.msk [vmem:[#allocation2 + $0x120] sm:$0xff] %vm2925_vm1, %v2889_v26 }
 0x5ca   :  { %3405 = vrot.lane.b32.xlu0 %v3378_v39, %s4076_s26  ;;  %3407 = vrot.lane.b32.xlu1 %v3379_v17, %s4076_s26  ;;  %v3382_v17 = vrot.slane %v5352_v21, 6 }
 0x5cc   :  { %v2891_v13 = vpop.permute.xlu0 %2890 }
 0x5cd   :  { %2958 = vst.msk [vmem:[#allocation2 + $0x128] sm:$0x1] %vm2927_vm13, %v2891_v13  ;;  %v2984_v13 = vld [vmem:[#allocation2 + $0xe8] sm:$0x1] }
 0x5ce   :  { %3483 = vrot.lane.b32.xlu0 %v3457_v40, %s4076_s26  ;;  %3485 = vrot.lane.b32.xlu1 %v3458_v38, %s4076_s26  ;;  %v3219_v38 = vrot.slane %v5283_v49, 4 }
 0x5d0   :  { %v2881_v8 = vpop.permute.xlu1 %2880  ;;  %v5346_v20 = vld [vmem:[#allocation2 + $0x120] sm:$0xff] }
 0x5d1   :  { %2953 = vst.msk [vmem:[#allocation2 + $0x100] sm:$0xff] %vm2925_vm1, %v2881_v8  ;;  %v3042_v3 = vrot.slane %v5346_v20, 1  ;;  %v3091_v4 = vrot.slane %v5346_v20, 2  ;;  %v3027_v8 = vrot.slane %v5161_v37, 1 }
 0x5d2   :  { %3161 = vrot.lane.b32.xlu0 %v3136_v5, %s4075_s1  ;;  %3163 = vrot.lane.b32.xlu1 %v3137_v61, %s4075_s1  ;;  %v3029_v5 = vrot.slane %v5157_v50, 1  ;;  %v3077_v61 = vrot.slane %v5190_v60, 2 }
 0x5d3   :  { %v5355_v46 = vadd.f32 %v3042_v3, %v5352_v21 }
 0x5d4   :  { %v2883_v52 = vpop.permute.xlu0 %2882  ;;  %v5357_v15 = vpop.permute.xlu1 %3227  ;;  %v3061_v3 = vadd.f32 %v3029_v5, %v5190_v60 }
 0x5d5   :  { %2954 = vst.msk [vmem:[#allocation2 + $0x108] sm:$0x1] %vm2927_vm13, %v2883_v52 }
 0x5d6   :  { %3401 = vrot.lane.b32.xlu0 %v3376_v28, %s4076_s26  ;;  %3319 = vrot.lane.b32.xlu1 %v3295_v16, %s4075_s1  ;;  %v3300_v16 = vrot.slane %v5352_v21, 5 }
 0x5d8   :  { %v5364_v43 = vpop.permute.xlu0 %3149  ;;  %v5366_v41 = vpop.permute.xlu1 %3223  ;;  %v5370_v11 = vld [vmem:[#allocation2 + $0x100] sm:$0xff] }
 0x5d9   :  { %v3089_v22 = vrot.slane %v5370_v11, 2  ;;  %v3040_v27 = vrot.slane %v5370_v11, 1  ;;  %v3073_v55 = vadd.f32 %v3041_v53, %v5370_v11  ;;  %v3028_v53 = vrot.slane %v5190_v60, 1 }
 0x5da   :  { %3479 = vrot.lane.b32.xlu0 %v3455_v12, %s4076_s26  ;;  %3403 = vrot.lane.b32.xlu1 %v3377_v24, %s4076_s26  ;;  %v4070_v12 = vld [vmem:[#allocation2] sm:$0xff] }
 0x5db   :  { %v5386_v1 = vadd.f32 %v3089_v22, %v5298_v30  ;;  %v3072_v9 = vadd.f32 %v3040_v27, %v5283_v49  ;;  %v5390_v29 = vadd.f32 %v3091_v4, %v3073_v55  ;;  %v3221_v30 = vrot.slane %v5352_v21, 4  ;;  %v2990_v22 = vld [vmem:[#allocation2 + $0x118] sm:$0x1] }
 0x5dc   :  { %v5379_v23 = vpop.permute.xlu0 %3305  ;;  %v5381_v44 = vpop.permute.xlu1 %3545  ;;  %v3059_v24 = vadd.f32 %v4070_v12, %v3027_v8  ;;  %v3079_v27 = vrot.slane %v5170_v48, 2 }
 0x5dd   :  { %v5394_v51 = vadd.f32 %v3090_v19, %v3072_v9  ;;  %v3461_v19 = vrot.slane %v5352_v21, 7  ;;  %v3301_v9 = vrot.slane %v5346_v20, 5 }
 0x5de   :  { %3245 = vrot.lane.b32.xlu0 %v3218_v32, %s4075_s1  ;;  %3481 = vrot.lane.b32.xlu1 %v3456_v0, %s4076_s26  ;;  %v3109_v55 = vadd.f32 %v3077_v61, %v3059_v24  ;;  %v3111_v4 = vadd.f32 %v3079_v27, %v3061_v3  ;;  %v2980_v61 = vld [vmem:[#allocation2 + $0xc8] sm:$0x1] }
 0x5e0   :  { %v5396_v45 = vpop.permute.xlu0 %3389  ;;  %v3152_v35 = vpop.permute.xlu1 %3151  ;;  %v3191_v60 = vadd.f32 %v4986_v6, %v3109_v55  ;;  %v2986_v55 = vld [vmem:[#allocation2 + $0xf8] sm:$0x1] }
 0x5e1   :  { %v5401_v57 = vadd.f32 %v3152_v35, %v5237_v62  ;;  %v3142_v62 = vrot.slane %v5352_v21, 3  ;;  %v3613_v35 = vlaneseq  ;;  %v3462_v21 = vrot.slane %v5346_v20, 7 }
 0x5e2   :  { %3241 = vrot.lane.b32.xlu0 %v3216_v7, %s4075_s1  ;;  %3251 = vrot.lane.b32.xlu1 %v3221_v30, %s4075_s1  ;;  %v3060_v7 = vadd.f32 %v3028_v53, %v5161_v37  ;;  %v3271_v5 = vadd.f32 %v5366_v41, %v3191_v60 }
 0x5e3   :  { %v3614_v8 = vshrl.u32 %v3613_v35, 7 }
 0x5e4   :  { %v5405_v26 = vpop.permute.xlu0 %3467  ;;  %v3308_v39 = vpop.permute.xlu1 %3307 }
 0x5e5   :  { %v3615_v53 = vsub.s32 0, %v3614_v8 }
 0x5e6   :  { %3563 = vrot.lane.b32.xlu0 %v2984_v13, %s4076_s26  ;;  %3413 = vrot.lane.b32.xlu1 %v3382_v17, %s4076_s26  ;;  %v3078_v17 = vrot.slane %v5157_v50, 2 }
 0x5e7   :  { %v5450_v35 = vrot.slane %v5110_v14, %v3615_v53  ;;  %v3222_v53 = vrot.slane %v5346_v20, 4 }
 0x5e8   :  { %v3146_v42 = vpop.permute.xlu0 %3145  ;;  %v5410_v40 = vpop.permute.xlu1 %3391  ;;  %v3110_v37 = vadd.f32 %v3078_v17, %v3060_v7 }
 0x5ea   :  { %3173 = vrot.lane.b32.xlu0 %v3142_v62, %s4075_s1  ;;  %3247 = vrot.lane.b32.xlu1 %v3219_v38, %s4075_s1  ;;  %v3192_v3 = vadd.f32 %v3146_v42, %v3110_v37 }
 0x5ec   :  { %v3386_v52 = vpop.permute.xlu0 %3385  ;;  %v5420_v28 = vpop.permute.xlu1 %3469 }
 0x5ee   :  { %3329 = vrot.lane.b32.xlu0 %v3300_v16, %s4075_s1  ;;  %3569 = vrot.lane.b32.xlu1 %v2990_v22, %s4076_s26 }
 0x5f0   :  { %v3464_v32 = vpop.permute.xlu0 %3463  ;;  %v3148_v0 = vpop.permute.xlu1 %3147 }
 0x5f1   :  { %v3193_v30 = vadd.f32 %v3148_v0, %v3111_v4 }
 0x5f2   :  { %3491 = vrot.lane.b32.xlu0 %v3461_v19, %s4076_s26  ;;  %3331 = vrot.lane.b32.xlu1 %v3301_v9, %s4075_s1  ;;  %v3298_v19 = vrot.slane %v5283_v49, 5  ;;  %v3141_v9 = vrot.slane %v5370_v11, 3 }
 0x5f3   :  { %v3273_v13 = vadd.f32 %v5357_v15, %v3193_v30  ;;  %v3140_v15 = vrot.slane %v5283_v49, 3 }
 0x5f4   :  { %v5435_v62 = vpop.permute.xlu0 %3229  ;;  %v3304_v38 = vpop.permute.xlu1 %3303 }
 0x5f5   :  { %v3351_v6 = vadd.f32 %v3304_v38, %v3271_v5  ;;  %v3353_v16 = vadd.f32 %v3308_v39, %v3273_v13  ;;  %v3380_v13 = vrot.slane %v5283_v49, 6  ;;  %v3299_v38 = vrot.slane %v5370_v11, 5 }
 0x5f6   :  { %3559 = vrot.lane.b32.xlu0 %v2980_v61, %s4076_s26  ;;  %3493 = vrot.lane.b32.xlu1 %v3462_v21, %s4076_s26 }
 0x5f7   :  { %v3431_v41 = vadd.f32 %v4991_v25, %v3351_v6 }
 0x5f8   :  { %v3226_v12 = vpop.permute.xlu0 %3225  ;;  %v3388_v24 = vpop.permute.xlu1 %3387 }
 0x5f9   :  { %v3272_v22 = vadd.f32 %v3226_v12, %v3192_v3  ;;  %v3433_v27 = vadd.f32 %v3388_v24, %v3353_v16  ;;  %v3511_v60 = vadd.f32 %v3464_v32, %v3431_v41  ;;  %v3459_v3 = vrot.slane %v5283_v49, 7 }
 0x5fa   :  { %3169 = vrot.lane.b32.xlu0 %v3140_v15, %s4075_s1  ;;  %3565 = vrot.lane.b32.xlu1 %v2986_v55, %s4076_s26 }
 0x5fb   :  { %v3352_v4 = vadd.f32 %v5379_v23, %v3272_v22  ;;  %v3513_v42 = vadd.f32 %v5405_v26, %v3433_v27  ;;  %v3460_v22 = vrot.slane %v5370_v11, 7  ;;  %v2994_v27 = vld [vmem:[#allocation2 + $0x138] sm:$0x1] }
 0x5fc   :  { %v3548_v0 = vpop.permute.xlu0 %3547  ;;  %v3466_v39 = vpop.permute.xlu1 %3465 }
 0x5fd   :  { %v3593_v7 = vadd.f32 %v3548_v0, %v3513_v42  ;;  %v3432_v30 = vadd.f32 %v3386_v52, %v3352_v4  ;;  %v3220_v4 = vrot.slane %v5370_v11, 4  ;;  %v3030_v42 = vrot.slane %v5170_v48, 1 }
 0x5fe   :  { %3325 = vrot.lane.b32.xlu0 %v3298_v19, %s4075_s1  ;;  %3171 = vrot.lane.b32.xlu1 %v3141_v9, %s4075_s1  ;;  %v3080_v0 = vrot.slane %v5204_v33, 2  ;;  %v2988_v9 = vld [vmem:[#allocation2 + $0x108] sm:$0x1] }
 0x5ff   :  { %v3619_v25 = vadd.f32 %v5450_v35, %v3593_v7  ;;  %v3512_v23 = vadd.f32 %v3466_v39, %v3432_v30  ;;  %v3062_v19 = vadd.f32 %v3030_v42, %v5157_v50 }
 0x600   :  { %v3544_v26 = vpop.permute.xlu0 %3543  ;;  %v5455_v17 = vpop.permute.xlu1 %3235 }
 0x601   :  { %vm3635_vm15 = vcmp.ge.f32.partialorder %v3619_v25, 0.0  ;;  %v3651_v14 = vmul.f32 0.01, %v3619_v25  ;;  %v3592_v52 = vadd.f32 %v5381_v44, %v3512_v23  ;;  %v3591_v21 = vadd.f32 %v3544_v26, %v3511_v60  ;;  %v2992_v23 = vld [vmem:[#allocation2 + $0x128] sm:$0x1] }
 0x602   :  { %3409 = vrot.lane.b32.xlu0 %v3380_v13, %s4076_s26  ;;  %3327 = vrot.lane.b32.xlu1 %v3299_v38, %s4075_s1  ;;  %v3381_v44 = vrot.slane %v5370_v11, 6  ;;  %v3112_v7 = vadd.f32 %v3080_v0, %v3062_v19 }
 0x603   :  { %v3667_v8 = vsel %vm3635_vm15, %v3619_v25, %v3651_v14  ;;  %v3618_v32 = vadd.f32 %v5450_v35, %v3592_v52  ;;  %v3617_v5 = vadd.f32 %v5450_v35, %v3591_v21  ;;  %v4071_v52 = vld [vmem:[#allocation2 + $0x90] sm:$0xff] }
 0x604   :  { %3684 = vst.msk [vmem:[%s5619_s9 + $0x2] sm:$0x1] %vm3681_vm14, %v3667_v8  ;;  %v3158_v37 = vpop.permute.xlu0 %3157  ;;  %v3232_v61 = vpop.permute.xlu1 %3231  ;;  %v3194_v11 = vadd.f32 %v5364_v43, %v3112_v7  ;;  %v3084_v21 = vrot.slane %v4071_v52, 2 }
 0x605   :  { %vm3634_vm0 = vcmp.ge.f32.partialorder %v3618_v32, 0.0  ;;  %v3650_v6 = vmul.f32 0.01, %v3618_v32  ;;  %vm3633_vm2 = vcmp.ge.f32.partialorder %v3617_v5, 0.0  ;;  %v3649_v16 = vmul.f32 0.01, %v3617_v5 }
 0x606   :  { %3487 = vrot.lane.b32.xlu0 %v3459_v3, %s4076_s26  ;;  %3411 = vrot.lane.b32.xlu1 %v3381_v44, %s4076_s26  ;;  %v3274_v48 = vadd.f32 %v5435_v62, %v3194_v11  ;;  %v3275_v13 = vadd.f32 %v3232_v61, %v5401_v57 }
 0x607   :  { %v3666_v12 = vsel %vm3634_vm0, %v3618_v32, %v3650_v6  ;;  %v3665_v24 = vsel %vm3633_vm2, %v3617_v5, %v3649_v16  ;;  %v3116_v6 = vadd.f32 %v3084_v21, %v5219_v58 }
 0x608   :  { %3683 = vst.msk [vmem:[%s5619_s9 + $0x1] sm:$0x1] %vm3681_vm14, %v3666_v12  ;;  %3682 = vst.msk [vmem:[%s5619_s9] sm:$0x1] %vm3681_vm14, %v3665_v24  ;;  %v3314_v49 = vpop.permute.xlu0 %3313  ;;  %v5480_v15 = vpop.permute.xlu1 %3553 }
 0x609   :  { %v3198_v61 = vadd.f32 %v3158_v37, %v3116_v6 }
 0x60a   :  { %3253 = vrot.lane.b32.xlu0 %v3222_v53, %s4075_s1  ;;  %3489 = vrot.lane.b32.xlu1 %v3460_v22, %s4076_s26 }
 0x60c   :  { %v3398_v55 = vpop.permute.xlu0 %3397  ;;  %v3316_v41 = vpop.permute.xlu1 %3315 }
 0x60e   :  { %3249 = vrot.lane.b32.xlu0 %v3220_v4, %s4075_s1  ;;  %3573 = vrot.lane.b32.xlu1 %v2994_v27, %s4076_s26 }
 0x610   :  { %v3476_v20 = vpop.permute.xlu0 %3475  ;;  %v3478_v39 = vpop.permute.xlu1 %3477 }
 0x612   :  { %3567 = vrot.lane.b32.xlu0 %v2988_v9, %s4076_s26 }
 0x614   :  { %v3154_v30 = vpop.permute.xlu0 %3153  ;;  %v3550_v25 = vpop.permute.xlu1 %3549 }
 0x616   :  { %3571 = vrot.lane.b32.xlu0 %v2992_v23, %s4076_s26 }
 0x618   :  { %v3310_v60 = vpop.permute.xlu0 %3309  ;;  %v3156_v26 = vpop.permute.xlu1 %3155 }
 0x619   :  { %v3354_v33 = vadd.f32 %v3310_v60, %v3274_v48  ;;  %v3197_v43 = vadd.f32 %v3156_v26, %v5243_v18 }
 0x61b   :  { %v3434_v50 = vadd.f32 %v5396_v45, %v3354_v33  ;;  %v3277_v45 = vadd.f32 %v5455_v17, %v3197_v43 }
 0x61c   :  { %v3394_v38 = vpop.permute.xlu0 %3393  ;;  %v3312_v14 = vpop.permute.xlu1 %3311 }
 0x61d   :  { %v3514_v8 = vadd.f32 %v5420_v28, %v3434_v50  ;;  %v3355_v32 = vadd.f32 %v3312_v14, %v3275_v13  ;;  %v3357_v53 = vadd.f32 %v3316_v41, %v3277_v45 }
 0x61f   :  { %v3594_v5 = vadd.f32 %v3550_v25, %v3514_v8  ;;  %v3435_v3 = vadd.f32 %v5410_v40, %v3355_v32  ;;  %v3196_v40 = vadd.f32 %v3154_v30, %v5241_v63 }
 0x620   :  { %v3472_v62 = vpop.permute.xlu0 %3471  ;;  %v3396_v44 = vpop.permute.xlu1 %3395 }
 0x621   :  { %v3620_v57 = vadd.f32 %v5450_v35, %v3594_v5  ;;  %v3437_v58 = vadd.f32 %v3396_v44, %v3357_v53 }
 0x623   :  { %vm3636_vm3 = vcmp.ge.f32.partialorder %v3620_v57, 0.0  ;;  %v3652_v16 = vmul.f32 0.01, %v3620_v57  ;;  %v3517_v19 = vadd.f32 %v3476_v20, %v3437_v58 }
 0x624   :  { %v3238_v12 = vpop.permute.xlu0 %3237  ;;  %v3474_v24 = vpop.permute.xlu1 %3473 }
 0x625   :  { %v3668_v28 = vsel %vm3636_vm3, %v3620_v57, %v3652_v16  ;;  %v3278_v18 = vadd.f32 %v3238_v12, %v3198_v61 }
 0x626   :  { %3685 = vst.msk [vmem:[%s5619_s9 + $0x3] sm:$0x1] %vm3681_vm14, %v3668_v28 }
 0x627   :  { %v3358_v22 = vadd.f32 %v5106_v59, %v3278_v18  ;;  %v3515_v59 = vadd.f32 %v3472_v62, %v3435_v3 }
 0x628   :  { %v3234_v27 = vpop.permute.xlu0 %3233  ;;  %v3244_v17 = vpop.permute.xlu1 %3243 }
 0x629   :  { %v3438_v37 = vadd.f32 %v3398_v55, %v3358_v22  ;;  %v3276_v4 = vadd.f32 %v3234_v27, %v3196_v40 }
 0x62b   :  { %v3518_v42 = vadd.f32 %v3478_v39, %v3438_v37  ;;  %v3356_v0 = vadd.f32 %v3314_v49, %v3276_v4 }
 0x62c   :  { %v3556_v9 = vpop.permute.xlu0 %3555  ;;  %v5510_v41 = vpop.permute.xlu1 %3239 }
 0x62d   :  { %v3598_v7 = vadd.f32 %v5115_v54, %v3518_v42  ;;  %v3436_v25 = vadd.f32 %v3394_v38, %v3356_v0  ;;  %v3597_v11 = vadd.f32 %v3556_v9, %v3517_v19 }
 0x62f   :  { %v3624_v23 = vadd.f32 %v5450_v35, %v3598_v7  ;;  %v3516_v63 = vadd.f32 %v3474_v24, %v3436_v25  ;;  %v3623_v30 = vadd.f32 %v5450_v35, %v3597_v11 }
 0x630   :  { %v3552_v48 = vpop.permute.xlu0 %3551  ;;  %v3562_v60 = vpop.permute.xlu1 %3561 }
 0x631   :  { %vm3640_vm4 = vcmp.ge.f32.partialorder %v3624_v23, 0.0  ;;  %v3656_v55 = vmul.f32 0.01, %v3624_v23  ;;  %v3596_v49 = vadd.f32 %v5480_v15, %v3516_v63  ;;  %vm3639_vm5 = vcmp.ge.f32.partialorder %v3623_v30, 0.0 }
 0x632   :  { %v3655_v20 = vmul.f32 0.01, %v3623_v30  ;;  %v3595_v39 = vadd.f32 %v3552_v48, %v3515_v59 }
 0x633   :  { %v3672_v26 = vsel %vm3640_vm4, %v3624_v23, %v3656_v55  ;;  %v3622_v54 = vadd.f32 %v5450_v35, %v3596_v49 }
 0x634   :  { %3689 = vst.msk [vmem:[%s5619_s9 + $0x7] sm:$0x1] %vm3681_vm14, %v3672_v26  ;;  %v3671_v33 = vsel %vm3639_vm5, %v3623_v30, %v3655_v20  ;;  %v3621_v13 = vadd.f32 %v5450_v35, %v3595_v39  ;;  %v5522_v50 = vpop.permute.xlu0 %3165  ;;  %v3168_v38 = vpop.permute.xlu1 %3167 }
 0x635   :  { %vm3638_vm6 = vcmp.ge.f32.partialorder %v3622_v54, 0.0  ;;  %v3654_v14 = vmul.f32 0.01, %v3622_v54  ;;  %3688 = vst.msk [vmem:[%s5619_s9 + $0x6] sm:$0x1] %vm3681_vm14, %v3671_v33  ;;  %v5529_v15 = vadd.f32 %v3168_v38, %v5386_v1 }
 0x636   :  { %vm3637_vm7 = vcmp.ge.f32.partialorder %v3621_v13, 0.0  ;;  %v3653_v52 = vmul.f32 0.01, %v3621_v13 }
 0x637   :  { %v3670_v21 = vsel %vm3638_vm6, %v3622_v54, %v3654_v14 }
 0x638   :  { %3687 = vst.msk [vmem:[%s5619_s9 + $0x5] sm:$0x1] %vm3681_vm14, %v3670_v21  ;;  %v3669_v8 = vsel %vm3637_vm7, %v3621_v13, %v3653_v52  ;;  %v3322_v43 = vpop.permute.xlu0 %3321  ;;  %v3324_v32 = vpop.permute.xlu1 %3323  ;;  %v3202_v21 = vadd.f32 %v5522_v50, %v5295_v2 }
 0x639   :  { %3686 = vst.msk [vmem:[%s5619_s9 + $0x4] sm:$0x1] %vm3681_vm14, %v3669_v8 }
 0x63c   :  { %v5539_v5 = vpop.permute.xlu0 %3405  ;;  %v5541_v1 = vpop.permute.xlu1 %3407 }
 0x640   :  { %v3484_v3 = vpop.permute.xlu0 %3483  ;;  %v5543_v62 = vpop.permute.xlu1 %3485 }
 0x644   :  { %v3162_v44 = vpop.permute.xlu0 %3161  ;;  %v3164_v6 = vpop.permute.xlu1 %3163 }
 0x645   :  { %v3201_v61 = vadd.f32 %v3164_v6, %v5300_v47  ;;  %v3200_v40 = vadd.f32 %v3162_v44, %v5289_v56 }
 0x647   :  { %v3281_v24 = vadd.f32 %v3244_v17, %v3201_v61  ;;  %v3199_v17 = vadd.f32 %v4989_v31, %v5274_v34  ;;  %v4072_v61 = vld [vmem:[#allocation2 + $0x130] sm:$0xff] }
 0x648   :  { %v3402_v57 = vpop.permute.xlu0 %3401  ;;  %v3320_v45 = vpop.permute.xlu1 %3319 }
 0x649   :  { %v3361_v18 = vadd.f32 %v3324_v32, %v3281_v24  ;;  %v3279_v23 = vadd.f32 %v5510_v41, %v3199_v17 }
 0x64b   :  { %v3359_v59 = vadd.f32 %v3320_v45, %v3279_v23 }
 0x64c   :  { %v3480_v16 = vpop.permute.xlu0 %3479  ;;  %v3404_v12 = vpop.permute.xlu1 %3403 }
 0x64d   :  { %v3441_v58 = vadd.f32 %v3404_v12, %v3361_v18  ;;  %v3439_v20 = vadd.f32 %v4993_v36, %v3359_v59 }
 0x64f   :  { %v3521_v42 = vadd.f32 %v3484_v3, %v3441_v58  ;;  %v3519_v26 = vadd.f32 %v3480_v16, %v3439_v20  ;;  %v3092_v16 = vrot.slane %v4072_v61, 2 }
 0x650   :  { %v3246_v28 = vpop.permute.xlu0 %3245  ;;  %v3482_v53 = vpop.permute.xlu1 %3481 }
 0x651   :  { %v3282_v8 = vadd.f32 %v3246_v28, %v3202_v21  ;;  %v3124_v28 = vadd.f32 %v3092_v16, %v5355_v46 }
 0x654   :  { %v3242_v22 = vpop.permute.xlu0 %3241  ;;  %v5547_v27 = vpop.permute.xlu1 %3251 }
 0x655   :  { %v3280_v37 = vadd.f32 %v3242_v22, %v3200_v40 }
 0x657   :  { %v3360_v4 = vadd.f32 %v3322_v43, %v3280_v37 }
 0x658   :  { %v3564_v0 = vpop.permute.xlu0 %3563  ;;  %v5549_v19 = vpop.permute.xlu1 %3413 }
 0x659   :  { %v3440_v9 = vadd.f32 %v3402_v57, %v3360_v4  ;;  %v3601_v47 = vadd.f32 %v3564_v0, %v3521_v42 }
 0x65b   :  { %v3520_v7 = vadd.f32 %v3482_v53, %v3440_v9  ;;  %v3627_v25 = vadd.f32 %v5450_v35, %v3601_v47 }
 0x65c   :  { %v3174_v11 = vpop.permute.xlu0 %3173  ;;  %v3248_v56 = vpop.permute.xlu1 %3247 }
 0x65d   :  { %v3600_v63 = vadd.f32 %v3562_v60, %v3520_v7  ;;  %vm3643_vm8 = vcmp.ge.f32.partialorder %v3627_v25, 0.0  ;;  %v3659_v30 = vmul.f32 0.01, %v3627_v25  ;;  %v3283_v53 = vadd.f32 %v3248_v56, %v5529_v15 }
 0x65e   :  { %v3206_v58 = vadd.f32 %v3174_v11, %v3124_v28 }
 0x65f   :  { %v3626_v48 = vadd.f32 %v5450_v35, %v3600_v63  ;;  %v3675_v55 = vsel %vm3643_vm8, %v3627_v25, %v3659_v30 }
 0x660   :  { %3692 = vst.msk [vmem:[%s5619_s9 + $0xa] sm:$0x1] %vm3681_vm14, %v3675_v55  ;;  %v3330_v31 = vpop.permute.xlu0 %3329  ;;  %v5560_v34 = vpop.permute.xlu1 %3569 }
 0x661   :  { %vm3642_vm9 = vcmp.ge.f32.partialorder %v3626_v48, 0.0  ;;  %v3658_v49 = vmul.f32 0.01, %v3626_v48 }
 0x663   :  { %v3674_v41 = vsel %vm3642_vm9, %v3626_v48, %v3658_v49 }
 0x664   :  { %3691 = vst.msk [vmem:[%s5619_s9 + $0x9] sm:$0x1] %vm3681_vm14, %v3674_v41  ;;  %v3492_v60 = vpop.permute.xlu0 %3491  ;;  %v3332_v39 = vpop.permute.xlu1 %3331 }
 0x668   :  { %v3560_v54 = vpop.permute.xlu0 %3559  ;;  %v3494_v33 = vpop.permute.xlu1 %3493 }
 0x669   :  { %v3599_v13 = vadd.f32 %v3560_v54, %v3519_v26 }
 0x66b   :  { %v3625_v38 = vadd.f32 %v5450_v35, %v3599_v13 }
 0x66c   :  { %v3170_v14 = vpop.permute.xlu0 %3169  ;;  %v3566_v52 = vpop.permute.xlu1 %3565 }
 0x66d   :  { %vm3641_vm10 = vcmp.ge.f32.partialorder %v3625_v38, 0.0  ;;  %v3657_v36 = vmul.f32 0.01, %v3625_v38  ;;  %v3204_v15 = vadd.f32 %v3170_v14, %v5394_v51 }
 0x66f   :  { %v3673_v43 = vsel %vm3641_vm10, %v3625_v38, %v3657_v36 }
 0x670   :  { %3690 = vst.msk [vmem:[%s5619_s9 + $0x8] sm:$0x1] %vm3681_vm14, %v3673_v43  ;;  %v3326_v32 = vpop.permute.xlu0 %3325  ;;  %v3172_v3 = vpop.permute.xlu1 %3171 }
 0x671   :  { %v3362_v44 = vadd.f32 %v3326_v32, %v3282_v8  ;;  %v3205_v40 = vadd.f32 %v3172_v3, %v5390_v29 }
 0x673   :  { %v3442_v6 = vadd.f32 %v5539_v5, %v3362_v44  ;;  %v3285_v46 = vadd.f32 %v5547_v27, %v3205_v40 }
 0x674   :  { %v3410_v57 = vpop.permute.xlu0 %3409  ;;  %v3328_v45 = vpop.permute.xlu1 %3327 }
 0x675   :  { %v3522_v2 = vadd.f32 %v5543_v62, %v3442_v6  ;;  %v3363_v22 = vadd.f32 %v3328_v45, %v3283_v53  ;;  %v3365_v7 = vadd.f32 %v3332_v39, %v3285_v46 }
 0x677   :  { %v3602_v50 = vadd.f32 %v3566_v52, %v3522_v2  ;;  %v3443_v0 = vadd.f32 %v5541_v1, %v3363_v22 }
 0x678   :  { %v3488_v12 = vpop.permute.xlu0 %3487  ;;  %v3412_v24 = vpop.permute.xlu1 %3411 }
 0x679   :  { %v3628_v18 = vadd.f32 %v5450_v35, %v3602_v50  ;;  %v3523_v11 = vadd.f32 %v3488_v12, %v3443_v0  ;;  %v3445_v63 = vadd.f32 %v3412_v24, %v3365_v7 }
 0x67b   :  { %vm3644_vm11 = vcmp.ge.f32.partialorder %v3628_v18, 0.0  ;;  %v3660_v5 = vmul.f32 0.01, %v3628_v18  ;;  %v3525_v49 = vadd.f32 %v3492_v60, %v3445_v63 }
 0x67c   :  { %v3254_v37 = vpop.permute.xlu0 %3253  ;;  %v3490_v62 = vpop.permute.xlu1 %3489 }
 0x67d   :  { %v3676_v4 = vsel %vm3644_vm11, %v3628_v18, %v3660_v5  ;;  %v3286_v42 = vadd.f32 %v3254_v37, %v3206_v58 }
 0x67e   :  { %3693 = vst.msk [vmem:[%s5619_s9 + $0xb] sm:$0x1] %vm3681_vm14, %v3676_v4 }
 0x67f   :  { %v3366_v29 = vadd.f32 %v5108_v10, %v3286_v42 }
 0x680   :  { %v3250_v9 = vpop.permute.xlu0 %3249  ;;  %v3574_v25 = vpop.permute.xlu1 %3573 }
 0x681   :  { %v3284_v47 = vadd.f32 %v3250_v9, %v3204_v15  ;;  %v3446_v17 = vadd.f32 %v5549_v19, %v3366_v29 }
 0x683   :  { %v3364_v56 = vadd.f32 %v3330_v31, %v3284_v47  ;;  %v3526_v23 = vadd.f32 %v3494_v33, %v3446_v17 }
 0x684   :  { %v3568_v30 = vpop.permute.xlu0 %3567 }
 0x685   :  { %v3444_v59 = vadd.f32 %v3410_v57, %v3364_v56  ;;  %v3603_v27 = vadd.f32 %v3568_v30, %v3523_v11  ;;  %v3606_v48 = vadd.f32 %v3574_v25, %v3526_v23 }
 0x687   :  { %v3524_v55 = vadd.f32 %v3490_v62, %v3444_v59  ;;  %v3629_v51 = vadd.f32 %v5450_v35, %v3603_v27  ;;  %v3632_v1 = vadd.f32 %v5450_v35, %v3606_v48 }
 0x688   :  { %v3572_v10 = vpop.permute.xlu0 %3571 }
 0x689   :  { %v3604_v20 = vadd.f32 %v5560_v34, %v3524_v55  ;;  %vm3645_vm12 = vcmp.ge.f32.partialorder %v3629_v51, 0.0  ;;  %v3661_v19 = vmul.f32 0.01, %v3629_v51  ;;  %vm3648_vm1 = vcmp.ge.f32.partialorder %v3632_v1, 0.0 }
 0x68a   :  { %v3664_v41 = vmul.f32 0.01, %v3632_v1  ;;  %v3605_v31 = vadd.f32 %v3572_v10, %v3525_v49 }
 0x68b   :  { %v3630_v39 = vadd.f32 %v5450_v35, %v3604_v20  ;;  %v3677_v26 = vsel %vm3645_vm12, %v3629_v51, %v3661_v19 }
 0x68c   :  { %3694 = vst.msk [vmem:[%s5619_s9 + $0xc] sm:$0x1] %vm3681_vm14, %v3677_v26  ;;  %v3680_v54 = vsel %vm3648_vm1, %v3632_v1, %v3664_v41  ;;  %v3631_v33 = vadd.f32 %v5450_v35, %v3605_v31 }
 0x68d   :  { %vm3646_vm13 = vcmp.ge.f32.partialorder %v3630_v39, 0.0  ;;  %v3662_v60 = vmul.f32 0.01, %v3630_v39  ;;  %3697 = vst.msk [vmem:[%s5619_s9 + $0xf] sm:$0x1] %vm3681_vm14, %v3680_v54 }
 0x68e   :  { %vm3647_vm15 = vcmp.ge.f32.partialorder %v3631_v33, 0.0  ;;  %v3663_v34 = vmul.f32 0.01, %v3631_v33 }
 0x68f   :  { %v3678_v13 = vsel %vm3646_vm13, %v3630_v39, %v3662_v60 }
 0x690   :  { %3695 = vst.msk [vmem:[%s5619_s9 + $0xd] sm:$0x1] %vm3681_vm14, %v3678_v13  ;;  %v3679_v38 = vsel %vm3647_vm15, %v3631_v33, %v3663_v34 }
 0x691   :  { %3696 = vst.msk [vmem:[%s5619_s9 + $0xe] sm:$0x1] %vm3681_vm14, %v3679_v38 }

</bundles_post_ra>
